<compile_context>
chip_gen: v7x
topology: tpu7x:2x2x1
jax: 0.10.0
libtpu: 0.0.40
codegen_flags: <defaults>
</compile_context>

<pallas_src>
import functools

import jax
import jax.numpy as jnp
from jax.experimental import pallas as pl
from jax.experimental.pallas import tpu as pltpu

COMPUTE_DTYPE = jnp.bfloat16   # MXU input dtype (2x+ f32 throughput, half the HBM traffic)
_EPS = 1e-5
_TM_MAX = 512                  # rows of the im2col matrix per grid step
_TK_MAX = 2048                 # K (reduction) slab per grid step
_LANE = 128


def _round_up(x, m):
    return (x + m - 1) // m * m


def _k_tiling(K):
    """Return (TK, K_padded)."""
    if K <= _TK_MAX:
        return K, K            # single K step, full-extent block (always legal)
    return _TK_MAX, _round_up(K, _TK_MAX)


# --------------------------- Pallas kernels ----------------------------------
def _conv_matmul_kernel(p_ref, w_ref, *rest, use_bn, act):
    """Tiled matmul with K-accumulation; epilogue emits either the activated output
    (no-BN layers) or the raw conv output + per-tile BN partial stats."""
    if use_bn:
        o_ref, stats_ref, acc_ref = rest
    else:
        o_ref, acc_ref = rest
        stats_ref = None

    k = pl.program_id(1)

    @pl.when(k == 0)
    def _init():
        acc_ref[...] = jnp.zeros_like(acc_ref)

    acc_ref[...] += jnp.dot(p_ref[...], w_ref[...],
                            preferred_element_type=jnp.float32)

    @pl.when(k == pl.num_programs(1) - 1)
    def _epilogue():
        acc = acc_ref[...]
        if use_bn:
            # Partial batch statistics for this M tile (zero-padded rows contribute 0).
            s = jnp.sum(acc, axis=0, keepdims=True)
            sq = jnp.sum(acc * acc, axis=0, keepdims=True)
            stats_ref[...] = jnp.concatenate([s, sq], axis=0).reshape(stats_ref.shape)
        out = acc
        if act == "leakyrelu":
            out = jnp.where(out > 0, out, 0.2 * out)
        elif act == "sigmoid":
            out = jax.nn.sigmoid(out)
        o_ref[...] = out.astype(o_ref.dtype)


def _bn_act_kernel(x_ref, scale_ref, bias_ref, o_ref):
    """Apply y = x*scale + bias (scale=rsqrt(var+eps), bias=-mean*scale) + LeakyReLU(0.2)."""
    y = x_ref[...] * scale_ref[...] + bias_ref[...]
    o_ref[...] = jnp.where(y > 0, y, 0.2 * y).astype(o_ref.dtype)


# --------------------------- host-side glue ----------------------------------
def _im2col(x_nhwc, ks, stride, pad):
    """Zero-pad + strided slicing to build the im2col matrix (kh, kw, cin order)."""
    N, H, W, C = x_nhwc.shape
    xp = jnp.pad(x_nhwc, ((0, 0), (pad, pad), (pad, pad), (0, 0)))
    OH = (H + 2 * pad - ks) // stride + 1
    OW = (W + 2 * pad - ks) // stride + 1
    cols = []
    for kh in range(ks):
        for kw in range(ks):
            cols.append(
                jax.lax.slice(
                    xp,
                    (0, kh, kw, 0),
                    (N, kh + stride * (OH - 1) + 1, kw + stride * (OW - 1) + 1, C),
                    (1, stride, stride, 1),
                )
            )
    p = jnp.stack(cols, axis=3)  # [N, OH, OW, ks*ks, C]
    return p.reshape(N * OH * OW, ks * ks * C), (N, OH, OW)


def prepare_params(params_oihw):
    """One-time weight prep: OIHW -> (K, Cout) -> pad K to the tiling grid and Cout
    to a multiple of 128 (lane-dense output), cast to bf16."""
    prepared = {}
    for name, w in params_oihw.items():
        cout, cin, kh, kw = w.shape
        K = kh * kw * cin
        _, Kp = _k_tiling(K)
        cout_p = _round_up(cout, _LANE)
        w2d = jnp.transpose(w, (2, 3, 1, 0)).reshape(K, cout)   # (kh,kw,cin) x cout
        w2d = jnp.pad(w2d, ((0, Kp - K), (0, cout_p - cout)))
        prepared[name] = {"w2d": w2d.astype(COMPUTE_DTYPE), "cout": cout, "ks": kh}
    return prepared


def conv_block(x_nhwc, wp, *, stride, pad, use_bn, act, out_dtype):
    w2d = wp["w2d"]                       # [Kp, Cout_p] bf16 (pre-transposed/padded)
    cout, ks = wp["cout"], wp["ks"]

    patches, (N, OH, OW) = _im2col(x_nhwc.astype(COMPUTE_DTYPE), ks, stride, pad)
    M, K = patches.shape
    Kp, cout_p = w2d.shape
    TK, Kp_check = _k_tiling(K)
    assert Kp_check == Kp

    TM = min(_TM_MAX, _round_up(M, 16))
    n_m = pl.cdiv(M, TM)
    Mp = n_m * TM
    n_k = Kp // TK
    if Mp != M or Kp != K:
        patches = jnp.pad(patches, ((0, Mp - M), (0, Kp - K)))

    conv_dtype = jnp.float32 if use_bn else out_dtype

    in_specs = [
        pl.BlockSpec((TM, TK), lambda i, k: (i, k)),       # streamed patch tiles
        pl.BlockSpec((TK, cout_p), lambda i, k: (k, 0)),   # weight slab (VMEM-resident per k)
    ]
    out_spec_main = pl.BlockSpec((TM, cout_p), lambda i, k: (i, 0))
    if use_bn:
        out_shape = (
            jax.ShapeDtypeStruct((Mp, cout_p), conv_dtype),
            jax.ShapeDtypeStruct((n_m, 2, cout_p), jnp.float32),   # per-tile (sum, sumsq)
        )
        out_specs = (out_spec_main,
                     pl.BlockSpec((1, 2, cout_p), lambda i, k: (i, 0, 0)))
    else:
        out_shape = jax.ShapeDtypeStruct((Mp, cout_p), conv_dtype)
        out_specs = out_spec_main

    result = pl.pallas_call(
        functools.partial(_conv_matmul_kernel, use_bn=use_bn,
                          act=None if use_bn else act),
        out_shape=out_shape,
        grid=(n_m, n_k),
        in_specs=in_specs,
        out_specs=out_specs,
        scratch_shapes=[pltpu.VMEM((TM, cout_p), jnp.float32)],
        compiler_params=pltpu.CompilerParams(
            dimension_semantics=("parallel", "arbitrary")),
    )(patches, w2d)

    if use_bn:
        conv_out, stats = result
        # Tiny global reduction of the per-tile statistics (in JAX, f32).
        total = jnp.sum(stats, axis=0)                 # (2, cout_p)
        mean = total[0] / M                            # padded rows contribute exactly 0
        var = jnp.maximum(total[1] / M - mean * mean, 0.0)
        inv_std = jax.lax.rsqrt(var + _EPS)
        scale = inv_std.reshape(1, cout_p)
        bias = (-mean * inv_std).reshape(1, cout_p)
        # Apply BN + LeakyReLU(0.2) (all BN layers in this module use leakyrelu).
        out = pl.pallas_call(
            _bn_act_kernel,
            out_shape=jax.ShapeDtypeStruct((Mp, cout_p), out_dtype),
            grid=(n_m,),
            in_specs=[
                pl.BlockSpec((TM, cout_p), lambda i: (i, 0)),
                pl.BlockSpec((1, cout_p), lambda i: (0, 0)),
                pl.BlockSpec((1, cout_p), lambda i: (0, 0)),
            ],
            out_specs=pl.BlockSpec((TM, cout_p), lambda i: (i, 0)),
            compiler_params=pltpu.CompilerParams(
                dimension_semantics=("parallel",)),
        )(conv_out, scale, bias)
    else:
        out = result

    out = out[:M, :cout]
    return out.reshape(N, OH, OW, cout)


def patchgan_d_70x70_forward(x1_nchw, x2_nchw, params, use_sigmoid=True):
    # torch.cat([x1, x2], dim=1) on NCHW, then the 5 conv blocks (NHWC internally).
    x = jnp.concatenate([x1_nchw, x2_nchw], axis=1)
    x = jnp.transpose(x, (0, 2, 3, 1))  # NCHW -> NHWC
    o = conv_block(x, params["w1"], stride=2, pad=1, use_bn=False,
                   act="leakyrelu", out_dtype=COMPUTE_DTYPE)
    o = conv_block(o, params["w2"], stride=2, pad=1, use_bn=True,
                   act="leakyrelu", out_dtype=COMPUTE_DTYPE)
    o = conv_block(o, params["w3"], stride=2, pad=1, use_bn=True,
                   act="leakyrelu", out_dtype=COMPUTE_DTYPE)
    o = conv_block(o, params["w4"], stride=1, pad=1, use_bn=True,
                   act="leakyrelu", out_dtype=COMPUTE_DTYPE)
    o = conv_block(o, params["w5"], stride=1, pad=1, use_bn=False,
                   act="sigmoid" if use_sigmoid else None, out_dtype=jnp.float32)
    return jnp.transpose(o.astype(jnp.float32), (0, 3, 1, 2))  # NHWC -> NCHW


# ---------------- pure-JAX f32 reference (correctness check only) -------------
def _ref_forward(x1, x2, params):
    x = jnp.concatenate([x1, x2], axis=1)

    def conv(x, w, stride, pad):
        return jax.lax.conv_general_dilated(
            x, w, (stride, stride), [(pad, pad), (pad, pad)],
            dimension_numbers=("NCHW", "OIHW", "NCHW"),
        )

    def bn(x):
        mean = x.mean(axis=(0, 2, 3), keepdims=True)
        var = jnp.square(x - mean).mean(axis=(0, 2, 3), keepdims=True)
        return (x - mean) * jax.lax.rsqrt(var + _EPS)

    def lrelu(x):
        return jnp.where(x > 0, x, 0.2 * x)

    o = lrelu(conv(x, params["w1"], 2, 1))
    o = lrelu(bn(conv(o, params["w2"], 2, 1)))
    o = lrelu(bn(conv(o, params["w3"], 2, 1)))
    o = lrelu(bn(conv(o, params["w4"], 1, 1)))
    return jax.nn.sigmoid(conv(o, params["w5"], 1, 1))


if __name__ == "__main__":
    key = jax.random.PRNGKey(0)
    ic_1, ic_2 = 2, 2
    N, H, W = 2, 32, 32  # spatial=32 so conv4/conv5 (k=4,s=1,p=1) stay valid
    ks = jax.random.split(key, 7)
    # Conv weights: N(0, 0.02), bias=False everywhere (as in the module init).
    params = {
        "w1": 0.02 * jax.random.normal(ks[0], (64, ic_1 + ic_2, 4, 4), jnp.float32),
        "w2": 0.02 * jax.random.normal(ks[1], (128, 64, 4, 4), jnp.float32),
        "w3": 0.02 * jax.random.normal(ks[2], (256, 128, 4, 4), jnp.float32),
        "w4": 0.02 * jax.random.normal(ks[3], (512, 256, 4, 4), jnp.float32),
        "w5": 0.02 * jax.random.normal(ks[4], (1, 512, 4, 4), jnp.float32),
    }
    x1 = jax.random.normal(ks[5], (N, ic_1, H, W), jnp.float32)
    x2 = jax.random.normal(ks[6], (N, ic_2, H, W), jnp.float32)

    prepared = prepare_params(params)   # one-time weight transpose/pad/cast
    fwd = jax.jit(lambda a, b: patchgan_d_70x70_forward(a, b, prepared))

    out = jax.block_until_ready(fwd(x1, x2))
    assert out.shape == (N, 1, 2, 2), out.shape

    ref = jax.block_until_ready(_ref_forward(x1, x2, params))
    # Tolerance accounts for bf16 MXU inputs through 5 layers (reference is pure f32).
    assert jnp.allclose(out, ref, atol=3e-2, rtol=3e-2), float(
        jnp.max(jnp.abs(out - ref))
    )
    print("KERNEL_OK")
</pallas_src>

<mosaic_0001>
module attributes {stable_mosaic.version = 11 : i64} {
  func.func @_conv_matmul_kernel(%arg0: i32, %arg1: i32, %arg2: memref<512x64xbf16, #tpu.memory_space<vmem>>, %arg3: memref<64x128xbf16, #tpu.memory_space<vmem>>, %arg4: memref<512x128xbf16, #tpu.memory_space<vmem>>, %arg5: memref<512x128xf32, #tpu.memory_space<vmem>>) attributes {dimension_semantics = [#tpu.dimension_semantics<parallel>, #tpu.dimension_semantics<arbitrary>], iteration_bounds = array<i64: 1, 1>, scalar_prefetch = 0 : i64, scratch_operands = 1 : i64, tpu.core_type = #tpu.core_type<tc>, window_params = [{transform_indices = @transform_0, window_bounds = array<i64: 512, 64>}, {transform_indices = @transform_1, window_bounds = array<i64: 64, 128>}, {transform_indices = @transform_2, window_bounds = array<i64: 512, 128>}]} {
    %c0_i32 = arith.constant 0 : i32
    %0 = arith.cmpi eq, %arg1, %c0_i32 : i32
    %1 = arith.extui %0 : i1 to i32
    %c0_i32_0 = arith.constant 0 : i32
    %2 = arith.cmpi ne, %1, %c0_i32_0 : i32
    scf.if %2 {
      %cst_10 = arith.constant 0.000000e+00 : f32
      %12 = vector.broadcast %cst_10 : f32 to vector<512x128xf32>
      %c0_11 = arith.constant 0 : index
      %c0_12 = arith.constant 0 : index
      %13 = vector.load %arg5[%c0_11, %c0_12] : memref<512x128xf32, #tpu.memory_space<vmem>>, vector<512x128xf32>
      tpu.vector_store %arg5[%c0_11, %c0_12], %12 {strides = array<i32>} : memref<512x128xf32, #tpu.memory_space<vmem>>, vector<512x128xf32>,
    } else {
    }
    %c0 = arith.constant 0 : index
    %c0_1 = arith.constant 0 : index
    %3 = vector.load %arg5[%c0, %c0_1] : memref<512x128xf32, #tpu.memory_space<vmem>>, vector<512x128xf32>
    %c0_2 = arith.constant 0 : index
    %c0_3 = arith.constant 0 : index
    %4 = vector.load %arg2[%c0_2, %c0_3] : memref<512x64xbf16, #tpu.memory_space<vmem>>, vector<512x64xbf16>
    %c0_4 = arith.constant 0 : index
    %c0_5 = arith.constant 0 : index
    %5 = vector.load %arg3[%c0_4, %c0_5] : memref<64x128xbf16, #tpu.memory_space<vmem>>, vector<64x128xbf16>
    %cst = arith.constant dense<0.000000e+00> : vector<512x128xf32>
    %6 = tpu.matmul %4, %5, %cst {dimension_numbers = #tpu.dot_dimension_numbers<[1], [0], [0], [1], [0, 0, 1, 1], [], []>} : vector<512x64xbf16>, vector<64x128xbf16>, vector<512x128xf32> -> vector<512x128xf32>
    %7 = arith.addf %3, %6 : vector<512x128xf32>
    %c0_6 = arith.constant 0 : index
    %c0_7 = arith.constant 0 : index
    %8 = vector.load %arg5[%c0_6, %c0_7] : memref<512x128xf32, #tpu.memory_space<vmem>>, vector<512x128xf32>
    tpu.vector_store %arg5[%c0_6, %c0_7], %7 {strides = array<i32>} : memref<512x128xf32, #tpu.memory_space<vmem>>, vector<512x128xf32>,
    %c0_i32_8 = arith.constant 0 : i32
    %9 = arith.cmpi eq, %arg1, %c0_i32_8 : i32
    %10 = arith.extui %9 : i1 to i32
    %c0_i32_9 = arith.constant 0 : i32
    %11 = arith.cmpi ne, %10, %c0_i32_9 : i32
    scf.if %11 {
      %c0_10 = arith.constant 0 : index
      %c0_11 = arith.constant 0 : index
      %12 = vector.load %arg5[%c0_10, %c0_11] : memref<512x128xf32, #tpu.memory_space<vmem>>, vector<512x128xf32>
      %cst_12 = arith.constant 0.000000e+00 : f32
      %13 = vector.broadcast %cst_12 : f32 to vector<512x128xf32>
      %14 = arith.cmpf ogt, %12, %13 : vector<512x128xf32>
      %cst_13 = arith.constant 2.000000e-01 : f32
      %15 = vector.broadcast %cst_13 : f32 to vector<512x128xf32>
      %16 = arith.mulf %15, %12 : vector<512x128xf32>
      %17 = arith.select %14, %12, %16 : vector<512x128xi1>, vector<512x128xf32>
      %18 = arith.truncf %17 : vector<512x128xf32> to vector<512x128xbf16>
      %c0_14 = arith.constant 0 : index
      %c0_15 = arith.constant 0 : index
      %19 = vector.load %arg4[%c0_14, %c0_15] : memref<512x128xbf16, #tpu.memory_space<vmem>>, vector<512x128xbf16>
      tpu.vector_store %arg4[%c0_14, %c0_15], %18 {strides = array<i32>} : memref<512x128xbf16, #tpu.memory_space<vmem>>, vector<512x128xbf16>,
    } else {
    }
    return
  }
  func.func @transform_0(%arg0: i32, %arg1: i32) -> (i32, i32) {
    %c0_i32 = arith.constant 0 : i32
    return %arg0, %arg1 : i32, i32
  }
  func.func @transform_1(%arg0: i32, %arg1: i32) -> (i32, i32) {
    %c0_i32 = arith.constant 0 : i32
    %c0_i32_0 = arith.constant 0 : i32
    return %arg1, %c0_i32 : i32, i32
  }
  func.func @transform_2(%arg0: i32, %arg1: i32) -> (i32, i32) {
    %c0_i32 = arith.constant 0 : i32
    %c0_i32_0 = arith.constant 0 : i32
    return %arg0, %c0_i32 : i32, i32
  }
}

module attributes {stable_mosaic.version = 11 : i64} {
  func.func @_conv_matmul_kernel(%arg0: i32, %arg1: i32, %arg2: memref<128x1024xbf16, #tpu.memory_space<vmem>>, %arg3: memref<1024x128xbf16, #tpu.memory_space<vmem>>, %arg4: memref<128x128xf32, #tpu.memory_space<vmem>>, %arg5: memref<1x2x128xf32, #tpu.memory_space<vmem>>, %arg6: memref<128x128xf32, #tpu.memory_space<vmem>>) attributes {dimension_semantics = [#tpu.dimension_semantics<parallel>, #tpu.dimension_semantics<arbitrary>], iteration_bounds = array<i64: 1, 1>, scalar_prefetch = 0 : i64, scratch_operands = 1 : i64, tpu.core_type = #tpu.core_type<tc>, window_params = [{transform_indices = @transform_0, window_bounds = array<i64: 128, 1024>}, {transform_indices = @transform_1, window_bounds = array<i64: 1024, 128>}, {transform_indices = @transform_2, window_bounds = array<i64: 128, 128>}, {transform_indices = @transform_3, window_bounds = array<i64: 1, 2, 128>}]} {
    %c0_i32 = arith.constant 0 : i32
    %0 = arith.cmpi eq, %arg1, %c0_i32 : i32
    %1 = arith.extui %0 : i1 to i32
    %c0_i32_0 = arith.constant 0 : i32
    %2 = arith.cmpi ne, %1, %c0_i32_0 : i32
    scf.if %2 {
      %cst_10 = arith.constant 0.000000e+00 : f32
      %12 = vector.broadcast %cst_10 : f32 to vector<128x128xf32>
      %c0_11 = arith.constant 0 : index
      %c0_12 = arith.constant 0 : index
      %13 = vector.load %arg6[%c0_11, %c0_12] : memref<128x128xf32, #tpu.memory_space<vmem>>, vector<128x128xf32>
      tpu.vector_store %arg6[%c0_11, %c0_12], %12 {strides = array<i32>} : memref<128x128xf32, #tpu.memory_space<vmem>>, vector<128x128xf32>,
    } else {
    }
    %c0 = arith.constant 0 : index
    %c0_1 = arith.constant 0 : index
    %3 = vector.load %arg6[%c0, %c0_1] : memref<128x128xf32, #tpu.memory_space<vmem>>, vector<128x128xf32>
    %c0_2 = arith.constant 0 : index
    %c0_3 = arith.constant 0 : index
    %4 = vector.load %arg2[%c0_2, %c0_3] : memref<128x1024xbf16, #tpu.memory_space<vmem>>, vector<128x1024xbf16>
    %c0_4 = arith.constant 0 : index
    %c0_5 = arith.constant 0 : index
    %5 = vector.load %arg3[%c0_4, %c0_5] : memref<1024x128xbf16, #tpu.memory_space<vmem>>, vector<1024x128xbf16>
    %cst = arith.constant dense<0.000000e+00> : vector<128x128xf32>
    %6 = tpu.matmul %4, %5, %cst {dimension_numbers = #tpu.dot_dimension_numbers<[1], [0], [0], [1], [0, 0, 1, 1], [], []>} : vector<128x1024xbf16>, vector<1024x128xbf16>, vector<128x128xf32> -> vector<128x128xf32>
    %7 = arith.addf %3, %6 : vector<128x128xf32>
    %c0_6 = arith.constant 0 : index
    %c0_7 = arith.constant 0 : index
    %8 = vector.load %arg6[%c0_6, %c0_7] : memref<128x128xf32, #tpu.memory_space<vmem>>, vector<128x128xf32>
    tpu.vector_store %arg6[%c0_6, %c0_7], %7 {strides = array<i32>} : memref<128x128xf32, #tpu.memory_space<vmem>>, vector<128x128xf32>,
    %c0_i32_8 = arith.constant 0 : i32
    %9 = arith.cmpi eq, %arg1, %c0_i32_8 : i32
    %10 = arith.extui %9 : i1 to i32
    %c0_i32_9 = arith.constant 0 : i32
    %11 = arith.cmpi ne, %10, %c0_i32_9 : i32
    scf.if %11 {
      %c0_10 = arith.constant 0 : index
      %c0_11 = arith.constant 0 : index
      %12 = vector.load %arg6[%c0_10, %c0_11] : memref<128x128xf32, #tpu.memory_space<vmem>>, vector<128x128xf32>
      %cst_12 = arith.constant dense<0.000000e+00> : vector<128xf32>
      %13 = vector.multi_reduction <add>, %12, %cst_12 [0] : vector<128x128xf32> to vector<128xf32>
      %14 = vector.shape_cast %13 : vector<128xf32> to vector<1x128xf32>
      %15 = arith.mulf %12, %12 : vector<128x128xf32>
      %cst_13 = arith.constant dense<0.000000e+00> : vector<128xf32>
      %16 = vector.multi_reduction <add>, %15, %cst_13 [0] : vector<128x128xf32> to vector<128xf32>
      %17 = vector.shape_cast %16 : vector<128xf32> to vector<1x128xf32>
      %18 = tpu.concatenate %14, %17 in 0 : vector<1x128xf32>, vector<1x128xf32> -> vector<2x128xf32>
      %19 = vector.shape_cast %18 : vector<2x128xf32> to vector<1x2x128xf32>
      %c0_14 = arith.constant 0 : index
      %c0_15 = arith.constant 0 : index
      %c0_16 = arith.constant 0 : index
      %20 = vector.load %arg5[%c0_14, %c0_15, %c0_16] : memref<1x2x128xf32, #tpu.memory_space<vmem>>, vector<1x2x128xf32>
      tpu.vector_store %arg5[%c0_14, %c0_15, %c0_16], %19 {strides = array<i32>} : memref<1x2x128xf32, #tpu.memory_space<vmem>>, vector<1x2x128xf32>,
      %c0_17 = arith.constant 0 : index
      %c0_18 = arith.constant 0 : index
      %21 = vector.load %arg4[%c0_17, %c0_18] : memref<128x128xf32, #tpu.memory_space<vmem>>, vector<128x128xf32>
      tpu.vector_store %arg4[%c0_17, %c0_18], %12 {strides = array<i32>} : memref<128x128xf32, #tpu.memory_space<vmem>>, vector<128x128xf32>,
    } else {
    }
    return
  }
  func.func @transform_0(%arg0: i32, %arg1: i32) -> (i32, i32) {
    %c0_i32 = arith.constant 0 : i32
    return %arg0, %arg1 : i32, i32
  }
  func.func @transform_1(%arg0: i32, %arg1: i32) -> (i32, i32) {
    %c0_i32 = arith.constant 0 : i32
    %c0_i32_0 = arith.constant 0 : i32
    return %arg1, %c0_i32 : i32, i32
  }
  func.func @transform_2(%arg0: i32, %arg1: i32) -> (i32, i32) {
    %c0_i32 = arith.constant 0 : i32
    %c0_i32_0 = arith.constant 0 : i32
    return %arg0, %c0_i32 : i32, i32
  }
  func.func @transform_3(%arg0: i32, %arg1: i32) -> (i32, i32, i32) {
    %c0_i32 = arith.constant 0 : i32
    %c0_i32_0 = arith.constant 0 : i32
    %c0_i32_1 = arith.constant 0 : i32
    return %arg0, %c0_i32, %c0_i32_0 : i32, i32, i32
  }
}

module attributes {stable_mosaic.version = 11 : i64} {
  func.func @_bn_act_kernel(%arg0: i32, %arg1: memref<128x128xf32, #tpu.memory_space<vmem>>, %arg2: memref<1x128xf32, #tpu.memory_space<vmem>>, %arg3: memref<1x128xf32, #tpu.memory_space<vmem>>, %arg4: memref<128x128xbf16, #tpu.memory_space<vmem>>) attributes {dimension_semantics = [#tpu.dimension_semantics<parallel>], iteration_bounds = array<i64: 1>, scalar_prefetch = 0 : i64, scratch_operands = 0 : i64, tpu.core_type = #tpu.core_type<tc>, window_params = [{transform_indices = @transform_0, window_bounds = array<i64: 128, 128>}, {pipeline_mode = #tpu.pipeline_mode<synchronous>, transform_indices = @transform_1, window_bounds = array<i64: 1, 128>}, {pipeline_mode = #tpu.pipeline_mode<synchronous>, transform_indices = @transform_2, window_bounds = array<i64: 1, 128>}, {transform_indices = @transform_3, window_bounds = array<i64: 128, 128>}]} {
    %c0 = arith.constant 0 : index
    %c0_0 = arith.constant 0 : index
    %0 = vector.load %arg1[%c0, %c0_0] : memref<128x128xf32, #tpu.memory_space<vmem>>, vector<128x128xf32>
    %c0_1 = arith.constant 0 : index
    %c0_2 = arith.constant 0 : index
    %1 = vector.load %arg2[%c0_1, %c0_2] : memref<1x128xf32, #tpu.memory_space<vmem>>, vector<1x128xf32>
    %2 = vector.broadcast %1 : vector<1x128xf32> to vector<128x128xf32>
    %3 = arith.mulf %0, %2 : vector<128x128xf32>
    %c0_3 = arith.constant 0 : index
    %c0_4 = arith.constant 0 : index
    %4 = vector.load %arg3[%c0_3, %c0_4] : memref<1x128xf32, #tpu.memory_space<vmem>>, vector<1x128xf32>
    %5 = vector.broadcast %4 : vector<1x128xf32> to vector<128x128xf32>
    %6 = arith.addf %3, %5 : vector<128x128xf32>
    %cst = arith.constant 0.000000e+00 : f32
    %7 = vector.broadcast %cst : f32 to vector<128x128xf32>
    %8 = arith.cmpf ogt, %6, %7 : vector<128x128xf32>
    %cst_5 = arith.constant 2.000000e-01 : f32
    %9 = vector.broadcast %cst_5 : f32 to vector<128x128xf32>
    %10 = arith.mulf %9, %6 : vector<128x128xf32>
    %11 = arith.select %8, %6, %10 : vector<128x128xi1>, vector<128x128xf32>
    %12 = arith.truncf %11 : vector<128x128xf32> to vector<128x128xbf16>
    %c0_6 = arith.constant 0 : index
    %c0_7 = arith.constant 0 : index
    %13 = vector.load %arg4[%c0_6, %c0_7] : memref<128x128xbf16, #tpu.memory_space<vmem>>, vector<128x128xbf16>
    tpu.vector_store %arg4[%c0_6, %c0_7], %12 {strides = array<i32>} : memref<128x128xbf16, #tpu.memory_space<vmem>>, vector<128x128xbf16>,
    return
  }
  func.func @transform_0(%arg0: i32) -> (i32, i32) {
    %c0_i32 = arith.constant 0 : i32
    %c0_i32_0 = arith.constant 0 : i32
    return %arg0, %c0_i32 : i32, i32
  }
  func.func @transform_1(%arg0: i32) -> (i32, i32) {
    %c0_i32 = arith.constant 0 : i32
    %c0_i32_0 = arith.constant 0 : i32
    %c0_i32_1 = arith.constant 0 : i32
    return %c0_i32, %c0_i32_0 : i32, i32
  }
  func.func @transform_2(%arg0: i32) -> (i32, i32) {
    %c0_i32 = arith.constant 0 : i32
    %c0_i32_0 = arith.constant 0 : i32
    %c0_i32_1 = arith.constant 0 : i32
    return %c0_i32, %c0_i32_0 : i32, i32
  }
  func.func @transform_3(%arg0: i32) -> (i32, i32) {
    %c0_i32 = arith.constant 0 : i32
    %c0_i32_0 = arith.constant 0 : i32
    return %arg0, %c0_i32 : i32, i32
  }
}

module attributes {stable_mosaic.version = 11 : i64} {
  func.func @_conv_matmul_kernel(%arg0: i32, %arg1: i32, %arg2: memref<32x2048xbf16, #tpu.memory_space<vmem>>, %arg3: memref<2048x256xbf16, #tpu.memory_space<vmem>>, %arg4: memref<32x256xf32, #tpu.memory_space<vmem>>, %arg5: memref<1x2x256xf32, #tpu.memory_space<vmem>>, %arg6: memref<32x256xf32, #tpu.memory_space<vmem>>) attributes {dimension_semantics = [#tpu.dimension_semantics<parallel>, #tpu.dimension_semantics<arbitrary>], iteration_bounds = array<i64: 1, 1>, scalar_prefetch = 0 : i64, scratch_operands = 1 : i64, tpu.core_type = #tpu.core_type<tc>, window_params = [{transform_indices = @transform_0, window_bounds = array<i64: 32, 2048>}, {transform_indices = @transform_1, window_bounds = array<i64: 2048, 256>}, {transform_indices = @transform_2, window_bounds = array<i64: 32, 256>}, {transform_indices = @transform_3, window_bounds = array<i64: 1, 2, 256>}]} {
    %c0_i32 = arith.constant 0 : i32
    %0 = arith.cmpi eq, %arg1, %c0_i32 : i32
    %1 = arith.extui %0 : i1 to i32
    %c0_i32_0 = arith.constant 0 : i32
    %2 = arith.cmpi ne, %1, %c0_i32_0 : i32
    scf.if %2 {
      %cst_10 = arith.constant 0.000000e+00 : f32
      %12 = vector.broadcast %cst_10 : f32 to vector<32x256xf32>
      %c0_11 = arith.constant 0 : index
      %c0_12 = arith.constant 0 : index
      %13 = vector.load %arg6[%c0_11, %c0_12] : memref<32x256xf32, #tpu.memory_space<vmem>>, vector<32x256xf32>
      tpu.vector_store %arg6[%c0_11, %c0_12], %12 {strides = array<i32>} : memref<32x256xf32, #tpu.memory_space<vmem>>, vector<32x256xf32>,
    } else {
    }
    %c0 = arith.constant 0 : index
    %c0_1 = arith.constant 0 : index
    %3 = vector.load %arg6[%c0, %c0_1] : memref<32x256xf32, #tpu.memory_space<vmem>>, vector<32x256xf32>
    %c0_2 = arith.constant 0 : index
    %c0_3 = arith.constant 0 : index
    %4 = vector.load %arg2[%c0_2, %c0_3] : memref<32x2048xbf16, #tpu.memory_space<vmem>>, vector<32x2048xbf16>
    %c0_4 = arith.constant 0 : index
    %c0_5 = arith.constant 0 : index
    %5 = vector.load %arg3[%c0_4, %c0_5] : memref<2048x256xbf16, #tpu.memory_space<vmem>>, vector<2048x256xbf16>
    %cst = arith.constant dense<0.000000e+00> : vector<32x256xf32>
    %6 = tpu.matmul %4, %5, %cst {dimension_numbers = #tpu.dot_dimension_numbers<[1], [0], [0], [1], [0, 0, 1, 1], [], []>} : vector<32x2048xbf16>, vector<2048x256xbf16>, vector<32x256xf32> -> vector<32x256xf32>
    %7 = arith.addf %3, %6 : vector<32x256xf32>
    %c0_6 = arith.constant 0 : index
    %c0_7 = arith.constant 0 : index
    %8 = vector.load %arg6[%c0_6, %c0_7] : memref<32x256xf32, #tpu.memory_space<vmem>>, vector<32x256xf32>
    tpu.vector_store %arg6[%c0_6, %c0_7], %7 {strides = array<i32>} : memref<32x256xf32, #tpu.memory_space<vmem>>, vector<32x256xf32>,
    %c0_i32_8 = arith.constant 0 : i32
    %9 = arith.cmpi eq, %arg1, %c0_i32_8 : i32
    %10 = arith.extui %9 : i1 to i32
    %c0_i32_9 = arith.constant 0 : i32
    %11 = arith.cmpi ne, %10, %c0_i32_9 : i32
    scf.if %11 {
      %c0_10 = arith.constant 0 : index
      %c0_11 = arith.constant 0 : index
      %12 = vector.load %arg6[%c0_10, %c0_11] : memref<32x256xf32, #tpu.memory_space<vmem>>, vector<32x256xf32>
      %cst_12 = arith.constant dense<0.000000e+00> : vector<256xf32>
      %13 = vector.multi_reduction <add>, %12, %cst_12 [0] : vector<32x256xf32> to vector<256xf32>
      %14 = vector.shape_cast %13 : vector<256xf32> to vector<1x256xf32>
      %15 = arith.mulf %12, %12 : vector<32x256xf32>
      %cst_13 = arith.constant dense<0.000000e+00> : vector<256xf32>
      %16 = vector.multi_reduction <add>, %15, %cst_13 [0] : vector<32x256xf32> to vector<256xf32>
      %17 = vector.shape_cast %16 : vector<256xf32> to vector<1x256xf32>
      %18 = tpu.concatenate %14, %17 in 0 : vector<1x256xf32>, vector<1x256xf32> -> vector<2x256xf32>
      %19 = vector.shape_cast %18 : vector<2x256xf32> to vector<1x2x256xf32>
      %c0_14 = arith.constant 0 : index
      %c0_15 = arith.constant 0 : index
      %c0_16 = arith.constant 0 : index
      %20 = vector.load %arg5[%c0_14, %c0_15, %c0_16] : memref<1x2x256xf32, #tpu.memory_space<vmem>>, vector<1x2x256xf32>
      tpu.vector_store %arg5[%c0_14, %c0_15, %c0_16], %19 {strides = array<i32>} : memref<1x2x256xf32, #tpu.memory_space<vmem>>, vector<1x2x256xf32>,
      %c0_17 = arith.constant 0 : index
      %c0_18 = arith.constant 0 : index
      %21 = vector.load %arg4[%c0_17, %c0_18] : memref<32x256xf32, #tpu.memory_space<vmem>>, vector<32x256xf32>
      tpu.vector_store %arg4[%c0_17, %c0_18], %12 {strides = array<i32>} : memref<32x256xf32, #tpu.memory_space<vmem>>, vector<32x256xf32>,
    } else {
    }
    return
  }
  func.func @transform_0(%arg0: i32, %arg1: i32) -> (i32, i32) {
    %c0_i32 = arith.constant 0 : i32
    return %arg0, %arg1 : i32, i32
  }
  func.func @transform_1(%arg0: i32, %arg1: i32) -> (i32, i32) {
    %c0_i32 = arith.constant 0 : i32
    %c0_i32_0 = arith.constant 0 : i32
    return %arg1, %c0_i32 : i32, i32
  }
  func.func @transform_2(%arg0: i32, %arg1: i32) -> (i32, i32) {
    %c0_i32 = arith.constant 0 : i32
    %c0_i32_0 = arith.constant 0 : i32
    return %arg0, %c0_i32 : i32, i32
  }
  func.func @transform_3(%arg0: i32, %arg1: i32) -> (i32, i32, i32) {
    %c0_i32 = arith.constant 0 : i32
    %c0_i32_0 = arith.constant 0 : i32
    %c0_i32_1 = arith.constant 0 : i32
    return %arg0, %c0_i32, %c0_i32_0 : i32, i32, i32
  }
}

module attributes {stable_mosaic.version = 11 : i64} {
  func.func @_bn_act_kernel(%arg0: i32, %arg1: memref<32x256xf32, #tpu.memory_space<vmem>>, %arg2: memref<1x256xf32, #tpu.memory_space<vmem>>, %arg3: memref<1x256xf32, #tpu.memory_space<vmem>>, %arg4: memref<32x256xbf16, #tpu.memory_space<vmem>>) attributes {dimension_semantics = [#tpu.dimension_semantics<parallel>], iteration_bounds = array<i64: 1>, scalar_prefetch = 0 : i64, scratch_operands = 0 : i64, tpu.core_type = #tpu.core_type<tc>, window_params = [{transform_indices = @transform_0, window_bounds = array<i64: 32, 256>}, {pipeline_mode = #tpu.pipeline_mode<synchronous>, transform_indices = @transform_1, window_bounds = array<i64: 1, 256>}, {pipeline_mode = #tpu.pipeline_mode<synchronous>, transform_indices = @transform_2, window_bounds = array<i64: 1, 256>}, {transform_indices = @transform_3, window_bounds = array<i64: 32, 256>}]} {
    %c0 = arith.constant 0 : index
    %c0_0 = arith.constant 0 : index
    %0 = vector.load %arg1[%c0, %c0_0] : memref<32x256xf32, #tpu.memory_space<vmem>>, vector<32x256xf32>
    %c0_1 = arith.constant 0 : index
    %c0_2 = arith.constant 0 : index
    %1 = vector.load %arg2[%c0_1, %c0_2] : memref<1x256xf32, #tpu.memory_space<vmem>>, vector<1x256xf32>
    %2 = vector.broadcast %1 : vector<1x256xf32> to vector<32x256xf32>
    %3 = arith.mulf %0, %2 : vector<32x256xf32>
    %c0_3 = arith.constant 0 : index
    %c0_4 = arith.constant 0 : index
    %4 = vector.load %arg3[%c0_3, %c0_4] : memref<1x256xf32, #tpu.memory_space<vmem>>, vector<1x256xf32>
    %5 = vector.broadcast %4 : vector<1x256xf32> to vector<32x256xf32>
    %6 = arith.addf %3, %5 : vector<32x256xf32>
    %cst = arith.constant 0.000000e+00 : f32
    %7 = vector.broadcast %cst : f32 to vector<32x256xf32>
    %8 = arith.cmpf ogt, %6, %7 : vector<32x256xf32>
    %cst_5 = arith.constant 2.000000e-01 : f32
    %9 = vector.broadcast %cst_5 : f32 to vector<32x256xf32>
    %10 = arith.mulf %9, %6 : vector<32x256xf32>
    %11 = arith.select %8, %6, %10 : vector<32x256xi1>, vector<32x256xf32>
    %12 = arith.truncf %11 : vector<32x256xf32> to vector<32x256xbf16>
    %c0_6 = arith.constant 0 : index
    %c0_7 = arith.constant 0 : index
    %13 = vector.load %arg4[%c0_6, %c0_7] : memref<32x256xbf16, #tpu.memory_space<vmem>>, vector<32x256xbf16>
    tpu.vector_store %arg4[%c0_6, %c0_7], %12 {strides = array<i32>} : memref<32x256xbf16, #tpu.memory_space<vmem>>, vector<32x256xbf16>,
    return
  }
  func.func @transform_0(%arg0: i32) -> (i32, i32) {
    %c0_i32 = arith.constant 0 : i32
    %c0_i32_0 = arith.constant 0 : i32
    return %arg0, %c0_i32 : i32, i32
  }
  func.func @transform_1(%arg0: i32) -> (i32, i32) {
    %c0_i32 = arith.constant 0 : i32
    %c0_i32_0 = arith.constant 0 : i32
    %c0_i32_1 = arith.constant 0 : i32
    return %c0_i32, %c0_i32_0 : i32, i32
  }
  func.func @transform_2(%arg0: i32) -> (i32, i32) {
    %c0_i32 = arith.constant 0 : i32
    %c0_i32_0 = arith.constant 0 : i32
    %c0_i32_1 = arith.constant 0 : i32
    return %c0_i32, %c0_i32_0 : i32, i32
  }
  func.func @transform_3(%arg0: i32) -> (i32, i32) {
    %c0_i32 = arith.constant 0 : i32
    %c0_i32_0 = arith.constant 0 : i32
    return %arg0, %c0_i32 : i32, i32
  }
}

module attributes {stable_mosaic.version = 11 : i64} {
  func.func @_conv_matmul_kernel(%arg0: i32, %arg1: i32, %arg2: memref<32x2048xbf16, #tpu.memory_space<vmem>>, %arg3: memref<2048x512xbf16, #tpu.memory_space<vmem>>, %arg4: memref<32x512xf32, #tpu.memory_space<vmem>>, %arg5: memref<1x2x512xf32, #tpu.memory_space<vmem>>, %arg6: memref<32x512xf32, #tpu.memory_space<vmem>>) attributes {dimension_semantics = [#tpu.dimension_semantics<parallel>, #tpu.dimension_semantics<arbitrary>], iteration_bounds = array<i64: 1, 2>, scalar_prefetch = 0 : i64, scratch_operands = 1 : i64, tpu.core_type = #tpu.core_type<tc>, window_params = [{transform_indices = @transform_0, window_bounds = array<i64: 32, 2048>}, {transform_indices = @transform_1, window_bounds = array<i64: 2048, 512>}, {transform_indices = @transform_2, window_bounds = array<i64: 32, 512>}, {transform_indices = @transform_3, window_bounds = array<i64: 1, 2, 512>}]} {
    %c0_i32 = arith.constant 0 : i32
    %0 = arith.cmpi eq, %arg1, %c0_i32 : i32
    %1 = arith.extui %0 : i1 to i32
    %c0_i32_0 = arith.constant 0 : i32
    %2 = arith.cmpi ne, %1, %c0_i32_0 : i32
    scf.if %2 {
      %cst_9 = arith.constant 0.000000e+00 : f32
      %12 = vector.broadcast %cst_9 : f32 to vector<32x512xf32>
      %c0_10 = arith.constant 0 : index
      %c0_11 = arith.constant 0 : index
      %13 = vector.load %arg6[%c0_10, %c0_11] : memref<32x512xf32, #tpu.memory_space<vmem>>, vector<32x512xf32>
      tpu.vector_store %arg6[%c0_10, %c0_11], %12 {strides = array<i32>} : memref<32x512xf32, #tpu.memory_space<vmem>>, vector<32x512xf32>,
    } else {
    }
    %c0 = arith.constant 0 : index
    %c0_1 = arith.constant 0 : index
    %3 = vector.load %arg6[%c0, %c0_1] : memref<32x512xf32, #tpu.memory_space<vmem>>, vector<32x512xf32>
    %c0_2 = arith.constant 0 : index
    %c0_3 = arith.constant 0 : index
    %4 = vector.load %arg2[%c0_2, %c0_3] : memref<32x2048xbf16, #tpu.memory_space<vmem>>, vector<32x2048xbf16>
    %c0_4 = arith.constant 0 : index
    %c0_5 = arith.constant 0 : index
    %5 = vector.load %arg3[%c0_4, %c0_5] : memref<2048x512xbf16, #tpu.memory_space<vmem>>, vector<2048x512xbf16>
    %cst = arith.constant dense<0.000000e+00> : vector<32x512xf32>
    %6 = tpu.matmul %4, %5, %cst {dimension_numbers = #tpu.dot_dimension_numbers<[1], [0], [0], [1], [0, 0, 1, 1], [], []>} : vector<32x2048xbf16>, vector<2048x512xbf16>, vector<32x512xf32> -> vector<32x512xf32>
    %7 = arith.addf %3, %6 : vector<32x512xf32>
    %c0_6 = arith.constant 0 : index
    %c0_7 = arith.constant 0 : index
    %8 = vector.load %arg6[%c0_6, %c0_7] : memref<32x512xf32, #tpu.memory_space<vmem>>, vector<32x512xf32>
    tpu.vector_store %arg6[%c0_6, %c0_7], %7 {strides = array<i32>} : memref<32x512xf32, #tpu.memory_space<vmem>>, vector<32x512xf32>,
    %c1_i32 = arith.constant 1 : i32
    %9 = arith.cmpi eq, %arg1, %c1_i32 : i32
    %10 = arith.extui %9 : i1 to i32
    %c0_i32_8 = arith.constant 0 : i32
    %11 = arith.cmpi ne, %10, %c0_i32_8 : i32
    scf.if %11 {
      %c0_9 = arith.constant 0 : index
      %c0_10 = arith.constant 0 : index
      %12 = vector.load %arg6[%c0_9, %c0_10] : memref<32x512xf32, #tpu.memory_space<vmem>>, vector<32x512xf32>
      %cst_11 = arith.constant dense<0.000000e+00> : vector<512xf32>
      %13 = vector.multi_reduction <add>, %12, %cst_11 [0] : vector<32x512xf32> to vector<512xf32>
      %14 = vector.shape_cast %13 : vector<512xf32> to vector<1x512xf32>
      %15 = arith.mulf %12, %12 : vector<32x512xf32>
      %cst_12 = arith.constant dense<0.000000e+00> : vector<512xf32>
      %16 = vector.multi_reduction <add>, %15, %cst_12 [0] : vector<32x512xf32> to vector<512xf32>
      %17 = vector.shape_cast %16 : vector<512xf32> to vector<1x512xf32>
      %18 = tpu.concatenate %14, %17 in 0 : vector<1x512xf32>, vector<1x512xf32> -> vector<2x512xf32>
      %19 = vector.shape_cast %18 : vector<2x512xf32> to vector<1x2x512xf32>
      %c0_13 = arith.constant 0 : index
      %c0_14 = arith.constant 0 : index
      %c0_15 = arith.constant 0 : index
      %20 = vector.load %arg5[%c0_13, %c0_14, %c0_15] : memref<1x2x512xf32, #tpu.memory_space<vmem>>, vector<1x2x512xf32>
      tpu.vector_store %arg5[%c0_13, %c0_14, %c0_15], %19 {strides = array<i32>} : memref<1x2x512xf32, #tpu.memory_space<vmem>>, vector<1x2x512xf32>,
      %c0_16 = arith.constant 0 : index
      %c0_17 = arith.constant 0 : index
      %21 = vector.load %arg4[%c0_16, %c0_17] : memref<32x512xf32, #tpu.memory_space<vmem>>, vector<32x512xf32>
      tpu.vector_store %arg4[%c0_16, %c0_17], %12 {strides = array<i32>} : memref<32x512xf32, #tpu.memory_space<vmem>>, vector<32x512xf32>,
    } else {
    }
    return
  }
  func.func @transform_0(%arg0: i32, %arg1: i32) -> (i32, i32) {
    %c0_i32 = arith.constant 0 : i32
    return %arg0, %arg1 : i32, i32
  }
  func.func @transform_1(%arg0: i32, %arg1: i32) -> (i32, i32) {
    %c0_i32 = arith.constant 0 : i32
    %c0_i32_0 = arith.constant 0 : i32
    return %arg1, %c0_i32 : i32, i32
  }
  func.func @transform_2(%arg0: i32, %arg1: i32) -> (i32, i32) {
    %c0_i32 = arith.constant 0 : i32
    %c0_i32_0 = arith.constant 0 : i32
    return %arg0, %c0_i32 : i32, i32
  }
  func.func @transform_3(%arg0: i32, %arg1: i32) -> (i32, i32, i32) {
    %c0_i32 = arith.constant 0 : i32
    %c0_i32_0 = arith.constant 0 : i32
    %c0_i32_1 = arith.constant 0 : i32
    return %arg0, %c0_i32, %c0_i32_0 : i32, i32, i32
  }
}

module attributes {stable_mosaic.version = 11 : i64} {
  func.func @_bn_act_kernel(%arg0: i32, %arg1: memref<32x512xf32, #tpu.memory_space<vmem>>, %arg2: memref<1x512xf32, #tpu.memory_space<vmem>>, %arg3: memref<1x512xf32, #tpu.memory_space<vmem>>, %arg4: memref<32x512xbf16, #tpu.memory_space<vmem>>) attributes {dimension_semantics = [#tpu.dimension_semantics<parallel>], iteration_bounds = array<i64: 1>, scalar_prefetch = 0 : i64, scratch_operands = 0 : i64, tpu.core_type = #tpu.core_type<tc>, window_params = [{transform_indices = @transform_0, window_bounds = array<i64: 32, 512>}, {pipeline_mode = #tpu.pipeline_mode<synchronous>, transform_indices = @transform_1, window_bounds = array<i64: 1, 512>}, {pipeline_mode = #tpu.pipeline_mode<synchronous>, transform_indices = @transform_2, window_bounds = array<i64: 1, 512>}, {transform_indices = @transform_3, window_bounds = array<i64: 32, 512>}]} {
    %c0 = arith.constant 0 : index
    %c0_0 = arith.constant 0 : index
    %0 = vector.load %arg1[%c0, %c0_0] : memref<32x512xf32, #tpu.memory_space<vmem>>, vector<32x512xf32>
    %c0_1 = arith.constant 0 : index
    %c0_2 = arith.constant 0 : index
    %1 = vector.load %arg2[%c0_1, %c0_2] : memref<1x512xf32, #tpu.memory_space<vmem>>, vector<1x512xf32>
    %2 = vector.broadcast %1 : vector<1x512xf32> to vector<32x512xf32>
    %3 = arith.mulf %0, %2 : vector<32x512xf32>
    %c0_3 = arith.constant 0 : index
    %c0_4 = arith.constant 0 : index
    %4 = vector.load %arg3[%c0_3, %c0_4] : memref<1x512xf32, #tpu.memory_space<vmem>>, vector<1x512xf32>
    %5 = vector.broadcast %4 : vector<1x512xf32> to vector<32x512xf32>
    %6 = arith.addf %3, %5 : vector<32x512xf32>
    %cst = arith.constant 0.000000e+00 : f32
    %7 = vector.broadcast %cst : f32 to vector<32x512xf32>
    %8 = arith.cmpf ogt, %6, %7 : vector<32x512xf32>
    %cst_5 = arith.constant 2.000000e-01 : f32
    %9 = vector.broadcast %cst_5 : f32 to vector<32x512xf32>
    %10 = arith.mulf %9, %6 : vector<32x512xf32>
    %11 = arith.select %8, %6, %10 : vector<32x512xi1>, vector<32x512xf32>
    %12 = arith.truncf %11 : vector<32x512xf32> to vector<32x512xbf16>
    %c0_6 = arith.constant 0 : index
    %c0_7 = arith.constant 0 : index
    %13 = vector.load %arg4[%c0_6, %c0_7] : memref<32x512xbf16, #tpu.memory_space<vmem>>, vector<32x512xbf16>
    tpu.vector_store %arg4[%c0_6, %c0_7], %12 {strides = array<i32>} : memref<32x512xbf16, #tpu.memory_space<vmem>>, vector<32x512xbf16>,
    return
  }
  func.func @transform_0(%arg0: i32) -> (i32, i32) {
    %c0_i32 = arith.constant 0 : i32
    %c0_i32_0 = arith.constant 0 : i32
    return %arg0, %c0_i32 : i32, i32
  }
  func.func @transform_1(%arg0: i32) -> (i32, i32) {
    %c0_i32 = arith.constant 0 : i32
    %c0_i32_0 = arith.constant 0 : i32
    %c0_i32_1 = arith.constant 0 : i32
    return %c0_i32, %c0_i32_0 : i32, i32
  }
  func.func @transform_2(%arg0: i32) -> (i32, i32) {
    %c0_i32 = arith.constant 0 : i32
    %c0_i32_0 = arith.constant 0 : i32
    %c0_i32_1 = arith.constant 0 : i32
    return %c0_i32, %c0_i32_0 : i32, i32
  }
  func.func @transform_3(%arg0: i32) -> (i32, i32) {
    %c0_i32 = arith.constant 0 : i32
    %c0_i32_0 = arith.constant 0 : i32
    return %arg0, %c0_i32 : i32, i32
  }
}

module attributes {stable_mosaic.version = 11 : i64} {
  func.func @_conv_matmul_kernel(%arg0: i32, %arg1: i32, %arg2: memref<16x2048xbf16, #tpu.memory_space<vmem>>, %arg3: memref<2048x128xbf16, #tpu.memory_space<vmem>>, %arg4: memref<16x128xf32, #tpu.memory_space<vmem>>, %arg5: memref<16x128xf32, #tpu.memory_space<vmem>>) attributes {dimension_semantics = [#tpu.dimension_semantics<parallel>, #tpu.dimension_semantics<arbitrary>], iteration_bounds = array<i64: 1, 4>, scalar_prefetch = 0 : i64, scratch_operands = 1 : i64, tpu.core_type = #tpu.core_type<tc>, window_params = [{transform_indices = @transform_0, window_bounds = array<i64: 16, 2048>}, {transform_indices = @transform_1, window_bounds = array<i64: 2048, 128>}, {transform_indices = @transform_2, window_bounds = array<i64: 16, 128>}]} {
    %c0_i32 = arith.constant 0 : i32
    %0 = arith.cmpi eq, %arg1, %c0_i32 : i32
    %1 = arith.extui %0 : i1 to i32
    %c0_i32_0 = arith.constant 0 : i32
    %2 = arith.cmpi ne, %1, %c0_i32_0 : i32
    scf.if %2 {
      %cst_9 = arith.constant 0.000000e+00 : f32
      %12 = vector.broadcast %cst_9 : f32 to vector<16x128xf32>
      %c0_10 = arith.constant 0 : index
      %c0_11 = arith.constant 0 : index
      %13 = vector.load %arg5[%c0_10, %c0_11] : memref<16x128xf32, #tpu.memory_space<vmem>>, vector<16x128xf32>
      tpu.vector_store %arg5[%c0_10, %c0_11], %12 {strides = array<i32>} : memref<16x128xf32, #tpu.memory_space<vmem>>, vector<16x128xf32>,
    } else {
    }
    %c0 = arith.constant 0 : index
    %c0_1 = arith.constant 0 : index
    %3 = vector.load %arg5[%c0, %c0_1] : memref<16x128xf32, #tpu.memory_space<vmem>>, vector<16x128xf32>
    %c0_2 = arith.constant 0 : index
    %c0_3 = arith.constant 0 : index
    %4 = vector.load %arg2[%c0_2, %c0_3] : memref<16x2048xbf16, #tpu.memory_space<vmem>>, vector<16x2048xbf16>
    %c0_4 = arith.constant 0 : index
    %c0_5 = arith.constant 0 : index
    %5 = vector.load %arg3[%c0_4, %c0_5] : memref<2048x128xbf16, #tpu.memory_space<vmem>>, vector<2048x128xbf16>
    %cst = arith.constant dense<0.000000e+00> : vector<16x128xf32>
    %6 = tpu.matmul %4, %5, %cst {dimension_numbers = #tpu.dot_dimension_numbers<[1], [0], [0], [1], [0, 0, 1, 1], [], []>} : vector<16x2048xbf16>, vector<2048x128xbf16>, vector<16x128xf32> -> vector<16x128xf32>
    %7 = arith.addf %3, %6 : vector<16x128xf32>
    %c0_6 = arith.constant 0 : index
    %c0_7 = arith.constant 0 : index
    %8 = vector.load %arg5[%c0_6, %c0_7] : memref<16x128xf32, #tpu.memory_space<vmem>>, vector<16x128xf32>
    tpu.vector_store %arg5[%c0_6, %c0_7], %7 {strides = array<i32>} : memref<16x128xf32, #tpu.memory_space<vmem>>, vector<16x128xf32>,
    %c3_i32 = arith.constant 3 : i32
    %9 = arith.cmpi eq, %arg1, %c3_i32 : i32
    %10 = arith.extui %9 : i1 to i32
    %c0_i32_8 = arith.constant 0 : i32
    %11 = arith.cmpi ne, %10, %c0_i32_8 : i32
    scf.if %11 {
      %c0_9 = arith.constant 0 : index
      %c0_10 = arith.constant 0 : index
      %12 = vector.load %arg5[%c0_9, %c0_10] : memref<16x128xf32, #tpu.memory_space<vmem>>, vector<16x128xf32>
      %13 = arith.negf %12 : vector<16x128xf32>
      %14 = math.exp %13 : vector<16x128xf32>
      %cst_11 = arith.constant 1.000000e+00 : f32
      %15 = vector.broadcast %cst_11 : f32 to vector<16x128xf32>
      %16 = arith.addf %15, %14 : vector<16x128xf32>
      %17 = arith.divf %15, %16 : vector<16x128xf32>
      %c0_12 = arith.constant 0 : index
      %c0_13 = arith.constant 0 : index
      %18 = vector.load %arg4[%c0_12, %c0_13] : memref<16x128xf32, #tpu.memory_space<vmem>>, vector<16x128xf32>
      tpu.vector_store %arg4[%c0_12, %c0_13], %17 {strides = array<i32>} : memref<16x128xf32, #tpu.memory_space<vmem>>, vector<16x128xf32>,
    } else {
    }
    return
  }
  func.func @transform_0(%arg0: i32, %arg1: i32) -> (i32, i32) {
    %c0_i32 = arith.constant 0 : i32
    return %arg0, %arg1 : i32, i32
  }
  func.func @transform_1(%arg0: i32, %arg1: i32) -> (i32, i32) {
    %c0_i32 = arith.constant 0 : i32
    %c0_i32_0 = arith.constant 0 : i32
    return %arg1, %c0_i32 : i32, i32
  }
  func.func @transform_2(%arg0: i32, %arg1: i32) -> (i32, i32) {
    %c0_i32 = arith.constant 0 : i32
    %c0_i32_0 = arith.constant 0 : i32
    return %arg0, %c0_i32 : i32, i32
  }
}

</mosaic_0001>

<bundles_post_ra>
// kernel: _lambda_.8
= control target key start
LH: loop header
LB: loop body
LE: loop exit
PB: predicated region body
PF: predicated region fallthrough
CT: control target
= control target key end

     0   :  { %vm400_vm0 = vcmask 523264   ;;  %s2294_s1 = inlined_call_operand.vmem [shape: bf16[64,128], index: 1, kind: input, shape index: {}]   ;;  %s2295_s0 = inlined_call_operand.vmem [shape: bf16[512,64], index: 0, kind: input, shape index: {}]   ;;  %s2296_s2 = inlined_call_operand.vmem [shape: bf16[512,128], index: 2, kind: output, shape index: {}]  }
   0x1   :  { %v2000_v0 = vld [vmem:[%s2294_s1] sm:$0xff]   ;;  %v2001_v1 = vld [vmem:[%s2294_s1 + $0x8] sm:$0xff]   ;;  %v2002_v2 = vld [vmem:[%s2294_s1 + $0x10] sm:$0xff]  }
   0x2   :  { %1920 = vmatprep.subr.bf16.mxu0 %v2000_v0  ;;  %1992 = vmatprep.subr.bf16.mxu1 %v2000_v0  ;;  %v2004_v3 = vld [vmem:[%s2295_s0] sm:$0xff]   ;;  %v2003_v5 = vld [vmem:[%s2294_s1 + $0x18] sm:$0xff]   ;;  %v2006_v6 = vld [vmem:[%s2295_s0 + $0x8] sm:$0xff]  }
   0x3   :  { %1921 = vmatpush3.bf16.msra.mxu0 %v2000_v0  ;;  %1996 = vmatpush3.bf16.msra.mxu1 %v2000_v0  ;;  %v2005_v4 = vld [vmem:[%s2295_s0 + $0x80] sm:$0xff]   ;;  %v2007_v7 = vld [vmem:[%s2295_s0 + $0x88] sm:$0xff]   ;;  %v2008_v8 = vld [vmem:[%s2295_s0 + $0x10] sm:$0xff]  }
   0x4   :  { %1922 = vmatprep.subr.bf16.mxu0 %v2001_v1  ;;  %1993 = vmatprep.subr.bf16.mxu1 %v2001_v1  ;;  %v2009_v9 = vld [vmem:[%s2295_s0 + $0x90] sm:$0xff]   ;;  %v2010_v10 = vld [vmem:[%s2295_s0 + $0x18] sm:$0xff]   ;;  %v2012_v12 = vld [vmem:[%s2295_s0 + $0x20] sm:$0xff]  }
   0x5   :  { %1928 = vmatprep.mubr.msk.bf16.mxu0 %vm400_vm0, %v2004_v3  ;;  %1960 = vmatprep.mubr.msk.bf16.mxu1 %vm400_vm0, %v2005_v4  ;;  %v2011_v11 = vld [vmem:[%s2295_s0 + $0x98] sm:$0xff]   ;;  %v2013_v13 = vld [vmem:[%s2295_s0 + $0xa0] sm:$0xff]   ;;  %v2014_v14 = vld [vmem:[%s2295_s0 + $0x28] sm:$0xff]  }
   0x6   :  { %v2015_v15 = vld [vmem:[%s2295_s0 + $0xa8] sm:$0xff]   ;;  %v2016_v16 = vld [vmem:[%s2295_s0 + $0x30] sm:$0xff]   ;;  %v2018_v18 = vld [vmem:[%s2295_s0 + $0x38] sm:$0xff]  }
   0x7   :  { %1923 = vmatpush3.bf16.msra.mxu0 %v2001_v1  ;;  %1997 = vmatpush3.bf16.msra.mxu1 %v2001_v1  ;;  %v2017_v17 = vld [vmem:[%s2295_s0 + $0xb0] sm:$0xff]   ;;  %v2019_v19 = vld [vmem:[%s2295_s0 + $0xb8] sm:$0xff]   ;;  %v2020_v20 = vld [vmem:[%s2295_s0 + $0x40] sm:$0xff]  }
   0x8   :  { %1924 = vmatprep.subr.bf16.mxu0 %v2002_v2  ;;  %1994 = vmatprep.subr.bf16.mxu1 %v2002_v2  ;;  %v2021_v21 = vld [vmem:[%s2295_s0 + $0xc0] sm:$0xff]   ;;  %v2022_v22 = vld [vmem:[%s2295_s0 + $0x48] sm:$0xff]   ;;  %v2024_v24 = vld [vmem:[%s2295_s0 + $0x50] sm:$0xff]  }
   0x9   :  { %v2023_v23 = vld [vmem:[%s2295_s0 + $0xc8] sm:$0xff]   ;;  %v2025_v25 = vld [vmem:[%s2295_s0 + $0xd0] sm:$0xff]   ;;  %v2026_v26 = vld [vmem:[%s2295_s0 + $0x58] sm:$0xff]  }
   0xa   :  { %v2027_v27 = vld [vmem:[%s2295_s0 + $0xd8] sm:$0xff]   ;;  %v2028_v28 = vld [vmem:[%s2295_s0 + $0x60] sm:$0xff]   ;;  %v2030_v30 = vld [vmem:[%s2295_s0 + $0x68] sm:$0xff]  }
   0xb   :  { %1925 = vmatpush3.bf16.msra.mxu0 %v2002_v2  ;;  %1998 = vmatpush3.bf16.msra.mxu1 %v2002_v2  ;;  %v2029_v29 = vld [vmem:[%s2295_s0 + $0xe0] sm:$0xff]   ;;  %v2031_v31 = vld [vmem:[%s2295_s0 + $0xe8] sm:$0xff]   ;;  %v2032_v32 = vld [vmem:[%s2295_s0 + $0x70] sm:$0xff]  }
   0xc   :  { %1926 = vmatprep.subr.bf16.mxu0 %v2003_v5  ;;  %1995 = vmatprep.subr.bf16.mxu1 %v2003_v5  ;;  %v2033_v33 = vld [vmem:[%s2295_s0 + $0xf0] sm:$0xff]   ;;  %v2034_v34 = vld [vmem:[%s2295_s0 + $0x78] sm:$0xff]  }
   0xd   :  { %v2035_v35 = vld [vmem:[%s2295_s0 + $0xf8] sm:$0xff]  }
   0xf   :  { %1927 = vmatpush3.bf16.msra.mxu0 %v2003_v5  ;;  %1999 = vmatpush3.bf16.msra.mxu1 %v2003_v5 }
  0x12   :  { %1929 = vmatmul.mubr.msk.bf16.vlgmr.msra.gmra.mrb[0].mxu0 %vm400_vm0, %v2006_v6  ;;  %1961 = vmatmul.mubr.msk.bf16.vlgmr.msra.gmra.mrb[0].mxu1 %vm400_vm0, %v2007_v7 }
  0x13   :  { %1932 = vmatprep.mubr.msk.bf16.mxu0 %vm400_vm0, %v2008_v8  ;;  %1964 = vmatprep.mubr.msk.bf16.mxu1 %vm400_vm0, %v2009_v9 }
  0x1a   :  { %1933 = vmatmul.mubr.msk.bf16.gmra.mrb[4].mxu0 %vm400_vm0, %v2010_v10  ;;  %1965 = vmatmul.mubr.msk.bf16.gmra.mrb[4].mxu1 %vm400_vm0, %v2011_v11 }
  0x1b   :  { %1936 = vmatprep.mubr.msk.bf16.mxu0 %vm400_vm0, %v2012_v12  ;;  %1968 = vmatprep.mubr.msk.bf16.mxu1 %vm400_vm0, %v2013_v13 }
  0x22   :  { %1937 = vmatmul.mubr.msk.bf16.gmra.mrb[8].mxu0 %vm400_vm0, %v2014_v14  ;;  %1969 = vmatmul.mubr.msk.bf16.gmra.mrb[8].mxu1 %vm400_vm0, %v2015_v15 }
  0x23   :  { %1940 = vmatprep.mubr.msk.bf16.mxu0 %vm400_vm0, %v2016_v16  ;;  %1972 = vmatprep.mubr.msk.bf16.mxu1 %vm400_vm0, %v2017_v17 }
  0x2a   :  { %1941 = vmatmul.mubr.msk.bf16.gmra.mrb[12].mxu0 %vm400_vm0, %v2018_v18  ;;  %1973 = vmatmul.mubr.msk.bf16.gmra.mrb[12].mxu1 %vm400_vm0, %v2019_v19 }
  0x2b   :  { %1944 = vmatprep.mubr.msk.bf16.mxu0 %vm400_vm0, %v2020_v20  ;;  %1976 = vmatprep.mubr.msk.bf16.mxu1 %vm400_vm0, %v2021_v21 }
  0x32   :  { %1945 = vmatmul.mubr.msk.bf16.gmra.mrb[16].mxu0 %vm400_vm0, %v2022_v22  ;;  %1977 = vmatmul.mubr.msk.bf16.gmra.mrb[16].mxu1 %vm400_vm0, %v2023_v23 }
  0x33   :  { %1948 = vmatprep.mubr.msk.bf16.mxu0 %vm400_vm0, %v2024_v24  ;;  %1980 = vmatprep.mubr.msk.bf16.mxu1 %vm400_vm0, %v2025_v25 }
  0x3a   :  { %1949 = vmatmul.mubr.msk.bf16.gmra.mrb[20].mxu0 %vm400_vm0, %v2026_v26  ;;  %1981 = vmatmul.mubr.msk.bf16.gmra.mrb[20].mxu1 %vm400_vm0, %v2027_v27 }
  0x3b   :  { %1952 = vmatprep.mubr.msk.bf16.mxu0 %vm400_vm0, %v2028_v28  ;;  %1984 = vmatprep.mubr.msk.bf16.mxu1 %vm400_vm0, %v2029_v29 }
  0x42   :  { %1953 = vmatmul.mubr.msk.bf16.gmra.mrb[24].mxu0 %vm400_vm0, %v2030_v30  ;;  %1985 = vmatmul.mubr.msk.bf16.gmra.mrb[24].mxu1 %vm400_vm0, %v2031_v31 }
  0x43   :  { %1956 = vmatprep.mubr.msk.bf16.mxu0 %vm400_vm0, %v2032_v32  ;;  %1988 = vmatprep.mubr.msk.bf16.mxu1 %vm400_vm0, %v2033_v33 }
  0x4a   :  { %1957 = vmatmul.mubr.msk.bf16.gmra.mrb[28].mxu0 %vm400_vm0, %v2034_v34  ;;  %1989 = vmatmul.mubr.msk.bf16.gmra.mrb[28].mxu1 %vm400_vm0, %v2035_v35 }
  0xe5   :  { %v1930_v36 = vpop.f32.mrb[0].mxu0  ;;  %v1962_v37 = vpop.f32.mrb[0].mxu1 }
  0xe6   :  { %vm983_vm1 = vcmp.gt.f32.partialorder %v1930_v36, 0.0  ;;  %v1047_v38 = vmul.f32 0.2, %v1930_v36  ;;  %v1079_v39 = vmul.f32 0.2, %v1962_v37  ;;  %vm1015_vm2 = vcmp.gt.f32.partialorder %v1962_v37, 0.0 }
  0xe7   :  { %v531_v40 = vpop.f32.mrb[1].mxu0  ;;  %v659_v41 = vpop.f32.mrb[1].mxu1 }
  0xe8   :  { %v1045_v42 = vmul.f32 0.2, %v531_v40  ;;  %v1931_v43 = vpop.f32.mrb[2].mxu0  ;;  %v1963_v44 = vpop.f32.mrb[2].mxu1  ;;  %v1111_v45 = vsel %vm983_vm1, %v1930_v36, %v1047_v38  ;;  %v1077_v46 = vmul.f32 0.2, %v659_v41  ;;  %v1143_v48 = vsel %vm1015_vm2, %v1962_v37, %v1079_v39 }
  0xe9   :  { %vm984_vm3 = vcmp.gt.f32.partialorder %v1931_v43, 0.0  ;;  %v1048_v47 = vmul.f32 0.2, %v1931_v43  ;;  %vm981_vm4 = vcmp.gt.f32.partialorder %v531_v40, 0.0  ;;  %vm1016_vm5 = vcmp.gt.f32.partialorder %v1963_v44, 0.0  ;;  %v534_v50 = vpop.f32.mrb[3].mxu0 }
  0xea   :  { %v1080_v49 = vmul.f32 0.2, %v1963_v44  ;;  %v662_v51 = vpop.f32.mrb[3].mxu1  ;;  %vm1013_vm6 = vcmp.gt.f32.partialorder %v659_v41, 0.0  ;;  %vm982_vm7 = vcmp.gt.f32.partialorder %v534_v50, 0.0  ;;  %v1109_v57 = vsel %vm981_vm4, %v531_v40, %v1045_v42 }
  0xeb   :  { %v1112_v52 = vsel %vm984_vm3, %v1931_v43, %v1048_v47  ;;  %v1046_v53 = vmul.f32 0.2, %v534_v50  ;;  %vm1014_vm8 = vcmp.gt.f32.partialorder %v662_v51, 0.0  ;;  %v1078_v56 = vmul.f32 0.2, %v662_v51 }
  0xec   :  { %v1701_v54 = vpack.c.bf16 %v1112_v52, %v1111_v45  ;;  %v1144_v55 = vsel %vm1016_vm5, %v1963_v44, %v1080_v49  ;;  %v1141_v62 = vsel %vm1013_vm6, %v659_v41, %v1077_v46 }
  0xed   :  { %v1781_v58 = vpack.c.bf16 %v1144_v55, %v1143_v48  ;;  %v1110_v59 = vsel %vm982_vm7, %v534_v50, %v1046_v53  ;;  %v1934_v60 = vpop.f32.mrb[4].mxu0  ;;  %v1966_v61 = vpop.f32.mrb[4].mxu1  ;;  %v1142_v0 = vsel %vm1014_vm8, %v662_v51, %v1078_v56 }
  0xee   :  { %1853 = vst [vmem:[%s2296_s2 + $0x8] sm:$0xff] %v1701_v54   ;;  %v1696_v63 = vpack.c.bf16 %v1110_v59, %v1109_v57  ;;  %v1051_v1 = vmul.f32 0.2, %v1934_v60  ;;  %v547_v2 = vpop.f32.mrb[5].mxu0  ;;  %v675_v3 = vpop.f32.mrb[5].mxu1  ;;  %v1776_v4 = vpack.c.bf16 %v1142_v0, %v1141_v62  ;;  %vm987_vm9 = vcmp.gt.f32.partialorder %v1934_v60, 0.0 }
  0xef   :  { %1869 = vst [vmem:[%s2296_s2 + $0x88] sm:$0xff] %v1781_v58   ;;  %v1083_v5 = vmul.f32 0.2, %v1966_v61  ;;  %v1935_v6 = vpop.f32.mrb[6].mxu0  ;;  %v1967_v7 = vpop.f32.mrb[6].mxu1  ;;  %vm1019_vm10 = vcmp.gt.f32.partialorder %v1966_v61, 0.0 }
  0xf0   :  { %1697 = vst [vmem:[%s2296_s2] sm:$0xff] %v1696_v63   ;;  %v1049_v8 = vmul.f32 0.2, %v547_v2  ;;  %v1081_v9 = vmul.f32 0.2, %v675_v3  ;;  %v550_v10 = vpop.f32.mrb[7].mxu0  ;;  %1868 = vst [vmem:[%s2296_s2 + $0x80] sm:$0xff] %v1776_v4   ;;  %v1115_v13 = vsel %vm987_vm9, %v1934_v60, %v1051_v1 }
  0xf1   :  { %vm985_vm11 = vcmp.gt.f32.partialorder %v547_v2, 0.0  ;;  %vm988_vm12 = vcmp.gt.f32.partialorder %v1935_v6, 0.0  ;;  %v1052_v11 = vmul.f32 0.2, %v1935_v6  ;;  %vm1020_vm13 = vcmp.gt.f32.partialorder %v1967_v7, 0.0  ;;  %v678_v12 = vpop.f32.mrb[7].mxu1 }
  0xf2   :  { %vm1017_vm14 = vcmp.gt.f32.partialorder %v675_v3, 0.0  ;;  %v1084_v14 = vmul.f32 0.2, %v1967_v7  ;;  %vm986_vm15 = vcmp.gt.f32.partialorder %v550_v10, 0.0  ;;  %v1050_v16 = vmul.f32 0.2, %v550_v10 }
  0xf3   :  { %v1116_v15 = vsel %vm988_vm12, %v1935_v6, %v1052_v11  ;;  %vm1018_vm0 = vcmp.gt.f32.partialorder %v678_v12, 0.0  ;;  %v1082_v17 = vmul.f32 0.2, %v678_v12  ;;  %v1147_v18 = vsel %vm1019_vm10, %v1966_v61, %v1083_v5 }
  0xf4   :  { %v1113_v19 = vsel %vm985_vm11, %v547_v2, %v1049_v8  ;;  %v1711_v20 = vpack.c.bf16 %v1116_v15, %v1115_v13  ;;  %v1148_v21 = vsel %vm1020_vm13, %v1967_v7, %v1084_v14  ;;  %v1145_v22 = vsel %vm1017_vm14, %v675_v3, %v1081_v9 }
  0xf5   :  { %v1791_v23 = vpack.c.bf16 %v1148_v21, %v1147_v18  ;;  %v1114_v24 = vsel %vm986_vm15, %v550_v10, %v1050_v16  ;;  %v1146_v25 = vsel %vm1018_vm0, %v678_v12, %v1082_v17  ;;  %v1938_v26 = vpop.f32.mrb[8].mxu0  ;;  %v1970_v27 = vpop.f32.mrb[8].mxu1 }
  0xf6   :  { %1855 = vst [vmem:[%s2296_s2 + $0x18] sm:$0xff] %v1711_v20   ;;  %v1706_v28 = vpack.c.bf16 %v1114_v24, %v1113_v19  ;;  %v1786_v29 = vpack.c.bf16 %v1146_v25, %v1145_v22  ;;  %vm991_vm1 = vcmp.gt.f32.partialorder %v1938_v26, 0.0  ;;  %v1055_v30 = vmul.f32 0.2, %v1938_v26  ;;  %v563_v31 = vpop.f32.mrb[9].mxu0  ;;  %v691_v32 = vpop.f32.mrb[9].mxu1 }
  0xf7   :  { %1871 = vst [vmem:[%s2296_s2 + $0x98] sm:$0xff] %v1791_v23   ;;  %vm1023_vm2 = vcmp.gt.f32.partialorder %v1970_v27, 0.0  ;;  %v1087_v33 = vmul.f32 0.2, %v1970_v27  ;;  %v1053_v34 = vmul.f32 0.2, %v563_v31 }
  0xf8   :  { %1854 = vst [vmem:[%s2296_s2 + $0x10] sm:$0xff] %v1706_v28   ;;  %1870 = vst [vmem:[%s2296_s2 + $0x90] sm:$0xff] %v1786_v29   ;;  %v1085_v35 = vmul.f32 0.2, %v691_v32  ;;  %v1939_v36 = vpop.f32.mrb[10].mxu0  ;;  %v1971_v37 = vpop.f32.mrb[10].mxu1  ;;  %v1119_v38 = vsel %vm991_vm1, %v1938_v26, %v1055_v30 }
  0xf9   :  { %vm989_vm3 = vcmp.gt.f32.partialorder %v563_v31, 0.0  ;;  %vm992_vm4 = vcmp.gt.f32.partialorder %v1939_v36, 0.0  ;;  %v1056_v39 = vmul.f32 0.2, %v1939_v36  ;;  %v566_v40 = vpop.f32.mrb[11].mxu0  ;;  %v694_v41 = vpop.f32.mrb[11].mxu1  ;;  %v1151_v46 = vsel %vm1023_vm2, %v1970_v27, %v1087_v33 }
  0xfa   :  { %vm1021_vm5 = vcmp.gt.f32.partialorder %v691_v32, 0.0  ;;  %vm1024_vm6 = vcmp.gt.f32.partialorder %v1971_v37, 0.0  ;;  %v1088_v42 = vmul.f32 0.2, %v1971_v37  ;;  %vm990_vm7 = vcmp.gt.f32.partialorder %v566_v40, 0.0 }
  0xfb   :  { %v1120_v43 = vsel %vm992_vm4, %v1939_v36, %v1056_v39  ;;  %v1054_v44 = vmul.f32 0.2, %v566_v40  ;;  %vm1022_vm8 = vcmp.gt.f32.partialorder %v694_v41, 0.0  ;;  %v1086_v45 = vmul.f32 0.2, %v694_v41 }
  0xfc   :  { %v1117_v47 = vsel %vm989_vm3, %v563_v31, %v1053_v34  ;;  %v1721_v48 = vpack.c.bf16 %v1120_v43, %v1119_v38  ;;  %v1152_v49 = vsel %vm1024_vm6, %v1971_v37, %v1088_v42  ;;  %v1149_v50 = vsel %vm1021_vm5, %v691_v32, %v1085_v35 }
  0xfd   :  { %v1801_v51 = vpack.c.bf16 %v1152_v49, %v1151_v46  ;;  %v1118_v52 = vsel %vm990_vm7, %v566_v40, %v1054_v44  ;;  %v1150_v53 = vsel %vm1022_vm8, %v694_v41, %v1086_v45  ;;  %v1942_v54 = vpop.f32.mrb[12].mxu0  ;;  %v1974_v55 = vpop.f32.mrb[12].mxu1 }
  0xfe   :  { %1857 = vst [vmem:[%s2296_s2 + $0x28] sm:$0xff] %v1721_v48   ;;  %v1716_v56 = vpack.c.bf16 %v1118_v52, %v1117_v47  ;;  %v1796_v57 = vpack.c.bf16 %v1150_v53, %v1149_v50  ;;  %vm995_vm9 = vcmp.gt.f32.partialorder %v1942_v54, 0.0  ;;  %v1059_v58 = vmul.f32 0.2, %v1942_v54  ;;  %v579_v59 = vpop.f32.mrb[13].mxu0  ;;  %v707_v60 = vpop.f32.mrb[13].mxu1 }
  0xff   :  { %1873 = vst [vmem:[%s2296_s2 + $0xa8] sm:$0xff] %v1801_v51   ;;  %vm1027_vm10 = vcmp.gt.f32.partialorder %v1974_v55, 0.0  ;;  %v1091_v61 = vmul.f32 0.2, %v1974_v55  ;;  %v1057_v62 = vmul.f32 0.2, %v579_v59 }
 0x100   :  { %1856 = vst [vmem:[%s2296_s2 + $0x20] sm:$0xff] %v1716_v56   ;;  %1872 = vst [vmem:[%s2296_s2 + $0xa0] sm:$0xff] %v1796_v57   ;;  %v1089_v63 = vmul.f32 0.2, %v707_v60  ;;  %v1943_v0 = vpop.f32.mrb[14].mxu0  ;;  %v1975_v1 = vpop.f32.mrb[14].mxu1  ;;  %v1123_v2 = vsel %vm995_vm9, %v1942_v54, %v1059_v58 }
 0x101   :  { %vm993_vm11 = vcmp.gt.f32.partialorder %v579_v59, 0.0  ;;  %vm996_vm12 = vcmp.gt.f32.partialorder %v1943_v0, 0.0  ;;  %v1060_v3 = vmul.f32 0.2, %v1943_v0  ;;  %v582_v4 = vpop.f32.mrb[15].mxu0  ;;  %v710_v5 = vpop.f32.mrb[15].mxu1  ;;  %v1155_v10 = vsel %vm1027_vm10, %v1974_v55, %v1091_v61 }
 0x102   :  { %vm1025_vm13 = vcmp.gt.f32.partialorder %v707_v60, 0.0  ;;  %vm1028_vm14 = vcmp.gt.f32.partialorder %v1975_v1, 0.0  ;;  %v1092_v6 = vmul.f32 0.2, %v1975_v1  ;;  %vm994_vm15 = vcmp.gt.f32.partialorder %v582_v4, 0.0 }
 0x103   :  { %v1124_v7 = vsel %vm996_vm12, %v1943_v0, %v1060_v3  ;;  %v1058_v8 = vmul.f32 0.2, %v582_v4  ;;  %vm1026_vm0 = vcmp.gt.f32.partialorder %v710_v5, 0.0  ;;  %v1090_v9 = vmul.f32 0.2, %v710_v5 }
 0x104   :  { %v1121_v11 = vsel %vm993_vm11, %v579_v59, %v1057_v62  ;;  %v1731_v12 = vpack.c.bf16 %v1124_v7, %v1123_v2  ;;  %v1156_v13 = vsel %vm1028_vm14, %v1975_v1, %v1092_v6  ;;  %v1153_v14 = vsel %vm1025_vm13, %v707_v60, %v1089_v63 }
 0x105   :  { %v1811_v15 = vpack.c.bf16 %v1156_v13, %v1155_v10  ;;  %v1122_v16 = vsel %vm994_vm15, %v582_v4, %v1058_v8  ;;  %v1154_v17 = vsel %vm1026_vm0, %v710_v5, %v1090_v9  ;;  %v1946_v18 = vpop.f32.mrb[16].mxu0  ;;  %v1978_v19 = vpop.f32.mrb[16].mxu1 }
 0x106   :  { %1859 = vst [vmem:[%s2296_s2 + $0x38] sm:$0xff] %v1731_v12   ;;  %v1726_v20 = vpack.c.bf16 %v1122_v16, %v1121_v11  ;;  %v1806_v21 = vpack.c.bf16 %v1154_v17, %v1153_v14  ;;  %vm999_vm1 = vcmp.gt.f32.partialorder %v1946_v18, 0.0  ;;  %v1063_v22 = vmul.f32 0.2, %v1946_v18  ;;  %v595_v23 = vpop.f32.mrb[17].mxu0  ;;  %v723_v24 = vpop.f32.mrb[17].mxu1 }
 0x107   :  { %1875 = vst [vmem:[%s2296_s2 + $0xb8] sm:$0xff] %v1811_v15   ;;  %vm1031_vm2 = vcmp.gt.f32.partialorder %v1978_v19, 0.0  ;;  %v1095_v25 = vmul.f32 0.2, %v1978_v19  ;;  %v1061_v26 = vmul.f32 0.2, %v595_v23 }
 0x108   :  { %1858 = vst [vmem:[%s2296_s2 + $0x30] sm:$0xff] %v1726_v20   ;;  %1874 = vst [vmem:[%s2296_s2 + $0xb0] sm:$0xff] %v1806_v21   ;;  %v1093_v27 = vmul.f32 0.2, %v723_v24  ;;  %v1947_v28 = vpop.f32.mrb[18].mxu0  ;;  %v1979_v29 = vpop.f32.mrb[18].mxu1  ;;  %v1127_v30 = vsel %vm999_vm1, %v1946_v18, %v1063_v22 }
 0x109   :  { %vm997_vm3 = vcmp.gt.f32.partialorder %v595_v23, 0.0  ;;  %vm1000_vm4 = vcmp.gt.f32.partialorder %v1947_v28, 0.0  ;;  %v1064_v31 = vmul.f32 0.2, %v1947_v28  ;;  %v598_v32 = vpop.f32.mrb[19].mxu0  ;;  %v726_v33 = vpop.f32.mrb[19].mxu1  ;;  %v1159_v38 = vsel %vm1031_vm2, %v1978_v19, %v1095_v25 }
 0x10a   :  { %vm1029_vm5 = vcmp.gt.f32.partialorder %v723_v24, 0.0  ;;  %vm1032_vm6 = vcmp.gt.f32.partialorder %v1979_v29, 0.0  ;;  %v1096_v34 = vmul.f32 0.2, %v1979_v29  ;;  %vm998_vm7 = vcmp.gt.f32.partialorder %v598_v32, 0.0 }
 0x10b   :  { %v1128_v35 = vsel %vm1000_vm4, %v1947_v28, %v1064_v31  ;;  %v1062_v36 = vmul.f32 0.2, %v598_v32  ;;  %vm1030_vm8 = vcmp.gt.f32.partialorder %v726_v33, 0.0  ;;  %v1094_v37 = vmul.f32 0.2, %v726_v33 }
 0x10c   :  { %v1125_v39 = vsel %vm997_vm3, %v595_v23, %v1061_v26  ;;  %v1741_v40 = vpack.c.bf16 %v1128_v35, %v1127_v30  ;;  %v1160_v41 = vsel %vm1032_vm6, %v1979_v29, %v1096_v34  ;;  %v1157_v42 = vsel %vm1029_vm5, %v723_v24, %v1093_v27 }
 0x10d   :  { %v1821_v43 = vpack.c.bf16 %v1160_v41, %v1159_v38  ;;  %v1126_v44 = vsel %vm998_vm7, %v598_v32, %v1062_v36  ;;  %v1158_v45 = vsel %vm1030_vm8, %v726_v33, %v1094_v37  ;;  %v1950_v46 = vpop.f32.mrb[20].mxu0  ;;  %v1982_v47 = vpop.f32.mrb[20].mxu1 }
 0x10e   :  { %1861 = vst [vmem:[%s2296_s2 + $0x48] sm:$0xff] %v1741_v40   ;;  %v1736_v48 = vpack.c.bf16 %v1126_v44, %v1125_v39  ;;  %v1816_v49 = vpack.c.bf16 %v1158_v45, %v1157_v42  ;;  %vm1003_vm9 = vcmp.gt.f32.partialorder %v1950_v46, 0.0  ;;  %v1067_v50 = vmul.f32 0.2, %v1950_v46  ;;  %v611_v51 = vpop.f32.mrb[21].mxu0  ;;  %v739_v52 = vpop.f32.mrb[21].mxu1 }
 0x10f   :  { %1877 = vst [vmem:[%s2296_s2 + $0xc8] sm:$0xff] %v1821_v43   ;;  %vm1035_vm10 = vcmp.gt.f32.partialorder %v1982_v47, 0.0  ;;  %v1099_v53 = vmul.f32 0.2, %v1982_v47  ;;  %v1065_v54 = vmul.f32 0.2, %v611_v51 }
 0x110   :  { %1860 = vst [vmem:[%s2296_s2 + $0x40] sm:$0xff] %v1736_v48   ;;  %1876 = vst [vmem:[%s2296_s2 + $0xc0] sm:$0xff] %v1816_v49   ;;  %v1097_v55 = vmul.f32 0.2, %v739_v52  ;;  %v1951_v56 = vpop.f32.mrb[22].mxu0  ;;  %v1983_v57 = vpop.f32.mrb[22].mxu1  ;;  %v1131_v58 = vsel %vm1003_vm9, %v1950_v46, %v1067_v50 }
 0x111   :  { %vm1001_vm11 = vcmp.gt.f32.partialorder %v611_v51, 0.0  ;;  %vm1004_vm12 = vcmp.gt.f32.partialorder %v1951_v56, 0.0  ;;  %v1068_v59 = vmul.f32 0.2, %v1951_v56  ;;  %v614_v60 = vpop.f32.mrb[23].mxu0  ;;  %v742_v61 = vpop.f32.mrb[23].mxu1  ;;  %v1163_v2 = vsel %vm1035_vm10, %v1982_v47, %v1099_v53 }
 0x112   :  { %vm1033_vm13 = vcmp.gt.f32.partialorder %v739_v52, 0.0  ;;  %vm1036_vm14 = vcmp.gt.f32.partialorder %v1983_v57, 0.0  ;;  %v1100_v62 = vmul.f32 0.2, %v1983_v57  ;;  %vm1002_vm15 = vcmp.gt.f32.partialorder %v614_v60, 0.0 }
 0x113   :  { %v1132_v63 = vsel %vm1004_vm12, %v1951_v56, %v1068_v59  ;;  %v1066_v0 = vmul.f32 0.2, %v614_v60  ;;  %vm1034_vm0 = vcmp.gt.f32.partialorder %v742_v61, 0.0  ;;  %v1098_v1 = vmul.f32 0.2, %v742_v61 }
 0x114   :  { %v1129_v3 = vsel %vm1001_vm11, %v611_v51, %v1065_v54  ;;  %v1751_v4 = vpack.c.bf16 %v1132_v63, %v1131_v58  ;;  %v1164_v5 = vsel %vm1036_vm14, %v1983_v57, %v1100_v62  ;;  %v1161_v6 = vsel %vm1033_vm13, %v739_v52, %v1097_v55 }
 0x115   :  { %v1831_v7 = vpack.c.bf16 %v1164_v5, %v1163_v2  ;;  %v1130_v8 = vsel %vm1002_vm15, %v614_v60, %v1066_v0  ;;  %v1162_v9 = vsel %vm1034_vm0, %v742_v61, %v1098_v1  ;;  %v1954_v10 = vpop.f32.mrb[24].mxu0  ;;  %v1986_v11 = vpop.f32.mrb[24].mxu1 }
 0x116   :  { %1863 = vst [vmem:[%s2296_s2 + $0x58] sm:$0xff] %v1751_v4   ;;  %v1746_v12 = vpack.c.bf16 %v1130_v8, %v1129_v3  ;;  %v1826_v13 = vpack.c.bf16 %v1162_v9, %v1161_v6  ;;  %vm1007_vm1 = vcmp.gt.f32.partialorder %v1954_v10, 0.0  ;;  %v1071_v14 = vmul.f32 0.2, %v1954_v10  ;;  %v627_v15 = vpop.f32.mrb[25].mxu0  ;;  %v755_v16 = vpop.f32.mrb[25].mxu1 }
 0x117   :  { %1879 = vst [vmem:[%s2296_s2 + $0xd8] sm:$0xff] %v1831_v7   ;;  %vm1039_vm2 = vcmp.gt.f32.partialorder %v1986_v11, 0.0  ;;  %v1103_v17 = vmul.f32 0.2, %v1986_v11  ;;  %v1069_v18 = vmul.f32 0.2, %v627_v15 }
 0x118   :  { %1862 = vst [vmem:[%s2296_s2 + $0x50] sm:$0xff] %v1746_v12   ;;  %1878 = vst [vmem:[%s2296_s2 + $0xd0] sm:$0xff] %v1826_v13   ;;  %v1101_v19 = vmul.f32 0.2, %v755_v16  ;;  %v1955_v20 = vpop.f32.mrb[26].mxu0  ;;  %v1987_v21 = vpop.f32.mrb[26].mxu1  ;;  %v1135_v22 = vsel %vm1007_vm1, %v1954_v10, %v1071_v14 }
 0x119   :  { %vm1005_vm3 = vcmp.gt.f32.partialorder %v627_v15, 0.0  ;;  %vm1008_vm4 = vcmp.gt.f32.partialorder %v1955_v20, 0.0  ;;  %v1072_v23 = vmul.f32 0.2, %v1955_v20  ;;  %v630_v24 = vpop.f32.mrb[27].mxu0  ;;  %v758_v25 = vpop.f32.mrb[27].mxu1  ;;  %v1167_v30 = vsel %vm1039_vm2, %v1986_v11, %v1103_v17 }
 0x11a   :  { %vm1037_vm5 = vcmp.gt.f32.partialorder %v755_v16, 0.0  ;;  %vm1040_vm6 = vcmp.gt.f32.partialorder %v1987_v21, 0.0  ;;  %v1104_v26 = vmul.f32 0.2, %v1987_v21  ;;  %vm1006_vm7 = vcmp.gt.f32.partialorder %v630_v24, 0.0 }
 0x11b   :  { %v1136_v27 = vsel %vm1008_vm4, %v1955_v20, %v1072_v23  ;;  %v1070_v28 = vmul.f32 0.2, %v630_v24  ;;  %vm1038_vm8 = vcmp.gt.f32.partialorder %v758_v25, 0.0  ;;  %v1102_v29 = vmul.f32 0.2, %v758_v25 }
 0x11c   :  { %v1133_v31 = vsel %vm1005_vm3, %v627_v15, %v1069_v18  ;;  %v1761_v32 = vpack.c.bf16 %v1136_v27, %v1135_v22  ;;  %v1168_v33 = vsel %vm1040_vm6, %v1987_v21, %v1104_v26  ;;  %v1165_v34 = vsel %vm1037_vm5, %v755_v16, %v1101_v19 }
 0x11d   :  { %v1841_v35 = vpack.c.bf16 %v1168_v33, %v1167_v30  ;;  %v1134_v36 = vsel %vm1006_vm7, %v630_v24, %v1070_v28  ;;  %v1166_v37 = vsel %vm1038_vm8, %v758_v25, %v1102_v29  ;;  %v1958_v38 = vpop.f32.mrb[28].mxu0  ;;  %v1990_v39 = vpop.f32.mrb[28].mxu1 }
 0x11e   :  { %1865 = vst [vmem:[%s2296_s2 + $0x68] sm:$0xff] %v1761_v32   ;;  %v1756_v40 = vpack.c.bf16 %v1134_v36, %v1133_v31  ;;  %v1836_v41 = vpack.c.bf16 %v1166_v37, %v1165_v34  ;;  %vm1011_vm9 = vcmp.gt.f32.partialorder %v1958_v38, 0.0  ;;  %v1075_v42 = vmul.f32 0.2, %v1958_v38  ;;  %v643_v43 = vpop.f32.mrb[29].mxu0  ;;  %v771_v44 = vpop.f32.mrb[29].mxu1 }
 0x11f   :  { %1881 = vst [vmem:[%s2296_s2 + $0xe8] sm:$0xff] %v1841_v35   ;;  %vm1043_vm10 = vcmp.gt.f32.partialorder %v1990_v39, 0.0  ;;  %v1107_v45 = vmul.f32 0.2, %v1990_v39  ;;  %v1073_v46 = vmul.f32 0.2, %v643_v43 }
 0x120   :  { %1864 = vst [vmem:[%s2296_s2 + $0x60] sm:$0xff] %v1756_v40   ;;  %1880 = vst [vmem:[%s2296_s2 + $0xe0] sm:$0xff] %v1836_v41   ;;  %v1105_v47 = vmul.f32 0.2, %v771_v44  ;;  %v1959_v48 = vpop.f32.mrb[30].mxu0  ;;  %v1991_v49 = vpop.f32.mrb[30].mxu1  ;;  %v1139_v50 = vsel %vm1011_vm9, %v1958_v38, %v1075_v42 }
 0x121   :  { %vm1009_vm11 = vcmp.gt.f32.partialorder %v643_v43, 0.0  ;;  %vm1012_vm12 = vcmp.gt.f32.partialorder %v1959_v48, 0.0  ;;  %v1076_v51 = vmul.f32 0.2, %v1959_v48  ;;  %v646_v52 = vpop.f32.mrb[31].mxu0  ;;  %v774_v53 = vpop.f32.mrb[31].mxu1  ;;  %v1171_v58 = vsel %vm1043_vm10, %v1990_v39, %v1107_v45 }
 0x122   :  { %vm1041_vm13 = vcmp.gt.f32.partialorder %v771_v44, 0.0  ;;  %vm1044_vm14 = vcmp.gt.f32.partialorder %v1991_v49, 0.0  ;;  %v1108_v54 = vmul.f32 0.2, %v1991_v49  ;;  %vm1010_vm15 = vcmp.gt.f32.partialorder %v646_v52, 0.0 }
 0x123   :  { %v1140_v55 = vsel %vm1012_vm12, %v1959_v48, %v1076_v51  ;;  %v1074_v56 = vmul.f32 0.2, %v646_v52  ;;  %vm1042_vm0 = vcmp.gt.f32.partialorder %v774_v53, 0.0  ;;  %v1106_v57 = vmul.f32 0.2, %v774_v53 }
 0x124   :  { %v1137_v59 = vsel %vm1009_vm11, %v643_v43, %v1073_v46  ;;  %v1771_v60 = vpack.c.bf16 %v1140_v55, %v1139_v50  ;;  %v1172_v61 = vsel %vm1044_vm14, %v1991_v49, %v1108_v54  ;;  %v1169_v62 = vsel %vm1041_vm13, %v771_v44, %v1105_v47 }
 0x125   :  { %v1851_v63 = vpack.c.bf16 %v1172_v61, %v1171_v58  ;;  %v1138_v0 = vsel %vm1010_vm15, %v646_v52, %v1074_v56  ;;  %v1170_v1 = vsel %vm1042_vm0, %v774_v53, %v1106_v57 }
 0x126   :  { %1867 = vst [vmem:[%s2296_s2 + $0x78] sm:$0xff] %v1771_v60   ;;  %v1766_v2 = vpack.c.bf16 %v1138_v0, %v1137_v59  ;;  %v1846_v3 = vpack.c.bf16 %v1170_v1, %v1169_v62 }
 0x127   :  { %1883 = vst [vmem:[%s2296_s2 + $0xf8] sm:$0xff] %v1851_v63  }
 0x128   :  { %1866 = vst [vmem:[%s2296_s2 + $0x70] sm:$0xff] %v1766_v2   ;;  %1882 = vst [vmem:[%s2296_s2 + $0xf0] sm:$0xff] %v1846_v3  }

// kernel: _lambda_.9
= control target key start
LH: loop header
LB: loop body
LE: loop exit
PB: predicated region body
PF: predicated region fallthrough
CT: control target
= control target key end

     0   :  { %vm1443_vm0 = vcmask 1040384   ;;  %s2421_s1 = inlined_call_operand.vmem [shape: bf16[1024,128], index: 1, kind: input, shape index: {}]   ;;  %s2422_s0 = inlined_call_operand.vmem [shape: bf16[128,1024], index: 0, kind: input, shape index: {}]   ;;  %s2423_s2 = inlined_call_operand.vmem [shape: f32[128,128], index: 2, kind: output, shape index: {0}]   ;;  %s2424_s3 = inlined_call_operand.vmem [shape: f32[1,2,128], index: 3, kind: output, shape index: {1}]  }
   0x1   :  { %v1854_v0 = vld [vmem:[%s2421_s1 + $0x40] sm:$0xff]   ;;  %v1858_v4 = vld [vmem:[%s2421_s1 + $0x48] sm:$0xff]   ;;  %v1862_v8 = vld [vmem:[%s2421_s1 + $0x50] sm:$0xff]  }
   0x2   :  { %v1855_v1 = vld [vmem:[%s2421_s1 + $0xc0] sm:$0xff]   ;;  %1598 = vmatprep.subr.bf16.mxu0 %v1854_v0  ;;  %v1859_v5 = vld [vmem:[%s2421_s1 + $0xc8] sm:$0xff]   ;;  %v1863_v9 = vld [vmem:[%s2421_s1 + $0xd0] sm:$0xff]  }
   0x3   :  { %v1856_v2 = vld [vmem:[%s2421_s1] sm:$0xff]   ;;  %1662 = vmatprep.subr.bf16.mxu1 %v1855_v1  ;;  %v1860_v6 = vld [vmem:[%s2421_s1 + $0x8] sm:$0xff]   ;;  %v1864_v10 = vld [vmem:[%s2421_s1 + $0x10] sm:$0xff]  }
   0x4   :  { %v1857_v3 = vld [vmem:[%s2421_s1 + $0x80] sm:$0xff]   ;;  %1599 = vmatpush3.bf16.msra.mxu0 %v1856_v2  ;;  %v1861_v7 = vld [vmem:[%s2421_s1 + $0x88] sm:$0xff]   ;;  %v1865_v11 = vld [vmem:[%s2421_s1 + $0x90] sm:$0xff]  }
   0x5   :  { %1663 = vmatpush3.bf16.msra.mxu1 %v1857_v3  ;;  %1600 = vmatprep.subr.bf16.mxu0 %v1858_v4  ;;  %v1866_v12 = vld [vmem:[%s2421_s1 + $0x58] sm:$0xff]   ;;  %v1870_v16 = vld [vmem:[%s2421_s1 + $0x60] sm:$0xff]   ;;  %v1874_v20 = vld [vmem:[%s2421_s1 + $0x68] sm:$0xff]  }
   0x6   :  { %1664 = vmatprep.subr.bf16.mxu1 %v1859_v5  ;;  %v1867_v13 = vld [vmem:[%s2421_s1 + $0xd8] sm:$0xff]   ;;  %v1871_v17 = vld [vmem:[%s2421_s1 + $0xe0] sm:$0xff]   ;;  %v1875_v21 = vld [vmem:[%s2421_s1 + $0xe8] sm:$0xff]  }
   0x7   :  { %v1868_v14 = vld [vmem:[%s2421_s1 + $0x18] sm:$0xff]   ;;  %v1872_v18 = vld [vmem:[%s2421_s1 + $0x20] sm:$0xff]   ;;  %v1876_v22 = vld [vmem:[%s2421_s1 + $0x28] sm:$0xff]  }
   0x8   :  { %1601 = vmatpush3.bf16.msra.mxu0 %v1860_v6  ;;  %v1869_v15 = vld [vmem:[%s2421_s1 + $0x98] sm:$0xff]   ;;  %v1873_v19 = vld [vmem:[%s2421_s1 + $0xa0] sm:$0xff]   ;;  %v1877_v23 = vld [vmem:[%s2421_s1 + $0xa8] sm:$0xff]  }
   0x9   :  { %1665 = vmatpush3.bf16.msra.mxu1 %v1861_v7  ;;  %1602 = vmatprep.subr.bf16.mxu0 %v1862_v8  ;;  %v1878_v24 = vld [vmem:[%s2421_s1 + $0x70] sm:$0xff]   ;;  %v1882_v28 = vld [vmem:[%s2421_s1 + $0x78] sm:$0xff]   ;;  %v50_v32 = vld [vmem:[%s2422_s0] sm:$0xff] }
   0xa   :  { %1666 = vmatprep.subr.bf16.mxu1 %v1863_v9  ;;  %v1879_v25 = vld [vmem:[%s2421_s1 + $0xf0] sm:$0xff]   ;;  %v1883_v29 = vld [vmem:[%s2421_s1 + $0xf8] sm:$0xff]   ;;  %v54_v33 = vld [vmem:[%s2422_s0 + $0x20] sm:$0xff] }
   0xb   :  { %v1880_v26 = vld [vmem:[%s2421_s1 + $0x30] sm:$0xff]   ;;  %v1884_v30 = vld [vmem:[%s2421_s1 + $0x38] sm:$0xff]   ;;  %v51_v34 = vld [vmem:[%s2422_s0 + $0x8] sm:$0xff]  ;;  %v1470_v35 = vcombine.low %v50_v32, %v54_v33  ;;  %v1471_v36 = vcombine.high %v50_v32, %v54_v33 }
   0xc   :  { %1603 = vmatpush3.bf16.msra.mxu0 %v1864_v10  ;;  %v1881_v27 = vld [vmem:[%s2421_s1 + $0xb0] sm:$0xff]   ;;  %v1885_v31 = vld [vmem:[%s2421_s1 + $0xb8] sm:$0xff]   ;;  %v55_v37 = vld [vmem:[%s2422_s0 + $0x28] sm:$0xff] }
   0xd   :  { %1667 = vmatpush3.bf16.msra.mxu1 %v1865_v11  ;;  %1604 = vmatprep.subr.bf16.mxu0 %v1866_v12  ;;  %v1472_v38 = vcombine.low %v51_v34, %v55_v37  ;;  %v1473_v39 = vcombine.high %v51_v34, %v55_v37  ;;  %v1886_v40 = vld [vmem:[%s2421_s1 + $0x140] sm:$0xff]   ;;  %v59_v47 = vld [vmem:[%s2422_s0 + $0x48] sm:$0xff]  ;;  %v1894_v62 = vld [vmem:[%s2421_s1 + $0x150] sm:$0xff]  }
   0xe   :  { %1668 = vmatprep.subr.bf16.mxu1 %v1867_v13  ;;  %978 = vmatprep.mubr.bf16.mxu0 %v1471_v36  ;;  %v1887_v41 = vld [vmem:[%s2421_s1 + $0x100] sm:$0xff]   ;;  %v63_v48 = vld [vmem:[%s2422_s0 + $0x68] sm:$0xff]  ;;  %v1895_v63 = vld [vmem:[%s2421_s1 + $0x110] sm:$0xff]  }
   0xf   :  { %1075 = vmatprep.mubr.bf16.mxu1 %v1473_v39  ;;  %v1888_v42 = vld [vmem:[%s2421_s1 + $0x1c0] sm:$0xff]   ;;  %v1481_v49 = vcombine.high %v59_v47, %v63_v48  ;;  %v1890_v50 = vld [vmem:[%s2421_s1 + $0x148] sm:$0xff]   ;;  %v1480_v53 = vcombine.low %v59_v47, %v63_v48  ;;  %v1896_v0 = vld [vmem:[%s2421_s1 + $0x1d0] sm:$0xff]  }
  0x10   :  { %1605 = vmatpush3.bf16.msra.mxu0 %v1868_v14  ;;  %v1889_v43 = vld [vmem:[%s2421_s1 + $0x180] sm:$0xff]   ;;  %v1891_v52 = vld [vmem:[%s2421_s1 + $0x108] sm:$0xff]   ;;  %v1897_v1 = vld [vmem:[%s2421_s1 + $0x190] sm:$0xff]  }
  0x11   :  { %1669 = vmatpush3.bf16.msra.mxu1 %v1869_v15  ;;  %1606 = vmatprep.subr.bf16.mxu0 %v1870_v16  ;;  %v58_v44 = vld [vmem:[%s2422_s0 + $0x40] sm:$0xff]  ;;  %v1892_v54 = vld [vmem:[%s2421_s1 + $0x1c8] sm:$0xff]   ;;  %v1898_v10 = vld [vmem:[%s2421_s1 + $0x158] sm:$0xff]  }
  0x12   :  { %1670 = vmatprep.subr.bf16.mxu1 %v1871_v17  ;;  %v62_v45 = vld [vmem:[%s2422_s0 + $0x60] sm:$0xff]  ;;  %v1893_v55 = vld [vmem:[%s2421_s1 + $0x188] sm:$0xff]   ;;  %v1899_v11 = vld [vmem:[%s2421_s1 + $0x118] sm:$0xff]  }
  0x13   :  { %v1479_v46 = vcombine.high %v58_v44, %v62_v45  ;;  %v1478_v51 = vcombine.low %v58_v44, %v62_v45  ;;  %v66_v56 = vld [vmem:[%s2422_s0 + $0x80] sm:$0xff]  ;;  %v67_v58 = vld [vmem:[%s2422_s0 + $0x88] sm:$0xff]  ;;  %v1900_v12 = vld [vmem:[%s2421_s1 + $0x1d8] sm:$0xff]  }
  0x14   :  { %1607 = vmatpush3.bf16.msra.mxu0 %v1872_v18  ;;  %v70_v57 = vld [vmem:[%s2422_s0 + $0xa0] sm:$0xff]  ;;  %v71_v59 = vld [vmem:[%s2422_s0 + $0xa8] sm:$0xff]  ;;  %v1901_v13 = vld [vmem:[%s2421_s1 + $0x198] sm:$0xff]  }
  0x15   :  { %1671 = vmatpush3.bf16.msra.mxu1 %v1873_v19  ;;  %1608 = vmatprep.subr.bf16.mxu0 %v1874_v20  ;;  %v1487_v60 = vcombine.high %v66_v56, %v70_v57  ;;  %v1489_v61 = vcombine.high %v67_v58, %v71_v59  ;;  %v1486_v2 = vcombine.low %v66_v56, %v70_v57  ;;  %v74_v3 = vld [vmem:[%s2422_s0 + $0xc0] sm:$0xff]  ;;  %v75_v5 = vld [vmem:[%s2422_s0 + $0xc8] sm:$0xff]  ;;  %v1911_v39 = vld [vmem:[%s2421_s1 + $0x130] sm:$0xff]  }
  0x16   :  { %1672 = vmatprep.subr.bf16.mxu1 %v1875_v21  ;;  %v78_v4 = vld [vmem:[%s2422_s0 + $0xe0] sm:$0xff]  ;;  %v1488_v6 = vcombine.low %v67_v58, %v71_v59  ;;  %v79_v8 = vld [vmem:[%s2422_s0 + $0xe8] sm:$0xff]  ;;  %v1915_v48 = vld [vmem:[%s2421_s1 + $0x138] sm:$0xff]  }
  0x17   :  { %v1495_v7 = vcombine.high %v74_v3, %v78_v4  ;;  %v1497_v9 = vcombine.high %v75_v5, %v79_v8  ;;  %v82_v14 = vld [vmem:[%s2422_s0 + $0x100] sm:$0xff]  ;;  %v83_v16 = vld [vmem:[%s2422_s0 + $0x108] sm:$0xff]  ;;  %v1494_v19 = vcombine.low %v74_v3, %v78_v4  ;;  %v1496_v21 = vcombine.low %v75_v5, %v79_v8  ;;  %v61_v8 = vld [vmem:[%s2422_s0 + $0x58] sm:$0xff] }
  0x18   :  { %1609 = vmatpush3.bf16.msra.mxu0 %v1876_v22  ;;  %v86_v15 = vld [vmem:[%s2422_s0 + $0x120] sm:$0xff]  ;;  %v87_v17 = vld [vmem:[%s2422_s0 + $0x128] sm:$0xff] }
  0x19   :  { %1673 = vmatpush3.bf16.msra.mxu1 %v1877_v23  ;;  %1610 = vmatprep.subr.bf16.mxu0 %v1878_v24  ;;  %v1902_v18 = vld [vmem:[%s2421_s1 + $0x160] sm:$0xff]   ;;  %v1503_v22 = vcombine.high %v82_v14, %v86_v15  ;;  %v1505_v24 = vcombine.high %v83_v16, %v87_v17  ;;  %v1908_v32 = vld [vmem:[%s2421_s1 + $0x1e8] sm:$0xff]   ;;  %v1502_v34 = vcombine.low %v82_v14, %v86_v15  ;;  %v68_v14 = vld [vmem:[%s2422_s0 + $0x90] sm:$0xff] }
  0x1a   :  { %1674 = vmatprep.subr.bf16.mxu1 %v1879_v25  ;;  %v1903_v20 = vld [vmem:[%s2421_s1 + $0x120] sm:$0xff]   ;;  %v1909_v33 = vld [vmem:[%s2421_s1 + $0x1a8] sm:$0xff]   ;;  %v72_v15 = vld [vmem:[%s2422_s0 + $0xb0] sm:$0xff] }
  0x1b   :  { %v1904_v23 = vld [vmem:[%s2421_s1 + $0x1e0] sm:$0xff]   ;;  %v99_v44 = vld [vmem:[%s2422_s0 + $0x188] sm:$0xff] }
  0x1c   :  { %1611 = vmatpush3.bf16.msra.mxu0 %v1880_v26  ;;  %v1905_v25 = vld [vmem:[%s2421_s1 + $0x1a0] sm:$0xff]   ;;  %v103_v45 = vld [vmem:[%s2422_s0 + $0x1a8] sm:$0xff] }
  0x1d   :  { %1675 = vmatpush3.bf16.msra.mxu1 %v1881_v27  ;;  %1612 = vmatprep.subr.bf16.mxu0 %v1882_v28  ;;  %v90_v26 = vld [vmem:[%s2422_s0 + $0x140] sm:$0xff]  ;;  %v1906_v28 = vld [vmem:[%s2421_s1 + $0x168] sm:$0xff]   ;;  %v1520_v59 = vcombine.low %v99_v44, %v103_v45 }
  0x1e   :  { %1676 = vmatprep.subr.bf16.mxu1 %v1883_v29  ;;  %v94_v27 = vld [vmem:[%s2422_s0 + $0x160] sm:$0xff]  ;;  %v91_v29 = vld [vmem:[%s2422_s0 + $0x148] sm:$0xff] }
  0x1f   :  { %v1511_v36 = vcombine.high %v90_v26, %v94_v27  ;;  %v1510_v47 = vcombine.low %v90_v26, %v94_v27  ;;  %v107_v56 = vld [vmem:[%s2422_s0 + $0x1c8] sm:$0xff]  ;;  %v1490_v26 = vcombine.low %v68_v14, %v72_v15 }
  0x20   :  { %1613 = vmatpush3.bf16.msra.mxu0 %v1884_v30  ;;  %v95_v30 = vld [vmem:[%s2422_s0 + $0x168] sm:$0xff] }
  0x21   :  { %1677 = vmatpush3.bf16.msra.mxu1 %v1885_v31  ;;  %1726 = vmatprep.subr.bf16.mxu0 %v1886_v40  ;;  %v1907_v31 = vld [vmem:[%s2421_s1 + $0x128] sm:$0xff]   ;;  %v1513_v37 = vcombine.high %v91_v29, %v95_v30  ;;  %v1912_v40 = vld [vmem:[%s2421_s1 + $0x1f0] sm:$0xff]  }
  0x22   :  { %1790 = vmatprep.subr.bf16.mxu1 %v1888_v42  ;;  %v102_v42 = vld [vmem:[%s2422_s0 + $0x1a0] sm:$0xff]  ;;  %v111_v57 = vld [vmem:[%s2422_s0 + $0x1e8] sm:$0xff] }
  0x23   :  { %979 = vmatmul.mubr.bf16.vlgmr.msra.gmra.mrb[0].mxu0 %v1470_v35  ;;  %v1504_v35 = vcombine.low %v83_v16, %v87_v17  ;;  %v1528_v3 = vcombine.low %v107_v56, %v111_v57  ;;  %v69_v16 = vld [vmem:[%s2422_s0 + $0x98] sm:$0xff] }
  0x24   :  { %1076 = vmatmul.mubr.bf16.vlgmr.msra.gmra.mrb[0].mxu1 %v1472_v38  ;;  %1727 = vmatpush3.bf16.msra.mxu0 %v1887_v41  ;;  %v1910_v38 = vld [vmem:[%s2421_s1 + $0x170] sm:$0xff]   ;;  %v98_v41 = vld [vmem:[%s2422_s0 + $0x180] sm:$0xff]  ;;  %v73_v17 = vld [vmem:[%s2422_s0 + $0xb8] sm:$0xff] }
  0x25   :  { %1791 = vmatpush3.bf16.msra.mxu1 %v1889_v43  ;;  %986 = vmatprep.mubr.bf16.mxu0 %v1479_v46  ;;  %v1913_v43 = vld [vmem:[%s2421_s1 + $0x1b0] sm:$0xff]   ;;  %v1914_v46 = vld [vmem:[%s2421_s1 + $0x178] sm:$0xff]   ;;  %v1518_v58 = vcombine.low %v98_v41, %v102_v42  ;;  %v1492_v27 = vcombine.low %v69_v16, %v73_v17 }
  0x26   :  { %1083 = vmatprep.mubr.bf16.mxu1 %v1481_v49  ;;  %1728 = vmatprep.subr.bf16.mxu0 %v1890_v50  ;;  %v1512_v49 = vcombine.low %v91_v29, %v95_v30  ;;  %v1519_v50 = vcombine.high %v98_v41, %v102_v42  ;;  %v84_v30 = vld [vmem:[%s2422_s0 + $0x110] sm:$0xff]  ;;  %v97_v41 = vld [vmem:[%s2422_s0 + $0x178] sm:$0xff] }
  0x27   :  { %1792 = vmatprep.subr.bf16.mxu1 %v1892_v54  ;;  %v106_v54 = vld [vmem:[%s2422_s0 + $0x1c0] sm:$0xff] }
  0x28   :  { %1729 = vmatpush3.bf16.msra.mxu0 %v1891_v52  ;;  %v1521_v52 = vcombine.high %v99_v44, %v103_v45 }
  0x29   :  { %1793 = vmatpush3.bf16.msra.mxu1 %v1893_v55  ;;  %1730 = vmatprep.subr.bf16.mxu0 %v1894_v62  ;;  %v110_v55 = vld [vmem:[%s2422_s0 + $0x1e0] sm:$0xff]  ;;  %v52_v62 = vld [vmem:[%s2422_s0 + $0x10] sm:$0xff] }
  0x2a   :  { %1794 = vmatprep.subr.bf16.mxu1 %v1896_v0  ;;  %v53_v0 = vld [vmem:[%s2422_s0 + $0x18] sm:$0xff] }
  0x2b   :  { %987 = vmatmul.mubr.bf16.gmra.mrb[4].mxu0 %v1478_v51  ;;  %v1916_v51 = vld [vmem:[%s2421_s1 + $0x1f8] sm:$0xff]  }
  0x2c   :  { %1084 = vmatmul.mubr.bf16.gmra.mrb[4].mxu1 %v1480_v53  ;;  %994 = vmatprep.mubr.bf16.mxu0 %v1487_v60  ;;  %v1917_v53 = vld [vmem:[%s2421_s1 + $0x1b8] sm:$0xff]   ;;  %v1527_v60 = vcombine.high %v106_v54, %v110_v55 }
  0x2d   :  { %1091 = vmatprep.mubr.bf16.mxu1 %v1489_v61  ;;  %1731 = vmatpush3.bf16.msra.mxu0 %v1895_v63  ;;  %v1529_v61 = vcombine.high %v107_v56, %v111_v57  ;;  %v56_v63 = vld [vmem:[%s2422_s0 + $0x30] sm:$0xff]  ;;  %v109_v56 = vld [vmem:[%s2422_s0 + $0x1d8] sm:$0xff] }
  0x2e   :  { %1795 = vmatpush3.bf16.msra.mxu1 %v1897_v1  ;;  %1732 = vmatprep.subr.bf16.mxu0 %v1898_v10  ;;  %v57_v1 = vld [vmem:[%s2422_s0 + $0x38] sm:$0xff]  ;;  %v1475_v4 = vcombine.high %v52_v62, %v56_v63  ;;  %v1474_v10 = vcombine.low %v52_v62, %v56_v63 }
  0x2f   :  { %1796 = vmatprep.subr.bf16.mxu1 %v1900_v12  ;;  %v1477_v5 = vcombine.high %v53_v0, %v57_v1  ;;  %v113_v57 = vld [vmem:[%s2422_s0 + $0x1f8] sm:$0xff] }
  0x30   :  { %v1532_v63 = vcombine.low %v109_v56, %v113_v57 }
  0x31   :  { %1733 = vmatpush3.bf16.msra.mxu0 %v1899_v11  ;;  %v1476_v11 = vcombine.low %v53_v0, %v57_v1 }
  0x32   :  { %1797 = vmatpush3.bf16.msra.mxu1 %v1901_v13  ;;  %1734 = vmatprep.subr.bf16.mxu0 %v1902_v18 }
  0x33   :  { %995 = vmatmul.mubr.bf16.gmra.mrb[8].mxu0 %v1486_v2  ;;  %1798 = vmatprep.subr.bf16.mxu1 %v1904_v23  ;;  %v1526_v2 = vcombine.low %v106_v54, %v110_v55  ;;  %v80_v23 = vld [vmem:[%s2422_s0 + $0xf0] sm:$0xff] }
  0x34   :  { %1092 = vmatmul.mubr.bf16.gmra.mrb[8].mxu1 %v1488_v6  ;;  %1002 = vmatprep.mubr.bf16.mxu0 %v1495_v7  ;;  %v60_v6 = vld [vmem:[%s2422_s0 + $0x50] sm:$0xff] }
  0x35   :  { %1099 = vmatprep.mubr.bf16.mxu1 %v1497_v9  ;;  %1735 = vmatpush3.bf16.msra.mxu0 %v1903_v20  ;;  %v64_v7 = vld [vmem:[%s2422_s0 + $0x70] sm:$0xff]  ;;  %v65_v9 = vld [vmem:[%s2422_s0 + $0x78] sm:$0xff]  ;;  %v1491_v20 = vcombine.high %v68_v14, %v72_v15 }
  0x36   :  { %1799 = vmatpush3.bf16.msra.mxu1 %v1905_v25  ;;  %1736 = vmatprep.subr.bf16.mxu0 %v1906_v28  ;;  %v1483_v12 = vcombine.high %v60_v6, %v64_v7  ;;  %v1485_v13 = vcombine.high %v61_v8, %v65_v9  ;;  %v1482_v18 = vcombine.low %v60_v6, %v64_v7  ;;  %v81_v25 = vld [vmem:[%s2422_s0 + $0xf8] sm:$0xff]  ;;  %v108_v54 = vld [vmem:[%s2422_s0 + $0x1d0] sm:$0xff] }
  0x37   :  { %1800 = vmatprep.subr.bf16.mxu1 %v1908_v32  ;;  %v85_v32 = vld [vmem:[%s2422_s0 + $0x118] sm:$0xff]  ;;  %v112_v55 = vld [vmem:[%s2422_s0 + $0x1f0] sm:$0xff] }
  0x38   :  { %v1530_v62 = vcombine.low %v108_v54, %v112_v55 }
  0x39   :  { %1737 = vmatpush3.bf16.msra.mxu0 %v1907_v31  ;;  %v88_v31 = vld [vmem:[%s2422_s0 + $0x130] sm:$0xff] }
  0x3a   :  { %1801 = vmatpush3.bf16.msra.mxu1 %v1909_v33  ;;  %1738 = vmatprep.subr.bf16.mxu0 %v1910_v38  ;;  %v89_v33 = vld [vmem:[%s2422_s0 + $0x138] sm:$0xff]  ;;  %v92_v38 = vld [vmem:[%s2422_s0 + $0x150] sm:$0xff]  ;;  %v1506_v42 = vcombine.low %v84_v30, %v88_v31 }
  0x3b   :  { %1003 = vmatmul.mubr.bf16.gmra.mrb[12].mxu0 %v1494_v19  ;;  %1802 = vmatprep.subr.bf16.mxu1 %v1912_v40  ;;  %v1484_v19 = vcombine.low %v61_v8, %v65_v9  ;;  %v93_v40 = vld [vmem:[%s2422_s0 + $0x158] sm:$0xff] }
  0x3c   :  { %1100 = vmatmul.mubr.bf16.gmra.mrb[12].mxu1 %v1496_v21  ;;  %1010 = vmatprep.mubr.bf16.mxu0 %v1503_v22  ;;  %v1493_v21 = vcombine.high %v69_v16, %v73_v17  ;;  %v76_v22 = vld [vmem:[%s2422_s0 + $0xd0] sm:$0xff]  ;;  %v1517_v45 = vcombine.high %v93_v40, %v97_v41 }
  0x3d   :  { %1107 = vmatprep.mubr.bf16.mxu1 %v1505_v24  ;;  %1739 = vmatpush3.bf16.msra.mxu0 %v1911_v39  ;;  %v77_v24 = vld [vmem:[%s2422_s0 + $0xd8] sm:$0xff]  ;;  %v1499_v28 = vcombine.high %v76_v22, %v80_v23  ;;  %v96_v39 = vld [vmem:[%s2422_s0 + $0x170] sm:$0xff] }
  0x3e   :  { %1803 = vmatpush3.bf16.msra.mxu1 %v1913_v43  ;;  %1740 = vmatprep.subr.bf16.mxu0 %v1914_v46  ;;  %v1501_v29 = vcombine.high %v77_v24, %v81_v25  ;;  %v1508_v43 = vcombine.low %v85_v32, %v89_v33  ;;  %v1515_v44 = vcombine.high %v92_v38, %v96_v39  ;;  %v100_v46 = vld [vmem:[%s2422_s0 + $0x190] sm:$0xff] }
  0x3f   :  { %1804 = vmatprep.subr.bf16.mxu1 %v1916_v51  ;;  %v1516_v51 = vcombine.low %v93_v40, %v97_v41 }
  0x41   :  { %1741 = vmatpush3.bf16.msra.mxu0 %v1915_v48  ;;  %v101_v48 = vld [vmem:[%s2422_s0 + $0x198] sm:$0xff] }
  0x42   :  { %1805 = vmatpush3.bf16.msra.mxu1 %v1917_v53 }
  0x43   :  { %1011 = vmatmul.mubr.bf16.gmra.mrb[16].mxu0 %v1502_v34  ;;  %v1498_v34 = vcombine.low %v76_v22, %v80_v23 }
  0x44   :  { %1108 = vmatmul.mubr.bf16.gmra.mrb[16].mxu1 %v1504_v35  ;;  %1018 = vmatprep.mubr.bf16.mxu0 %v1511_v36  ;;  %v1500_v35 = vcombine.low %v77_v24, %v81_v25  ;;  %v1507_v36 = vcombine.high %v84_v30, %v88_v31 }
  0x45   :  { %1115 = vmatprep.mubr.bf16.mxu1 %v1513_v37  ;;  %v1509_v37 = vcombine.high %v85_v32, %v89_v33 }
  0x4b   :  { %1019 = vmatmul.mubr.bf16.gmra.mrb[20].mxu0 %v1510_v47  ;;  %v104_v47 = vld [vmem:[%s2422_s0 + $0x1b0] sm:$0xff] }
  0x4c   :  { %1116 = vmatmul.mubr.bf16.gmra.mrb[20].mxu1 %v1512_v49  ;;  %1026 = vmatprep.mubr.bf16.mxu0 %v1519_v50  ;;  %v105_v49 = vld [vmem:[%s2422_s0 + $0x1b8] sm:$0xff]  ;;  %v1514_v50 = vcombine.low %v92_v38, %v96_v39 }
  0x4d   :  { %1123 = vmatprep.mubr.bf16.mxu1 %v1521_v52  ;;  %v1523_v52 = vcombine.high %v100_v46, %v104_v47  ;;  %v1525_v53 = vcombine.high %v101_v48, %v105_v49 }
  0x53   :  { %1027 = vmatmul.mubr.bf16.gmra.mrb[24].mxu0 %v1518_v58  ;;  %v1522_v58 = vcombine.low %v100_v46, %v104_v47 }
  0x54   :  { %1124 = vmatmul.mubr.bf16.gmra.mrb[24].mxu1 %v1520_v59  ;;  %1034 = vmatprep.mubr.bf16.mxu0 %v1527_v60  ;;  %v1524_v59 = vcombine.low %v101_v48, %v105_v49  ;;  %v1531_v60 = vcombine.high %v108_v54, %v112_v55 }
  0x55   :  { %1131 = vmatprep.mubr.bf16.mxu1 %v1529_v61  ;;  %v1533_v61 = vcombine.high %v109_v56, %v113_v57 }
  0x5b   :  { %1035 = vmatmul.mubr.bf16.gmra.mrb[28].mxu0 %v1526_v2 }
  0x5c   :  { %1132 = vmatmul.mubr.bf16.gmra.mrb[28].mxu1 %v1528_v3  ;;  %1172 = vmatprep.mubr.bf16.mxu0 %v1475_v4 }
  0x5d   :  { %1269 = vmatprep.mubr.bf16.mxu1 %v1477_v5 }
  0x63   :  { %1173 = vmatmul.mubr.bf16.vlgmr.msra.gmra.mrb[32].mxu0 %v1474_v10 }
  0x64   :  { %1270 = vmatmul.mubr.bf16.vlgmr.msra.gmra.mrb[32].mxu1 %v1476_v11  ;;  %1180 = vmatprep.mubr.bf16.mxu0 %v1483_v12 }
  0x65   :  { %1277 = vmatprep.mubr.bf16.mxu1 %v1485_v13 }
  0x6b   :  { %1181 = vmatmul.mubr.bf16.gmra.mrb[36].mxu0 %v1482_v18 }
  0x6c   :  { %1278 = vmatmul.mubr.bf16.gmra.mrb[36].mxu1 %v1484_v19  ;;  %1188 = vmatprep.mubr.bf16.mxu0 %v1491_v20 }
  0x6d   :  { %1285 = vmatprep.mubr.bf16.mxu1 %v1493_v21 }
  0x73   :  { %1189 = vmatmul.mubr.bf16.gmra.mrb[40].mxu0 %v1490_v26 }
  0x74   :  { %1286 = vmatmul.mubr.bf16.gmra.mrb[40].mxu1 %v1492_v27  ;;  %1196 = vmatprep.mubr.bf16.mxu0 %v1499_v28 }
  0x75   :  { %1293 = vmatprep.mubr.bf16.mxu1 %v1501_v29 }
  0x7b   :  { %1197 = vmatmul.mubr.bf16.gmra.mrb[44].mxu0 %v1498_v34 }
  0x7c   :  { %1294 = vmatmul.mubr.bf16.gmra.mrb[44].mxu1 %v1500_v35  ;;  %1204 = vmatprep.mubr.bf16.mxu0 %v1507_v36 }
  0x7d   :  { %1301 = vmatprep.mubr.bf16.mxu1 %v1509_v37 }
  0x83   :  { %1205 = vmatmul.mubr.bf16.gmra.mrb[48].mxu0 %v1506_v42 }
  0x84   :  { %1302 = vmatmul.mubr.bf16.gmra.mrb[48].mxu1 %v1508_v43  ;;  %1212 = vmatprep.mubr.bf16.mxu0 %v1515_v44 }
  0x85   :  { %1309 = vmatprep.mubr.bf16.mxu1 %v1517_v45 }
  0x8b   :  { %1213 = vmatmul.mubr.bf16.gmra.mrb[52].mxu0 %v1514_v50 }
  0x8c   :  { %1310 = vmatmul.mubr.bf16.gmra.mrb[52].mxu1 %v1516_v51  ;;  %1220 = vmatprep.mubr.bf16.mxu0 %v1523_v52 }
  0x8d   :  { %1317 = vmatprep.mubr.bf16.mxu1 %v1525_v53 }
  0x93   :  { %1221 = vmatmul.mubr.bf16.gmra.mrb[56].mxu0 %v1522_v58 }
  0x94   :  { %1318 = vmatmul.mubr.bf16.gmra.mrb[56].mxu1 %v1524_v59  ;;  %1228 = vmatprep.mubr.bf16.mxu0 %v1531_v60 }
  0x95   :  { %1325 = vmatprep.mubr.bf16.mxu1 %v1533_v61 }
  0x9b   :  { %1229 = vmatmul.mubr.bf16.gmra.mrb[60].mxu0 %v1530_v62 }
  0x9c   :  { %1326 = vmatmul.mubr.bf16.gmra.mrb[60].mxu1 %v1532_v63 }
  0xf6   :  { %v1614_v0 = vpop.f32.mrb[0].mxu0 }
  0xf7   :  { %v1678_v1 = vpop.f32.mrb[0].mxu1  ;;  %v1615_v2 = vpop.f32.mrb[1].mxu0 }
  0xf8   :  { %v1616_v3 = vadd.f32 %v1615_v2, %v1614_v0  ;;  %v1679_v4 = vpop.f32.mrb[1].mxu1  ;;  %v1617_v5 = vpop.f32.mrb[2].mxu0 }
  0xf9   :  { %v1680_v6 = vadd.f32 %v1679_v4, %v1678_v1  ;;  %v1681_v7 = vpop.f32.mrb[2].mxu1  ;;  %v1618_v8 = vpop.f32.mrb[3].mxu0 }
  0xfa   :  { %v1619_v9 = vadd.f32 %v1618_v8, %v1617_v5  ;;  %v1682_v10 = vpop.f32.mrb[3].mxu1 }
  0xfb   :  { %v2322_v11 = vadd.f32 %v1680_v6, %v1616_v3  ;;  %v1683_v12 = vadd.f32 %v1682_v10, %v1681_v7 }
  0xfd   :  { %v2324_v13 = vadd.f32 %v1683_v12, %v1619_v9 }
  0xfe   :  { %v1620_v14 = vpop.f32.mrb[4].mxu0 }
  0xff   :  { %v1684_v15 = vpop.f32.mrb[4].mxu1  ;;  %v1621_v16 = vpop.f32.mrb[5].mxu0 }
 0x100   :  { %v1622_v17 = vadd.f32 %v1621_v16, %v1620_v14  ;;  %v1685_v18 = vpop.f32.mrb[5].mxu1  ;;  %v1623_v19 = vpop.f32.mrb[6].mxu0 }
 0x101   :  { %v1686_v20 = vadd.f32 %v1685_v18, %v1684_v15  ;;  %v1687_v21 = vpop.f32.mrb[6].mxu1  ;;  %v1624_v22 = vpop.f32.mrb[7].mxu0 }
 0x102   :  { %v1625_v23 = vadd.f32 %v1624_v22, %v1623_v19  ;;  %v1688_v24 = vpop.f32.mrb[7].mxu1 }
 0x103   :  { %v2326_v25 = vadd.f32 %v1686_v20, %v1622_v17  ;;  %v1689_v26 = vadd.f32 %v1688_v24, %v1687_v21 }
 0x105   :  { %v2328_v27 = vadd.f32 %v1689_v26, %v1625_v23 }
 0x106   :  { %v1626_v28 = vpop.f32.mrb[8].mxu0 }
 0x107   :  { %v1690_v29 = vpop.f32.mrb[8].mxu1  ;;  %v1627_v30 = vpop.f32.mrb[9].mxu0 }
 0x108   :  { %v1628_v31 = vadd.f32 %v1627_v30, %v1626_v28  ;;  %v1691_v32 = vpop.f32.mrb[9].mxu1  ;;  %v1629_v33 = vpop.f32.mrb[10].mxu0 }
 0x109   :  { %v1692_v34 = vadd.f32 %v1691_v32, %v1690_v29  ;;  %v1693_v35 = vpop.f32.mrb[10].mxu1  ;;  %v1630_v36 = vpop.f32.mrb[11].mxu0 }
 0x10a   :  { %v1631_v37 = vadd.f32 %v1630_v36, %v1629_v33  ;;  %v1694_v38 = vpop.f32.mrb[11].mxu1 }
 0x10b   :  { %v2330_v39 = vadd.f32 %v1692_v34, %v1628_v31  ;;  %v1695_v40 = vadd.f32 %v1694_v38, %v1693_v35 }
 0x10d   :  { %v2332_v41 = vadd.f32 %v1695_v40, %v1631_v37 }
 0x10e   :  { %v1632_v42 = vpop.f32.mrb[12].mxu0 }
 0x10f   :  { %v1696_v43 = vpop.f32.mrb[12].mxu1  ;;  %v1633_v44 = vpop.f32.mrb[13].mxu0 }
 0x110   :  { %v1634_v45 = vadd.f32 %v1633_v44, %v1632_v42  ;;  %v1697_v46 = vpop.f32.mrb[13].mxu1  ;;  %v1635_v47 = vpop.f32.mrb[14].mxu0 }
 0x111   :  { %v1698_v48 = vadd.f32 %v1697_v46, %v1696_v43  ;;  %v1699_v49 = vpop.f32.mrb[14].mxu1  ;;  %v1636_v50 = vpop.f32.mrb[15].mxu0 }
 0x112   :  { %v1637_v51 = vadd.f32 %v1636_v50, %v1635_v47  ;;  %v1700_v52 = vpop.f32.mrb[15].mxu1 }
 0x113   :  { %v2334_v53 = vadd.f32 %v1698_v48, %v1634_v45  ;;  %v1701_v54 = vadd.f32 %v1700_v52, %v1699_v49 }
 0x115   :  { %v2336_v55 = vadd.f32 %v1701_v54, %v1637_v51 }
 0x116   :  { %v1638_v56 = vpop.f32.mrb[16].mxu0 }
 0x117   :  { %v1702_v57 = vpop.f32.mrb[16].mxu1  ;;  %v1639_v58 = vpop.f32.mrb[17].mxu0 }
 0x118   :  { %v1640_v59 = vadd.f32 %v1639_v58, %v1638_v56  ;;  %v1703_v60 = vpop.f32.mrb[17].mxu1  ;;  %v1641_v61 = vpop.f32.mrb[18].mxu0 }
 0x119   :  { %v1704_v62 = vadd.f32 %v1703_v60, %v1702_v57  ;;  %v1705_v63 = vpop.f32.mrb[18].mxu1  ;;  %v1642_v0 = vpop.f32.mrb[19].mxu0 }
 0x11a   :  { %v1643_v1 = vadd.f32 %v1642_v0, %v1641_v61  ;;  %v1706_v2 = vpop.f32.mrb[19].mxu1 }
 0x11b   :  { %v2338_v3 = vadd.f32 %v1704_v62, %v1640_v59  ;;  %v1707_v4 = vadd.f32 %v1706_v2, %v1705_v63 }
 0x11d   :  { %v2340_v5 = vadd.f32 %v1707_v4, %v1643_v1 }
 0x11e   :  { %v1644_v6 = vpop.f32.mrb[20].mxu0 }
 0x11f   :  { %v1708_v7 = vpop.f32.mrb[20].mxu1  ;;  %v1645_v8 = vpop.f32.mrb[21].mxu0 }
 0x120   :  { %v1646_v9 = vadd.f32 %v1645_v8, %v1644_v6  ;;  %v1709_v10 = vpop.f32.mrb[21].mxu1  ;;  %v1647_v12 = vpop.f32.mrb[22].mxu0 }
 0x121   :  { %v1710_v14 = vadd.f32 %v1709_v10, %v1708_v7  ;;  %v1711_v15 = vpop.f32.mrb[22].mxu1  ;;  %v1648_v16 = vpop.f32.mrb[23].mxu0 }
 0x122   :  { %v1649_v17 = vadd.f32 %v1648_v16, %v1647_v12  ;;  %v1712_v18 = vpop.f32.mrb[23].mxu1 }
 0x123   :  { %v2342_v19 = vadd.f32 %v1710_v14, %v1646_v9  ;;  %v1713_v20 = vadd.f32 %v1712_v18, %v1711_v15 }
 0x125   :  { %v2344_v21 = vadd.f32 %v1713_v20, %v1649_v17 }
 0x126   :  { %v1650_v22 = vpop.f32.mrb[24].mxu0 }
 0x127   :  { %v1714_v23 = vpop.f32.mrb[24].mxu1  ;;  %v1651_v24 = vpop.f32.mrb[25].mxu0 }
 0x128   :  { %v1652_v26 = vadd.f32 %v1651_v24, %v1650_v22  ;;  %v1715_v28 = vpop.f32.mrb[25].mxu1  ;;  %v1653_v29 = vpop.f32.mrb[26].mxu0 }
 0x129   :  { %v1716_v30 = vadd.f32 %v1715_v28, %v1714_v23  ;;  %v1717_v31 = vpop.f32.mrb[26].mxu1  ;;  %v1654_v32 = vpop.f32.mrb[27].mxu0 }
 0x12a   :  { %v1655_v33 = vadd.f32 %v1654_v32, %v1653_v29  ;;  %v1718_v34 = vpop.f32.mrb[27].mxu1 }
 0x12b   :  { %v2346_v35 = vadd.f32 %v1716_v30, %v1652_v26  ;;  %v1719_v36 = vadd.f32 %v1718_v34, %v1717_v31 }
 0x12d   :  { %v2348_v37 = vadd.f32 %v1719_v36, %v1655_v33 }
 0x12e   :  { %v1656_v38 = vpop.f32.mrb[28].mxu0 }
 0x12f   :  { %v1720_v40 = vpop.f32.mrb[28].mxu1  ;;  %v1657_v42 = vpop.f32.mrb[29].mxu0 }
 0x130   :  { %v1658_v43 = vadd.f32 %v1657_v42, %v1656_v38  ;;  %v1721_v44 = vpop.f32.mrb[29].mxu1  ;;  %v1659_v45 = vpop.f32.mrb[30].mxu0 }
 0x131   :  { %v1722_v46 = vadd.f32 %v1721_v44, %v1720_v40  ;;  %v1723_v47 = vpop.f32.mrb[30].mxu1  ;;  %v1660_v48 = vpop.f32.mrb[31].mxu0 }
 0x132   :  { %v1661_v49 = vadd.f32 %v1660_v48, %v1659_v45  ;;  %v1724_v50 = vpop.f32.mrb[31].mxu1 }
 0x133   :  { %v2350_v51 = vadd.f32 %v1722_v46, %v1658_v43  ;;  %v1725_v52 = vadd.f32 %v1724_v50, %v1723_v47 }
 0x135   :  { %v2352_v54 = vadd.f32 %v1725_v52, %v1661_v49 }
 0x136   :  { %v1742_v56 = vpop.f32.mrb[32].mxu0 }
 0x137   :  { %v1806_v57 = vpop.f32.mrb[32].mxu1  ;;  %v1743_v58 = vpop.f32.mrb[33].mxu0 }
 0x138   :  { %v1744_v59 = vadd.f32 %v1743_v58, %v1742_v56  ;;  %v1807_v60 = vpop.f32.mrb[33].mxu1  ;;  %v1745_v61 = vpop.f32.mrb[34].mxu0 }
 0x139   :  { %v1808_v62 = vadd.f32 %v1807_v60, %v1806_v57  ;;  %v1809_v63 = vpop.f32.mrb[34].mxu1  ;;  %v1746_v0 = vpop.f32.mrb[35].mxu0 }
 0x13a   :  { %v1175_v1 = vadd.f32 %v1744_v59, %v2322_v11  ;;  %v1747_v2 = vadd.f32 %v1746_v0, %v1745_v61  ;;  %v1810_v4 = vpop.f32.mrb[35].mxu1 }
 0x13b   :  { %v1811_v6 = vadd.f32 %v1810_v4, %v1809_v63 }
 0x13c   :  { %v1272_v7 = vadd.f32 %v1808_v62, %v1175_v1  ;;  %v1178_v8 = vadd.f32 %v1747_v2, %v2324_v13 }
 0x13e   :  { %1446 = vst [vmem:[%s2423_s2] sm:$0xff] %v1272_v7  ;;  %v1275_v9 = vadd.f32 %v1811_v6, %v1178_v8  ;;  %v1748_v10 = vpop.f32.mrb[36].mxu0  ;;  %v1406_v15 = vmul.f32 %v1272_v7, %v1272_v7 }
 0x13f   :  { %v1812_v12 = vpop.f32.mrb[36].mxu1  ;;  %v1749_v14 = vpop.f32.mrb[37].mxu0 }
 0x140   :  { %v1385_v16 = vadd.f32 %v1275_v9, %v1272_v7  ;;  %v1407_v17 = vmul.f32 %v1275_v9, %v1275_v9  ;;  %1447 = vst [vmem:[%s2423_s2 + $0x8] sm:$0xff] %v1275_v9  ;;  %v1750_v11 = vadd.f32 %v1749_v14, %v1748_v10  ;;  %v1813_v18 = vpop.f32.mrb[37].mxu1  ;;  %v1751_v20 = vpop.f32.mrb[38].mxu0 }
 0x141   :  { %v1814_v22 = vadd.f32 %v1813_v18, %v1812_v12  ;;  %v1815_v13 = vpop.f32.mrb[38].mxu1  ;;  %v1752_v23 = vpop.f32.mrb[39].mxu0 }
 0x142   :  { %v1422_v24 = vadd.f32 %v1407_v17, %v1406_v15  ;;  %v1183_v26 = vadd.f32 %v1750_v11, %v2326_v25  ;;  %v1753_v28 = vadd.f32 %v1752_v23, %v1751_v20  ;;  %v1816_v29 = vpop.f32.mrb[39].mxu1 }
 0x143   :  { %v1817_v30 = vadd.f32 %v1816_v29, %v1815_v13 }
 0x144   :  { %v1280_v31 = vadd.f32 %v1814_v22, %v1183_v26  ;;  %v1186_v32 = vadd.f32 %v1753_v28, %v2328_v27 }
 0x146   :  { %v1386_v33 = vadd.f32 %v1385_v16, %v1280_v31  ;;  %v1408_v34 = vmul.f32 %v1280_v31, %v1280_v31  ;;  %1448 = vst [vmem:[%s2423_s2 + $0x10] sm:$0xff] %v1280_v31  ;;  %v1283_v36 = vadd.f32 %v1817_v30, %v1186_v32  ;;  %v1754_v38 = vpop.f32.mrb[40].mxu0 }
 0x147   :  { %v1818_v40 = vpop.f32.mrb[40].mxu1  ;;  %v1755_v42 = vpop.f32.mrb[41].mxu0 }
 0x148   :  { %v1423_v43 = vadd.f32 %v1422_v24, %v1408_v34  ;;  %v1387_v44 = vadd.f32 %v1386_v33, %v1283_v36  ;;  %v1409_v45 = vmul.f32 %v1283_v36, %v1283_v36  ;;  %1449 = vst [vmem:[%s2423_s2 + $0x18] sm:$0xff] %v1283_v36  ;;  %v1756_v25 = vadd.f32 %v1755_v42, %v1754_v38  ;;  %v1819_v46 = vpop.f32.mrb[41].mxu1  ;;  %v1757_v27 = vpop.f32.mrb[42].mxu0 }
 0x149   :  { %v1820_v47 = vadd.f32 %v1819_v46, %v1818_v40  ;;  %v1821_v48 = vpop.f32.mrb[42].mxu1  ;;  %v1758_v49 = vpop.f32.mrb[43].mxu0 }
 0x14a   :  { %v1424_v50 = vadd.f32 %v1423_v43, %v1409_v45  ;;  %v1191_v52 = vadd.f32 %v1756_v25, %v2330_v39  ;;  %v1759_v56 = vadd.f32 %v1758_v49, %v1757_v27  ;;  %v1822_v57 = vpop.f32.mrb[43].mxu1 }
 0x14b   :  { %v1823_v58 = vadd.f32 %v1822_v57, %v1821_v48 }
 0x14c   :  { %v1288_v59 = vadd.f32 %v1820_v47, %v1191_v52  ;;  %v1194_v60 = vadd.f32 %v1759_v56, %v2332_v41 }
 0x14e   :  { %v1388_v61 = vadd.f32 %v1387_v44, %v1288_v59  ;;  %v1410_v62 = vmul.f32 %v1288_v59, %v1288_v59  ;;  %1450 = vst [vmem:[%s2423_s2 + $0x20] sm:$0xff] %v1288_v59  ;;  %v1291_v63 = vadd.f32 %v1823_v58, %v1194_v60  ;;  %v1760_v0 = vpop.f32.mrb[44].mxu0 }
 0x14f   :  { %v1824_v1 = vpop.f32.mrb[44].mxu1  ;;  %v1761_v2 = vpop.f32.mrb[45].mxu0 }
 0x150   :  { %v1425_v4 = vadd.f32 %v1424_v50, %v1410_v62  ;;  %v1389_v6 = vadd.f32 %v1388_v61, %v1291_v63  ;;  %v1411_v7 = vmul.f32 %v1291_v63, %v1291_v63  ;;  %1451 = vst [vmem:[%s2423_s2 + $0x28] sm:$0xff] %v1291_v63  ;;  %v1762_v39 = vadd.f32 %v1761_v2, %v1760_v0  ;;  %v1825_v8 = vpop.f32.mrb[45].mxu1  ;;  %v1763_v41 = vpop.f32.mrb[46].mxu0 }
 0x151   :  { %v1826_v9 = vadd.f32 %v1825_v8, %v1824_v1  ;;  %v1827_v10 = vpop.f32.mrb[46].mxu1  ;;  %v1764_v12 = vpop.f32.mrb[47].mxu0 }
 0x152   :  { %v1426_v14 = vadd.f32 %v1425_v4, %v1411_v7  ;;  %v1199_v15 = vadd.f32 %v1762_v39, %v2334_v53  ;;  %v1765_v16 = vadd.f32 %v1764_v12, %v1763_v41  ;;  %v1828_v17 = vpop.f32.mrb[47].mxu1 }
 0x153   :  { %v1829_v11 = vadd.f32 %v1828_v17, %v1827_v10 }
 0x154   :  { %v1296_v18 = vadd.f32 %v1826_v9, %v1199_v15  ;;  %v1202_v20 = vadd.f32 %v1765_v16, %v2336_v55 }
 0x156   :  { %v1390_v22 = vadd.f32 %v1389_v6, %v1296_v18  ;;  %v1412_v13 = vmul.f32 %v1296_v18, %v1296_v18  ;;  %1452 = vst [vmem:[%s2423_s2 + $0x30] sm:$0xff] %v1296_v18  ;;  %v1299_v23 = vadd.f32 %v1829_v11, %v1202_v20  ;;  %v1766_v24 = vpop.f32.mrb[48].mxu0 }
 0x157   :  { %v1830_v26 = vpop.f32.mrb[48].mxu1  ;;  %v1767_v28 = vpop.f32.mrb[49].mxu0 }
 0x158   :  { %v1427_v29 = vadd.f32 %v1426_v14, %v1412_v13  ;;  %v1391_v30 = vadd.f32 %v1390_v22, %v1299_v23  ;;  %v1413_v31 = vmul.f32 %v1299_v23, %v1299_v23  ;;  %1453 = vst [vmem:[%s2423_s2 + $0x38] sm:$0xff] %v1299_v23  ;;  %v1768_v53 = vadd.f32 %v1767_v28, %v1766_v24  ;;  %v1831_v32 = vpop.f32.mrb[49].mxu1  ;;  %v1769_v55 = vpop.f32.mrb[50].mxu0 }
 0x159   :  { %v1832_v33 = vadd.f32 %v1831_v32, %v1830_v26  ;;  %v1833_v34 = vpop.f32.mrb[50].mxu1  ;;  %v1770_v36 = vpop.f32.mrb[51].mxu0 }
 0x15a   :  { %v1428_v38 = vadd.f32 %v1427_v29, %v1413_v31  ;;  %v1207_v40 = vadd.f32 %v1768_v53, %v2338_v3  ;;  %v1771_v42 = vadd.f32 %v1770_v36, %v1769_v55  ;;  %v1834_v43 = vpop.f32.mrb[51].mxu1 }
 0x15b   :  { %v1835_v44 = vadd.f32 %v1834_v43, %v1833_v34 }
 0x15c   :  { %v1304_v45 = vadd.f32 %v1832_v33, %v1207_v40  ;;  %v1210_v25 = vadd.f32 %v1771_v42, %v2340_v5 }
 0x15e   :  { %v1392_v46 = vadd.f32 %v1391_v30, %v1304_v45  ;;  %v1414_v27 = vmul.f32 %v1304_v45, %v1304_v45  ;;  %1454 = vst [vmem:[%s2423_s2 + $0x40] sm:$0xff] %v1304_v45  ;;  %v1307_v47 = vadd.f32 %v1835_v44, %v1210_v25  ;;  %v1772_v48 = vpop.f32.mrb[52].mxu0 }
 0x15f   :  { %v1836_v49 = vpop.f32.mrb[52].mxu1  ;;  %v1773_v50 = vpop.f32.mrb[53].mxu0 }
 0x160   :  { %v1429_v52 = vadd.f32 %v1428_v38, %v1414_v27  ;;  %v1393_v56 = vadd.f32 %v1392_v46, %v1307_v47  ;;  %v1415_v57 = vmul.f32 %v1307_v47, %v1307_v47  ;;  %1455 = vst [vmem:[%s2423_s2 + $0x48] sm:$0xff] %v1307_v47  ;;  %v1774_v3 = vadd.f32 %v1773_v50, %v1772_v48  ;;  %v1837_v58 = vpop.f32.mrb[53].mxu1  ;;  %v1775_v5 = vpop.f32.mrb[54].mxu0 }
 0x161   :  { %v1838_v59 = vadd.f32 %v1837_v58, %v1836_v49  ;;  %v1839_v60 = vpop.f32.mrb[54].mxu1  ;;  %v1776_v61 = vpop.f32.mrb[55].mxu0 }
 0x162   :  { %v1430_v62 = vadd.f32 %v1429_v52, %v1415_v57  ;;  %v1215_v63 = vadd.f32 %v1774_v3, %v2342_v19  ;;  %v1777_v0 = vadd.f32 %v1776_v61, %v1775_v5  ;;  %v1840_v1 = vpop.f32.mrb[55].mxu1 }
 0x163   :  { %v1841_v2 = vadd.f32 %v1840_v1, %v1839_v60 }
 0x164   :  { %v1312_v4 = vadd.f32 %v1838_v59, %v1215_v63  ;;  %v1218_v6 = vadd.f32 %v1777_v0, %v2344_v21 }
 0x166   :  { %v1394_v7 = vadd.f32 %v1393_v56, %v1312_v4  ;;  %v1416_v39 = vmul.f32 %v1312_v4, %v1312_v4  ;;  %1456 = vst [vmem:[%s2423_s2 + $0x50] sm:$0xff] %v1312_v4  ;;  %v1315_v8 = vadd.f32 %v1841_v2, %v1218_v6  ;;  %v1778_v41 = vpop.f32.mrb[56].mxu0 }
 0x167   :  { %v1842_v9 = vpop.f32.mrb[56].mxu1  ;;  %v1779_v10 = vpop.f32.mrb[57].mxu0 }
 0x168   :  { %v1431_v12 = vadd.f32 %v1430_v62, %v1416_v39  ;;  %v1395_v14 = vadd.f32 %v1394_v7, %v1315_v8  ;;  %v1417_v15 = vmul.f32 %v1315_v8, %v1315_v8  ;;  %1457 = vst [vmem:[%s2423_s2 + $0x58] sm:$0xff] %v1315_v8  ;;  %v1780_v19 = vadd.f32 %v1779_v10, %v1778_v41  ;;  %v1843_v16 = vpop.f32.mrb[57].mxu1  ;;  %v1781_v21 = vpop.f32.mrb[58].mxu0 }
 0x169   :  { %v1844_v17 = vadd.f32 %v1843_v16, %v1842_v9  ;;  %v1845_v11 = vpop.f32.mrb[58].mxu1  ;;  %v1782_v18 = vpop.f32.mrb[59].mxu0 }
 0x16a   :  { %v1432_v20 = vadd.f32 %v1431_v12, %v1417_v15  ;;  %v1223_v22 = vadd.f32 %v1780_v19, %v2346_v35  ;;  %v1783_v13 = vadd.f32 %v1782_v18, %v1781_v21  ;;  %v1846_v23 = vpop.f32.mrb[59].mxu1 }
 0x16b   :  { %v1847_v24 = vadd.f32 %v1846_v23, %v1845_v11 }
 0x16c   :  { %v1320_v26 = vadd.f32 %v1844_v17, %v1223_v22  ;;  %v1226_v28 = vadd.f32 %v1783_v13, %v2348_v37 }
 0x16e   :  { %v1396_v29 = vadd.f32 %v1395_v14, %v1320_v26  ;;  %v1418_v30 = vmul.f32 %v1320_v26, %v1320_v26  ;;  %1458 = vst [vmem:[%s2423_s2 + $0x60] sm:$0xff] %v1320_v26  ;;  %v1323_v31 = vadd.f32 %v1847_v24, %v1226_v28  ;;  %v1784_v53 = vpop.f32.mrb[60].mxu0 }
 0x16f   :  { %v1848_v32 = vpop.f32.mrb[60].mxu1  ;;  %v1785_v55 = vpop.f32.mrb[61].mxu0 }
 0x170   :  { %v1433_v33 = vadd.f32 %v1432_v20, %v1418_v30  ;;  %v1397_v34 = vadd.f32 %v1396_v29, %v1323_v31  ;;  %v1419_v36 = vmul.f32 %v1323_v31, %v1323_v31  ;;  %1459 = vst [vmem:[%s2423_s2 + $0x68] sm:$0xff] %v1323_v31  ;;  %v1786_v35 = vadd.f32 %v1785_v55, %v1784_v53  ;;  %v1849_v38 = vpop.f32.mrb[61].mxu1  ;;  %v1787_v37 = vpop.f32.mrb[62].mxu0 }
 0x171   :  { %v1850_v40 = vadd.f32 %v1849_v38, %v1848_v32  ;;  %v1851_v42 = vpop.f32.mrb[62].mxu1  ;;  %v1788_v43 = vpop.f32.mrb[63].mxu0 }
 0x172   :  { %v1434_v44 = vadd.f32 %v1433_v33, %v1419_v36  ;;  %v1231_v45 = vadd.f32 %v1786_v35, %v2350_v51  ;;  %v1789_v25 = vadd.f32 %v1788_v43, %v1787_v37  ;;  %v1852_v46 = vpop.f32.mrb[63].mxu1 }
 0x173   :  { %v1853_v27 = vadd.f32 %v1852_v46, %v1851_v42 }
 0x174   :  { %v1328_v47 = vadd.f32 %v1850_v40, %v1231_v45  ;;  %v1234_v48 = vadd.f32 %v1789_v25, %v2352_v54 }
 0x176   :  { %v1398_v49 = vadd.f32 %v1397_v34, %v1328_v47  ;;  %v1420_v50 = vmul.f32 %v1328_v47, %v1328_v47  ;;  %1460 = vst [vmem:[%s2423_s2 + $0x70] sm:$0xff] %v1328_v47  ;;  %v1331_v52 = vadd.f32 %v1853_v27, %v1234_v48 }
 0x178   :  { %v1435_v56 = vadd.f32 %v1434_v44, %v1420_v50  ;;  %v1399_v57 = vadd.f32 %v1398_v49, %v1331_v52  ;;  %v1421_v3 = vmul.f32 %v1331_v52, %v1331_v52  ;;  %1461 = vst [vmem:[%s2423_s2 + $0x78] sm:$0xff] %v1331_v52 }
 0x17a   :  { %v1400_v51 = vrot.slane %v1399_v57, 4  ;;  %v1436_v58 = vadd.f32 %v1435_v56, %v1421_v3 }
 0x17c   :  { %v1401_v5 = vadd.f32 %v1400_v51, %v1399_v57  ;;  %v1437_v59 = vrot.slane %v1436_v58, 4 }
 0x17e   :  { %v1402_v60 = vrot.slane %v1401_v5, 2  ;;  %v1438_v54 = vadd.f32 %v1437_v59, %v1436_v58 }
 0x180   :  { %v1403_v61 = vadd.f32 %v1402_v60, %v1401_v5  ;;  %v1439_v62 = vrot.slane %v1438_v54, 2 }
 0x182   :  { %v1404_v63 = vrot.slane %v1403_v61, 1  ;;  %v1440_v0 = vadd.f32 %v1439_v62, %v1438_v54 }
 0x184   :  { %v1441_v1 = vrot.slane %v1440_v0, 1  ;;  %v1405_v2 = vadd.f32 %v1404_v63, %v1403_v61 }
 0x186   :  { %v1442_v4 = vadd.f32 %v1441_v1, %v1440_v0 }
 0x188   :  { %v1444_v6 = vsel %vm1443_vm0, %v1405_v2, %v1442_v4 }
 0x189   :  { %1445 = vst [vmem:[%s2424_s3] sm:$0x3] %v1444_v6 }

// kernel: _lambda_.10
= control target key start
LH: loop header
LB: loop body
LE: loop exit
PB: predicated region body
PF: predicated region fallthrough
CT: control target
= control target key end

     0   :  { %s423_s0 = inlined_call_operand.vmem [shape: f32[128,128], index: 0, kind: input, shape index: {}]   ;;  %s424_s1 = inlined_call_operand.vmem [shape: f32[1,128], index: 1, kind: input, shape index: {}]   ;;  %s425_s2 = inlined_call_operand.vmem [shape: f32[1,128], index: 2, kind: input, shape index: {}]   ;;  %s426_s3 = inlined_call_operand.vmem [shape: bf16[128,128], index: 3, kind: output, shape index: {}]  }
   0x1   :  { %v14_v0 = vld [vmem:[%s423_s0] sm:$0xff]  ;;  %v15_v1 = vld [vmem:[%s423_s0 + $0x8] sm:$0xff]  ;;  %v16_v6 = vld [vmem:[%s423_s0 + $0x10] sm:$0xff] }
   0x2   :  { %v318_v2 = vld [vmem:[%s424_s1] ss:$0 sm:$0xff]  ;;  %v17_v7 = vld [vmem:[%s423_s0 + $0x18] sm:$0xff]  ;;  %v19_v11 = vld [vmem:[%s423_s0 + $0x28] sm:$0xff] }
   0x3   :  { %v37_v3 = vmul.f32 %v318_v2, %v14_v0  ;;  %v38_v4 = vmul.f32 %v318_v2, %v15_v1  ;;  %v325_v5 = vld [vmem:[%s425_s2] ss:$0 sm:$0xff]  ;;  %v39_v8 = vmul.f32 %v318_v2, %v16_v6  ;;  %v40_v9 = vmul.f32 %v318_v2, %v17_v7  ;;  %v20_v12 = vld [vmem:[%s423_s0 + $0x30] sm:$0xff]  ;;  %v21_v17 = vld [vmem:[%s423_s0 + $0x38] sm:$0xff] }
   0x4   :  { %v18_v10 = vld [vmem:[%s423_s0 + $0x20] sm:$0xff]  ;;  %v42_v16 = vmul.f32 %v318_v2, %v19_v11  ;;  %v43_v20 = vmul.f32 %v318_v2, %v20_v12  ;;  %v44_v21 = vmul.f32 %v318_v2, %v21_v17  ;;  %v23_v35 = vld [vmem:[%s423_s0 + $0x48] sm:$0xff]  ;;  %v24_v36 = vld [vmem:[%s423_s0 + $0x50] sm:$0xff] }
   0x5   :  { %v60_v13 = vadd.f32 %v325_v5, %v37_v3  ;;  %v61_v14 = vadd.f32 %v325_v5, %v38_v4  ;;  %v41_v15 = vmul.f32 %v318_v2, %v18_v10  ;;  %v62_v18 = vadd.f32 %v325_v5, %v39_v8  ;;  %v22_v34 = vld [vmem:[%s423_s0 + $0x40] sm:$0xff]  ;;  %v25_v42 = vld [vmem:[%s423_s0 + $0x58] sm:$0xff]  ;;  %v27_v48 = vld [vmem:[%s423_s0 + $0x68] sm:$0xff] }
   0x6   :  { %v63_v19 = vadd.f32 %v325_v5, %v40_v9  ;;  %v65_v29 = vadd.f32 %v325_v5, %v42_v16  ;;  %v66_v33 = vadd.f32 %v325_v5, %v43_v20  ;;  %v67_v40 = vadd.f32 %v325_v5, %v44_v21  ;;  %v26_v47 = vld [vmem:[%s423_s0 + $0x60] sm:$0xff]  ;;  %v28_v60 = vld [vmem:[%s423_s0 + $0x70] sm:$0xff]  ;;  %v29_v7 = vld [vmem:[%s423_s0 + $0x78] sm:$0xff] }
   0x7   :  { %vm76_vm0 = vcmp.gt.f32.partialorder %v60_v13, 0.0  ;;  %vm77_vm1 = vcmp.gt.f32.partialorder %v61_v14, 0.0  ;;  %v92_v22 = vmul.f32 0.2, %v60_v13  ;;  %v93_v23 = vmul.f32 0.2, %v61_v14 }
   0x8   :  { %vm78_vm2 = vcmp.gt.f32.partialorder %v62_v18, 0.0  ;;  %vm79_vm3 = vcmp.gt.f32.partialorder %v63_v19, 0.0  ;;  %v94_v24 = vmul.f32 0.2, %v62_v18  ;;  %v95_v25 = vmul.f32 0.2, %v63_v19 }
   0x9   :  { %v108_v26 = vsel %vm76_vm0, %v60_v13, %v92_v22  ;;  %v109_v27 = vsel %vm77_vm1, %v61_v14, %v93_v23  ;;  %v64_v28 = vadd.f32 %v325_v5, %v41_v15  ;;  %vm81_vm5 = vcmp.gt.f32.partialorder %v65_v29, 0.0 }
   0xa   :  { %v245_v30 = vpack.c.bf16 %v109_v27, %v108_v26  ;;  %v110_v31 = vsel %vm78_vm2, %v62_v18, %v94_v24  ;;  %v111_v32 = vsel %vm79_vm3, %v63_v19, %v95_v25  ;;  %v97_v39 = vmul.f32 0.2, %v65_v29 }
   0xb   :  { %v250_v37 = vpack.c.bf16 %v111_v32, %v110_v31  ;;  %vm80_vm4 = vcmp.gt.f32.partialorder %v64_v28, 0.0  ;;  %v96_v38 = vmul.f32 0.2, %v64_v28  ;;  %vm82_vm6 = vcmp.gt.f32.partialorder %v66_v33, 0.0 }
   0xc   :  { %246 = vst [vmem:[%s426_s3] sm:$0xff] %v245_v30   ;;  %v98_v41 = vmul.f32 0.2, %v66_v33  ;;  %v45_v44 = vmul.f32 %v318_v2, %v22_v34  ;;  %v46_v45 = vmul.f32 %v318_v2, %v23_v35  ;;  %v47_v46 = vmul.f32 %v318_v2, %v24_v36 }
   0xd   :  { %282 = vst [vmem:[%s426_s3 + $0x8] sm:$0xff] %v250_v37   ;;  %v112_v43 = vsel %vm80_vm4, %v64_v28, %v96_v38  ;;  %v113_v49 = vsel %vm81_vm5, %v65_v29, %v97_v39  ;;  %vm83_vm7 = vcmp.gt.f32.partialorder %v67_v40, 0.0  ;;  %v99_v50 = vmul.f32 0.2, %v67_v40 }
   0xe   :  { %v114_v51 = vsel %vm82_vm6, %v66_v33, %v98_v41  ;;  %v255_v52 = vpack.c.bf16 %v113_v49, %v112_v43  ;;  %v68_v53 = vadd.f32 %v325_v5, %v45_v44  ;;  %v69_v54 = vadd.f32 %v325_v5, %v46_v45 }
   0xf   :  { %v48_v55 = vmul.f32 %v318_v2, %v25_v42  ;;  %v115_v56 = vsel %vm83_vm7, %v67_v40, %v99_v50  ;;  %v70_v57 = vadd.f32 %v325_v5, %v47_v46  ;;  %v49_v58 = vmul.f32 %v318_v2, %v26_v47 }
  0x10   :  { %v50_v59 = vmul.f32 %v318_v2, %v27_v48  ;;  %283 = vst [vmem:[%s426_s3 + $0x10] sm:$0xff] %v255_v52   ;;  %v260_v61 = vpack.c.bf16 %v115_v56, %v114_v51  ;;  %vm84_vm8 = vcmp.gt.f32.partialorder %v68_v53, 0.0  ;;  %vm85_vm9 = vcmp.gt.f32.partialorder %v69_v54, 0.0 }
  0x11   :  { %v100_v62 = vmul.f32 0.2, %v68_v53  ;;  %v101_v63 = vmul.f32 0.2, %v69_v54  ;;  %v71_v0 = vadd.f32 %v325_v5, %v48_v55  ;;  %vm86_vm10 = vcmp.gt.f32.partialorder %v70_v57, 0.0 }
  0x12   :  { %v102_v1 = vmul.f32 0.2, %v70_v57  ;;  %284 = vst [vmem:[%s426_s3 + $0x18] sm:$0xff] %v260_v61   ;;  %v72_v4 = vadd.f32 %v325_v5, %v49_v58  ;;  %v73_v6 = vadd.f32 %v325_v5, %v50_v59  ;;  %v51_v8 = vmul.f32 %v318_v2, %v28_v60 }
  0x13   :  { %v116_v3 = vsel %vm84_vm8, %v68_v53, %v100_v62  ;;  %v117_v9 = vsel %vm85_vm9, %v69_v54, %v101_v63  ;;  %vm87_vm11 = vcmp.gt.f32.partialorder %v71_v0, 0.0  ;;  %v103_v10 = vmul.f32 0.2, %v71_v0 }
  0x14   :  { %v118_v11 = vsel %vm86_vm10, %v70_v57, %v102_v1  ;;  %v265_v12 = vpack.c.bf16 %v117_v9, %v116_v3  ;;  %vm88_vm12 = vcmp.gt.f32.partialorder %v72_v4, 0.0  ;;  %vm89_vm13 = vcmp.gt.f32.partialorder %v73_v6, 0.0 }
  0x15   :  { %v104_v13 = vmul.f32 0.2, %v72_v4  ;;  %v119_v14 = vsel %vm87_vm11, %v71_v0, %v103_v10  ;;  %v105_v15 = vmul.f32 0.2, %v73_v6  ;;  %v52_v16 = vmul.f32 %v318_v2, %v29_v7 }
  0x16   :  { %v74_v17 = vadd.f32 %v325_v5, %v51_v8  ;;  %285 = vst [vmem:[%s426_s3 + $0x20] sm:$0xff] %v265_v12   ;;  %v270_v18 = vpack.c.bf16 %v119_v14, %v118_v11 }
  0x17   :  { %v120_v19 = vsel %vm88_vm12, %v72_v4, %v104_v13  ;;  %v121_v20 = vsel %vm89_vm13, %v73_v6, %v105_v15  ;;  %v75_v21 = vadd.f32 %v325_v5, %v52_v16 }
  0x18   :  { %vm90_vm14 = vcmp.gt.f32.partialorder %v74_v17, 0.0  ;;  %v106_v22 = vmul.f32 0.2, %v74_v17  ;;  %286 = vst [vmem:[%s426_s3 + $0x28] sm:$0xff] %v270_v18   ;;  %v275_v23 = vpack.c.bf16 %v121_v20, %v120_v19 }
  0x19   :  { %vm91_vm15 = vcmp.gt.f32.partialorder %v75_v21, 0.0  ;;  %v107_v2 = vmul.f32 0.2, %v75_v21 }
  0x1a   :  { %v122_v24 = vsel %vm90_vm14, %v74_v17, %v106_v22  ;;  %287 = vst [vmem:[%s426_s3 + $0x30] sm:$0xff] %v275_v23  }
  0x1b   :  { %v123_v25 = vsel %vm91_vm15, %v75_v21, %v107_v2 }
  0x1c   :  { %v280_v26 = vpack.c.bf16 %v123_v25, %v122_v24 }
  0x1e   :  { %288 = vst [vmem:[%s426_s3 + $0x38] sm:$0xff] %v280_v26  }

// kernel: _lambda_.12
= control target key start
LH: loop header
LB: loop body
LE: loop exit
PB: predicated region body
PF: predicated region fallthrough
CT: control target
= control target key end

     0   :  { %v24_v0 = vlaneseq  ;;  %s188_s1 = inlined_call_operand.vmem [shape: f32[1,256], index: 1, kind: input, shape index: {}]   ;;  %s189_s2 = inlined_call_operand.vmem [shape: f32[1,256], index: 2, kind: input, shape index: {}]   ;;  %s190_s0 = inlined_call_operand.vmem [shape: f32[32,256], index: 0, kind: input, shape index: {}]   ;;  %s191_s3 = inlined_call_operand.vmem [shape: bf16[32,256], index: 3, kind: output, shape index: {}]  }
   0x1   :  { %v22_v2 = vld [vmem:[%s188_s1] sm:$0x3]  ;;  %v15_v5 = vld [vmem:[%s190_s0 + $0x8] sm:$0xff]  ;;  %v16_v8 = vld [vmem:[%s190_s0 + $0x10] sm:$0xff] }
   0x2   :  { %v25_v1 = vshrl.u32 %v24_v0, 7  ;;  %v42_v3 = vld [vmem:[%s189_s2] sm:$0x3]  ;;  %v17_v9 = vld [vmem:[%s190_s0 + $0x18] sm:$0xff]  ;;  %v19_v15 = vld [vmem:[%s190_s0 + $0x28] sm:$0xff] }
   0x3   :  { %v14_v4 = vld [vmem:[%s190_s0] sm:$0xff]  ;;  %v20_v16 = vld [vmem:[%s190_s0 + $0x30] sm:$0xff]  ;;  %v21_v17 = vld [vmem:[%s190_s0 + $0x38] sm:$0xff] }
   0x4   :  { %v26_v6 = vsub.s32 0, %v25_v1  ;;  %v30_v7 = vsub.s32 1, %v25_v1  ;;  %v18_v10 = vld [vmem:[%s190_s0 + $0x20] sm:$0xff] }
   0x6   :  { %v27_v11 = vrot.slane %v22_v2, %v26_v6  ;;  %v31_v12 = vrot.slane %v22_v2, %v30_v7  ;;  %v47_v13 = vrot.slane %v42_v3, %v26_v6  ;;  %v51_v14 = vrot.slane %v42_v3, %v30_v7 }
   0x8   :  { %v34_v18 = vmul.f32 %v27_v11, %v14_v4  ;;  %v35_v19 = vmul.f32 %v31_v12, %v15_v5  ;;  %v36_v20 = vmul.f32 %v27_v11, %v16_v8  ;;  %v37_v21 = vmul.f32 %v31_v12, %v17_v9 }
   0x9   :  { %v38_v22 = vmul.f32 %v27_v11, %v18_v10  ;;  %v39_v23 = vmul.f32 %v31_v12, %v19_v15  ;;  %v40_v24 = vmul.f32 %v27_v11, %v20_v16  ;;  %v41_v25 = vmul.f32 %v31_v12, %v21_v17 }
   0xa   :  { %v54_v26 = vadd.f32 %v47_v13, %v34_v18  ;;  %v55_v27 = vadd.f32 %v51_v14, %v35_v19  ;;  %v56_v28 = vadd.f32 %v47_v13, %v36_v20  ;;  %v57_v29 = vadd.f32 %v51_v14, %v37_v21 }
   0xb   :  { %v58_v30 = vadd.f32 %v47_v13, %v38_v22  ;;  %v59_v31 = vadd.f32 %v51_v14, %v39_v23  ;;  %v60_v32 = vadd.f32 %v47_v13, %v40_v24  ;;  %v61_v33 = vadd.f32 %v51_v14, %v41_v25 }
   0xc   :  { %vm62_vm0 = vcmp.gt.f32.partialorder %v54_v26, 0.0  ;;  %vm63_vm1 = vcmp.gt.f32.partialorder %v55_v27, 0.0  ;;  %v70_v34 = vmul.f32 0.2, %v54_v26  ;;  %v71_v35 = vmul.f32 0.2, %v55_v27 }
   0xd   :  { %vm64_vm2 = vcmp.gt.f32.partialorder %v56_v28, 0.0  ;;  %vm65_vm3 = vcmp.gt.f32.partialorder %v57_v29, 0.0  ;;  %v72_v36 = vmul.f32 0.2, %v56_v28  ;;  %v73_v37 = vmul.f32 0.2, %v57_v29 }
   0xe   :  { %v78_v38 = vsel %vm62_vm0, %v54_v26, %v70_v34  ;;  %v79_v39 = vsel %vm63_vm1, %v55_v27, %v71_v35  ;;  %vm66_vm4 = vcmp.gt.f32.partialorder %v58_v30, 0.0  ;;  %vm67_vm5 = vcmp.gt.f32.partialorder %v59_v31, 0.0 }
   0xf   :  { %v122_v40 = vpack.c.bf16 %v79_v39, %v78_v38  ;;  %v80_v41 = vsel %vm64_vm2, %v56_v28, %v72_v36  ;;  %v81_v42 = vsel %vm65_vm3, %v57_v29, %v73_v37  ;;  %v74_v43 = vmul.f32 0.2, %v58_v30 }
  0x10   :  { %v123_v44 = vpack.c.bf16 %v81_v42, %v80_v41  ;;  %v75_v45 = vmul.f32 0.2, %v59_v31  ;;  %vm68_vm6 = vcmp.gt.f32.partialorder %v60_v32, 0.0  ;;  %vm69_vm7 = vcmp.gt.f32.partialorder %v61_v33, 0.0 }
  0x11   :  { %110 = vst [vmem:[%s191_s3] sm:$0xff] %v122_v40  ;;  %v82_v46 = vsel %vm66_vm4, %v58_v30, %v74_v43  ;;  %v76_v47 = vmul.f32 0.2, %v60_v32  ;;  %v77_v48 = vmul.f32 0.2, %v61_v33 }
  0x12   :  { %111 = vst [vmem:[%s191_s3 + $0x8] sm:$0xff] %v123_v44  ;;  %v83_v49 = vsel %vm67_vm5, %v59_v31, %v75_v45 }
  0x13   :  { %v124_v50 = vpack.c.bf16 %v83_v49, %v82_v46  ;;  %v84_v51 = vsel %vm68_vm6, %v60_v32, %v76_v47  ;;  %v85_v52 = vsel %vm69_vm7, %v61_v33, %v77_v48 }
  0x14   :  { %v125_v53 = vpack.c.bf16 %v85_v52, %v84_v51 }
  0x15   :  { %112 = vst [vmem:[%s191_s3 + $0x10] sm:$0xff] %v124_v50 }
  0x16   :  { %113 = vst [vmem:[%s191_s3 + $0x18] sm:$0xff] %v125_v53 }

// kernel: _lambda_.11
= control target key start
LH: loop header
LB: loop body
LE: loop exit
PB: predicated region body
PF: predicated region fallthrough
CT: control target
= control target key end

     0   :  { %vm2256_vm0 = vcmask 1040384   ;;  %s3975_s1 = inlined_call_operand.vmem [shape: bf16[2048,256], index: 1, kind: input, shape index: {}]   ;;  %s3976_s0 = inlined_call_operand.vmem [shape: bf16[32,2048], index: 0, kind: input, shape index: {}]   ;;  %s3977_s2 = inlined_call_operand.vmem [shape: f32[32,256], index: 2, kind: output, shape index: {0}]   ;;  %s3978_s3 = inlined_call_operand.vmem [shape: f32[1,2,256], index: 3, kind: output, shape index: {1}]  }
   0x1   :  { %v2632_v0 = vld [vmem:[%s3975_s1 + $0x4] ss:$8 sps:$4 sm:$0xff]   ;;  %v2636_v2 = vld [vmem:[%s3975_s1] ss:$8 sps:$4 sm:$0xff]   ;;  %v2638_v4 = vld [vmem:[%s3975_s1 + $0x14] ss:$8 sps:$4 sm:$0xff]  }
   0x2   :  { %v2634_v1 = vld [vmem:[%s3975_s1 + $0x404] ss:$8 sps:$4 sm:$0xff]   ;;  %1761 = vmatprep.subr.bf16.mxu1 %v2632_v0  ;;  %v2637_v3 = vld [vmem:[%s3975_s1 + $0x400] ss:$8 sps:$4 sm:$0xff]   ;;  %v2640_v5 = vld [vmem:[%s3975_s1 + $0x414] ss:$8 sps:$4 sm:$0xff]  }
   0x3   :  { %1973 = vmatprep.subr.bf16.mxu0 %v2634_v1  ;;  %1762 = vmatpush1.bf16.msra.mxu1 %v2636_v2  ;;  %v2642_v6 = vld [vmem:[%s3975_s1 + $0x10] ss:$8 sps:$4 sm:$0xff]   ;;  %v2644_v8 = vld [vmem:[%s3975_s1 + $0x24] ss:$8 sps:$4 sm:$0xff]   ;;  %v2648_v10 = vld [vmem:[%s3975_s1 + $0x20] ss:$8 sps:$4 sm:$0xff]  }
   0x4   :  { %1974 = vmatpush1.bf16.msra.mxu0 %v2637_v3  ;;  %1763 = vmatprep.subr.bf16.mxu1 %v2638_v4  ;;  %v2643_v7 = vld [vmem:[%s3975_s1 + $0x410] ss:$8 sps:$4 sm:$0xff]   ;;  %v2646_v9 = vld [vmem:[%s3975_s1 + $0x424] ss:$8 sps:$4 sm:$0xff]   ;;  %v2649_v11 = vld [vmem:[%s3975_s1 + $0x420] ss:$8 sps:$4 sm:$0xff]  }
   0x5   :  { %1975 = vmatprep.subr.bf16.mxu0 %v2640_v5  ;;  %v2650_v12 = vld [vmem:[%s3975_s1 + $0x34] ss:$8 sps:$4 sm:$0xff]   ;;  %v2654_v14 = vld [vmem:[%s3975_s1 + $0x30] ss:$8 sps:$4 sm:$0xff]   ;;  %v2656_v16 = vld [vmem:[%s3975_s1 + $0x44] ss:$8 sps:$4 sm:$0xff]  }
   0x6   :  { %v2652_v13 = vld [vmem:[%s3975_s1 + $0x434] ss:$8 sps:$4 sm:$0xff]   ;;  %v2655_v15 = vld [vmem:[%s3975_s1 + $0x430] ss:$8 sps:$4 sm:$0xff]   ;;  %v2658_v17 = vld [vmem:[%s3975_s1 + $0x444] ss:$8 sps:$4 sm:$0xff]  }
   0x7   :  { %1764 = vmatpush1.bf16.msra.mxu1 %v2642_v6  ;;  %v2660_v18 = vld [vmem:[%s3975_s1 + $0x40] ss:$8 sps:$4 sm:$0xff]   ;;  %v2662_v20 = vld [vmem:[%s3975_s1 + $0x54] ss:$8 sps:$4 sm:$0xff]   ;;  %v2666_v22 = vld [vmem:[%s3975_s1 + $0x50] ss:$8 sps:$4 sm:$0xff]  }
   0x8   :  { %1976 = vmatpush1.bf16.msra.mxu0 %v2643_v7  ;;  %1765 = vmatprep.subr.bf16.mxu1 %v2644_v8  ;;  %v2661_v19 = vld [vmem:[%s3975_s1 + $0x440] ss:$8 sps:$4 sm:$0xff]   ;;  %v2664_v21 = vld [vmem:[%s3975_s1 + $0x454] ss:$8 sps:$4 sm:$0xff]   ;;  %v2667_v23 = vld [vmem:[%s3975_s1 + $0x450] ss:$8 sps:$4 sm:$0xff]  }
   0x9   :  { %1977 = vmatprep.subr.bf16.mxu0 %v2646_v9  ;;  %v2668_v24 = vld [vmem:[%s3975_s1 + $0x64] ss:$8 sps:$4 sm:$0xff]   ;;  %v2672_v26 = vld [vmem:[%s3975_s1 + $0x60] ss:$8 sps:$4 sm:$0xff]   ;;  %v2674_v28 = vld [vmem:[%s3975_s1 + $0x74] ss:$8 sps:$4 sm:$0xff]  }
   0xa   :  { %v2670_v25 = vld [vmem:[%s3975_s1 + $0x464] ss:$8 sps:$4 sm:$0xff]   ;;  %v2673_v27 = vld [vmem:[%s3975_s1 + $0x460] ss:$8 sps:$4 sm:$0xff]   ;;  %v2676_v29 = vld [vmem:[%s3975_s1 + $0x474] ss:$8 sps:$4 sm:$0xff]  }
   0xb   :  { %1766 = vmatpush1.bf16.msra.mxu1 %v2648_v10  ;;  %v2678_v30 = vld [vmem:[%s3975_s1 + $0x70] ss:$8 sps:$4 sm:$0xff]   ;;  %v2680_v32 = vld [vmem:[%s3975_s1 + $0x84] ss:$8 sps:$4 sm:$0xff]   ;;  %v2684_v34 = vld [vmem:[%s3975_s1 + $0x80] ss:$8 sps:$4 sm:$0xff]  }
   0xc   :  { %1978 = vmatpush1.bf16.msra.mxu0 %v2649_v11  ;;  %1767 = vmatprep.subr.bf16.mxu1 %v2650_v12  ;;  %v2679_v31 = vld [vmem:[%s3975_s1 + $0x470] ss:$8 sps:$4 sm:$0xff]   ;;  %v2682_v33 = vld [vmem:[%s3975_s1 + $0x484] ss:$8 sps:$4 sm:$0xff]   ;;  %v2685_v35 = vld [vmem:[%s3975_s1 + $0x480] ss:$8 sps:$4 sm:$0xff]  }
   0xd   :  { %1979 = vmatprep.subr.bf16.mxu0 %v2652_v13  ;;  %v2686_v36 = vld [vmem:[%s3975_s1 + $0x94] ss:$8 sps:$4 sm:$0xff]   ;;  %v2690_v38 = vld [vmem:[%s3975_s1 + $0x90] ss:$8 sps:$4 sm:$0xff]   ;;  %v2692_v40 = vld [vmem:[%s3975_s1 + $0xa4] ss:$8 sps:$4 sm:$0xff]  }
   0xe   :  { %v2688_v37 = vld [vmem:[%s3975_s1 + $0x494] ss:$8 sps:$4 sm:$0xff]   ;;  %v2691_v39 = vld [vmem:[%s3975_s1 + $0x490] ss:$8 sps:$4 sm:$0xff]   ;;  %v2694_v41 = vld [vmem:[%s3975_s1 + $0x4a4] ss:$8 sps:$4 sm:$0xff]  }
   0xf   :  { %1768 = vmatpush1.bf16.msra.mxu1 %v2654_v14  ;;  %v2696_v42 = vld [vmem:[%s3975_s1 + $0xa0] ss:$8 sps:$4 sm:$0xff]   ;;  %v2698_v44 = vld [vmem:[%s3975_s1 + $0xb4] ss:$8 sps:$4 sm:$0xff]   ;;  %v2702_v46 = vld [vmem:[%s3975_s1 + $0xb0] ss:$8 sps:$4 sm:$0xff]  }
  0x10   :  { %1980 = vmatpush1.bf16.msra.mxu0 %v2655_v15  ;;  %1769 = vmatprep.subr.bf16.mxu1 %v2656_v16  ;;  %v2697_v43 = vld [vmem:[%s3975_s1 + $0x4a0] ss:$8 sps:$4 sm:$0xff]   ;;  %v2700_v45 = vld [vmem:[%s3975_s1 + $0x4b4] ss:$8 sps:$4 sm:$0xff]   ;;  %v2703_v47 = vld [vmem:[%s3975_s1 + $0x4b0] ss:$8 sps:$4 sm:$0xff]  }
  0x11   :  { %1981 = vmatprep.subr.bf16.mxu0 %v2658_v17  ;;  %v33_v48 = vld [vmem:[%s3976_s0] sm:$0xff]  ;;  %v2710_v58 = vld [vmem:[%s3975_s1 + $0xd4] ss:$8 sps:$4 sm:$0xff]   ;;  %v2714_v60 = vld [vmem:[%s3975_s1 + $0xd0] ss:$8 sps:$4 sm:$0xff]  }
  0x12   :  { %v41_v49 = vld [vmem:[%s3976_s0 + $0x40] sm:$0xff]  ;;  %v2712_v59 = vld [vmem:[%s3975_s1 + $0x4d4] ss:$8 sps:$4 sm:$0xff]   ;;  %v2715_v61 = vld [vmem:[%s3975_s1 + $0x4d0] ss:$8 sps:$4 sm:$0xff]  }
  0x13   :  { %1770 = vmatpush1.bf16.msra.mxu1 %v2660_v18  ;;  %v2704_v50 = vld [vmem:[%s3975_s1 + $0xc4] ss:$8 sps:$4 sm:$0xff]   ;;  %v2288_v52 = vcombine.high %v33_v48, %v41_v49  ;;  %v2708_v56 = vld [vmem:[%s3975_s1 + $0xc0] ss:$8 sps:$4 sm:$0xff]   ;;  %v2722_v2 = vld [vmem:[%s3975_s1 + $0xf4] ss:$8 sps:$4 sm:$0xff]   ;;  %v2287_v8 = vcombine.low %v33_v48, %v41_v49 }
  0x14   :  { %1982 = vmatpush1.bf16.msra.mxu0 %v2661_v19  ;;  %1771 = vmatprep.subr.bf16.mxu1 %v2662_v20  ;;  %v2706_v51 = vld [vmem:[%s3975_s1 + $0x4c4] ss:$8 sps:$4 sm:$0xff]   ;;  %v2709_v57 = vld [vmem:[%s3975_s1 + $0x4c0] ss:$8 sps:$4 sm:$0xff]   ;;  %v2724_v3 = vld [vmem:[%s3975_s1 + $0x4f4] ss:$8 sps:$4 sm:$0xff]  }
  0x15   :  { %1983 = vmatprep.subr.bf16.mxu0 %v2664_v21  ;;  %v37_v53 = vld [vmem:[%s3976_s0 + $0x20] sm:$0xff]  ;;  %1793 = vmatprep.mubr.bf16.mxu1 %v2288_v52  ;;  %v2726_v4 = vld [vmem:[%s3975_s1 + $0xf0] ss:$8 sps:$4 sm:$0xff]   ;;  %v2736_v12 = vld [vmem:[%s3975_s1 + $0x114] ss:$8 sps:$4 sm:$0xff]  }
  0x16   :  { %v45_v54 = vld [vmem:[%s3976_s0 + $0x60] sm:$0xff]  ;;  %v2727_v5 = vld [vmem:[%s3975_s1 + $0x4f0] ss:$8 sps:$4 sm:$0xff]   ;;  %v2739_v13 = vld [vmem:[%s3975_s1 + $0x514] ss:$8 sps:$4 sm:$0xff]  }
  0x17   :  { %1772 = vmatpush1.bf16.msra.mxu1 %v2666_v22  ;;  %v2296_v55 = vcombine.high %v37_v53, %v45_v54  ;;  %v2716_v62 = vld [vmem:[%s3975_s1 + $0xe4] ss:$8 sps:$4 sm:$0xff]   ;;  %v2720_v0 = vld [vmem:[%s3975_s1 + $0xe0] ss:$8 sps:$4 sm:$0xff]   ;;  %v2295_v10 = vcombine.low %v37_v53, %v45_v54  ;;  %v2734_v14 = vld [vmem:[%s3975_s1 + $0x110] ss:$8 sps:$4 sm:$0xff]  }
  0x18   :  { %1984 = vmatpush1.bf16.msra.mxu0 %v2667_v23  ;;  %1773 = vmatprep.subr.bf16.mxu1 %v2668_v24  ;;  %v2718_v63 = vld [vmem:[%s3975_s1 + $0x4e4] ss:$8 sps:$4 sm:$0xff]   ;;  %v2721_v1 = vld [vmem:[%s3975_s1 + $0x4e0] ss:$8 sps:$4 sm:$0xff]   ;;  %v2737_v15 = vld [vmem:[%s3975_s1 + $0x510] ss:$8 sps:$4 sm:$0xff]  }
  0x19   :  { %1985 = vmatprep.subr.bf16.mxu0 %v2670_v25  ;;  %2005 = vmatprep.mubr.bf16.mxu0 %v2296_v55  ;;  %v2730_v6 = vld [vmem:[%s3975_s1 + $0x104] ss:$8 sps:$4 sm:$0xff]   ;;  %v2728_v9 = vld [vmem:[%s3975_s1 + $0x100] ss:$8 sps:$4 sm:$0xff]   ;;  %v2748_v20 = vld [vmem:[%s3975_s1 + $0x134] ss:$8 sps:$4 sm:$0xff]  }
  0x1a   :  { %v2733_v7 = vld [vmem:[%s3975_s1 + $0x504] ss:$8 sps:$4 sm:$0xff]   ;;  %v2731_v11 = vld [vmem:[%s3975_s1 + $0x500] ss:$8 sps:$4 sm:$0xff]   ;;  %v2751_v21 = vld [vmem:[%s3975_s1 + $0x534] ss:$8 sps:$4 sm:$0xff]  }
  0x1b   :  { %1774 = vmatpush1.bf16.msra.mxu1 %v2672_v26  ;;  %v2742_v16 = vld [vmem:[%s3975_s1 + $0x124] ss:$8 sps:$4 sm:$0xff]   ;;  %v2740_v18 = vld [vmem:[%s3975_s1 + $0x120] ss:$8 sps:$4 sm:$0xff]   ;;  %v2746_v22 = vld [vmem:[%s3975_s1 + $0x130] ss:$8 sps:$4 sm:$0xff]  }
  0x1c   :  { %1986 = vmatpush1.bf16.msra.mxu0 %v2673_v27  ;;  %1775 = vmatprep.subr.bf16.mxu1 %v2674_v28  ;;  %v2745_v17 = vld [vmem:[%s3975_s1 + $0x524] ss:$8 sps:$4 sm:$0xff]   ;;  %v2743_v19 = vld [vmem:[%s3975_s1 + $0x520] ss:$8 sps:$4 sm:$0xff]   ;;  %v2749_v23 = vld [vmem:[%s3975_s1 + $0x530] ss:$8 sps:$4 sm:$0xff]  }
  0x1d   :  { %1987 = vmatprep.subr.bf16.mxu0 %v2676_v29  ;;  %v2754_v24 = vld [vmem:[%s3975_s1 + $0x144] ss:$8 sps:$4 sm:$0xff]   ;;  %v2752_v26 = vld [vmem:[%s3975_s1 + $0x140] ss:$8 sps:$4 sm:$0xff]   ;;  %v2760_v28 = vld [vmem:[%s3975_s1 + $0x154] ss:$8 sps:$4 sm:$0xff]  }
  0x1e   :  { %v2757_v25 = vld [vmem:[%s3975_s1 + $0x544] ss:$8 sps:$4 sm:$0xff]   ;;  %v2755_v27 = vld [vmem:[%s3975_s1 + $0x540] ss:$8 sps:$4 sm:$0xff]   ;;  %v2763_v29 = vld [vmem:[%s3975_s1 + $0x554] ss:$8 sps:$4 sm:$0xff]  }
  0x1f   :  { %1776 = vmatpush1.bf16.msra.mxu1 %v2678_v30  ;;  %v49_v30 = vld [vmem:[%s3976_s0 + $0x80] sm:$0xff]  ;;  %v3357_v49 = vld [vmem:[%s3976_s0 + $0x28] sm:$0xff]  ;;  %v2773_v52 = vld [vmem:[%s3975_s1 + $0x570] ss:$8 sps:$4 sm:$0xff]  }
  0x20   :  { %1988 = vmatpush1.bf16.msra.mxu0 %v2679_v31  ;;  %1777 = vmatprep.subr.bf16.mxu1 %v2680_v32  ;;  %v57_v31 = vld [vmem:[%s3976_s0 + $0xc0] sm:$0xff]  ;;  %v2758_v32 = vld [vmem:[%s3975_s1 + $0x150] ss:$8 sps:$4 sm:$0xff]  }
  0x21   :  { %1989 = vmatprep.subr.bf16.mxu0 %v2682_v33  ;;  %v2304_v33 = vcombine.high %v49_v30, %v57_v31  ;;  %v2778_v54 = vld [vmem:[%s3975_s1 + $0x184] ss:$8 sps:$4 sm:$0xff]  }
  0x22   :  { %v2781_v55 = vld [vmem:[%s3975_s1 + $0x584] ss:$8 sps:$4 sm:$0xff]  }
  0x23   :  { %1778 = vmatpush1.bf16.msra.mxu1 %v2684_v34  ;;  %v2761_v34 = vld [vmem:[%s3975_s1 + $0x550] ss:$8 sps:$4 sm:$0xff]  }
  0x24   :  { %1990 = vmatpush1.bf16.msra.mxu0 %v2685_v35  ;;  %1779 = vmatprep.subr.bf16.mxu1 %v2686_v36  ;;  %v53_v35 = vld [vmem:[%s3976_s0 + $0xa0] sm:$0xff] }
  0x25   :  { %1991 = vmatprep.subr.bf16.mxu0 %v2688_v37  ;;  %v61_v36 = vld [vmem:[%s3976_s0 + $0xe0] sm:$0xff]  ;;  %v2303_v37 = vcombine.low %v49_v30, %v57_v31  ;;  %v2832_v30 = vld [vmem:[%s3975_s1 + $0x214] ss:$8 sps:$4 sm:$0xff]  }
  0x26   :  { %v2835_v31 = vld [vmem:[%s3975_s1 + $0x614] ss:$8 sps:$4 sm:$0xff]  }
  0x27   :  { %1780 = vmatpush1.bf16.msra.mxu1 %v2690_v38  ;;  %v2766_v38 = vld [vmem:[%s3975_s1 + $0x164] ss:$8 sps:$4 sm:$0xff]  }
  0x28   :  { %1992 = vmatpush1.bf16.msra.mxu0 %v2691_v39  ;;  %1781 = vmatprep.subr.bf16.mxu1 %v2692_v40  ;;  %v2312_v39 = vcombine.high %v53_v35, %v61_v36  ;;  %v2311_v40 = vcombine.low %v53_v35, %v61_v36  ;;  %v2830_v36 = vld [vmem:[%s3975_s1 + $0x210] ss:$8 sps:$4 sm:$0xff]  }
  0x29   :  { %1993 = vmatprep.subr.bf16.mxu0 %v2694_v41  ;;  %v2769_v41 = vld [vmem:[%s3975_s1 + $0x564] ss:$8 sps:$4 sm:$0xff]  }
  0x2b   :  { %1782 = vmatpush1.bf16.msra.mxu1 %v2696_v42  ;;  %v2764_v42 = vld [vmem:[%s3975_s1 + $0x160] ss:$8 sps:$4 sm:$0xff]  }
  0x2c   :  { %1994 = vmatpush1.bf16.msra.mxu0 %v2697_v43  ;;  %1783 = vmatprep.subr.bf16.mxu1 %v2698_v44  ;;  %v2767_v43 = vld [vmem:[%s3975_s1 + $0x560] ss:$8 sps:$4 sm:$0xff]  }
  0x2d   :  { %1995 = vmatprep.subr.bf16.mxu0 %v2700_v45  ;;  %v3339_v44 = vld [vmem:[%s3976_s0 + $0x8] sm:$0xff] }
  0x2e   :  { %v3344_v45 = vld [vmem:[%s3976_s0 + $0x48] sm:$0xff] }
  0x2f   :  { %1784 = vmatpush1.bf16.msra.mxu1 %v2702_v46  ;;  %v2772_v46 = vld [vmem:[%s3975_s1 + $0x174] ss:$8 sps:$4 sm:$0xff]   ;;  %v2290_v48 = vcombine.high %v3339_v44, %v3344_v45 }
  0x30   :  { %1996 = vmatpush1.bf16.msra.mxu0 %v2703_v47  ;;  %1785 = vmatprep.subr.bf16.mxu1 %v2704_v50  ;;  %v2775_v47 = vld [vmem:[%s3975_s1 + $0x574] ss:$8 sps:$4 sm:$0xff]   ;;  %v3362_v50 = vld [vmem:[%s3976_s0 + $0x68] sm:$0xff] }
  0x31   :  { %1997 = vmatprep.subr.bf16.mxu0 %v2706_v51  ;;  %v2770_v51 = vld [vmem:[%s3975_s1 + $0x170] ss:$8 sps:$4 sm:$0xff]   ;;  %v2298_v53 = vcombine.high %v3357_v49, %v3362_v50 }
  0x33   :  { %1786 = vmatpush1.bf16.msra.mxu1 %v2708_v56  ;;  %v2776_v56 = vld [vmem:[%s3975_s1 + $0x180] ss:$8 sps:$4 sm:$0xff]  }
  0x34   :  { %1998 = vmatpush1.bf16.msra.mxu0 %v2709_v57  ;;  %1787 = vmatprep.subr.bf16.mxu1 %v2710_v58  ;;  %v2779_v57 = vld [vmem:[%s3975_s1 + $0x580] ss:$8 sps:$4 sm:$0xff]   ;;  %v2784_v58 = vld [vmem:[%s3975_s1 + $0x194] ss:$8 sps:$4 sm:$0xff]  }
  0x35   :  { %1999 = vmatprep.subr.bf16.mxu0 %v2712_v59  ;;  %v2787_v59 = vld [vmem:[%s3975_s1 + $0x594] ss:$8 sps:$4 sm:$0xff]  }
  0x37   :  { %1788 = vmatpush1.bf16.msra.mxu1 %v2714_v60  ;;  %v2782_v60 = vld [vmem:[%s3975_s1 + $0x190] ss:$8 sps:$4 sm:$0xff]  }
  0x38   :  { %2000 = vmatpush1.bf16.msra.mxu0 %v2715_v61  ;;  %1789 = vmatprep.subr.bf16.mxu1 %v2716_v62  ;;  %v2785_v61 = vld [vmem:[%s3975_s1 + $0x590] ss:$8 sps:$4 sm:$0xff]   ;;  %v2790_v62 = vld [vmem:[%s3975_s1 + $0x1a4] ss:$8 sps:$4 sm:$0xff]  }
  0x39   :  { %2001 = vmatprep.subr.bf16.mxu0 %v2718_v63  ;;  %v2793_v63 = vld [vmem:[%s3975_s1 + $0x5a4] ss:$8 sps:$4 sm:$0xff]  }
  0x3b   :  { %1790 = vmatpush1.bf16.msra.mxu1 %v2720_v0  ;;  %v2788_v0 = vld [vmem:[%s3975_s1 + $0x1a0] ss:$8 sps:$4 sm:$0xff]  }
  0x3c   :  { %2002 = vmatpush1.bf16.msra.mxu0 %v2721_v1  ;;  %1791 = vmatprep.subr.bf16.mxu1 %v2722_v2  ;;  %v2791_v1 = vld [vmem:[%s3975_s1 + $0x5a0] ss:$8 sps:$4 sm:$0xff]   ;;  %v2796_v2 = vld [vmem:[%s3975_s1 + $0x1b4] ss:$8 sps:$4 sm:$0xff]  }
  0x3d   :  { %2003 = vmatprep.subr.bf16.mxu0 %v2724_v3  ;;  %v2799_v3 = vld [vmem:[%s3975_s1 + $0x5b4] ss:$8 sps:$4 sm:$0xff]  }
  0x3f   :  { %1792 = vmatpush1.bf16.msra.mxu1 %v2726_v4  ;;  %v2794_v4 = vld [vmem:[%s3975_s1 + $0x1b0] ss:$8 sps:$4 sm:$0xff]  }
  0x40   :  { %2004 = vmatpush1.bf16.msra.mxu0 %v2727_v5  ;;  %1814 = vmatprep.subr.bf16.mxu1 %v2730_v6  ;;  %v2797_v5 = vld [vmem:[%s3975_s1 + $0x5b0] ss:$8 sps:$4 sm:$0xff]   ;;  %v2802_v6 = vld [vmem:[%s3975_s1 + $0x1c4] ss:$8 sps:$4 sm:$0xff]  }
  0x41   :  { %2026 = vmatprep.subr.bf16.mxu0 %v2733_v7  ;;  %v2805_v7 = vld [vmem:[%s3975_s1 + $0x5c4] ss:$8 sps:$4 sm:$0xff]  }
  0x42   :  { %1794 = vmatmul.mubr.bf16.vlgmr.msra.gmra.mrb[0].mxu1 %v2287_v8  ;;  %v2800_v8 = vld [vmem:[%s3975_s1 + $0x1c0] ss:$8 sps:$4 sm:$0xff]  }
  0x43   :  { %2006 = vmatmul.mubr.bf16.vlgmr.msra.gmra.mrb[0].mxu0 %v2295_v10  ;;  %1815 = vmatpush1.bf16.msra.mxu1 %v2728_v9  ;;  %v2803_v9 = vld [vmem:[%s3975_s1 + $0x5c0] ss:$8 sps:$4 sm:$0xff]   ;;  %v2808_v10 = vld [vmem:[%s3975_s1 + $0x1d4] ss:$8 sps:$4 sm:$0xff]  }
  0x44   :  { %2027 = vmatpush1.bf16.msra.mxu0 %v2731_v11  ;;  %1816 = vmatprep.subr.bf16.mxu1 %v2736_v12  ;;  %v2811_v11 = vld [vmem:[%s3975_s1 + $0x5d4] ss:$8 sps:$4 sm:$0xff]   ;;  %v2806_v12 = vld [vmem:[%s3975_s1 + $0x1d0] ss:$8 sps:$4 sm:$0xff]  }
  0x45   :  { %2028 = vmatprep.subr.bf16.mxu0 %v2739_v13  ;;  %1803 = vmatprep.mubr.bf16.mxu1 %v2304_v33  ;;  %v2809_v13 = vld [vmem:[%s3975_s1 + $0x5d0] ss:$8 sps:$4 sm:$0xff]   ;;  %v62_v33 = vld [vmem:[%s3976_s0 + $0xe8] sm:$0xff] }
  0x46   :  { %2015 = vmatprep.mubr.bf16.mxu0 %v2312_v39  ;;  %v2841_v39 = vld [vmem:[%s3975_s1 + $0x624] ss:$8 sps:$4 sm:$0xff]  }
  0x47   :  { %1817 = vmatpush1.bf16.msra.mxu1 %v2734_v14  ;;  %v2814_v14 = vld [vmem:[%s3975_s1 + $0x1e4] ss:$8 sps:$4 sm:$0xff]  }
  0x48   :  { %2029 = vmatpush1.bf16.msra.mxu0 %v2737_v15  ;;  %1818 = vmatprep.subr.bf16.mxu1 %v2742_v16  ;;  %v2817_v15 = vld [vmem:[%s3975_s1 + $0x5e4] ss:$8 sps:$4 sm:$0xff]   ;;  %v2812_v16 = vld [vmem:[%s3975_s1 + $0x1e0] ss:$8 sps:$4 sm:$0xff]  }
  0x49   :  { %2030 = vmatprep.subr.bf16.mxu0 %v2745_v17  ;;  %v2815_v17 = vld [vmem:[%s3975_s1 + $0x5e0] ss:$8 sps:$4 sm:$0xff]  }
  0x4a   :  { %1804 = vmatmul.mubr.bf16.gmra.mrb[4].mxu1 %v2303_v37  ;;  %v2833_v37 = vld [vmem:[%s3975_s1 + $0x610] ss:$8 sps:$4 sm:$0xff]  }
  0x4b   :  { %1819 = vmatpush1.bf16.msra.mxu1 %v2740_v18  ;;  %2016 = vmatmul.mubr.bf16.gmra.mrb[4].mxu0 %v2311_v40  ;;  %v2820_v18 = vld [vmem:[%s3975_s1 + $0x1f4] ss:$8 sps:$4 sm:$0xff]   ;;  %v2836_v40 = vld [vmem:[%s3975_s1 + $0x220] ss:$8 sps:$4 sm:$0xff]  }
  0x4c   :  { %2031 = vmatpush1.bf16.msra.mxu0 %v2743_v19  ;;  %1820 = vmatprep.subr.bf16.mxu1 %v2748_v20  ;;  %v2823_v19 = vld [vmem:[%s3975_s1 + $0x5f4] ss:$8 sps:$4 sm:$0xff]   ;;  %v2818_v20 = vld [vmem:[%s3975_s1 + $0x1f0] ss:$8 sps:$4 sm:$0xff]  }
  0x4d   :  { %2032 = vmatprep.subr.bf16.mxu0 %v2751_v21  ;;  %1846 = vmatprep.mubr.bf16.mxu1 %v2290_v48  ;;  %v2821_v21 = vld [vmem:[%s3975_s1 + $0x5f0] ss:$8 sps:$4 sm:$0xff]   ;;  %v2844_v48 = vld [vmem:[%s3975_s1 + $0x234] ss:$8 sps:$4 sm:$0xff]  }
  0x4e   :  { %2058 = vmatprep.mubr.bf16.mxu0 %v2298_v53  ;;  %v2845_v53 = vld [vmem:[%s3975_s1 + $0x630] ss:$8 sps:$4 sm:$0xff]  }
  0x4f   :  { %1821 = vmatpush1.bf16.msra.mxu1 %v2746_v22  ;;  %v2826_v22 = vld [vmem:[%s3975_s1 + $0x204] ss:$8 sps:$4 sm:$0xff]  }
  0x50   :  { %2033 = vmatpush1.bf16.msra.mxu0 %v2749_v23  ;;  %1822 = vmatprep.subr.bf16.mxu1 %v2754_v24  ;;  %v2829_v23 = vld [vmem:[%s3975_s1 + $0x604] ss:$8 sps:$4 sm:$0xff]   ;;  %v2824_v24 = vld [vmem:[%s3975_s1 + $0x200] ss:$8 sps:$4 sm:$0xff]  }
  0x51   :  { %2034 = vmatprep.subr.bf16.mxu0 %v2757_v25  ;;  %v2827_v25 = vld [vmem:[%s3975_s1 + $0x600] ss:$8 sps:$4 sm:$0xff]  }
  0x53   :  { %1823 = vmatpush1.bf16.msra.mxu1 %v2752_v26  ;;  %v50_v26 = vld [vmem:[%s3976_s0 + $0x88] sm:$0xff] }
  0x54   :  { %2035 = vmatpush1.bf16.msra.mxu0 %v2755_v27  ;;  %1824 = vmatprep.subr.bf16.mxu1 %v2760_v28  ;;  %v2289_v27 = vcombine.low %v3339_v44, %v3344_v45  ;;  %v2297_v28 = vcombine.low %v3357_v49, %v3362_v50  ;;  %v3528_v45 = vld [vmem:[%s3976_s0 + $0x50] sm:$0xff] }
  0x55   :  { %2036 = vmatprep.subr.bf16.mxu0 %v2763_v29  ;;  %v58_v29 = vld [vmem:[%s3976_s0 + $0xc8] sm:$0xff]  ;;  %v2847_v49 = vld [vmem:[%s3975_s1 + $0x634] ss:$8 sps:$4 sm:$0xff]  }
  0x57   :  { %1825 = vmatpush1.bf16.msra.mxu1 %v2758_v32  ;;  %v54_v32 = vld [vmem:[%s3976_s0 + $0xa8] sm:$0xff] }
  0x58   :  { %2037 = vmatpush1.bf16.msra.mxu0 %v2761_v34  ;;  %1826 = vmatprep.subr.bf16.mxu1 %v2766_v38  ;;  %v2306_v34 = vcombine.high %v50_v26, %v58_v29  ;;  %v2314_v35 = vcombine.high %v54_v32, %v62_v33  ;;  %v2838_v38 = vld [vmem:[%s3975_s1 + $0x224] ss:$8 sps:$4 sm:$0xff]   ;;  %v2313_v44 = vcombine.low %v54_v32, %v62_v33  ;;  %v2908_v32 = vld [vmem:[%s3975_s1 + $0x2e0] ss:$8 sps:$4 sm:$0xff]  }
  0x59   :  { %2038 = vmatprep.subr.bf16.mxu0 %v2769_v41  ;;  %v2839_v41 = vld [vmem:[%s3975_s1 + $0x620] ss:$8 sps:$4 sm:$0xff]  }
  0x5a   :  { %v2911_v33 = vld [vmem:[%s3975_s1 + $0x6e0] ss:$8 sps:$4 sm:$0xff]  }
  0x5b   :  { %1827 = vmatpush1.bf16.msra.mxu1 %v2764_v42  ;;  %v3523_v42 = vld [vmem:[%s3976_s0 + $0x10] sm:$0xff] }
  0x5c   :  { %2039 = vmatpush1.bf16.msra.mxu0 %v2767_v43  ;;  %1828 = vmatprep.subr.bf16.mxu1 %v2772_v46  ;;  %v2305_v43 = vcombine.low %v50_v26, %v58_v29  ;;  %v3533_v46 = vld [vmem:[%s3976_s0 + $0x30] sm:$0xff]  ;;  %v2292_v50 = vcombine.high %v3523_v42, %v3528_v45 }
  0x5d   :  { %2040 = vmatprep.subr.bf16.mxu0 %v2775_v47  ;;  %v3538_v47 = vld [vmem:[%s3976_s0 + $0x70] sm:$0xff] }
  0x5e   :  { %v2904_v26 = vld [vmem:[%s3975_s1 + $0x2d4] ss:$8 sps:$4 sm:$0xff]   ;;  %v2905_v29 = vld [vmem:[%s3975_s1 + $0x6d0] ss:$8 sps:$4 sm:$0xff]  }
  0x5f   :  { %1829 = vmatpush1.bf16.msra.mxu1 %v2770_v51  ;;  %v2300_v51 = vcombine.high %v3533_v46, %v3538_v47 }
  0x60   :  { %2041 = vmatpush1.bf16.msra.mxu0 %v2773_v52  ;;  %1830 = vmatprep.subr.bf16.mxu1 %v2778_v54  ;;  %v2842_v52 = vld [vmem:[%s3975_s1 + $0x230] ss:$8 sps:$4 sm:$0xff]   ;;  %v2850_v54 = vld [vmem:[%s3975_s1 + $0x244] ss:$8 sps:$4 sm:$0xff]  }
  0x61   :  { %2042 = vmatprep.subr.bf16.mxu0 %v2781_v55  ;;  %v2853_v55 = vld [vmem:[%s3975_s1 + $0x644] ss:$8 sps:$4 sm:$0xff]  }
  0x63   :  { %1831 = vmatpush1.bf16.msra.mxu1 %v2776_v56  ;;  %v2848_v56 = vld [vmem:[%s3975_s1 + $0x240] ss:$8 sps:$4 sm:$0xff]  }
  0x64   :  { %2043 = vmatpush1.bf16.msra.mxu0 %v2779_v57  ;;  %1832 = vmatprep.subr.bf16.mxu1 %v2784_v58  ;;  %v2851_v57 = vld [vmem:[%s3975_s1 + $0x640] ss:$8 sps:$4 sm:$0xff]   ;;  %v2856_v58 = vld [vmem:[%s3975_s1 + $0x254] ss:$8 sps:$4 sm:$0xff]  }
  0x65   :  { %2044 = vmatprep.subr.bf16.mxu0 %v2787_v59  ;;  %v2859_v59 = vld [vmem:[%s3975_s1 + $0x654] ss:$8 sps:$4 sm:$0xff]  }
  0x67   :  { %1833 = vmatpush1.bf16.msra.mxu1 %v2782_v60  ;;  %v2854_v60 = vld [vmem:[%s3975_s1 + $0x250] ss:$8 sps:$4 sm:$0xff]  }
  0x68   :  { %2045 = vmatpush1.bf16.msra.mxu0 %v2785_v61  ;;  %1834 = vmatprep.subr.bf16.mxu1 %v2790_v62  ;;  %v2857_v61 = vld [vmem:[%s3975_s1 + $0x650] ss:$8 sps:$4 sm:$0xff]   ;;  %v2862_v62 = vld [vmem:[%s3975_s1 + $0x264] ss:$8 sps:$4 sm:$0xff]  }
  0x69   :  { %2046 = vmatprep.subr.bf16.mxu0 %v2793_v63  ;;  %v2865_v63 = vld [vmem:[%s3975_s1 + $0x664] ss:$8 sps:$4 sm:$0xff]  }
  0x6b   :  { %1835 = vmatpush1.bf16.msra.mxu1 %v2788_v0  ;;  %v2860_v0 = vld [vmem:[%s3975_s1 + $0x260] ss:$8 sps:$4 sm:$0xff]  }
  0x6c   :  { %2047 = vmatpush1.bf16.msra.mxu0 %v2791_v1  ;;  %1836 = vmatprep.subr.bf16.mxu1 %v2796_v2  ;;  %v2863_v1 = vld [vmem:[%s3975_s1 + $0x660] ss:$8 sps:$4 sm:$0xff]   ;;  %v2868_v2 = vld [vmem:[%s3975_s1 + $0x274] ss:$8 sps:$4 sm:$0xff]  }
  0x6d   :  { %2048 = vmatprep.subr.bf16.mxu0 %v2799_v3  ;;  %v2871_v3 = vld [vmem:[%s3975_s1 + $0x674] ss:$8 sps:$4 sm:$0xff]  }
  0x6f   :  { %1837 = vmatpush1.bf16.msra.mxu1 %v2794_v4  ;;  %v2866_v4 = vld [vmem:[%s3975_s1 + $0x270] ss:$8 sps:$4 sm:$0xff]  }
  0x70   :  { %2049 = vmatpush1.bf16.msra.mxu0 %v2797_v5  ;;  %1838 = vmatprep.subr.bf16.mxu1 %v2802_v6  ;;  %v2869_v5 = vld [vmem:[%s3975_s1 + $0x670] ss:$8 sps:$4 sm:$0xff]   ;;  %v2874_v6 = vld [vmem:[%s3975_s1 + $0x284] ss:$8 sps:$4 sm:$0xff]  }
  0x71   :  { %2050 = vmatprep.subr.bf16.mxu0 %v2805_v7  ;;  %v2877_v7 = vld [vmem:[%s3975_s1 + $0x684] ss:$8 sps:$4 sm:$0xff]  }
  0x73   :  { %1839 = vmatpush1.bf16.msra.mxu1 %v2800_v8  ;;  %v2872_v8 = vld [vmem:[%s3975_s1 + $0x280] ss:$8 sps:$4 sm:$0xff]  }
  0x74   :  { %2051 = vmatpush1.bf16.msra.mxu0 %v2803_v9  ;;  %1840 = vmatprep.subr.bf16.mxu1 %v2808_v10  ;;  %v2875_v9 = vld [vmem:[%s3975_s1 + $0x680] ss:$8 sps:$4 sm:$0xff]   ;;  %v2880_v10 = vld [vmem:[%s3975_s1 + $0x294] ss:$8 sps:$4 sm:$0xff]  }
  0x75   :  { %2052 = vmatprep.subr.bf16.mxu0 %v2811_v11  ;;  %v2883_v11 = vld [vmem:[%s3975_s1 + $0x694] ss:$8 sps:$4 sm:$0xff]  }
  0x77   :  { %1841 = vmatpush1.bf16.msra.mxu1 %v2806_v12  ;;  %v2878_v12 = vld [vmem:[%s3975_s1 + $0x290] ss:$8 sps:$4 sm:$0xff]  }
  0x78   :  { %2053 = vmatpush1.bf16.msra.mxu0 %v2809_v13  ;;  %1842 = vmatprep.subr.bf16.mxu1 %v2814_v14  ;;  %v2881_v13 = vld [vmem:[%s3975_s1 + $0x690] ss:$8 sps:$4 sm:$0xff]   ;;  %v2886_v14 = vld [vmem:[%s3975_s1 + $0x2a4] ss:$8 sps:$4 sm:$0xff]  }
  0x79   :  { %2054 = vmatprep.subr.bf16.mxu0 %v2817_v15  ;;  %v2889_v15 = vld [vmem:[%s3975_s1 + $0x6a4] ss:$8 sps:$4 sm:$0xff]  }
  0x7b   :  { %1843 = vmatpush1.bf16.msra.mxu1 %v2812_v16  ;;  %v2884_v16 = vld [vmem:[%s3975_s1 + $0x2a0] ss:$8 sps:$4 sm:$0xff]  }
  0x7c   :  { %2055 = vmatpush1.bf16.msra.mxu0 %v2815_v17  ;;  %1844 = vmatprep.subr.bf16.mxu1 %v2820_v18  ;;  %v2887_v17 = vld [vmem:[%s3975_s1 + $0x6a0] ss:$8 sps:$4 sm:$0xff]   ;;  %v2892_v18 = vld [vmem:[%s3975_s1 + $0x2b4] ss:$8 sps:$4 sm:$0xff]  }
  0x7d   :  { %2056 = vmatprep.subr.bf16.mxu0 %v2823_v19  ;;  %v2895_v19 = vld [vmem:[%s3975_s1 + $0x6b4] ss:$8 sps:$4 sm:$0xff]  }
  0x7f   :  { %1845 = vmatpush1.bf16.msra.mxu1 %v2818_v20  ;;  %v2890_v20 = vld [vmem:[%s3975_s1 + $0x2b0] ss:$8 sps:$4 sm:$0xff]  }
  0x80   :  { %2057 = vmatpush1.bf16.msra.mxu0 %v2821_v21  ;;  %1867 = vmatprep.subr.bf16.mxu1 %v2826_v22  ;;  %v2893_v21 = vld [vmem:[%s3975_s1 + $0x6b0] ss:$8 sps:$4 sm:$0xff]   ;;  %v2898_v22 = vld [vmem:[%s3975_s1 + $0x2c4] ss:$8 sps:$4 sm:$0xff]  }
  0x81   :  { %2079 = vmatprep.subr.bf16.mxu0 %v2829_v23  ;;  %v2901_v23 = vld [vmem:[%s3975_s1 + $0x6c4] ss:$8 sps:$4 sm:$0xff]  }
  0x82   :  { %1847 = vmatmul.mubr.bf16.vlgmr.msra.gmra.mrb[0].mxu1 %v2289_v27  ;;  %v2907_v27 = vld [vmem:[%s3975_s1 + $0x6d4] ss:$8 sps:$4 sm:$0xff]  }
  0x83   :  { %2059 = vmatmul.mubr.bf16.vlgmr.msra.gmra.mrb[0].mxu0 %v2297_v28  ;;  %1868 = vmatpush1.bf16.msra.mxu1 %v2824_v24  ;;  %v2896_v24 = vld [vmem:[%s3975_s1 + $0x2c0] ss:$8 sps:$4 sm:$0xff]   ;;  %v2902_v28 = vld [vmem:[%s3975_s1 + $0x2d0] ss:$8 sps:$4 sm:$0xff]  }
  0x84   :  { %2080 = vmatpush1.bf16.msra.mxu0 %v2827_v25  ;;  %1869 = vmatprep.subr.bf16.mxu1 %v2832_v30  ;;  %v2899_v25 = vld [vmem:[%s3975_s1 + $0x6c0] ss:$8 sps:$4 sm:$0xff]   ;;  %v2910_v30 = vld [vmem:[%s3975_s1 + $0x2e4] ss:$8 sps:$4 sm:$0xff]  }
  0x85   :  { %2081 = vmatprep.subr.bf16.mxu0 %v2835_v31  ;;  %1856 = vmatprep.mubr.bf16.mxu1 %v2306_v34  ;;  %v2913_v31 = vld [vmem:[%s3975_s1 + $0x6e4] ss:$8 sps:$4 sm:$0xff]   ;;  %v2916_v34 = vld [vmem:[%s3975_s1 + $0x2f4] ss:$8 sps:$4 sm:$0xff]  }
  0x86   :  { %2068 = vmatprep.mubr.bf16.mxu0 %v2314_v35  ;;  %v2919_v35 = vld [vmem:[%s3975_s1 + $0x6f4] ss:$8 sps:$4 sm:$0xff]  }
  0x87   :  { %1870 = vmatpush1.bf16.msra.mxu1 %v2830_v36  ;;  %v2914_v36 = vld [vmem:[%s3975_s1 + $0x2f0] ss:$8 sps:$4 sm:$0xff]  }
  0x88   :  { %2082 = vmatpush1.bf16.msra.mxu0 %v2833_v37  ;;  %1871 = vmatprep.subr.bf16.mxu1 %v2838_v38  ;;  %v2917_v37 = vld [vmem:[%s3975_s1 + $0x6f0] ss:$8 sps:$4 sm:$0xff]   ;;  %v2922_v38 = vld [vmem:[%s3975_s1 + $0x304] ss:$8 sps:$4 sm:$0xff]  }
  0x89   :  { %2083 = vmatprep.subr.bf16.mxu0 %v2841_v39  ;;  %v2925_v39 = vld [vmem:[%s3975_s1 + $0x704] ss:$8 sps:$4 sm:$0xff]  }
  0x8a   :  { %1857 = vmatmul.mubr.bf16.gmra.mrb[4].mxu1 %v2305_v43  ;;  %v2299_v43 = vcombine.low %v3533_v46, %v3538_v47  ;;  %v2928_v46 = vld [vmem:[%s3975_s1 + $0x314] ss:$8 sps:$4 sm:$0xff]  }
  0x8b   :  { %2069 = vmatmul.mubr.bf16.gmra.mrb[4].mxu0 %v2313_v44  ;;  %1872 = vmatpush1.bf16.msra.mxu1 %v2836_v40  ;;  %v51_v40 = vld [vmem:[%s3976_s0 + $0x90] sm:$0xff] }
  0x8c   :  { %2084 = vmatpush1.bf16.msra.mxu0 %v2839_v41  ;;  %1873 = vmatprep.subr.bf16.mxu1 %v2844_v48  ;;  %v2291_v41 = vcombine.low %v3523_v42, %v3528_v45  ;;  %v59_v44 = vld [vmem:[%s3976_s0 + $0xd0] sm:$0xff]  ;;  %v2920_v42 = vld [vmem:[%s3975_s1 + $0x300] ss:$8 sps:$4 sm:$0xff]  }
  0x8d   :  { %2085 = vmatprep.subr.bf16.mxu0 %v2847_v49  ;;  %1899 = vmatprep.mubr.bf16.mxu1 %v2292_v50  ;;  %v55_v48 = vld [vmem:[%s3976_s0 + $0xb0] sm:$0xff]  ;;  %v2923_v45 = vld [vmem:[%s3975_s1 + $0x700] ss:$8 sps:$4 sm:$0xff]   ;;  %v2308_v50 = vcombine.high %v51_v40, %v59_v44 }
  0x8e   :  { %2111 = vmatprep.mubr.bf16.mxu0 %v2300_v51  ;;  %v63_v49 = vld [vmem:[%s3976_s0 + $0xf0] sm:$0xff] }
  0x8f   :  { %1874 = vmatpush1.bf16.msra.mxu1 %v2842_v52  ;;  %v2931_v47 = vld [vmem:[%s3975_s1 + $0x714] ss:$8 sps:$4 sm:$0xff]   ;;  %v2316_v51 = vcombine.high %v55_v48, %v63_v49  ;;  %v2926_v52 = vld [vmem:[%s3975_s1 + $0x310] ss:$8 sps:$4 sm:$0xff]  }
  0x90   :  { %2086 = vmatpush1.bf16.msra.mxu0 %v2845_v53  ;;  %1875 = vmatprep.subr.bf16.mxu1 %v2850_v54  ;;  %v2929_v53 = vld [vmem:[%s3975_s1 + $0x710] ss:$8 sps:$4 sm:$0xff]   ;;  %v2934_v54 = vld [vmem:[%s3975_s1 + $0x324] ss:$8 sps:$4 sm:$0xff]  }
  0x91   :  { %2087 = vmatprep.subr.bf16.mxu0 %v2853_v55  ;;  %v2937_v55 = vld [vmem:[%s3975_s1 + $0x724] ss:$8 sps:$4 sm:$0xff]  }
  0x93   :  { %1876 = vmatpush1.bf16.msra.mxu1 %v2848_v56  ;;  %v3749_v56 = vld [vmem:[%s3976_s0 + $0x18] sm:$0xff] }
  0x94   :  { %2088 = vmatpush1.bf16.msra.mxu0 %v2851_v57  ;;  %1877 = vmatprep.subr.bf16.mxu1 %v2856_v58  ;;  %v2307_v57 = vcombine.low %v51_v40, %v59_v44  ;;  %v2315_v58 = vcombine.low %v55_v48, %v63_v49  ;;  %v2992_v40 = vld [vmem:[%s3975_s1 + $0x3c0] ss:$8 sps:$4 sm:$0xff]   ;;  %v3003_v44 = vld [vmem:[%s3975_s1 + $0x7d4] ss:$8 sps:$4 sm:$0xff]   ;;  %v2998_v48 = vld [vmem:[%s3975_s1 + $0x3d0] ss:$8 sps:$4 sm:$0xff]  }
  0x95   :  { %2089 = vmatprep.subr.bf16.mxu0 %v2859_v59  ;;  %v3754_v59 = vld [vmem:[%s3976_s0 + $0x58] sm:$0xff] }
  0x96   :  { %v3001_v49 = vld [vmem:[%s3975_s1 + $0x7d0] ss:$8 sps:$4 sm:$0xff]  }
  0x97   :  { %1878 = vmatpush1.bf16.msra.mxu1 %v2854_v60  ;;  %v3759_v60 = vld [vmem:[%s3976_s0 + $0x38] sm:$0xff] }
  0x98   :  { %2090 = vmatpush1.bf16.msra.mxu0 %v2857_v61  ;;  %1879 = vmatprep.subr.bf16.mxu1 %v2862_v62  ;;  %v3764_v61 = vld [vmem:[%s3976_s0 + $0x78] sm:$0xff]  ;;  %v2932_v62 = vld [vmem:[%s3975_s1 + $0x320] ss:$8 sps:$4 sm:$0xff]  }
  0x99   :  { %2091 = vmatprep.subr.bf16.mxu0 %v2865_v63  ;;  %v2935_v63 = vld [vmem:[%s3975_s1 + $0x720] ss:$8 sps:$4 sm:$0xff]  }
  0x9b   :  { %1880 = vmatpush1.bf16.msra.mxu1 %v2860_v0  ;;  %v2940_v0 = vld [vmem:[%s3975_s1 + $0x334] ss:$8 sps:$4 sm:$0xff]  }
  0x9c   :  { %2092 = vmatpush1.bf16.msra.mxu0 %v2863_v1  ;;  %1881 = vmatprep.subr.bf16.mxu1 %v2868_v2  ;;  %v2943_v1 = vld [vmem:[%s3975_s1 + $0x734] ss:$8 sps:$4 sm:$0xff]   ;;  %v2294_v2 = vcombine.high %v3749_v56, %v3754_v59 }
  0x9d   :  { %2093 = vmatprep.subr.bf16.mxu0 %v2871_v3  ;;  %v2302_v3 = vcombine.high %v3759_v60, %v3764_v61 }
  0x9f   :  { %1882 = vmatpush1.bf16.msra.mxu1 %v2866_v4  ;;  %v2938_v4 = vld [vmem:[%s3975_s1 + $0x330] ss:$8 sps:$4 sm:$0xff]  }
  0xa0   :  { %2094 = vmatpush1.bf16.msra.mxu0 %v2869_v5  ;;  %1883 = vmatprep.subr.bf16.mxu1 %v2874_v6  ;;  %v2941_v5 = vld [vmem:[%s3975_s1 + $0x730] ss:$8 sps:$4 sm:$0xff]   ;;  %v2946_v6 = vld [vmem:[%s3975_s1 + $0x344] ss:$8 sps:$4 sm:$0xff]  }
  0xa1   :  { %2095 = vmatprep.subr.bf16.mxu0 %v2877_v7  ;;  %v2949_v7 = vld [vmem:[%s3975_s1 + $0x744] ss:$8 sps:$4 sm:$0xff]  }
  0xa3   :  { %1884 = vmatpush1.bf16.msra.mxu1 %v2872_v8  ;;  %v2944_v8 = vld [vmem:[%s3975_s1 + $0x340] ss:$8 sps:$4 sm:$0xff]  }
  0xa4   :  { %2096 = vmatpush1.bf16.msra.mxu0 %v2875_v9  ;;  %1885 = vmatprep.subr.bf16.mxu1 %v2880_v10  ;;  %v2947_v9 = vld [vmem:[%s3975_s1 + $0x740] ss:$8 sps:$4 sm:$0xff]   ;;  %v2952_v10 = vld [vmem:[%s3975_s1 + $0x354] ss:$8 sps:$4 sm:$0xff]  }
  0xa5   :  { %2097 = vmatprep.subr.bf16.mxu0 %v2883_v11  ;;  %v2955_v11 = vld [vmem:[%s3975_s1 + $0x754] ss:$8 sps:$4 sm:$0xff]  }
  0xa7   :  { %1886 = vmatpush1.bf16.msra.mxu1 %v2878_v12  ;;  %v2950_v12 = vld [vmem:[%s3975_s1 + $0x350] ss:$8 sps:$4 sm:$0xff]  }
  0xa8   :  { %2098 = vmatpush1.bf16.msra.mxu0 %v2881_v13  ;;  %1887 = vmatprep.subr.bf16.mxu1 %v2886_v14  ;;  %v2953_v13 = vld [vmem:[%s3975_s1 + $0x750] ss:$8 sps:$4 sm:$0xff]   ;;  %v2958_v14 = vld [vmem:[%s3975_s1 + $0x364] ss:$8 sps:$4 sm:$0xff]  }
  0xa9   :  { %2099 = vmatprep.subr.bf16.mxu0 %v2889_v15  ;;  %v2961_v15 = vld [vmem:[%s3975_s1 + $0x764] ss:$8 sps:$4 sm:$0xff]  }
  0xab   :  { %1888 = vmatpush1.bf16.msra.mxu1 %v2884_v16  ;;  %v2956_v16 = vld [vmem:[%s3975_s1 + $0x360] ss:$8 sps:$4 sm:$0xff]  }
  0xac   :  { %2100 = vmatpush1.bf16.msra.mxu0 %v2887_v17  ;;  %1889 = vmatprep.subr.bf16.mxu1 %v2892_v18  ;;  %v2959_v17 = vld [vmem:[%s3975_s1 + $0x760] ss:$8 sps:$4 sm:$0xff]   ;;  %v2964_v18 = vld [vmem:[%s3975_s1 + $0x374] ss:$8 sps:$4 sm:$0xff]  }
  0xad   :  { %2101 = vmatprep.subr.bf16.mxu0 %v2895_v19  ;;  %v2967_v19 = vld [vmem:[%s3975_s1 + $0x774] ss:$8 sps:$4 sm:$0xff]  }
  0xaf   :  { %1890 = vmatpush1.bf16.msra.mxu1 %v2890_v20  ;;  %v2962_v20 = vld [vmem:[%s3975_s1 + $0x370] ss:$8 sps:$4 sm:$0xff]  }
  0xb0   :  { %2102 = vmatpush1.bf16.msra.mxu0 %v2893_v21  ;;  %1891 = vmatprep.subr.bf16.mxu1 %v2898_v22  ;;  %v2965_v21 = vld [vmem:[%s3975_s1 + $0x770] ss:$8 sps:$4 sm:$0xff]   ;;  %v2970_v22 = vld [vmem:[%s3975_s1 + $0x384] ss:$8 sps:$4 sm:$0xff]  }
  0xb1   :  { %2103 = vmatprep.subr.bf16.mxu0 %v2901_v23  ;;  %v2973_v23 = vld [vmem:[%s3975_s1 + $0x784] ss:$8 sps:$4 sm:$0xff]  }
  0xb3   :  { %1892 = vmatpush1.bf16.msra.mxu1 %v2896_v24  ;;  %v2968_v24 = vld [vmem:[%s3975_s1 + $0x380] ss:$8 sps:$4 sm:$0xff]  }
  0xb4   :  { %2104 = vmatpush1.bf16.msra.mxu0 %v2899_v25  ;;  %1893 = vmatprep.subr.bf16.mxu1 %v2904_v26  ;;  %v2971_v25 = vld [vmem:[%s3975_s1 + $0x780] ss:$8 sps:$4 sm:$0xff]   ;;  %v2976_v26 = vld [vmem:[%s3975_s1 + $0x394] ss:$8 sps:$4 sm:$0xff]  }
  0xb5   :  { %2105 = vmatprep.subr.bf16.mxu0 %v2907_v27  ;;  %v2979_v27 = vld [vmem:[%s3975_s1 + $0x794] ss:$8 sps:$4 sm:$0xff]  }
  0xb7   :  { %1894 = vmatpush1.bf16.msra.mxu1 %v2902_v28  ;;  %v2974_v28 = vld [vmem:[%s3975_s1 + $0x390] ss:$8 sps:$4 sm:$0xff]  }
  0xb8   :  { %2106 = vmatpush1.bf16.msra.mxu0 %v2905_v29  ;;  %1895 = vmatprep.subr.bf16.mxu1 %v2910_v30  ;;  %v2977_v29 = vld [vmem:[%s3975_s1 + $0x790] ss:$8 sps:$4 sm:$0xff]   ;;  %v2982_v30 = vld [vmem:[%s3975_s1 + $0x3a4] ss:$8 sps:$4 sm:$0xff]  }
  0xb9   :  { %2107 = vmatprep.subr.bf16.mxu0 %v2913_v31  ;;  %v2985_v31 = vld [vmem:[%s3975_s1 + $0x7a4] ss:$8 sps:$4 sm:$0xff]  }
  0xbb   :  { %1896 = vmatpush1.bf16.msra.mxu1 %v2908_v32  ;;  %v2980_v32 = vld [vmem:[%s3975_s1 + $0x3a0] ss:$8 sps:$4 sm:$0xff]  }
  0xbc   :  { %2108 = vmatpush1.bf16.msra.mxu0 %v2911_v33  ;;  %1897 = vmatprep.subr.bf16.mxu1 %v2916_v34  ;;  %v2983_v33 = vld [vmem:[%s3975_s1 + $0x7a0] ss:$8 sps:$4 sm:$0xff]   ;;  %v2988_v34 = vld [vmem:[%s3975_s1 + $0x3b4] ss:$8 sps:$4 sm:$0xff]  }
  0xbd   :  { %2109 = vmatprep.subr.bf16.mxu0 %v2919_v35  ;;  %v2991_v35 = vld [vmem:[%s3975_s1 + $0x7b4] ss:$8 sps:$4 sm:$0xff]  }
  0xbf   :  { %1898 = vmatpush1.bf16.msra.mxu1 %v2914_v36  ;;  %v2986_v36 = vld [vmem:[%s3975_s1 + $0x3b0] ss:$8 sps:$4 sm:$0xff]  }
  0xc0   :  { %2110 = vmatpush1.bf16.msra.mxu0 %v2917_v37  ;;  %1920 = vmatprep.subr.bf16.mxu1 %v2922_v38  ;;  %v2989_v37 = vld [vmem:[%s3975_s1 + $0x7b0] ss:$8 sps:$4 sm:$0xff]   ;;  %v2994_v38 = vld [vmem:[%s3975_s1 + $0x3c4] ss:$8 sps:$4 sm:$0xff]  }
  0xc1   :  { %2132 = vmatprep.subr.bf16.mxu0 %v2925_v39  ;;  %v2997_v39 = vld [vmem:[%s3975_s1 + $0x7c4] ss:$8 sps:$4 sm:$0xff]  }
  0xc2   :  { %1900 = vmatmul.mubr.bf16.vlgmr.msra.gmra.mrb[0].mxu1 %v2291_v41  ;;  %v2995_v41 = vld [vmem:[%s3975_s1 + $0x7c0] ss:$8 sps:$4 sm:$0xff]  }
  0xc3   :  { %2112 = vmatmul.mubr.bf16.vlgmr.msra.gmra.mrb[0].mxu0 %v2299_v43  ;;  %1921 = vmatpush1.bf16.msra.mxu1 %v2920_v42  ;;  %v3000_v43 = vld [vmem:[%s3975_s1 + $0x3d4] ss:$8 sps:$4 sm:$0xff]   ;;  %v3006_v42 = vld [vmem:[%s3975_s1 + $0x3e4] ss:$8 sps:$4 sm:$0xff]  }
  0xc4   :  { %2133 = vmatpush1.bf16.msra.mxu0 %v2923_v45  ;;  %1922 = vmatprep.subr.bf16.mxu1 %v2928_v46  ;;  %v3009_v45 = vld [vmem:[%s3975_s1 + $0x7e4] ss:$8 sps:$4 sm:$0xff]   ;;  %v3004_v46 = vld [vmem:[%s3975_s1 + $0x3e0] ss:$8 sps:$4 sm:$0xff]  }
  0xc5   :  { %2134 = vmatprep.subr.bf16.mxu0 %v2931_v47  ;;  %1909 = vmatprep.mubr.bf16.mxu1 %v2308_v50  ;;  %v3007_v47 = vld [vmem:[%s3975_s1 + $0x7e0] ss:$8 sps:$4 sm:$0xff]   ;;  %v3012_v50 = vld [vmem:[%s3975_s1 + $0x3f4] ss:$8 sps:$4 sm:$0xff]  }
  0xc6   :  { %2121 = vmatprep.mubr.bf16.mxu0 %v2316_v51  ;;  %v3015_v51 = vld [vmem:[%s3975_s1 + $0x7f4] ss:$8 sps:$4 sm:$0xff]  }
  0xc7   :  { %1923 = vmatpush1.bf16.msra.mxu1 %v2926_v52  ;;  %v3010_v52 = vld [vmem:[%s3975_s1 + $0x3f0] ss:$8 sps:$4 sm:$0xff]  }
  0xc8   :  { %2135 = vmatpush1.bf16.msra.mxu0 %v2929_v53  ;;  %1924 = vmatprep.subr.bf16.mxu1 %v2934_v54  ;;  %v3013_v53 = vld [vmem:[%s3975_s1 + $0x7f0] ss:$8 sps:$4 sm:$0xff]  }
  0xc9   :  { %2136 = vmatprep.subr.bf16.mxu0 %v2937_v55  ;;  %v52_v54 = vld [vmem:[%s3976_s0 + $0x98] sm:$0xff] }
  0xca   :  { %1910 = vmatmul.mubr.bf16.gmra.mrb[4].mxu1 %v2307_v57  ;;  %v60_v55 = vld [vmem:[%s3976_s0 + $0xd8] sm:$0xff] }
  0xcb   :  { %2122 = vmatmul.mubr.bf16.gmra.mrb[4].mxu0 %v2315_v58  ;;  %1925 = vmatpush1.bf16.msra.mxu1 %v2932_v62  ;;  %v56_v57 = vld [vmem:[%s3976_s0 + $0xb8] sm:$0xff]  ;;  %v2293_v62 = vcombine.low %v3749_v56, %v3754_v59 }
  0xcc   :  { %2137 = vmatpush1.bf16.msra.mxu0 %v2935_v63  ;;  %1926 = vmatprep.subr.bf16.mxu1 %v2940_v0  ;;  %v64_v58 = vld [vmem:[%s3976_s0 + $0xf8] sm:$0xff]  ;;  %v2301_v63 = vcombine.low %v3759_v60, %v3764_v61  ;;  %v2310_v0 = vcombine.high %v52_v54, %v60_v55 }
  0xcd   :  { %2138 = vmatprep.subr.bf16.mxu0 %v2943_v1  ;;  %1952 = vmatprep.mubr.bf16.mxu1 %v2294_v2  ;;  %v2318_v1 = vcombine.high %v56_v57, %v64_v58  ;;  %v2309_v2 = vcombine.low %v52_v54, %v60_v55 }
  0xce   :  { %2164 = vmatprep.mubr.bf16.mxu0 %v2302_v3  ;;  %v2317_v3 = vcombine.low %v56_v57, %v64_v58 }
  0xcf   :  { %1927 = vmatpush1.bf16.msra.mxu1 %v2938_v4 }
  0xd0   :  { %2139 = vmatpush1.bf16.msra.mxu0 %v2941_v5  ;;  %1928 = vmatprep.subr.bf16.mxu1 %v2946_v6 }
  0xd1   :  { %2140 = vmatprep.subr.bf16.mxu0 %v2949_v7 }
  0xd3   :  { %1929 = vmatpush1.bf16.msra.mxu1 %v2944_v8 }
  0xd4   :  { %2141 = vmatpush1.bf16.msra.mxu0 %v2947_v9  ;;  %1930 = vmatprep.subr.bf16.mxu1 %v2952_v10 }
  0xd5   :  { %2142 = vmatprep.subr.bf16.mxu0 %v2955_v11 }
  0xd7   :  { %1931 = vmatpush1.bf16.msra.mxu1 %v2950_v12 }
  0xd8   :  { %2143 = vmatpush1.bf16.msra.mxu0 %v2953_v13  ;;  %1932 = vmatprep.subr.bf16.mxu1 %v2958_v14 }
  0xd9   :  { %2144 = vmatprep.subr.bf16.mxu0 %v2961_v15 }
  0xdb   :  { %1933 = vmatpush1.bf16.msra.mxu1 %v2956_v16 }
  0xdc   :  { %2145 = vmatpush1.bf16.msra.mxu0 %v2959_v17  ;;  %1934 = vmatprep.subr.bf16.mxu1 %v2964_v18 }
  0xdd   :  { %2146 = vmatprep.subr.bf16.mxu0 %v2967_v19 }
  0xdf   :  { %1935 = vmatpush1.bf16.msra.mxu1 %v2962_v20 }
  0xe0   :  { %2147 = vmatpush1.bf16.msra.mxu0 %v2965_v21  ;;  %1936 = vmatprep.subr.bf16.mxu1 %v2970_v22 }
  0xe1   :  { %2148 = vmatprep.subr.bf16.mxu0 %v2973_v23 }
  0xe3   :  { %1937 = vmatpush1.bf16.msra.mxu1 %v2968_v24 }
  0xe4   :  { %2149 = vmatpush1.bf16.msra.mxu0 %v2971_v25  ;;  %1938 = vmatprep.subr.bf16.mxu1 %v2976_v26 }
  0xe5   :  { %2150 = vmatprep.subr.bf16.mxu0 %v2979_v27 }
  0xe7   :  { %1939 = vmatpush1.bf16.msra.mxu1 %v2974_v28 }
  0xe8   :  { %2151 = vmatpush1.bf16.msra.mxu0 %v2977_v29  ;;  %1940 = vmatprep.subr.bf16.mxu1 %v2982_v30 }
  0xe9   :  { %2152 = vmatprep.subr.bf16.mxu0 %v2985_v31 }
  0xeb   :  { %1941 = vmatpush1.bf16.msra.mxu1 %v2980_v32 }
  0xec   :  { %2153 = vmatpush1.bf16.msra.mxu0 %v2983_v33  ;;  %1942 = vmatprep.subr.bf16.mxu1 %v2988_v34 }
  0xed   :  { %2154 = vmatprep.subr.bf16.mxu0 %v2991_v35 }
  0xef   :  { %1943 = vmatpush1.bf16.msra.mxu1 %v2986_v36 }
  0xf0   :  { %2155 = vmatpush1.bf16.msra.mxu0 %v2989_v37  ;;  %1944 = vmatprep.subr.bf16.mxu1 %v2994_v38 }
  0xf1   :  { %2156 = vmatprep.subr.bf16.mxu0 %v2997_v39 }
  0xf3   :  { %1945 = vmatpush1.bf16.msra.mxu1 %v2992_v40 }
  0xf4   :  { %2157 = vmatpush1.bf16.msra.mxu0 %v2995_v41  ;;  %1946 = vmatprep.subr.bf16.mxu1 %v3000_v43 }
  0xf5   :  { %2158 = vmatprep.subr.bf16.mxu0 %v3003_v44 }
  0xf7   :  { %1947 = vmatpush1.bf16.msra.mxu1 %v2998_v48 }
  0xf8   :  { %2159 = vmatpush1.bf16.msra.mxu0 %v3001_v49  ;;  %1948 = vmatprep.subr.bf16.mxu1 %v3006_v42 }
  0xf9   :  { %2160 = vmatprep.subr.bf16.mxu0 %v3009_v45 }
  0xfb   :  { %1949 = vmatpush1.bf16.msra.mxu1 %v3004_v46 }
  0xfc   :  { %2161 = vmatpush1.bf16.msra.mxu0 %v3007_v47  ;;  %1950 = vmatprep.subr.bf16.mxu1 %v3012_v50 }
  0xfd   :  { %2162 = vmatprep.subr.bf16.mxu0 %v3015_v51 }
  0xff   :  { %1951 = vmatpush1.bf16.msra.mxu1 %v3010_v52 }
 0x100   :  { %2163 = vmatpush1.bf16.msra.mxu0 %v3013_v53 }
 0x102   :  { %1953 = vmatmul.mubr.bf16.vlgmr.msra.gmra.mrb[0].mxu1 %v2293_v62 }
 0x103   :  { %2165 = vmatmul.mubr.bf16.vlgmr.msra.gmra.mrb[0].mxu0 %v2301_v63  ;;  %1962 = vmatprep.mubr.bf16.mxu1 %v2310_v0 }
 0x104   :  { %2174 = vmatprep.mubr.bf16.mxu0 %v2318_v1 }
 0x10a   :  { %1963 = vmatmul.mubr.bf16.gmra.mrb[4].mxu1 %v2309_v2 }
 0x10b   :  { %2175 = vmatmul.mubr.bf16.gmra.mrb[4].mxu0 %v2317_v3 }
 0x1d5   :  { %v1954_v4 = vpop.f32.mrb[0].mxu1 }
 0x1d6   :  { %v2166_v5 = vpop.f32.mrb[0].mxu0  ;;  %v1956_v7 = vpop.f32.mrb[1].mxu1 }
 0x1d7   :  { %v2576_v6 = vadd.f32 %v2166_v5, %v1954_v4  ;;  %v2168_v56 = vpop.f32.mrb[1].mxu0  ;;  %v1958_v8 = vpop.f32.mrb[2].mxu1 }
 0x1d8   :  { %v2577_v59 = vadd.f32 %v2168_v56, %v1956_v7  ;;  %v2170_v60 = vpop.f32.mrb[2].mxu0  ;;  %v1960_v9 = vpop.f32.mrb[3].mxu1 }
 0x1d9   :  { %2271 = vst [vmem:[%s3977_s2] sm:$0xff] %v2576_v6  ;;  %v2578_v61 = vadd.f32 %v2170_v60, %v1958_v8  ;;  %v2172_v10 = vpop.f32.mrb[3].mxu0  ;;  %v2230_v12 = vmul.f32 %v2576_v6, %v2576_v6 }
 0x1da   :  { %2272 = vst [vmem:[%s3977_s2 + $0x8] sm:$0xff] %v2577_v59  ;;  %v2579_v11 = vadd.f32 %v2172_v10, %v1960_v9  ;;  %v2231_v15 = vmul.f32 %v2577_v59, %v2577_v59 }
 0x1db   :  { %v2212_v13 = vadd.f32 %v2578_v61, %v2576_v6  ;;  %v2232_v14 = vmul.f32 %v2578_v61, %v2578_v61  ;;  %2273 = vst [vmem:[%s3977_s2 + $0x10] sm:$0xff] %v2578_v61 }
 0x1dc   :  { %v2221_v16 = vadd.f32 %v2579_v11, %v2577_v59  ;;  %v2233_v17 = vmul.f32 %v2579_v11, %v2579_v11  ;;  %2274 = vst [vmem:[%s3977_s2 + $0x18] sm:$0xff] %v2579_v11 }
 0x1dd   :  { %v2238_v18 = vadd.f32 %v2232_v14, %v2230_v12  ;;  %v1964_v20 = vpop.f32.mrb[4].mxu1 }
 0x1de   :  { %v2247_v19 = vadd.f32 %v2233_v17, %v2231_v15  ;;  %v2176_v21 = vpop.f32.mrb[4].mxu0  ;;  %v1966_v23 = vpop.f32.mrb[5].mxu1 }
 0x1df   :  { %v2580_v22 = vadd.f32 %v2176_v21, %v1964_v20  ;;  %v2178_v24 = vpop.f32.mrb[5].mxu0  ;;  %v1968_v26 = vpop.f32.mrb[6].mxu1 }
 0x1e0   :  { %v2581_v25 = vadd.f32 %v2178_v24, %v1966_v23  ;;  %v2180_v27 = vpop.f32.mrb[6].mxu0  ;;  %v1970_v31 = vpop.f32.mrb[7].mxu1 }
 0x1e1   :  { %v2213_v28 = vadd.f32 %v2580_v22, %v2212_v13  ;;  %v2234_v29 = vmul.f32 %v2580_v22, %v2580_v22  ;;  %2275 = vst [vmem:[%s3977_s2 + $0x20] sm:$0xff] %v2580_v22  ;;  %v2582_v30 = vadd.f32 %v2180_v27, %v1968_v26  ;;  %v2182_v32 = vpop.f32.mrb[7].mxu0 }
 0x1e2   :  { %v2222_v33 = vadd.f32 %v2581_v25, %v2221_v16  ;;  %v2235_v34 = vmul.f32 %v2581_v25, %v2581_v25  ;;  %2276 = vst [vmem:[%s3977_s2 + $0x28] sm:$0xff] %v2581_v25  ;;  %v2583_v35 = vadd.f32 %v2182_v32, %v1970_v31 }
 0x1e3   :  { %v2239_v36 = vadd.f32 %v2238_v18, %v2234_v29  ;;  %v2214_v37 = vadd.f32 %v2582_v30, %v2213_v28  ;;  %v2236_v38 = vmul.f32 %v2582_v30, %v2582_v30  ;;  %2277 = vst [vmem:[%s3977_s2 + $0x30] sm:$0xff] %v2582_v30 }
 0x1e4   :  { %v2248_v39 = vadd.f32 %v2247_v19, %v2235_v34  ;;  %v2223_v40 = vadd.f32 %v2583_v35, %v2222_v33  ;;  %v2237_v41 = vmul.f32 %v2583_v35, %v2583_v35  ;;  %2278 = vst [vmem:[%s3977_s2 + $0x38] sm:$0xff] %v2583_v35 }
 0x1e5   :  { %v2215_v43 = vrot.slane %v2214_v37, 4  ;;  %v2240_v44 = vadd.f32 %v2239_v36, %v2236_v38 }
 0x1e6   :  { %v2224_v48 = vrot.slane %v2223_v40, 4  ;;  %v2249_v49 = vadd.f32 %v2248_v39, %v2237_v41 }
 0x1e7   :  { %v2216_v42 = vadd.f32 %v2215_v43, %v2214_v37  ;;  %v2241_v45 = vrot.slane %v2240_v44, 4 }
 0x1e8   :  { %v2225_v46 = vadd.f32 %v2224_v48, %v2223_v40  ;;  %v2250_v47 = vrot.slane %v2249_v49, 4 }
 0x1e9   :  { %v2217_v50 = vrot.slane %v2216_v42, 2  ;;  %v2242_v51 = vadd.f32 %v2241_v45, %v2240_v44 }
 0x1ea   :  { %v2226_v52 = vrot.slane %v2225_v46, 2  ;;  %v2251_v53 = vadd.f32 %v2250_v47, %v2249_v49 }
 0x1eb   :  { %v2218_v54 = vadd.f32 %v2217_v50, %v2216_v42  ;;  %v2243_v55 = vrot.slane %v2242_v51, 2 }
 0x1ec   :  { %v2227_v57 = vadd.f32 %v2226_v52, %v2225_v46  ;;  %v2252_v58 = vrot.slane %v2251_v53, 2 }
 0x1ed   :  { %v2219_v62 = vrot.slane %v2218_v54, 1  ;;  %v2244_v63 = vadd.f32 %v2243_v55, %v2242_v51 }
 0x1ee   :  { %v2228_v0 = vrot.slane %v2227_v57, 1  ;;  %v2253_v1 = vadd.f32 %v2252_v58, %v2251_v53 }
 0x1ef   :  { %v2245_v2 = vrot.slane %v2244_v63, 1  ;;  %v2220_v4 = vadd.f32 %v2219_v62, %v2218_v54 }
 0x1f0   :  { %v2254_v3 = vrot.slane %v2253_v1, 1  ;;  %v2229_v6 = vadd.f32 %v2228_v0, %v2227_v57 }
 0x1f1   :  { %v2246_v5 = vadd.f32 %v2245_v2, %v2244_v63 }
 0x1f2   :  { %v2255_v7 = vadd.f32 %v2254_v3, %v2253_v1 }
 0x1f3   :  { %v2257_v56 = vsel %vm2256_vm0, %v2220_v4, %v2246_v5 }
 0x1f4   :  { %v2258_v59 = vsel %vm2256_vm0, %v2229_v6, %v2255_v7 }
 0x1f5   :  { %v2261_v8 = vcombine.low %v2257_v56, %v2258_v59 }
 0x1f7   :  { %2575 = vst.sshfl [vmem:[%s3978_s3] sm:$0x33 pattern:$0x76325410] %v2261_v8 }

// kernel: _lambda_.14
= control target key start
LH: loop header
LB: loop body
LE: loop exit
PB: predicated region body
PF: predicated region fallthrough
CT: control target
= control target key end

     0   :  { %v32_v0 = vlaneseq  ;;  %s377_s1 = inlined_call_operand.vmem [shape: f32[1,512], index: 1, kind: input, shape index: {}]   ;;  %s378_s2 = inlined_call_operand.vmem [shape: f32[1,512], index: 2, kind: input, shape index: {}]   ;;  %s379_s0 = inlined_call_operand.vmem [shape: f32[32,512], index: 0, kind: input, shape index: {}]   ;;  %s380_s3 = inlined_call_operand.vmem [shape: bf16[32,512], index: 3, kind: output, shape index: {}]  }
   0x1   :  { %v30_v2 = vld [vmem:[%s377_s1] sm:$0xf]  ;;  %v15_v5 = vld [vmem:[%s379_s0 + $0x8] sm:$0xff]  ;;  %v16_v10 = vld [vmem:[%s379_s0 + $0x10] sm:$0xff] }
   0x2   :  { %v33_v1 = vshrl.u32 %v32_v0, 7  ;;  %v68_v3 = vld [vmem:[%s378_s2] sm:$0xf]  ;;  %v19_v12 = vld [vmem:[%s379_s0 + $0x28] sm:$0xff]  ;;  %v17_v17 = vld [vmem:[%s379_s0 + $0x18] sm:$0xff] }
   0x3   :  { %v14_v4 = vld [vmem:[%s379_s0] sm:$0xff]  ;;  %v20_v18 = vld [vmem:[%s379_s0 + $0x30] sm:$0xff]  ;;  %v21_v19 = vld [vmem:[%s379_s0 + $0x38] sm:$0xff] }
   0x4   :  { %v34_v6 = vsub.s32 0, %v33_v1  ;;  %v38_v7 = vsub.s32 1, %v33_v1  ;;  %v42_v8 = vsub.s32 2, %v33_v1  ;;  %v46_v9 = vsub.s32 3, %v33_v1  ;;  %v18_v11 = vld [vmem:[%s379_s0 + $0x20] sm:$0xff]  ;;  %v23_v51 = vld [vmem:[%s379_s0 + $0x48] sm:$0xff] }
   0x5   :  { %v22_v46 = vld [vmem:[%s379_s0 + $0x40] sm:$0xff]  ;;  %v24_v52 = vld [vmem:[%s379_s0 + $0x50] sm:$0xff]  ;;  %v25_v53 = vld [vmem:[%s379_s0 + $0x58] sm:$0xff] }
   0x6   :  { %v271_v13 = vrot.slane %v30_v2, %v34_v6  ;;  %v273_v14 = vrot.slane %v30_v2, %v38_v7  ;;  %v275_v15 = vrot.slane %v68_v3, %v34_v6  ;;  %v277_v16 = vrot.slane %v68_v3, %v38_v7  ;;  %v26_v0 = vld [vmem:[%s379_s0 + $0x60] sm:$0xff]  ;;  %v27_v1 = vld [vmem:[%s379_s0 + $0x68] sm:$0xff] }
   0x7   :  { %v288_v20 = vrot.slane %v30_v2, %v42_v8  ;;  %v290_v21 = vrot.slane %v30_v2, %v46_v9  ;;  %v292_v22 = vrot.slane %v68_v3, %v42_v8  ;;  %v294_v23 = vrot.slane %v68_v3, %v46_v9 }
   0x8   :  { %v52_v24 = vmul.f32 %v271_v13, %v14_v4  ;;  %v53_v25 = vmul.f32 %v273_v14, %v15_v5  ;;  %v56_v26 = vmul.f32 %v271_v13, %v18_v11  ;;  %v57_v27 = vmul.f32 %v273_v14, %v19_v12 }
   0x9   :  { %v54_v28 = vmul.f32 %v288_v20, %v16_v10  ;;  %v55_v29 = vmul.f32 %v290_v21, %v17_v17  ;;  %v58_v30 = vmul.f32 %v288_v20, %v20_v18  ;;  %v59_v31 = vmul.f32 %v290_v21, %v21_v19  ;;  %v28_v17 = vld [vmem:[%s379_s0 + $0x70] sm:$0xff]  ;;  %v29_v18 = vld [vmem:[%s379_s0 + $0x78] sm:$0xff] }
   0xa   :  { %v90_v32 = vadd.f32 %v275_v15, %v52_v24  ;;  %v91_v33 = vadd.f32 %v277_v16, %v53_v25  ;;  %v94_v34 = vadd.f32 %v275_v15, %v56_v26  ;;  %v95_v35 = vadd.f32 %v277_v16, %v57_v27 }
   0xb   :  { %v92_v36 = vadd.f32 %v292_v22, %v54_v28  ;;  %v93_v37 = vadd.f32 %v294_v23, %v55_v29  ;;  %v96_v38 = vadd.f32 %v292_v22, %v58_v30  ;;  %v97_v39 = vadd.f32 %v294_v23, %v59_v31 }
   0xc   :  { %vm106_vm0 = vcmp.gt.f32.partialorder %v90_v32, 0.0  ;;  %vm107_vm1 = vcmp.gt.f32.partialorder %v91_v33, 0.0  ;;  %v122_v40 = vmul.f32 0.2, %v90_v32  ;;  %v123_v41 = vmul.f32 0.2, %v91_v33 }
   0xd   :  { %vm108_vm2 = vcmp.gt.f32.partialorder %v92_v36, 0.0  ;;  %vm109_vm3 = vcmp.gt.f32.partialorder %v93_v37, 0.0  ;;  %v124_v42 = vmul.f32 0.2, %v92_v36  ;;  %v125_v43 = vmul.f32 0.2, %v93_v37 }
   0xe   :  { %v138_v44 = vsel %vm106_vm0, %v90_v32, %v122_v40  ;;  %v139_v45 = vsel %vm107_vm1, %v91_v33, %v123_v41  ;;  %vm110_vm4 = vcmp.gt.f32.partialorder %v94_v34, 0.0  ;;  %vm111_vm5 = vcmp.gt.f32.partialorder %v95_v35, 0.0 }
   0xf   :  { %v222_v47 = vpack.c.bf16 %v139_v45, %v138_v44  ;;  %v140_v48 = vsel %vm108_vm2, %v92_v36, %v124_v42  ;;  %v141_v49 = vsel %vm109_vm3, %v93_v37, %v125_v43  ;;  %v126_v50 = vmul.f32 0.2, %v94_v34 }
  0x10   :  { %v223_v54 = vpack.c.bf16 %v141_v49, %v140_v48  ;;  %v127_v55 = vmul.f32 0.2, %v95_v35  ;;  %vm112_vm6 = vcmp.gt.f32.partialorder %v96_v38, 0.0  ;;  %vm113_vm7 = vcmp.gt.f32.partialorder %v97_v39, 0.0 }
  0x11   :  { %202 = vst [vmem:[%s380_s3] sm:$0xff] %v222_v47  ;;  %v142_v56 = vsel %vm110_vm4, %v94_v34, %v126_v50  ;;  %v128_v57 = vmul.f32 0.2, %v96_v38  ;;  %v129_v58 = vmul.f32 0.2, %v97_v39  ;;  %v60_v59 = vmul.f32 %v271_v13, %v22_v46 }
  0x12   :  { %203 = vst [vmem:[%s380_s3 + $0x8] sm:$0xff] %v223_v54  ;;  %v143_v60 = vsel %vm111_vm5, %v95_v35, %v127_v55  ;;  %v61_v61 = vmul.f32 %v273_v14, %v23_v51  ;;  %v62_v62 = vmul.f32 %v288_v20, %v24_v52  ;;  %v63_v63 = vmul.f32 %v290_v21, %v25_v53 }
  0x13   :  { %v224_v2 = vpack.c.bf16 %v143_v60, %v142_v56  ;;  %v144_v3 = vsel %vm112_vm6, %v96_v38, %v128_v57  ;;  %v145_v4 = vsel %vm113_vm7, %v97_v39, %v129_v58  ;;  %v98_v5 = vadd.f32 %v275_v15, %v60_v59 }
  0x14   :  { %v225_v6 = vpack.c.bf16 %v145_v4, %v144_v3  ;;  %v99_v7 = vadd.f32 %v277_v16, %v61_v61  ;;  %v100_v8 = vadd.f32 %v292_v22, %v62_v62  ;;  %v101_v9 = vadd.f32 %v294_v23, %v63_v63 }
  0x15   :  { %204 = vst [vmem:[%s380_s3 + $0x10] sm:$0xff] %v224_v2  ;;  %vm114_vm8 = vcmp.gt.f32.partialorder %v98_v5, 0.0  ;;  %v130_v10 = vmul.f32 0.2, %v98_v5  ;;  %v64_v11 = vmul.f32 %v271_v13, %v26_v0  ;;  %v65_v12 = vmul.f32 %v273_v14, %v27_v1 }
  0x16   :  { %205 = vst [vmem:[%s380_s3 + $0x18] sm:$0xff] %v225_v6  ;;  %vm115_vm9 = vcmp.gt.f32.partialorder %v99_v7, 0.0  ;;  %v131_v19 = vmul.f32 0.2, %v99_v7  ;;  %vm116_vm10 = vcmp.gt.f32.partialorder %v100_v8, 0.0  ;;  %vm117_vm11 = vcmp.gt.f32.partialorder %v101_v9, 0.0 }
  0x17   :  { %v146_v24 = vsel %vm114_vm8, %v98_v5, %v130_v10  ;;  %v132_v13 = vmul.f32 0.2, %v100_v8  ;;  %v133_v25 = vmul.f32 0.2, %v101_v9  ;;  %v102_v14 = vadd.f32 %v275_v15, %v64_v11 }
  0x18   :  { %v147_v26 = vsel %vm115_vm9, %v99_v7, %v131_v19  ;;  %v103_v27 = vadd.f32 %v277_v16, %v65_v12  ;;  %v66_v28 = vmul.f32 %v288_v20, %v28_v17  ;;  %v67_v29 = vmul.f32 %v290_v21, %v29_v18 }
  0x19   :  { %v226_v30 = vpack.c.bf16 %v147_v26, %v146_v24  ;;  %v148_v31 = vsel %vm116_vm10, %v100_v8, %v132_v13  ;;  %v149_v32 = vsel %vm117_vm11, %v101_v9, %v133_v25  ;;  %vm118_vm12 = vcmp.gt.f32.partialorder %v102_v14, 0.0 }
  0x1a   :  { %v227_v33 = vpack.c.bf16 %v149_v32, %v148_v31  ;;  %vm119_vm13 = vcmp.gt.f32.partialorder %v103_v27, 0.0  ;;  %v134_v34 = vmul.f32 0.2, %v102_v14  ;;  %v135_v35 = vmul.f32 0.2, %v103_v27 }
  0x1b   :  { %206 = vst [vmem:[%s380_s3 + $0x20] sm:$0xff] %v226_v30  ;;  %v104_v15 = vadd.f32 %v292_v22, %v66_v28  ;;  %v105_v16 = vadd.f32 %v294_v23, %v67_v29 }
  0x1c   :  { %207 = vst [vmem:[%s380_s3 + $0x28] sm:$0xff] %v227_v33  ;;  %v150_v20 = vsel %vm118_vm12, %v102_v14, %v134_v34  ;;  %v151_v21 = vsel %vm119_vm13, %v103_v27, %v135_v35 }
  0x1d   :  { %v228_v36 = vpack.c.bf16 %v151_v21, %v150_v20  ;;  %vm120_vm14 = vcmp.gt.f32.partialorder %v104_v15, 0.0  ;;  %vm121_vm15 = vcmp.gt.f32.partialorder %v105_v16, 0.0  ;;  %v136_v37 = vmul.f32 0.2, %v104_v15 }
  0x1e   :  { %v137_v38 = vmul.f32 0.2, %v105_v16 }
  0x1f   :  { %208 = vst [vmem:[%s380_s3 + $0x30] sm:$0xff] %v228_v36  ;;  %v152_v39 = vsel %vm120_vm14, %v104_v15, %v136_v37 }
  0x20   :  { %v153_v40 = vsel %vm121_vm15, %v105_v16, %v137_v38 }
  0x21   :  { %v229_v22 = vpack.c.bf16 %v153_v40, %v152_v39 }
  0x23   :  { %209 = vst [vmem:[%s380_s3 + $0x38] sm:$0xff] %v229_v22 }

// kernel: _lambda_.13
= control target key start
LH: loop header
LB: loop body
LE: loop exit
PB: predicated region body
PF: predicated region fallthrough
CT: control target
= control target key end

     0   :  { %s6308_s12 = smov 0   ;;  %s6310_s13 = smov 0   ;;  %s7102_s0 = inlined_call_operand.vmem [shape: bf16[32,4096], index: 0, kind: input, shape index: {}]   ;;  %s7103_s1 = inlined_call_operand.vmem [shape: bf16[4096,512], index: 1, kind: input, shape index: {}]   ;;  %s7104_s2 = inlined_call_operand.vmem [shape: f32[32,512], index: 2, kind: output, shape index: {0}]   ;;  %s7105_s3 = inlined_call_operand.vmem [shape: f32[1,2,512], index: 3, kind: output, shape index: {1}]  }
   0x1   :  { %s6312_s14 = smov 0   ;;  %s6314_s15 = smov 0  }
   0x2   :  { %s6316_s16 = smov 0  }
   0x3 LB: > { %s23_s17 = sadd.s32 1, %s6280_s15  ;;  %p42_p1 = scmp.ne.s32.totalorder %s6272_s13, %s6268_s12  ;;  %s6284_s16 = sphi %s6316_s16, %s14_s16   ;;  %s6280_s15 = sphi %s6314_s15, %s7109_s15   ;;  %s6276_s14 = sphi %s6312_s14, %s7108_s14   ;;  %s6272_s13 = sphi %s6310_s13, %s7107_s13   ;;  %s6268_s12 = sphi %s6308_s12, %s7106_s12  }
   0x4   : > { %p24_p0 = scmp.ge.s32.totalorder %s23_s17, 2  ;;  %p43_p2 = scmp.eq.s32.totalorder %s6284_s16, 0 }
   0x5   : > { %s35_s19 = sadd.s32 1, %s6272_s13  ;;  %p4762_p5 = scmp.ge.s32.totalorder %s6284_s16, 2 }
   0x6   : > { %s7111_s17 = smov (%p24_p0, %s23_s17), 0  ;;  %p44_p3 = por %p43_p2, %p42_p1 }
   0x7   : > { %s31_s18 = ssub.s32 %s6280_s15, %s7111_s17  ;;  %146 = sbr.rel (%p4762_p5) target bundleno = 34 (0x22), region = 16 }
   0x8   : > { %p33_p4 = scmp.eq.s32.totalorder %s31_s18, 0 }
   0xa   : > { %s6343_s20 = scalar_select %p33_p4, %s6272_s13, %s35_s19  }
   0xe   : > { %149 = sbr.rel (!%p44_p3) target bundleno = 34 (0x22), region = 20  ;;  %s151_s21 = sand.u32 (%p44_p3), 1, %s6272_s13  }
   0xf   : > { %s5322_s22 = sshll.u32 (%p44_p3), %s6280_s15, 6  ;;  %s4763_s23 = sshll.u32 (%p44_p3), %s151_s21, 8 }
  0x10   : > { %s6351_s26 = scalar_lea.vmem (%p44_p3), %s7102_s0, %s5322_s22  ;;  %s6356_s27 = scalar_lea.vmem (%p44_p3), [#allocation3], %s4763_s23 }
  0x11   : > { %v172_v0 = vld [vmem:[%s6351_s26] sm:$0xff] (%p44_p3)  ;;  %v174_v1 = vld [vmem:[%s6351_s26 + $0x8] sm:$0xff] (%p44_p3)  ;;  %v176_v2 = vld [vmem:[%s6351_s26 + $0x10] sm:$0xff] (%p44_p3) }
  0x12   : > { %173 = vst [vmem:[%s6356_s27] sm:$0xff] (%p44_p3), %v172_v0  ;;  %175 = vst [vmem:[%s6356_s27 + $0x8] sm:$0xff] (%p44_p3), %v174_v1  ;;  %v178_v3 = vld [vmem:[%s6351_s26 + $0x18] sm:$0xff] (%p44_p3)  ;;  %v180_v4 = vld [vmem:[%s6351_s26 + $0x20] sm:$0xff] (%p44_p3) }
  0x13   : > { %177 = vst [vmem:[%s6356_s27 + $0x10] sm:$0xff] (%p44_p3), %v176_v2  ;;  %v182_v5 = vld [vmem:[%s6351_s26 + $0x28] sm:$0xff] (%p44_p3)  ;;  %179 = vst [vmem:[%s6356_s27 + $0x18] sm:$0xff] (%p44_p3), %v178_v3  ;;  %v184_v6 = vld [vmem:[%s6351_s26 + $0x30] sm:$0xff] (%p44_p3) }
  0x14   : > { %181 = vst [vmem:[%s6356_s27 + $0x20] sm:$0xff] (%p44_p3), %v180_v4  ;;  %183 = vst [vmem:[%s6356_s27 + $0x28] sm:$0xff] (%p44_p3), %v182_v5  ;;  %v186_v7 = vld [vmem:[%s6351_s26 + $0x38] sm:$0xff] (%p44_p3)  ;;  %v188_v8 = vld [vmem:[%s6351_s26 + $0x80] sm:$0xff] (%p44_p3) }
  0x15   : > { %185 = vst [vmem:[%s6356_s27 + $0x30] sm:$0xff] %v184_v6  ;;  %187 = vst [vmem:[%s6356_s27 + $0x38] sm:$0xff] %v186_v7  ;;  %v190_v9 = vld [vmem:[%s6351_s26 + $0x88] sm:$0xff]  ;;  %v192_v10 = vld [vmem:[%s6351_s26 + $0x90] sm:$0xff] }
  0x16   : > { %189 = vst [vmem:[%s6356_s27 + $0x40] sm:$0xff] %v188_v8  ;;  %v194_v11 = vld [vmem:[%s6351_s26 + $0x98] sm:$0xff]  ;;  %191 = vst [vmem:[%s6356_s27 + $0x48] sm:$0xff] %v190_v9  ;;  %v196_v12 = vld [vmem:[%s6351_s26 + $0xa0] sm:$0xff] }
  0x17   : > { %193 = vst [vmem:[%s6356_s27 + $0x50] sm:$0xff] %v192_v10  ;;  %195 = vst [vmem:[%s6356_s27 + $0x58] sm:$0xff] %v194_v11  ;;  %v198_v13 = vld [vmem:[%s6351_s26 + $0xa8] sm:$0xff]  ;;  %v200_v14 = vld [vmem:[%s6351_s26 + $0xb0] sm:$0xff] }
  0x18   : > { %197 = vst [vmem:[%s6356_s27 + $0x60] sm:$0xff] %v196_v12  ;;  %199 = vst [vmem:[%s6356_s27 + $0x68] sm:$0xff] %v198_v13  ;;  %v202_v15 = vld [vmem:[%s6351_s26 + $0xb8] sm:$0xff]  ;;  %v204_v16 = vld [vmem:[%s6351_s26 + $0x100] sm:$0xff] }
  0x19   : > { %201 = vst [vmem:[%s6356_s27 + $0x70] sm:$0xff] %v200_v14  ;;  %v206_v17 = vld [vmem:[%s6351_s26 + $0x108] sm:$0xff]  ;;  %203 = vst [vmem:[%s6356_s27 + $0x78] sm:$0xff] %v202_v15  ;;  %v208_v18 = vld [vmem:[%s6351_s26 + $0x110] sm:$0xff] }
  0x1a   : > { %205 = vst [vmem:[%s6356_s27 + $0x80] sm:$0xff] %v204_v16  ;;  %207 = vst [vmem:[%s6356_s27 + $0x88] sm:$0xff] %v206_v17  ;;  %v210_v19 = vld [vmem:[%s6351_s26 + $0x118] sm:$0xff]  ;;  %v212_v20 = vld [vmem:[%s6351_s26 + $0x120] sm:$0xff] }
  0x1b   : > { %209 = vst [vmem:[%s6356_s27 + $0x90] sm:$0xff] %v208_v18  ;;  %211 = vst [vmem:[%s6356_s27 + $0x98] sm:$0xff] %v210_v19  ;;  %v214_v21 = vld [vmem:[%s6351_s26 + $0x128] sm:$0xff]  ;;  %v216_v22 = vld [vmem:[%s6351_s26 + $0x130] sm:$0xff] }
  0x1c   : > { %213 = vst [vmem:[%s6356_s27 + $0xa0] sm:$0xff] %v212_v20  ;;  %v218_v23 = vld [vmem:[%s6351_s26 + $0x138] sm:$0xff]  ;;  %215 = vst [vmem:[%s6356_s27 + $0xa8] sm:$0xff] %v214_v21  ;;  %v220_v24 = vld [vmem:[%s6351_s26 + $0x180] sm:$0xff] }
  0x1d   : > { %217 = vst [vmem:[%s6356_s27 + $0xb0] sm:$0xff] %v216_v22  ;;  %219 = vst [vmem:[%s6356_s27 + $0xb8] sm:$0xff] %v218_v23  ;;  %v222_v25 = vld [vmem:[%s6351_s26 + $0x188] sm:$0xff]  ;;  %v224_v26 = vld [vmem:[%s6351_s26 + $0x190] sm:$0xff] }
  0x1e   : > { %221 = vst [vmem:[%s6356_s27 + $0xc0] sm:$0xff] %v220_v24  ;;  %223 = vst [vmem:[%s6356_s27 + $0xc8] sm:$0xff] %v222_v25  ;;  %v226_v27 = vld [vmem:[%s6351_s26 + $0x198] sm:$0xff]  ;;  %v228_v28 = vld [vmem:[%s6351_s26 + $0x1a0] sm:$0xff] }
  0x1f   : > { %225 = vst [vmem:[%s6356_s27 + $0xd0] sm:$0xff] %v224_v26  ;;  %v230_v29 = vld [vmem:[%s6351_s26 + $0x1a8] sm:$0xff]  ;;  %227 = vst [vmem:[%s6356_s27 + $0xd8] sm:$0xff] %v226_v27  ;;  %v232_v30 = vld [vmem:[%s6351_s26 + $0x1b0] sm:$0xff] }
  0x20   : > { %229 = vst [vmem:[%s6356_s27 + $0xe0] sm:$0xff] %v228_v28  ;;  %231 = vst [vmem:[%s6356_s27 + $0xe8] sm:$0xff] %v230_v29  ;;  %v234_v31 = vld [vmem:[%s6351_s26 + $0x1b8] sm:$0xff] }
  0x21   : > { %233 = vst [vmem:[%s6356_s27 + $0xf0] sm:$0xff] %v232_v30  ;;  %235 = vst [vmem:[%s6356_s27 + $0xf8] sm:$0xff] %v234_v31 }
  0x22 PF: > { %p4766_p6 = scmp.ge.s32.totalorder %s6284_s16, 1  ;;  %p250_p7 = scmp.lt.s32.totalorder %s6284_s16, 3 }
  0x24   : > { %p251_p8 = pnand %p4766_p6, %p250_p7 }
  0x25   : > { %s257_s28 = sand.u32 (!%p251_p8), 1, %s6268_s12   ;;  %s4768_s29 = sshll.u32 (!%p251_p8), %s6276_s14, 8 }
  0x26   : > { %254 = sbr.rel (%p251_p8) target bundleno = 829 (0x33d), region = 47  ;;  %s4767_s30 = sshll.u32 (!%p251_p8), %s257_s28, 8 }
  0x27   : > { %p295_p9 = scmp.lt.s32.totalorder (!%p251_p8), %s4768_s29, 511  ;;  %s6428_s8 = scalar_lea.vmem (!%p251_p8), [#allocation3], %s4767_s30 }
  0x28   : > { %p4771_p10 = scmp.ne.s32.totalorder (!%p251_p8), %s6276_s14, 0 }
  0x2d   : > { %s7113_s29 = smov (!%p295_p9, %s4768_s29), 511  ;;  %316 = sbr.rel (%p4771_p10) target bundleno = 55 (0x37), region = 55 }
  0x2e   : > { %s5323_s4 = sshll.u32 %s7113_s29, 4  ;;  %v6286_v32 = vmov (!%p4771_p10), 0.0  }
  0x2f   : > { %s6426_s7 = scalar_lea.vmem %s7103_s1, %s5323_s4  ;;  %317 = vst [vmem:[#allocation2] sm:$0xff] (!%p4771_p10), %v6286_v32  ;;  %318 = vst [vmem:[#allocation2 + $0x8] sm:$0xff] (!%p4771_p10), %v6286_v32 }
  0x30   : > { %319 = vst [vmem:[#allocation2 + $0x10] sm:$0xff] (!%p4771_p10), %v6286_v32  ;;  %320 = vst [vmem:[#allocation2 + $0x18] sm:$0xff] (!%p4771_p10), %v6286_v32 }
  0x31   : > { %321 = vst [vmem:[#allocation2 + $0x20] sm:$0xff] (!%p4771_p10), %v6286_v32  ;;  %322 = vst [vmem:[#allocation2 + $0x28] sm:$0xff] (!%p4771_p10), %v6286_v32 }
  0x32   : > { %323 = vst [vmem:[#allocation2 + $0x30] sm:$0xff] (!%p4771_p10), %v6286_v32  ;;  %324 = vst [vmem:[#allocation2 + $0x38] sm:$0xff] (!%p4771_p10), %v6286_v32 }
  0x33   : > { %325 = vst [vmem:[#allocation2 + $0x40] sm:$0xff] (!%p4771_p10), %v6286_v32  ;;  %326 = vst [vmem:[#allocation2 + $0x48] sm:$0xff] (!%p4771_p10), %v6286_v32 }
  0x34   : > { %327 = vst [vmem:[#allocation2 + $0x50] sm:$0xff] %v6286_v32  ;;  %328 = vst [vmem:[#allocation2 + $0x58] sm:$0xff] %v6286_v32 }
  0x35   : > { %329 = vst [vmem:[#allocation2 + $0x60] sm:$0xff] %v6286_v32  ;;  %330 = vst [vmem:[#allocation2 + $0x68] sm:$0xff] %v6286_v32 }
  0x36   : > { %331 = vst [vmem:[#allocation2 + $0x70] sm:$0xff] %v6286_v32  ;;  %332 = vst [vmem:[#allocation2 + $0x78] sm:$0xff] %v6286_v32 }
  0x37 PF: > { %v5478_v33 = vld [vmem:[%s6426_s7 + $0x4] ss:$16 sps:$4 sm:$0xff]   ;;  %v5480_v34 = vld [vmem:[%s6426_s7 + $0xc] ss:$16 sps:$4 sm:$0xff]   ;;  %v5482_v35 = vld [vmem:[%s6426_s7] ss:$16 sps:$4 sm:$0xff]  }
  0x38   : > { %3613 = vmatprep.subr.bf16.mxu0 %v5478_v33  ;;  %v5483_v36 = vld [vmem:[%s6426_s7 + $0x8] ss:$16 sps:$4 sm:$0xff]   ;;  %4037 = vmatprep.subr.bf16.mxu1 %v5480_v34  ;;  %v5484_v37 = vld [vmem:[%s6426_s7 + $0x24] ss:$16 sps:$4 sm:$0xff]   ;;  %v5486_v38 = vld [vmem:[%s6426_s7 + $0x2c] ss:$16 sps:$4 sm:$0xff]  }
  0x39   : > { %3614 = vmatpush1.bf16.msra.mxu0 %v5482_v35  ;;  %4038 = vmatpush1.bf16.msra.mxu1 %v5483_v36  ;;  %v5488_v39 = vld [vmem:[%s6426_s7 + $0x20] ss:$16 sps:$4 sm:$0xff]   ;;  %v5489_v40 = vld [vmem:[%s6426_s7 + $0x28] ss:$16 sps:$4 sm:$0xff]   ;;  %v5490_v41 = vld [vmem:[%s6426_s7 + $0x44] ss:$16 sps:$4 sm:$0xff]  }
  0x3a   : > { %3615 = vmatprep.subr.bf16.mxu0 %v5484_v37  ;;  %4039 = vmatprep.subr.bf16.mxu1 %v5486_v38  ;;  %v5492_v42 = vld [vmem:[%s6426_s7 + $0x4c] ss:$16 sps:$4 sm:$0xff]   ;;  %v5494_v43 = vld [vmem:[%s6426_s7 + $0x40] ss:$16 sps:$4 sm:$0xff]   ;;  %v5495_v44 = vld [vmem:[%s6426_s7 + $0x48] ss:$16 sps:$4 sm:$0xff]  }
  0x3b   : > { %v5496_v45 = vld [vmem:[%s6426_s7 + $0x64] ss:$16 sps:$4 sm:$0xff]   ;;  %v5498_v46 = vld [vmem:[%s6426_s7 + $0x6c] ss:$16 sps:$4 sm:$0xff]   ;;  %v5500_v47 = vld [vmem:[%s6426_s7 + $0x60] ss:$16 sps:$4 sm:$0xff]  }
  0x3c   : > { %v5501_v48 = vld [vmem:[%s6426_s7 + $0x68] ss:$16 sps:$4 sm:$0xff]   ;;  %v5502_v49 = vld [vmem:[%s6426_s7 + $0x84] ss:$16 sps:$4 sm:$0xff]   ;;  %v5504_v50 = vld [vmem:[%s6426_s7 + $0x8c] ss:$16 sps:$4 sm:$0xff]  }
  0x3d   : > { %3616 = vmatpush1.bf16.msra.mxu0 %v5488_v39  ;;  %4040 = vmatpush1.bf16.msra.mxu1 %v5489_v40  ;;  %v5506_v51 = vld [vmem:[%s6426_s7 + $0x80] ss:$16 sps:$4 sm:$0xff]   ;;  %v5507_v52 = vld [vmem:[%s6426_s7 + $0x88] ss:$16 sps:$4 sm:$0xff]   ;;  %v5508_v53 = vld [vmem:[%s6426_s7 + $0xa4] ss:$16 sps:$4 sm:$0xff]  }
  0x3e   : > { %3617 = vmatprep.subr.bf16.mxu0 %v5490_v41  ;;  %4041 = vmatprep.subr.bf16.mxu1 %v5492_v42  ;;  %v5510_v54 = vld [vmem:[%s6426_s7 + $0xac] ss:$16 sps:$4 sm:$0xff]   ;;  %v5512_v55 = vld [vmem:[%s6426_s7 + $0xa0] ss:$16 sps:$4 sm:$0xff]   ;;  %v5513_v56 = vld [vmem:[%s6426_s7 + $0xa8] ss:$16 sps:$4 sm:$0xff]  }
  0x3f   : > { %v5514_v57 = vld [vmem:[%s6426_s7 + $0xc4] ss:$16 sps:$4 sm:$0xff]   ;;  %v5516_v58 = vld [vmem:[%s6426_s7 + $0xcc] ss:$16 sps:$4 sm:$0xff]   ;;  %v5518_v59 = vld [vmem:[%s6426_s7 + $0xc0] ss:$16 sps:$4 sm:$0xff]  }
  0x40   : > { %v5519_v60 = vld [vmem:[%s6426_s7 + $0xc8] ss:$16 sps:$4 sm:$0xff]   ;;  %v5520_v61 = vld [vmem:[%s6426_s7 + $0xe4] ss:$16 sps:$4 sm:$0xff]   ;;  %v5522_v62 = vld [vmem:[%s6426_s7 + $0xec] ss:$16 sps:$4 sm:$0xff]  }
  0x41   : > { %3618 = vmatpush1.bf16.msra.mxu0 %v5494_v43  ;;  %4042 = vmatpush1.bf16.msra.mxu1 %v5495_v44  ;;  %v5524_v63 = vld [vmem:[%s6426_s7 + $0xe0] ss:$16 sps:$4 sm:$0xff]   ;;  %v5525_v0 = vld [vmem:[%s6426_s7 + $0xe8] ss:$16 sps:$4 sm:$0xff]   ;;  %v5526_v1 = vld [vmem:[%s6426_s7 + $0x104] ss:$16 sps:$4 sm:$0xff]  }
  0x42   : > { %3619 = vmatprep.subr.bf16.mxu0 %v5496_v45  ;;  %4043 = vmatprep.subr.bf16.mxu1 %v5498_v46  ;;  %v5528_v2 = vld [vmem:[%s6426_s7 + $0x10c] ss:$16 sps:$4 sm:$0xff]   ;;  %v5530_v3 = vld [vmem:[%s6426_s7 + $0x100] ss:$16 sps:$4 sm:$0xff]   ;;  %v5531_v4 = vld [vmem:[%s6426_s7 + $0x108] ss:$16 sps:$4 sm:$0xff]  }
  0x43   : > { %v5532_v5 = vld [vmem:[%s6426_s7 + $0x124] ss:$16 sps:$4 sm:$0xff]   ;;  %v5534_v6 = vld [vmem:[%s6426_s7 + $0x12c] ss:$16 sps:$4 sm:$0xff]   ;;  %v5536_v7 = vld [vmem:[%s6426_s7 + $0x120] ss:$16 sps:$4 sm:$0xff]  }
  0x44   : > { %v5537_v8 = vld [vmem:[%s6426_s7 + $0x128] ss:$16 sps:$4 sm:$0xff]   ;;  %v5538_v9 = vld [vmem:[%s6426_s7 + $0x144] ss:$16 sps:$4 sm:$0xff]   ;;  %v5540_v10 = vld [vmem:[%s6426_s7 + $0x14c] ss:$16 sps:$4 sm:$0xff]  }
  0x45   : > { %3620 = vmatpush1.bf16.msra.mxu0 %v5500_v47  ;;  %4044 = vmatpush1.bf16.msra.mxu1 %v5501_v48  ;;  %v5542_v11 = vld [vmem:[%s6426_s7 + $0x140] ss:$16 sps:$4 sm:$0xff]   ;;  %v5543_v12 = vld [vmem:[%s6426_s7 + $0x148] ss:$16 sps:$4 sm:$0xff]   ;;  %v5544_v13 = vld [vmem:[%s6426_s7 + $0x164] ss:$16 sps:$4 sm:$0xff]  }
  0x46   : > { %3621 = vmatprep.subr.bf16.mxu0 %v5502_v49  ;;  %4045 = vmatprep.subr.bf16.mxu1 %v5504_v50  ;;  %v5546_v14 = vld [vmem:[%s6426_s7 + $0x16c] ss:$16 sps:$4 sm:$0xff]   ;;  %v349_v15 = vld [vmem:[%s6428_s8] sm:$0xff]  ;;  %v5549_v18 = vld [vmem:[%s6426_s7 + $0x168] ss:$16 sps:$4 sm:$0xff]   ;;  %p5316_p11 = scmp.ne.s32.totalorder %s6276_s14, 1 }
  0x47   : > { %v357_v16 = vld [vmem:[%s6428_s8 + $0x40] sm:$0xff]  ;;  %v5552_v21 = vld [vmem:[%s6426_s7 + $0x18c] ss:$16 sps:$4 sm:$0xff]   ;;  %v5555_v23 = vld [vmem:[%s6426_s7 + $0x188] ss:$16 sps:$4 sm:$0xff]   ;;  %vm4601_vm0 = vcmask (!%p5316_p11), 1040384  }
  0x48   : > { %v5548_v17 = vld [vmem:[%s6426_s7 + $0x160] ss:$16 sps:$4 sm:$0xff]   ;;  %v4773_v19 = vcombine.high %v349_v15, %v357_v16  ;;  %v5550_v20 = vld [vmem:[%s6426_s7 + $0x184] ss:$16 sps:$4 sm:$0xff]   ;;  %v5558_v25 = vld [vmem:[%s6426_s7 + $0x1ac] ss:$16 sps:$4 sm:$0xff]   ;;  %v4772_v38 = vcombine.low %v349_v15, %v357_v16 }
  0x49   : > { %3622 = vmatpush1.bf16.msra.mxu0 %v5506_v51  ;;  %4046 = vmatpush1.bf16.msra.mxu1 %v5507_v52  ;;  %v5554_v22 = vld [vmem:[%s6426_s7 + $0x180] ss:$16 sps:$4 sm:$0xff]   ;;  %v5556_v24 = vld [vmem:[%s6426_s7 + $0x1a4] ss:$16 sps:$4 sm:$0xff]   ;;  %v5561_v27 = vld [vmem:[%s6426_s7 + $0x1a8] ss:$16 sps:$4 sm:$0xff]  }
  0x4a   : > { %3623 = vmatprep.subr.bf16.mxu0 %v5508_v53  ;;  %4047 = vmatprep.subr.bf16.mxu1 %v5510_v54  ;;  %v5560_v26 = vld [vmem:[%s6426_s7 + $0x1a0] ss:$16 sps:$4 sm:$0xff]   ;;  %v5562_v28 = vld [vmem:[%s6426_s7 + $0x1c4] ss:$16 sps:$4 sm:$0xff]   ;;  %v5564_v29 = vld [vmem:[%s6426_s7 + $0x1cc] ss:$16 sps:$4 sm:$0xff]  }
  0x4b   : > { %3645 = vmatprep.mubr.bf16.mxu0 %v4773_v19  ;;  %4069 = vmatprep.mubr.bf16.mxu1 %v4773_v19  ;;  %v5566_v30 = vld [vmem:[%s6426_s7 + $0x1c0] ss:$16 sps:$4 sm:$0xff]   ;;  %v5567_v31 = vld [vmem:[%s6426_s7 + $0x1c8] ss:$16 sps:$4 sm:$0xff]   ;;  %v5568_v32 = vld [vmem:[%s6426_s7 + $0x1e4] ss:$16 sps:$4 sm:$0xff]  }
  0x4c   : > { %v5570_v33 = vld [vmem:[%s6426_s7 + $0x1ec] ss:$16 sps:$4 sm:$0xff]   ;;  %v5572_v34 = vld [vmem:[%s6426_s7 + $0x1e0] ss:$16 sps:$4 sm:$0xff]   ;;  %v5573_v35 = vld [vmem:[%s6426_s7 + $0x1e8] ss:$16 sps:$4 sm:$0xff]  }
  0x4d   : > { %3624 = vmatpush1.bf16.msra.mxu0 %v5512_v55  ;;  %4048 = vmatpush1.bf16.msra.mxu1 %v5513_v56  ;;  %v5576_v36 = vld [vmem:[%s6426_s7 + $0x204] ss:$16 sps:$4 sm:$0xff]   ;;  %v5579_v37 = vld [vmem:[%s6426_s7 + $0x20c] ss:$16 sps:$4 sm:$0xff]   ;;  %v5574_v39 = vld [vmem:[%s6426_s7 + $0x200] ss:$16 sps:$4 sm:$0xff]  }
  0x4e   : > { %3625 = vmatprep.subr.bf16.mxu0 %v5514_v57  ;;  %4049 = vmatprep.subr.bf16.mxu1 %v5516_v58  ;;  %v5577_v40 = vld [vmem:[%s6426_s7 + $0x208] ss:$16 sps:$4 sm:$0xff]   ;;  %v5582_v41 = vld [vmem:[%s6426_s7 + $0x224] ss:$16 sps:$4 sm:$0xff]   ;;  %v5585_v42 = vld [vmem:[%s6426_s7 + $0x22c] ss:$16 sps:$4 sm:$0xff]  }
  0x4f   : > { %v5580_v43 = vld [vmem:[%s6426_s7 + $0x220] ss:$16 sps:$4 sm:$0xff]   ;;  %v5583_v44 = vld [vmem:[%s6426_s7 + $0x228] ss:$16 sps:$4 sm:$0xff]   ;;  %v5588_v45 = vld [vmem:[%s6426_s7 + $0x244] ss:$16 sps:$4 sm:$0xff]  }
  0x50   : > { %v5591_v46 = vld [vmem:[%s6426_s7 + $0x24c] ss:$16 sps:$4 sm:$0xff]   ;;  %v5586_v47 = vld [vmem:[%s6426_s7 + $0x240] ss:$16 sps:$4 sm:$0xff]   ;;  %v5589_v48 = vld [vmem:[%s6426_s7 + $0x248] ss:$16 sps:$4 sm:$0xff]  }
  0x51   : > { %3626 = vmatpush1.bf16.msra.mxu0 %v5518_v59  ;;  %4050 = vmatpush1.bf16.msra.mxu1 %v5519_v60  ;;  %v5594_v49 = vld [vmem:[%s6426_s7 + $0x264] ss:$16 sps:$4 sm:$0xff]   ;;  %v5597_v50 = vld [vmem:[%s6426_s7 + $0x26c] ss:$16 sps:$4 sm:$0xff]   ;;  %v5592_v51 = vld [vmem:[%s6426_s7 + $0x260] ss:$16 sps:$4 sm:$0xff]  }
  0x52   : > { %3627 = vmatprep.subr.bf16.mxu0 %v5520_v61  ;;  %4051 = vmatprep.subr.bf16.mxu1 %v5522_v62  ;;  %v5595_v52 = vld [vmem:[%s6426_s7 + $0x268] ss:$16 sps:$4 sm:$0xff]   ;;  %v5600_v53 = vld [vmem:[%s6426_s7 + $0x284] ss:$16 sps:$4 sm:$0xff]   ;;  %v5603_v54 = vld [vmem:[%s6426_s7 + $0x28c] ss:$16 sps:$4 sm:$0xff]  }
  0x53   : > { %v5598_v55 = vld [vmem:[%s6426_s7 + $0x280] ss:$16 sps:$4 sm:$0xff]   ;;  %v5601_v56 = vld [vmem:[%s6426_s7 + $0x288] ss:$16 sps:$4 sm:$0xff]   ;;  %v5606_v57 = vld [vmem:[%s6426_s7 + $0x2a4] ss:$16 sps:$4 sm:$0xff]  }
  0x54   : > { %v5609_v58 = vld [vmem:[%s6426_s7 + $0x2ac] ss:$16 sps:$4 sm:$0xff]   ;;  %v365_v59 = vld [vmem:[%s6428_s8 + $0x80] sm:$0xff]  ;;  %v5625_v15 = vld [vmem:[%s6426_s7 + $0x308] ss:$16 sps:$4 sm:$0xff]  }
  0x55   : > { %3628 = vmatpush1.bf16.msra.mxu0 %v5524_v63  ;;  %4052 = vmatpush1.bf16.msra.mxu1 %v5525_v0  ;;  %v373_v60 = vld [vmem:[%s6428_s8 + $0xc0] sm:$0xff]  ;;  %v5607_v63 = vld [vmem:[%s6426_s7 + $0x2a8] ss:$16 sps:$4 sm:$0xff]  }
  0x56   : > { %3629 = vmatprep.subr.bf16.mxu0 %v5526_v1  ;;  %4053 = vmatprep.subr.bf16.mxu1 %v5528_v2  ;;  %v4789_v61 = vcombine.high %v365_v59, %v373_v60  ;;  %v5604_v62 = vld [vmem:[%s6426_s7 + $0x2a0] ss:$16 sps:$4 sm:$0xff]   ;;  %v4788_v0 = vcombine.low %v365_v59, %v373_v60  ;;  %v5612_v1 = vld [vmem:[%s6426_s7 + $0x2c4] ss:$16 sps:$4 sm:$0xff]   ;;  %v5615_v2 = vld [vmem:[%s6426_s7 + $0x2cc] ss:$16 sps:$4 sm:$0xff]  }
  0x57   : > { %v5630_v16 = vld [vmem:[%s6426_s7 + $0x324] ss:$16 sps:$4 sm:$0xff]   ;;  %v5631_v19 = vld [vmem:[%s6426_s7 + $0x328] ss:$16 sps:$4 sm:$0xff]  }
  0x58   : > { %v6589_v60 = vld [vmem:[%s6428_s8 + $0x50] sm:$0xff] }
  0x59   : > { %3630 = vmatpush1.bf16.msra.mxu0 %v5530_v3  ;;  %4054 = vmatpush1.bf16.msra.mxu1 %v5531_v4  ;;  %v6526_v3 = vld [vmem:[%s6428_s8 + $0x8] sm:$0xff] }
  0x5a   : > { %3631 = vmatprep.subr.bf16.mxu0 %v5532_v5  ;;  %4055 = vmatprep.subr.bf16.mxu1 %v5534_v6  ;;  %v6529_v4 = vld [vmem:[%s6428_s8 + $0x48] sm:$0xff]  ;;  %v5610_v5 = vld [vmem:[%s6426_s7 + $0x2c0] ss:$16 sps:$4 sm:$0xff]  }
  0x5b   : > { %v5613_v6 = vld [vmem:[%s6426_s7 + $0x2c8] ss:$16 sps:$4 sm:$0xff]  }
  0x5d   : > { %3632 = vmatpush1.bf16.msra.mxu0 %v5536_v7  ;;  %4056 = vmatpush1.bf16.msra.mxu1 %v5537_v8  ;;  %v4775_v7 = vcombine.high %v6526_v3, %v6529_v4  ;;  %v5618_v8 = vld [vmem:[%s6426_s7 + $0x2e4] ss:$16 sps:$4 sm:$0xff]  }
  0x5e   : > { %3633 = vmatprep.subr.bf16.mxu0 %v5538_v9  ;;  %4057 = vmatprep.subr.bf16.mxu1 %v5540_v10  ;;  %v5621_v9 = vld [vmem:[%s6426_s7 + $0x2ec] ss:$16 sps:$4 sm:$0xff]   ;;  %v5616_v10 = vld [vmem:[%s6426_s7 + $0x2e0] ss:$16 sps:$4 sm:$0xff]  }
  0x61   : > { %3634 = vmatpush1.bf16.msra.mxu0 %v5542_v11  ;;  %4058 = vmatpush1.bf16.msra.mxu1 %v5543_v12  ;;  %v5619_v11 = vld [vmem:[%s6426_s7 + $0x2e8] ss:$16 sps:$4 sm:$0xff]   ;;  %v5624_v12 = vld [vmem:[%s6426_s7 + $0x304] ss:$16 sps:$4 sm:$0xff]  }
  0x62   : > { %3635 = vmatprep.subr.bf16.mxu0 %v5544_v13  ;;  %4059 = vmatprep.subr.bf16.mxu1 %v5546_v14  ;;  %v5627_v13 = vld [vmem:[%s6426_s7 + $0x30c] ss:$16 sps:$4 sm:$0xff]   ;;  %v5622_v14 = vld [vmem:[%s6426_s7 + $0x300] ss:$16 sps:$4 sm:$0xff]  }
  0x65   : > { %3636 = vmatpush1.bf16.msra.mxu0 %v5548_v17  ;;  %4060 = vmatpush1.bf16.msra.mxu1 %v5549_v18  ;;  %v5633_v17 = vld [vmem:[%s6426_s7 + $0x32c] ss:$16 sps:$4 sm:$0xff]   ;;  %v5628_v18 = vld [vmem:[%s6426_s7 + $0x320] ss:$16 sps:$4 sm:$0xff]  }
  0x66   : > { %3637 = vmatprep.subr.bf16.mxu0 %v5550_v20  ;;  %4061 = vmatprep.subr.bf16.mxu1 %v5552_v21  ;;  %v5636_v20 = vld [vmem:[%s6426_s7 + $0x344] ss:$16 sps:$4 sm:$0xff]   ;;  %v5639_v21 = vld [vmem:[%s6426_s7 + $0x34c] ss:$16 sps:$4 sm:$0xff]  }
  0x69   : > { %3638 = vmatpush1.bf16.msra.mxu0 %v5554_v22  ;;  %4062 = vmatpush1.bf16.msra.mxu1 %v5555_v23  ;;  %v5634_v22 = vld [vmem:[%s6426_s7 + $0x340] ss:$16 sps:$4 sm:$0xff]   ;;  %v5637_v23 = vld [vmem:[%s6426_s7 + $0x348] ss:$16 sps:$4 sm:$0xff]  }
  0x6a   : > { %3639 = vmatprep.subr.bf16.mxu0 %v5556_v24  ;;  %4063 = vmatprep.subr.bf16.mxu1 %v5558_v25  ;;  %v5642_v24 = vld [vmem:[%s6426_s7 + $0x364] ss:$16 sps:$4 sm:$0xff]   ;;  %v5645_v25 = vld [vmem:[%s6426_s7 + $0x36c] ss:$16 sps:$4 sm:$0xff]  }
  0x6d   : > { %3640 = vmatpush1.bf16.msra.mxu0 %v5560_v26  ;;  %4064 = vmatpush1.bf16.msra.mxu1 %v5561_v27  ;;  %v5640_v26 = vld [vmem:[%s6426_s7 + $0x360] ss:$16 sps:$4 sm:$0xff]   ;;  %v5643_v27 = vld [vmem:[%s6426_s7 + $0x368] ss:$16 sps:$4 sm:$0xff]  }
  0x6e   : > { %3641 = vmatprep.subr.bf16.mxu0 %v5562_v28  ;;  %4065 = vmatprep.subr.bf16.mxu1 %v5564_v29  ;;  %v5648_v28 = vld [vmem:[%s6426_s7 + $0x384] ss:$16 sps:$4 sm:$0xff]   ;;  %v5651_v29 = vld [vmem:[%s6426_s7 + $0x38c] ss:$16 sps:$4 sm:$0xff]  }
  0x71   : > { %3642 = vmatpush1.bf16.msra.mxu0 %v5566_v30  ;;  %4066 = vmatpush1.bf16.msra.mxu1 %v5567_v31  ;;  %v5646_v30 = vld [vmem:[%s6426_s7 + $0x380] ss:$16 sps:$4 sm:$0xff]   ;;  %v5649_v31 = vld [vmem:[%s6426_s7 + $0x388] ss:$16 sps:$4 sm:$0xff]  }
  0x72   : > { %3643 = vmatprep.subr.bf16.mxu0 %v5568_v32  ;;  %4067 = vmatprep.subr.bf16.mxu1 %v5570_v33  ;;  %v5654_v32 = vld [vmem:[%s6426_s7 + $0x3a4] ss:$16 sps:$4 sm:$0xff]   ;;  %v5657_v33 = vld [vmem:[%s6426_s7 + $0x3ac] ss:$16 sps:$4 sm:$0xff]  }
  0x75   : > { %3644 = vmatpush1.bf16.msra.mxu0 %v5572_v34  ;;  %4068 = vmatpush1.bf16.msra.mxu1 %v5573_v35  ;;  %v5652_v34 = vld [vmem:[%s6426_s7 + $0x3a0] ss:$16 sps:$4 sm:$0xff]   ;;  %v5655_v35 = vld [vmem:[%s6426_s7 + $0x3a8] ss:$16 sps:$4 sm:$0xff]  }
  0x76   : > { %3666 = vmatprep.subr.bf16.mxu0 %v5576_v36  ;;  %4090 = vmatprep.subr.bf16.mxu1 %v5579_v37  ;;  %v5660_v36 = vld [vmem:[%s6426_s7 + $0x3c4] ss:$16 sps:$4 sm:$0xff]   ;;  %v5663_v37 = vld [vmem:[%s6426_s7 + $0x3cc] ss:$16 sps:$4 sm:$0xff]  }
  0x78   : > { %3646 = vmatmul.mubr.bf16.vlgmr.msra.gmra.mrb[0].mxu0 %v4772_v38  ;;  %4070 = vmatmul.mubr.bf16.vlgmr.msra.gmra.mrb[0].mxu1 %v4772_v38  ;;  %v5658_v38 = vld [vmem:[%s6426_s7 + $0x3c0] ss:$16 sps:$4 sm:$0xff]  }
  0x79   : > { %3667 = vmatpush1.bf16.msra.mxu0 %v5574_v39  ;;  %4091 = vmatpush1.bf16.msra.mxu1 %v5577_v40  ;;  %v5661_v39 = vld [vmem:[%s6426_s7 + $0x3c8] ss:$16 sps:$4 sm:$0xff]   ;;  %v5666_v40 = vld [vmem:[%s6426_s7 + $0x3e4] ss:$16 sps:$4 sm:$0xff]  }
  0x7a   : > { %3668 = vmatprep.subr.bf16.mxu0 %v5582_v41  ;;  %4092 = vmatprep.subr.bf16.mxu1 %v5585_v42  ;;  %v5669_v41 = vld [vmem:[%s6426_s7 + $0x3ec] ss:$16 sps:$4 sm:$0xff]   ;;  %v5664_v42 = vld [vmem:[%s6426_s7 + $0x3e0] ss:$16 sps:$4 sm:$0xff]  }
  0x7b   : > { %3655 = vmatprep.mubr.bf16.mxu0 %v4789_v61  ;;  %4079 = vmatprep.mubr.bf16.mxu1 %v4789_v61  ;;  %v5682_v61 = vld [vmem:[%s6426_s7 + $0x440] ss:$16 sps:$4 sm:$0xff]  }
  0x7d   : > { %3669 = vmatpush1.bf16.msra.mxu0 %v5580_v43  ;;  %4093 = vmatpush1.bf16.msra.mxu1 %v5583_v44  ;;  %v5667_v43 = vld [vmem:[%s6426_s7 + $0x3e8] ss:$16 sps:$4 sm:$0xff]   ;;  %v5672_v44 = vld [vmem:[%s6426_s7 + $0x404] ss:$16 sps:$4 sm:$0xff]  }
  0x7e   : > { %3670 = vmatprep.subr.bf16.mxu0 %v5588_v45  ;;  %4094 = vmatprep.subr.bf16.mxu1 %v5591_v46  ;;  %v5675_v45 = vld [vmem:[%s6426_s7 + $0x40c] ss:$16 sps:$4 sm:$0xff]   ;;  %v5670_v46 = vld [vmem:[%s6426_s7 + $0x400] ss:$16 sps:$4 sm:$0xff]  }
  0x80   : > { %3656 = vmatmul.mubr.bf16.gmra.mrb[4].mxu0 %v4788_v0  ;;  %4080 = vmatmul.mubr.bf16.gmra.mrb[4].mxu1 %v4788_v0  ;;  %v5693_v0 = vld [vmem:[%s6426_s7 + $0x46c] ss:$16 sps:$4 sm:$0xff]  }
  0x81   : > { %3671 = vmatpush1.bf16.msra.mxu0 %v5586_v47  ;;  %4095 = vmatpush1.bf16.msra.mxu1 %v5589_v48  ;;  %v5673_v47 = vld [vmem:[%s6426_s7 + $0x408] ss:$16 sps:$4 sm:$0xff]   ;;  %v4774_v48 = vcombine.low %v6526_v3, %v6529_v4  ;;  %v5696_v4 = vld [vmem:[%s6426_s7 + $0x484] ss:$16 sps:$4 sm:$0xff]  }
  0x82   : > { %3672 = vmatprep.subr.bf16.mxu0 %v5594_v49  ;;  %4096 = vmatprep.subr.bf16.mxu1 %v5597_v50  ;;  %v366_v49 = vld [vmem:[%s6428_s8 + $0x88] sm:$0xff] }
  0x83   : > { %3698 = vmatprep.mubr.bf16.mxu0 %v4775_v7  ;;  %4122 = vmatprep.mubr.bf16.mxu1 %v4775_v7  ;;  %v374_v50 = vld [vmem:[%s6428_s8 + $0xc8] sm:$0xff] }
  0x84   : > { %v4790_v59 = vcombine.low %v366_v49, %v374_v50  ;;  %v5691_v3 = vld [vmem:[%s6426_s7 + $0x468] ss:$16 sps:$4 sm:$0xff]  }
  0x85   : > { %3673 = vmatpush1.bf16.msra.mxu0 %v5592_v51  ;;  %4097 = vmatpush1.bf16.msra.mxu1 %v5595_v52  ;;  %v5678_v51 = vld [vmem:[%s6426_s7 + $0x424] ss:$16 sps:$4 sm:$0xff]   ;;  %v5681_v52 = vld [vmem:[%s6426_s7 + $0x42c] ss:$16 sps:$4 sm:$0xff]   ;;  %v5697_v7 = vld [vmem:[%s6426_s7 + $0x488] ss:$16 sps:$4 sm:$0xff]  }
  0x86   : > { %3674 = vmatprep.subr.bf16.mxu0 %v5600_v53  ;;  %4098 = vmatprep.subr.bf16.mxu1 %v5603_v54  ;;  %v4791_v53 = vcombine.high %v366_v49, %v374_v50  ;;  %v5676_v54 = vld [vmem:[%s6426_s7 + $0x420] ss:$16 sps:$4 sm:$0xff]   ;;  %v5765_v49 = vld [vmem:[%s6426_s7 + $0x5ec] ss:$16 sps:$4 sm:$0xff]  }
  0x87   : > { %v5760_v50 = vld [vmem:[%s6426_s7 + $0x5e0] ss:$16 sps:$4 sm:$0xff]  }
  0x89   : > { %3675 = vmatpush1.bf16.msra.mxu0 %v5598_v55  ;;  %4099 = vmatpush1.bf16.msra.mxu1 %v5601_v56  ;;  %v5679_v55 = vld [vmem:[%s6426_s7 + $0x428] ss:$16 sps:$4 sm:$0xff]   ;;  %v5684_v56 = vld [vmem:[%s6426_s7 + $0x444] ss:$16 sps:$4 sm:$0xff]  }
  0x8a   : > { %3676 = vmatprep.subr.bf16.mxu0 %v5606_v57  ;;  %4100 = vmatprep.subr.bf16.mxu1 %v5609_v58  ;;  %v5687_v57 = vld [vmem:[%s6426_s7 + $0x44c] ss:$16 sps:$4 sm:$0xff]   ;;  %v6586_v58 = vld [vmem:[%s6428_s8 + $0x10] sm:$0xff] }
  0x8d   : > { %3677 = vmatpush1.bf16.msra.mxu0 %v5604_v62  ;;  %4101 = vmatpush1.bf16.msra.mxu1 %v5607_v63  ;;  %v5685_v62 = vld [vmem:[%s6426_s7 + $0x448] ss:$16 sps:$4 sm:$0xff]   ;;  %v5690_v63 = vld [vmem:[%s6426_s7 + $0x464] ss:$16 sps:$4 sm:$0xff]  }
  0x8e   : > { %3678 = vmatprep.subr.bf16.mxu0 %v5612_v1  ;;  %4102 = vmatprep.subr.bf16.mxu1 %v5615_v2  ;;  %v4777_v1 = vcombine.high %v6586_v58, %v6589_v60  ;;  %v5688_v2 = vld [vmem:[%s6426_s7 + $0x460] ss:$16 sps:$4 sm:$0xff]  }
  0x91   : > { %3679 = vmatpush1.bf16.msra.mxu0 %v5610_v5  ;;  %4103 = vmatpush1.bf16.msra.mxu1 %v5613_v6  ;;  %v5699_v5 = vld [vmem:[%s6426_s7 + $0x48c] ss:$16 sps:$4 sm:$0xff]   ;;  %v5694_v6 = vld [vmem:[%s6426_s7 + $0x480] ss:$16 sps:$4 sm:$0xff]  }
  0x92   : > { %3680 = vmatprep.subr.bf16.mxu0 %v5618_v8  ;;  %4104 = vmatprep.subr.bf16.mxu1 %v5621_v9  ;;  %v5702_v8 = vld [vmem:[%s6426_s7 + $0x4a4] ss:$16 sps:$4 sm:$0xff]   ;;  %v5705_v9 = vld [vmem:[%s6426_s7 + $0x4ac] ss:$16 sps:$4 sm:$0xff]  }
  0x95   : > { %3681 = vmatpush1.bf16.msra.mxu0 %v5616_v10  ;;  %4105 = vmatpush1.bf16.msra.mxu1 %v5619_v11  ;;  %v5700_v10 = vld [vmem:[%s6426_s7 + $0x4a0] ss:$16 sps:$4 sm:$0xff]   ;;  %v5703_v11 = vld [vmem:[%s6426_s7 + $0x4a8] ss:$16 sps:$4 sm:$0xff]  }
  0x96   : > { %3682 = vmatprep.subr.bf16.mxu0 %v5624_v12  ;;  %4106 = vmatprep.subr.bf16.mxu1 %v5627_v13  ;;  %v5708_v12 = vld [vmem:[%s6426_s7 + $0x4c4] ss:$16 sps:$4 sm:$0xff]   ;;  %v5711_v13 = vld [vmem:[%s6426_s7 + $0x4cc] ss:$16 sps:$4 sm:$0xff]  }
  0x99   : > { %3683 = vmatpush1.bf16.msra.mxu0 %v5622_v14  ;;  %4107 = vmatpush1.bf16.msra.mxu1 %v5625_v15  ;;  %v5706_v14 = vld [vmem:[%s6426_s7 + $0x4c0] ss:$16 sps:$4 sm:$0xff]   ;;  %v5709_v15 = vld [vmem:[%s6426_s7 + $0x4c8] ss:$16 sps:$4 sm:$0xff]  }
  0x9a   : > { %3684 = vmatprep.subr.bf16.mxu0 %v5630_v16  ;;  %4108 = vmatprep.subr.bf16.mxu1 %v5633_v17  ;;  %v5714_v16 = vld [vmem:[%s6426_s7 + $0x4e4] ss:$16 sps:$4 sm:$0xff]   ;;  %v5717_v17 = vld [vmem:[%s6426_s7 + $0x4ec] ss:$16 sps:$4 sm:$0xff]  }
  0x9d   : > { %3685 = vmatpush1.bf16.msra.mxu0 %v5628_v18  ;;  %4109 = vmatpush1.bf16.msra.mxu1 %v5631_v19  ;;  %v5712_v18 = vld [vmem:[%s6426_s7 + $0x4e0] ss:$16 sps:$4 sm:$0xff]   ;;  %v5715_v19 = vld [vmem:[%s6426_s7 + $0x4e8] ss:$16 sps:$4 sm:$0xff]  }
  0x9e   : > { %3686 = vmatprep.subr.bf16.mxu0 %v5636_v20  ;;  %4110 = vmatprep.subr.bf16.mxu1 %v5639_v21  ;;  %v5720_v20 = vld [vmem:[%s6426_s7 + $0x504] ss:$16 sps:$4 sm:$0xff]   ;;  %v5723_v21 = vld [vmem:[%s6426_s7 + $0x50c] ss:$16 sps:$4 sm:$0xff]  }
  0xa1   : > { %3687 = vmatpush1.bf16.msra.mxu0 %v5634_v22  ;;  %4111 = vmatpush1.bf16.msra.mxu1 %v5637_v23  ;;  %v5718_v22 = vld [vmem:[%s6426_s7 + $0x500] ss:$16 sps:$4 sm:$0xff]   ;;  %v5721_v23 = vld [vmem:[%s6426_s7 + $0x508] ss:$16 sps:$4 sm:$0xff]  }
  0xa2   : > { %3688 = vmatprep.subr.bf16.mxu0 %v5642_v24  ;;  %4112 = vmatprep.subr.bf16.mxu1 %v5645_v25  ;;  %v5726_v24 = vld [vmem:[%s6426_s7 + $0x524] ss:$16 sps:$4 sm:$0xff]   ;;  %v5729_v25 = vld [vmem:[%s6426_s7 + $0x52c] ss:$16 sps:$4 sm:$0xff]  }
  0xa5   : > { %3689 = vmatpush1.bf16.msra.mxu0 %v5640_v26  ;;  %4113 = vmatpush1.bf16.msra.mxu1 %v5643_v27  ;;  %v5724_v26 = vld [vmem:[%s6426_s7 + $0x520] ss:$16 sps:$4 sm:$0xff]   ;;  %v5727_v27 = vld [vmem:[%s6426_s7 + $0x528] ss:$16 sps:$4 sm:$0xff]  }
  0xa6   : > { %3690 = vmatprep.subr.bf16.mxu0 %v5648_v28  ;;  %4114 = vmatprep.subr.bf16.mxu1 %v5651_v29  ;;  %v5732_v28 = vld [vmem:[%s6426_s7 + $0x544] ss:$16 sps:$4 sm:$0xff]   ;;  %v5735_v29 = vld [vmem:[%s6426_s7 + $0x54c] ss:$16 sps:$4 sm:$0xff]  }
  0xa9   : > { %3691 = vmatpush1.bf16.msra.mxu0 %v5646_v30  ;;  %4115 = vmatpush1.bf16.msra.mxu1 %v5649_v31  ;;  %v5730_v30 = vld [vmem:[%s6426_s7 + $0x540] ss:$16 sps:$4 sm:$0xff]   ;;  %v5733_v31 = vld [vmem:[%s6426_s7 + $0x548] ss:$16 sps:$4 sm:$0xff]  }
  0xaa   : > { %3692 = vmatprep.subr.bf16.mxu0 %v5654_v32  ;;  %4116 = vmatprep.subr.bf16.mxu1 %v5657_v33  ;;  %v5738_v32 = vld [vmem:[%s6426_s7 + $0x564] ss:$16 sps:$4 sm:$0xff]   ;;  %v5741_v33 = vld [vmem:[%s6426_s7 + $0x56c] ss:$16 sps:$4 sm:$0xff]  }
  0xad   : > { %3693 = vmatpush1.bf16.msra.mxu0 %v5652_v34  ;;  %4117 = vmatpush1.bf16.msra.mxu1 %v5655_v35  ;;  %v5736_v34 = vld [vmem:[%s6426_s7 + $0x560] ss:$16 sps:$4 sm:$0xff]   ;;  %v5739_v35 = vld [vmem:[%s6426_s7 + $0x568] ss:$16 sps:$4 sm:$0xff]  }
  0xae   : > { %3694 = vmatprep.subr.bf16.mxu0 %v5660_v36  ;;  %4118 = vmatprep.subr.bf16.mxu1 %v5663_v37  ;;  %v5744_v36 = vld [vmem:[%s6426_s7 + $0x584] ss:$16 sps:$4 sm:$0xff]   ;;  %v5747_v37 = vld [vmem:[%s6426_s7 + $0x58c] ss:$16 sps:$4 sm:$0xff]  }
  0xb1   : > { %3695 = vmatpush1.bf16.msra.mxu0 %v5658_v38  ;;  %4119 = vmatpush1.bf16.msra.mxu1 %v5661_v39  ;;  %v5742_v38 = vld [vmem:[%s6426_s7 + $0x580] ss:$16 sps:$4 sm:$0xff]   ;;  %v5745_v39 = vld [vmem:[%s6426_s7 + $0x588] ss:$16 sps:$4 sm:$0xff]  }
  0xb2   : > { %3696 = vmatprep.subr.bf16.mxu0 %v5666_v40  ;;  %4120 = vmatprep.subr.bf16.mxu1 %v5669_v41  ;;  %v5750_v40 = vld [vmem:[%s6426_s7 + $0x5a4] ss:$16 sps:$4 sm:$0xff]   ;;  %v5753_v41 = vld [vmem:[%s6426_s7 + $0x5ac] ss:$16 sps:$4 sm:$0xff]  }
  0xb5   : > { %3697 = vmatpush1.bf16.msra.mxu0 %v5664_v42  ;;  %4121 = vmatpush1.bf16.msra.mxu1 %v5667_v43  ;;  %v5748_v42 = vld [vmem:[%s6426_s7 + $0x5a0] ss:$16 sps:$4 sm:$0xff]   ;;  %v5751_v43 = vld [vmem:[%s6426_s7 + $0x5a8] ss:$16 sps:$4 sm:$0xff]  }
  0xb6   : > { %3719 = vmatprep.subr.bf16.mxu0 %v5672_v44  ;;  %4143 = vmatprep.subr.bf16.mxu1 %v5675_v45  ;;  %v5756_v44 = vld [vmem:[%s6426_s7 + $0x5c4] ss:$16 sps:$4 sm:$0xff]   ;;  %v5759_v45 = vld [vmem:[%s6426_s7 + $0x5cc] ss:$16 sps:$4 sm:$0xff]  }
  0xb8   : > { %3699 = vmatmul.mubr.bf16.vlgmr.msra.gmra.mrb[0].mxu0 %v4774_v48  ;;  %4123 = vmatmul.mubr.bf16.vlgmr.msra.gmra.mrb[0].mxu1 %v4774_v48  ;;  %v5762_v48 = vld [vmem:[%s6426_s7 + $0x5e4] ss:$16 sps:$4 sm:$0xff]  }
  0xb9   : > { %3720 = vmatpush1.bf16.msra.mxu0 %v5670_v46  ;;  %4144 = vmatpush1.bf16.msra.mxu1 %v5673_v47  ;;  %v5754_v46 = vld [vmem:[%s6426_s7 + $0x5c0] ss:$16 sps:$4 sm:$0xff]   ;;  %v5757_v47 = vld [vmem:[%s6426_s7 + $0x5c8] ss:$16 sps:$4 sm:$0xff]  }
  0xba   : > { %3721 = vmatprep.subr.bf16.mxu0 %v5678_v51  ;;  %4145 = vmatprep.subr.bf16.mxu1 %v5681_v52  ;;  %v5763_v51 = vld [vmem:[%s6426_s7 + $0x5e8] ss:$16 sps:$4 sm:$0xff]   ;;  %v5768_v52 = vld [vmem:[%s6426_s7 + $0x604] ss:$16 sps:$4 sm:$0xff]  }
  0xbb   : > { %3708 = vmatprep.mubr.bf16.mxu0 %v4791_v53  ;;  %4132 = vmatprep.mubr.bf16.mxu1 %v4791_v53  ;;  %v5771_v53 = vld [vmem:[%s6426_s7 + $0x60c] ss:$16 sps:$4 sm:$0xff]  }
  0xbd   : > { %3722 = vmatpush1.bf16.msra.mxu0 %v5676_v54  ;;  %4146 = vmatpush1.bf16.msra.mxu1 %v5679_v55  ;;  %v367_v54 = vld [vmem:[%s6428_s8 + $0x90] sm:$0xff]  ;;  %v4776_v55 = vcombine.low %v6586_v58, %v6589_v60  ;;  %v5775_v60 = vld [vmem:[%s6426_s7 + $0x628] ss:$16 sps:$4 sm:$0xff]  }
  0xbe   : > { %3723 = vmatprep.subr.bf16.mxu0 %v5684_v56  ;;  %4147 = vmatprep.subr.bf16.mxu1 %v5687_v57  ;;  %v375_v56 = vld [vmem:[%s6428_s8 + $0xd0] sm:$0xff] }
  0xbf   : > { %v5766_v57 = vld [vmem:[%s6426_s7 + $0x600] ss:$16 sps:$4 sm:$0xff]  }
  0xc0   : > { %3709 = vmatmul.mubr.bf16.gmra.mrb[4].mxu0 %v4790_v59  ;;  %4133 = vmatmul.mubr.bf16.gmra.mrb[4].mxu1 %v4790_v59  ;;  %v5769_v59 = vld [vmem:[%s6426_s7 + $0x608] ss:$16 sps:$4 sm:$0xff]   ;;  %v5772_v58 = vld [vmem:[%s6426_s7 + $0x620] ss:$16 sps:$4 sm:$0xff]  }
  0xc1   : > { %3724 = vmatpush1.bf16.msra.mxu0 %v5682_v61  ;;  %4148 = vmatpush1.bf16.msra.mxu1 %v5685_v62  ;;  %v5774_v61 = vld [vmem:[%s6426_s7 + $0x624] ss:$16 sps:$4 sm:$0xff]   ;;  %v5777_v62 = vld [vmem:[%s6426_s7 + $0x62c] ss:$16 sps:$4 sm:$0xff]  }
  0xc2   : > { %3725 = vmatprep.subr.bf16.mxu0 %v5690_v63  ;;  %4149 = vmatprep.subr.bf16.mxu1 %v5693_v0  ;;  %v4793_v63 = vcombine.high %v367_v54, %v375_v56  ;;  %v5780_v0 = vld [vmem:[%s6426_s7 + $0x644] ss:$16 sps:$4 sm:$0xff]  }
  0xc3   : > { %3751 = vmatprep.mubr.bf16.mxu0 %v4777_v1  ;;  %4175 = vmatprep.mubr.bf16.mxu1 %v4777_v1  ;;  %v5783_v1 = vld [vmem:[%s6426_s7 + $0x64c] ss:$16 sps:$4 sm:$0xff]  }
  0xc5   : > { %3726 = vmatpush1.bf16.msra.mxu0 %v5688_v2  ;;  %4150 = vmatpush1.bf16.msra.mxu1 %v5691_v3  ;;  %v6662_v2 = vld [vmem:[%s6428_s8 + $0x18] sm:$0xff]  ;;  %v4792_v3 = vcombine.low %v367_v54, %v375_v56  ;;  %v5850_v54 = vld [vmem:[%s6426_s7 + $0x7c0] ss:$16 sps:$4 sm:$0xff]   ;;  %v5858_v56 = vld [vmem:[%s6426_s7 + $0x7e4] ss:$16 sps:$4 sm:$0xff]  }
  0xc6   : > { %3727 = vmatprep.subr.bf16.mxu0 %v5696_v4  ;;  %4151 = vmatprep.subr.bf16.mxu1 %v5699_v5  ;;  %v6665_v4 = vld [vmem:[%s6428_s8 + $0x58] sm:$0xff]  ;;  %v5778_v5 = vld [vmem:[%s6426_s7 + $0x640] ss:$16 sps:$4 sm:$0xff]  }
  0xc9   : > { %3728 = vmatpush1.bf16.msra.mxu0 %v5694_v6  ;;  %4152 = vmatpush1.bf16.msra.mxu1 %v5697_v7  ;;  %v5781_v6 = vld [vmem:[%s6426_s7 + $0x648] ss:$16 sps:$4 sm:$0xff]   ;;  %v5786_v7 = vld [vmem:[%s6426_s7 + $0x664] ss:$16 sps:$4 sm:$0xff]  }
  0xca   : > { %3729 = vmatprep.subr.bf16.mxu0 %v5702_v8  ;;  %4153 = vmatprep.subr.bf16.mxu1 %v5705_v9  ;;  %v5789_v8 = vld [vmem:[%s6426_s7 + $0x66c] ss:$16 sps:$4 sm:$0xff]   ;;  %v4779_v9 = vcombine.high %v6662_v2, %v6665_v4 }
  0xcd   : > { %3730 = vmatpush1.bf16.msra.mxu0 %v5700_v10  ;;  %4154 = vmatpush1.bf16.msra.mxu1 %v5703_v11  ;;  %v5784_v10 = vld [vmem:[%s6426_s7 + $0x660] ss:$16 sps:$4 sm:$0xff]   ;;  %v5787_v11 = vld [vmem:[%s6426_s7 + $0x668] ss:$16 sps:$4 sm:$0xff]  }
  0xce   : > { %3731 = vmatprep.subr.bf16.mxu0 %v5708_v12  ;;  %4155 = vmatprep.subr.bf16.mxu1 %v5711_v13  ;;  %v5792_v12 = vld [vmem:[%s6426_s7 + $0x684] ss:$16 sps:$4 sm:$0xff]   ;;  %v5795_v13 = vld [vmem:[%s6426_s7 + $0x68c] ss:$16 sps:$4 sm:$0xff]  }
  0xd1   : > { %3732 = vmatpush1.bf16.msra.mxu0 %v5706_v14  ;;  %4156 = vmatpush1.bf16.msra.mxu1 %v5709_v15  ;;  %v5790_v14 = vld [vmem:[%s6426_s7 + $0x680] ss:$16 sps:$4 sm:$0xff]   ;;  %v5793_v15 = vld [vmem:[%s6426_s7 + $0x688] ss:$16 sps:$4 sm:$0xff]  }
  0xd2   : > { %3733 = vmatprep.subr.bf16.mxu0 %v5714_v16  ;;  %4157 = vmatprep.subr.bf16.mxu1 %v5717_v17  ;;  %v5798_v16 = vld [vmem:[%s6426_s7 + $0x6a4] ss:$16 sps:$4 sm:$0xff]   ;;  %v5801_v17 = vld [vmem:[%s6426_s7 + $0x6ac] ss:$16 sps:$4 sm:$0xff]  }
  0xd5   : > { %3734 = vmatpush1.bf16.msra.mxu0 %v5712_v18  ;;  %4158 = vmatpush1.bf16.msra.mxu1 %v5715_v19  ;;  %v5796_v18 = vld [vmem:[%s6426_s7 + $0x6a0] ss:$16 sps:$4 sm:$0xff]   ;;  %v5799_v19 = vld [vmem:[%s6426_s7 + $0x6a8] ss:$16 sps:$4 sm:$0xff]  }
  0xd6   : > { %3735 = vmatprep.subr.bf16.mxu0 %v5720_v20  ;;  %4159 = vmatprep.subr.bf16.mxu1 %v5723_v21  ;;  %v5804_v20 = vld [vmem:[%s6426_s7 + $0x6c4] ss:$16 sps:$4 sm:$0xff]   ;;  %v5807_v21 = vld [vmem:[%s6426_s7 + $0x6cc] ss:$16 sps:$4 sm:$0xff]  }
  0xd9   : > { %3736 = vmatpush1.bf16.msra.mxu0 %v5718_v22  ;;  %4160 = vmatpush1.bf16.msra.mxu1 %v5721_v23  ;;  %v5802_v22 = vld [vmem:[%s6426_s7 + $0x6c0] ss:$16 sps:$4 sm:$0xff]   ;;  %v5805_v23 = vld [vmem:[%s6426_s7 + $0x6c8] ss:$16 sps:$4 sm:$0xff]  }
  0xda   : > { %3737 = vmatprep.subr.bf16.mxu0 %v5726_v24  ;;  %4161 = vmatprep.subr.bf16.mxu1 %v5729_v25  ;;  %v5810_v24 = vld [vmem:[%s6426_s7 + $0x6e4] ss:$16 sps:$4 sm:$0xff]   ;;  %v5813_v25 = vld [vmem:[%s6426_s7 + $0x6ec] ss:$16 sps:$4 sm:$0xff]  }
  0xdd   : > { %3738 = vmatpush1.bf16.msra.mxu0 %v5724_v26  ;;  %4162 = vmatpush1.bf16.msra.mxu1 %v5727_v27  ;;  %v5808_v26 = vld [vmem:[%s6426_s7 + $0x6e0] ss:$16 sps:$4 sm:$0xff]   ;;  %v5811_v27 = vld [vmem:[%s6426_s7 + $0x6e8] ss:$16 sps:$4 sm:$0xff]  }
  0xde   : > { %3739 = vmatprep.subr.bf16.mxu0 %v5732_v28  ;;  %4163 = vmatprep.subr.bf16.mxu1 %v5735_v29  ;;  %v5816_v28 = vld [vmem:[%s6426_s7 + $0x704] ss:$16 sps:$4 sm:$0xff]   ;;  %v5819_v29 = vld [vmem:[%s6426_s7 + $0x70c] ss:$16 sps:$4 sm:$0xff]  }
  0xe1   : > { %3740 = vmatpush1.bf16.msra.mxu0 %v5730_v30  ;;  %4164 = vmatpush1.bf16.msra.mxu1 %v5733_v31  ;;  %v5814_v30 = vld [vmem:[%s6426_s7 + $0x700] ss:$16 sps:$4 sm:$0xff]   ;;  %v5817_v31 = vld [vmem:[%s6426_s7 + $0x708] ss:$16 sps:$4 sm:$0xff]  }
  0xe2   : > { %3741 = vmatprep.subr.bf16.mxu0 %v5738_v32  ;;  %4165 = vmatprep.subr.bf16.mxu1 %v5741_v33  ;;  %v5822_v32 = vld [vmem:[%s6426_s7 + $0x724] ss:$16 sps:$4 sm:$0xff]   ;;  %v5825_v33 = vld [vmem:[%s6426_s7 + $0x72c] ss:$16 sps:$4 sm:$0xff]  }
  0xe5   : > { %3742 = vmatpush1.bf16.msra.mxu0 %v5736_v34  ;;  %4166 = vmatpush1.bf16.msra.mxu1 %v5739_v35  ;;  %v5820_v34 = vld [vmem:[%s6426_s7 + $0x720] ss:$16 sps:$4 sm:$0xff]   ;;  %v5823_v35 = vld [vmem:[%s6426_s7 + $0x728] ss:$16 sps:$4 sm:$0xff]  }
  0xe6   : > { %3743 = vmatprep.subr.bf16.mxu0 %v5744_v36  ;;  %4167 = vmatprep.subr.bf16.mxu1 %v5747_v37  ;;  %v5828_v36 = vld [vmem:[%s6426_s7 + $0x744] ss:$16 sps:$4 sm:$0xff]   ;;  %v5831_v37 = vld [vmem:[%s6426_s7 + $0x74c] ss:$16 sps:$4 sm:$0xff]  }
  0xe9   : > { %3744 = vmatpush1.bf16.msra.mxu0 %v5742_v38  ;;  %4168 = vmatpush1.bf16.msra.mxu1 %v5745_v39  ;;  %v5826_v38 = vld [vmem:[%s6426_s7 + $0x740] ss:$16 sps:$4 sm:$0xff]   ;;  %v5829_v39 = vld [vmem:[%s6426_s7 + $0x748] ss:$16 sps:$4 sm:$0xff]  }
  0xea   : > { %3745 = vmatprep.subr.bf16.mxu0 %v5750_v40  ;;  %4169 = vmatprep.subr.bf16.mxu1 %v5753_v41  ;;  %v5834_v40 = vld [vmem:[%s6426_s7 + $0x764] ss:$16 sps:$4 sm:$0xff]   ;;  %v5837_v41 = vld [vmem:[%s6426_s7 + $0x76c] ss:$16 sps:$4 sm:$0xff]  }
  0xed   : > { %3746 = vmatpush1.bf16.msra.mxu0 %v5748_v42  ;;  %4170 = vmatpush1.bf16.msra.mxu1 %v5751_v43  ;;  %v5832_v42 = vld [vmem:[%s6426_s7 + $0x760] ss:$16 sps:$4 sm:$0xff]   ;;  %v5835_v43 = vld [vmem:[%s6426_s7 + $0x768] ss:$16 sps:$4 sm:$0xff]  }
  0xee   : > { %3747 = vmatprep.subr.bf16.mxu0 %v5756_v44  ;;  %4171 = vmatprep.subr.bf16.mxu1 %v5759_v45  ;;  %v5840_v44 = vld [vmem:[%s6426_s7 + $0x784] ss:$16 sps:$4 sm:$0xff]   ;;  %v5843_v45 = vld [vmem:[%s6426_s7 + $0x78c] ss:$16 sps:$4 sm:$0xff]  }
  0xf1   : > { %3748 = vmatpush1.bf16.msra.mxu0 %v5754_v46  ;;  %4172 = vmatpush1.bf16.msra.mxu1 %v5757_v47  ;;  %v5838_v46 = vld [vmem:[%s6426_s7 + $0x780] ss:$16 sps:$4 sm:$0xff]   ;;  %v5841_v47 = vld [vmem:[%s6426_s7 + $0x788] ss:$16 sps:$4 sm:$0xff]  }
  0xf2   : > { %3749 = vmatprep.subr.bf16.mxu0 %v5762_v48  ;;  %4173 = vmatprep.subr.bf16.mxu1 %v5765_v49  ;;  %v5846_v48 = vld [vmem:[%s6426_s7 + $0x7a4] ss:$16 sps:$4 sm:$0xff]   ;;  %v5849_v49 = vld [vmem:[%s6426_s7 + $0x7ac] ss:$16 sps:$4 sm:$0xff]  }
  0xf5   : > { %3750 = vmatpush1.bf16.msra.mxu0 %v5760_v50  ;;  %4174 = vmatpush1.bf16.msra.mxu1 %v5763_v51  ;;  %v5844_v50 = vld [vmem:[%s6426_s7 + $0x7a0] ss:$16 sps:$4 sm:$0xff]   ;;  %v5847_v51 = vld [vmem:[%s6426_s7 + $0x7a8] ss:$16 sps:$4 sm:$0xff]  }
  0xf6   : > { %3772 = vmatprep.subr.bf16.mxu0 %v5768_v52  ;;  %4196 = vmatprep.subr.bf16.mxu1 %v5771_v53  ;;  %v5852_v52 = vld [vmem:[%s6426_s7 + $0x7c4] ss:$16 sps:$4 sm:$0xff]   ;;  %v5855_v53 = vld [vmem:[%s6426_s7 + $0x7cc] ss:$16 sps:$4 sm:$0xff]  }
  0xf8   : > { %3752 = vmatmul.mubr.bf16.vlgmr.msra.gmra.mrb[0].mxu0 %v4776_v55  ;;  %4176 = vmatmul.mubr.bf16.vlgmr.msra.gmra.mrb[0].mxu1 %v4776_v55  ;;  %v5853_v55 = vld [vmem:[%s6426_s7 + $0x7c8] ss:$16 sps:$4 sm:$0xff]  }
  0xf9   : > { %3773 = vmatpush1.bf16.msra.mxu0 %v5766_v57  ;;  %4197 = vmatpush1.bf16.msra.mxu1 %v5769_v59  ;;  %v5861_v57 = vld [vmem:[%s6426_s7 + $0x7ec] ss:$16 sps:$4 sm:$0xff]   ;;  %v5856_v59 = vld [vmem:[%s6426_s7 + $0x7e0] ss:$16 sps:$4 sm:$0xff]  }
  0xfa   : > { %3774 = vmatprep.subr.bf16.mxu0 %v5774_v61  ;;  %4198 = vmatprep.subr.bf16.mxu1 %v5777_v62  ;;  %v5859_v61 = vld [vmem:[%s6426_s7 + $0x7e8] ss:$16 sps:$4 sm:$0xff]   ;;  %v5864_v62 = vld [vmem:[%s6426_s7 + $0x804] ss:$16 sps:$4 sm:$0xff]  }
  0xfb   : > { %3761 = vmatprep.mubr.bf16.mxu0 %v4793_v63  ;;  %4185 = vmatprep.mubr.bf16.mxu1 %v4793_v63  ;;  %v5867_v63 = vld [vmem:[%s6426_s7 + $0x80c] ss:$16 sps:$4 sm:$0xff]  }
  0xfd   : > { %3775 = vmatpush1.bf16.msra.mxu0 %v5772_v58  ;;  %4199 = vmatpush1.bf16.msra.mxu1 %v5775_v60  ;;  %v368_v58 = vld [vmem:[%s6428_s8 + $0x98] sm:$0xff]  ;;  %v4778_v60 = vcombine.low %v6662_v2, %v6665_v4  ;;  %v5876_v4 = vld [vmem:[%s6426_s7 + $0x844] ss:$16 sps:$4 sm:$0xff]  }
  0xfe   : > { %3776 = vmatprep.subr.bf16.mxu0 %v5780_v0  ;;  %4200 = vmatprep.subr.bf16.mxu1 %v5783_v1  ;;  %v376_v0 = vld [vmem:[%s6428_s8 + $0xd8] sm:$0xff]  ;;  %v5862_v1 = vld [vmem:[%s6426_s7 + $0x800] ss:$16 sps:$4 sm:$0xff]  }
  0xff   : > { %v5871_v2 = vld [vmem:[%s6426_s7 + $0x828] ss:$16 sps:$4 sm:$0xff]  }
 0x100   : > { %3762 = vmatmul.mubr.bf16.gmra.mrb[4].mxu0 %v4792_v3  ;;  %4186 = vmatmul.mubr.bf16.gmra.mrb[4].mxu1 %v4792_v3  ;;  %v5865_v3 = vld [vmem:[%s6426_s7 + $0x808] ss:$16 sps:$4 sm:$0xff]  }
 0x101   : > { %3777 = vmatpush1.bf16.msra.mxu0 %v5778_v5  ;;  %4201 = vmatpush1.bf16.msra.mxu1 %v5781_v6  ;;  %v5870_v5 = vld [vmem:[%s6426_s7 + $0x824] ss:$16 sps:$4 sm:$0xff]   ;;  %v5873_v6 = vld [vmem:[%s6426_s7 + $0x82c] ss:$16 sps:$4 sm:$0xff]  }
 0x102   : > { %3778 = vmatprep.subr.bf16.mxu0 %v5786_v7  ;;  %4202 = vmatprep.subr.bf16.mxu1 %v5789_v8  ;;  %v4795_v7 = vcombine.high %v368_v58, %v376_v0  ;;  %v5868_v8 = vld [vmem:[%s6426_s7 + $0x820] ss:$16 sps:$4 sm:$0xff]  }
 0x103   : > { %3804 = vmatprep.mubr.bf16.mxu0 %v4779_v9  ;;  %4228 = vmatprep.mubr.bf16.mxu1 %v4779_v9  ;;  %v5879_v9 = vld [vmem:[%s6426_s7 + $0x84c] ss:$16 sps:$4 sm:$0xff]  }
 0x105   : > { %3779 = vmatpush1.bf16.msra.mxu0 %v5784_v10  ;;  %4203 = vmatpush1.bf16.msra.mxu1 %v5787_v11  ;;  %v6738_v10 = vld [vmem:[%s6428_s8 + $0x20] sm:$0xff]  ;;  %v4794_v11 = vcombine.low %v368_v58, %v376_v0 }
 0x106   : > { %3780 = vmatprep.subr.bf16.mxu0 %v5792_v12  ;;  %4204 = vmatprep.subr.bf16.mxu1 %v5795_v13  ;;  %v6741_v12 = vld [vmem:[%s6428_s8 + $0x60] sm:$0xff] }
 0x107   : > { %v5874_v13 = vld [vmem:[%s6426_s7 + $0x840] ss:$16 sps:$4 sm:$0xff]   ;;  %v5954_v0 = vld [vmem:[%s6426_s7 + $0x9e4] ss:$16 sps:$4 sm:$0xff]  }
 0x108   : > { %v5946_v58 = vld [vmem:[%s6426_s7 + $0x9c0] ss:$16 sps:$4 sm:$0xff]  }
 0x109   : > { %3781 = vmatpush1.bf16.msra.mxu0 %v5790_v14  ;;  %4205 = vmatpush1.bf16.msra.mxu1 %v5793_v15  ;;  %v5877_v14 = vld [vmem:[%s6426_s7 + $0x848] ss:$16 sps:$4 sm:$0xff]   ;;  %v5882_v15 = vld [vmem:[%s6426_s7 + $0x864] ss:$16 sps:$4 sm:$0xff]  }
 0x10a   : > { %3782 = vmatprep.subr.bf16.mxu0 %v5798_v16  ;;  %4206 = vmatprep.subr.bf16.mxu1 %v5801_v17  ;;  %v5885_v16 = vld [vmem:[%s6426_s7 + $0x86c] ss:$16 sps:$4 sm:$0xff]   ;;  %v4781_v17 = vcombine.high %v6738_v10, %v6741_v12 }
 0x10d   : > { %3783 = vmatpush1.bf16.msra.mxu0 %v5796_v18  ;;  %4207 = vmatpush1.bf16.msra.mxu1 %v5799_v19  ;;  %v5880_v18 = vld [vmem:[%s6426_s7 + $0x860] ss:$16 sps:$4 sm:$0xff]   ;;  %v5883_v19 = vld [vmem:[%s6426_s7 + $0x868] ss:$16 sps:$4 sm:$0xff]  }
 0x10e   : > { %3784 = vmatprep.subr.bf16.mxu0 %v5804_v20  ;;  %4208 = vmatprep.subr.bf16.mxu1 %v5807_v21  ;;  %v5888_v20 = vld [vmem:[%s6426_s7 + $0x884] ss:$16 sps:$4 sm:$0xff]   ;;  %v5891_v21 = vld [vmem:[%s6426_s7 + $0x88c] ss:$16 sps:$4 sm:$0xff]  }
 0x111   : > { %3785 = vmatpush1.bf16.msra.mxu0 %v5802_v22  ;;  %4209 = vmatpush1.bf16.msra.mxu1 %v5805_v23  ;;  %v5886_v22 = vld [vmem:[%s6426_s7 + $0x880] ss:$16 sps:$4 sm:$0xff]   ;;  %v5889_v23 = vld [vmem:[%s6426_s7 + $0x888] ss:$16 sps:$4 sm:$0xff]  }
 0x112   : > { %3786 = vmatprep.subr.bf16.mxu0 %v5810_v24  ;;  %4210 = vmatprep.subr.bf16.mxu1 %v5813_v25  ;;  %v5894_v24 = vld [vmem:[%s6426_s7 + $0x8a4] ss:$16 sps:$4 sm:$0xff]   ;;  %v5897_v25 = vld [vmem:[%s6426_s7 + $0x8ac] ss:$16 sps:$4 sm:$0xff]  }
 0x115   : > { %3787 = vmatpush1.bf16.msra.mxu0 %v5808_v26  ;;  %4211 = vmatpush1.bf16.msra.mxu1 %v5811_v27  ;;  %v5892_v26 = vld [vmem:[%s6426_s7 + $0x8a0] ss:$16 sps:$4 sm:$0xff]   ;;  %v5895_v27 = vld [vmem:[%s6426_s7 + $0x8a8] ss:$16 sps:$4 sm:$0xff]  }
 0x116   : > { %3788 = vmatprep.subr.bf16.mxu0 %v5816_v28  ;;  %4212 = vmatprep.subr.bf16.mxu1 %v5819_v29  ;;  %v5900_v28 = vld [vmem:[%s6426_s7 + $0x8c4] ss:$16 sps:$4 sm:$0xff]   ;;  %v5903_v29 = vld [vmem:[%s6426_s7 + $0x8cc] ss:$16 sps:$4 sm:$0xff]  }
 0x119   : > { %3789 = vmatpush1.bf16.msra.mxu0 %v5814_v30  ;;  %4213 = vmatpush1.bf16.msra.mxu1 %v5817_v31  ;;  %v5898_v30 = vld [vmem:[%s6426_s7 + $0x8c0] ss:$16 sps:$4 sm:$0xff]   ;;  %v5901_v31 = vld [vmem:[%s6426_s7 + $0x8c8] ss:$16 sps:$4 sm:$0xff]  }
 0x11a   : > { %3790 = vmatprep.subr.bf16.mxu0 %v5822_v32  ;;  %4214 = vmatprep.subr.bf16.mxu1 %v5825_v33  ;;  %v5906_v32 = vld [vmem:[%s6426_s7 + $0x8e4] ss:$16 sps:$4 sm:$0xff]   ;;  %v5909_v33 = vld [vmem:[%s6426_s7 + $0x8ec] ss:$16 sps:$4 sm:$0xff]  }
 0x11d   : > { %3791 = vmatpush1.bf16.msra.mxu0 %v5820_v34  ;;  %4215 = vmatpush1.bf16.msra.mxu1 %v5823_v35  ;;  %v5904_v34 = vld [vmem:[%s6426_s7 + $0x8e0] ss:$16 sps:$4 sm:$0xff]   ;;  %v5907_v35 = vld [vmem:[%s6426_s7 + $0x8e8] ss:$16 sps:$4 sm:$0xff]  }
 0x11e   : > { %3792 = vmatprep.subr.bf16.mxu0 %v5828_v36  ;;  %4216 = vmatprep.subr.bf16.mxu1 %v5831_v37  ;;  %v5912_v36 = vld [vmem:[%s6426_s7 + $0x904] ss:$16 sps:$4 sm:$0xff]   ;;  %v5915_v37 = vld [vmem:[%s6426_s7 + $0x90c] ss:$16 sps:$4 sm:$0xff]  }
 0x121   : > { %3793 = vmatpush1.bf16.msra.mxu0 %v5826_v38  ;;  %4217 = vmatpush1.bf16.msra.mxu1 %v5829_v39  ;;  %v5910_v38 = vld [vmem:[%s6426_s7 + $0x900] ss:$16 sps:$4 sm:$0xff]   ;;  %v5913_v39 = vld [vmem:[%s6426_s7 + $0x908] ss:$16 sps:$4 sm:$0xff]  }
 0x122   : > { %3794 = vmatprep.subr.bf16.mxu0 %v5834_v40  ;;  %4218 = vmatprep.subr.bf16.mxu1 %v5837_v41  ;;  %v5918_v40 = vld [vmem:[%s6426_s7 + $0x924] ss:$16 sps:$4 sm:$0xff]   ;;  %v5921_v41 = vld [vmem:[%s6426_s7 + $0x92c] ss:$16 sps:$4 sm:$0xff]  }
 0x125   : > { %3795 = vmatpush1.bf16.msra.mxu0 %v5832_v42  ;;  %4219 = vmatpush1.bf16.msra.mxu1 %v5835_v43  ;;  %v5916_v42 = vld [vmem:[%s6426_s7 + $0x920] ss:$16 sps:$4 sm:$0xff]   ;;  %v5919_v43 = vld [vmem:[%s6426_s7 + $0x928] ss:$16 sps:$4 sm:$0xff]  }
 0x126   : > { %3796 = vmatprep.subr.bf16.mxu0 %v5840_v44  ;;  %4220 = vmatprep.subr.bf16.mxu1 %v5843_v45  ;;  %v5924_v44 = vld [vmem:[%s6426_s7 + $0x944] ss:$16 sps:$4 sm:$0xff]   ;;  %v5927_v45 = vld [vmem:[%s6426_s7 + $0x94c] ss:$16 sps:$4 sm:$0xff]  }
 0x129   : > { %3797 = vmatpush1.bf16.msra.mxu0 %v5838_v46  ;;  %4221 = vmatpush1.bf16.msra.mxu1 %v5841_v47  ;;  %v5922_v46 = vld [vmem:[%s6426_s7 + $0x940] ss:$16 sps:$4 sm:$0xff]   ;;  %v5925_v47 = vld [vmem:[%s6426_s7 + $0x948] ss:$16 sps:$4 sm:$0xff]  }
 0x12a   : > { %3798 = vmatprep.subr.bf16.mxu0 %v5846_v48  ;;  %4222 = vmatprep.subr.bf16.mxu1 %v5849_v49  ;;  %v5930_v48 = vld [vmem:[%s6426_s7 + $0x964] ss:$16 sps:$4 sm:$0xff]   ;;  %v5933_v49 = vld [vmem:[%s6426_s7 + $0x96c] ss:$16 sps:$4 sm:$0xff]  }
 0x12d   : > { %3799 = vmatpush1.bf16.msra.mxu0 %v5844_v50  ;;  %4223 = vmatpush1.bf16.msra.mxu1 %v5847_v51  ;;  %v5928_v50 = vld [vmem:[%s6426_s7 + $0x960] ss:$16 sps:$4 sm:$0xff]   ;;  %v5931_v51 = vld [vmem:[%s6426_s7 + $0x968] ss:$16 sps:$4 sm:$0xff]  }
 0x12e   : > { %3800 = vmatprep.subr.bf16.mxu0 %v5852_v52  ;;  %4224 = vmatprep.subr.bf16.mxu1 %v5855_v53  ;;  %v5936_v52 = vld [vmem:[%s6426_s7 + $0x984] ss:$16 sps:$4 sm:$0xff]   ;;  %v5939_v53 = vld [vmem:[%s6426_s7 + $0x98c] ss:$16 sps:$4 sm:$0xff]  }
 0x131   : > { %3801 = vmatpush1.bf16.msra.mxu0 %v5850_v54  ;;  %4225 = vmatpush1.bf16.msra.mxu1 %v5853_v55  ;;  %v5934_v54 = vld [vmem:[%s6426_s7 + $0x980] ss:$16 sps:$4 sm:$0xff]   ;;  %v5937_v55 = vld [vmem:[%s6426_s7 + $0x988] ss:$16 sps:$4 sm:$0xff]  }
 0x132   : > { %3802 = vmatprep.subr.bf16.mxu0 %v5858_v56  ;;  %4226 = vmatprep.subr.bf16.mxu1 %v5861_v57  ;;  %v5942_v56 = vld [vmem:[%s6426_s7 + $0x9a4] ss:$16 sps:$4 sm:$0xff]   ;;  %v5945_v57 = vld [vmem:[%s6426_s7 + $0x9ac] ss:$16 sps:$4 sm:$0xff]  }
 0x135   : > { %3803 = vmatpush1.bf16.msra.mxu0 %v5856_v59  ;;  %4227 = vmatpush1.bf16.msra.mxu1 %v5859_v61  ;;  %v5940_v59 = vld [vmem:[%s6426_s7 + $0x9a0] ss:$16 sps:$4 sm:$0xff]   ;;  %v5943_v61 = vld [vmem:[%s6426_s7 + $0x9a8] ss:$16 sps:$4 sm:$0xff]  }
 0x136   : > { %3825 = vmatprep.subr.bf16.mxu0 %v5864_v62  ;;  %4249 = vmatprep.subr.bf16.mxu1 %v5867_v63  ;;  %v5948_v62 = vld [vmem:[%s6426_s7 + $0x9c4] ss:$16 sps:$4 sm:$0xff]   ;;  %v5951_v63 = vld [vmem:[%s6426_s7 + $0x9cc] ss:$16 sps:$4 sm:$0xff]  }
 0x138   : > { %3805 = vmatmul.mubr.bf16.vlgmr.msra.gmra.mrb[0].mxu0 %v4778_v60  ;;  %4229 = vmatmul.mubr.bf16.vlgmr.msra.gmra.mrb[0].mxu1 %v4778_v60  ;;  %v5949_v60 = vld [vmem:[%s6426_s7 + $0x9c8] ss:$16 sps:$4 sm:$0xff]  }
 0x139   : > { %3826 = vmatpush1.bf16.msra.mxu0 %v5862_v1  ;;  %4250 = vmatpush1.bf16.msra.mxu1 %v5865_v3  ;;  %v5957_v1 = vld [vmem:[%s6426_s7 + $0x9ec] ss:$16 sps:$4 sm:$0xff]   ;;  %v5952_v3 = vld [vmem:[%s6426_s7 + $0x9e0] ss:$16 sps:$4 sm:$0xff]  }
 0x13a   : > { %3827 = vmatprep.subr.bf16.mxu0 %v5870_v5  ;;  %4251 = vmatprep.subr.bf16.mxu1 %v5873_v6  ;;  %v5955_v5 = vld [vmem:[%s6426_s7 + $0x9e8] ss:$16 sps:$4 sm:$0xff]   ;;  %v5960_v6 = vld [vmem:[%s6426_s7 + $0xa04] ss:$16 sps:$4 sm:$0xff]  }
 0x13b   : > { %3814 = vmatprep.mubr.bf16.mxu0 %v4795_v7  ;;  %4238 = vmatprep.mubr.bf16.mxu1 %v4795_v7  ;;  %v5963_v7 = vld [vmem:[%s6426_s7 + $0xa0c] ss:$16 sps:$4 sm:$0xff]  }
 0x13d   : > { %3828 = vmatpush1.bf16.msra.mxu0 %v5868_v8  ;;  %4252 = vmatpush1.bf16.msra.mxu1 %v5871_v2  ;;  %v369_v8 = vld [vmem:[%s6428_s8 + $0xa0] sm:$0xff] }
 0x13e   : > { %3829 = vmatprep.subr.bf16.mxu0 %v5876_v4  ;;  %4253 = vmatprep.subr.bf16.mxu1 %v5879_v9  ;;  %v377_v2 = vld [vmem:[%s6428_s8 + $0xe0] sm:$0xff]  ;;  %v4780_v4 = vcombine.low %v6738_v10, %v6741_v12  ;;  %v5975_v12 = vld [vmem:[%s6426_s7 + $0xa4c] ss:$16 sps:$4 sm:$0xff]  }
 0x13f   : > { %v5958_v9 = vld [vmem:[%s6426_s7 + $0xa00] ss:$16 sps:$4 sm:$0xff]   ;;  %v5972_v10 = vld [vmem:[%s6426_s7 + $0xa44] ss:$16 sps:$4 sm:$0xff]  }
 0x140   : > { %3815 = vmatmul.mubr.bf16.gmra.mrb[4].mxu0 %v4794_v11  ;;  %4239 = vmatmul.mubr.bf16.gmra.mrb[4].mxu1 %v4794_v11  ;;  %v5961_v11 = vld [vmem:[%s6426_s7 + $0xa08] ss:$16 sps:$4 sm:$0xff]  }
 0x141   : > { %3830 = vmatpush1.bf16.msra.mxu0 %v5874_v13  ;;  %4254 = vmatpush1.bf16.msra.mxu1 %v5877_v14  ;;  %v5966_v13 = vld [vmem:[%s6426_s7 + $0xa24] ss:$16 sps:$4 sm:$0xff]   ;;  %v5969_v14 = vld [vmem:[%s6426_s7 + $0xa2c] ss:$16 sps:$4 sm:$0xff]  }
 0x142   : > { %3831 = vmatprep.subr.bf16.mxu0 %v5882_v15  ;;  %4255 = vmatprep.subr.bf16.mxu1 %v5885_v16  ;;  %v5964_v15 = vld [vmem:[%s6426_s7 + $0xa20] ss:$16 sps:$4 sm:$0xff]   ;;  %v5967_v16 = vld [vmem:[%s6426_s7 + $0xa28] ss:$16 sps:$4 sm:$0xff]  }
 0x143   : > { %3857 = vmatprep.mubr.bf16.mxu0 %v4781_v17  ;;  %4281 = vmatprep.mubr.bf16.mxu1 %v4781_v17  ;;  %v4797_v17 = vcombine.high %v369_v8, %v377_v2 }
 0x145   : > { %3832 = vmatpush1.bf16.msra.mxu0 %v5880_v18  ;;  %4256 = vmatpush1.bf16.msra.mxu1 %v5883_v19  ;;  %v6814_v18 = vld [vmem:[%s6428_s8 + $0x28] sm:$0xff] }
 0x146   : > { %3833 = vmatprep.subr.bf16.mxu0 %v5888_v20  ;;  %4257 = vmatprep.subr.bf16.mxu1 %v5891_v21  ;;  %v6817_v19 = vld [vmem:[%s6428_s8 + $0x68] sm:$0xff]  ;;  %v4796_v20 = vcombine.low %v369_v8, %v377_v2  ;;  %v5970_v21 = vld [vmem:[%s6426_s7 + $0xa40] ss:$16 sps:$4 sm:$0xff]  }
 0x147   : > { %v6042_v8 = vld [vmem:[%s6426_s7 + $0xbc0] ss:$16 sps:$4 sm:$0xff]   ;;  %v6045_v2 = vld [vmem:[%s6426_s7 + $0xbc8] ss:$16 sps:$4 sm:$0xff]  }
 0x149   : > { %3834 = vmatpush1.bf16.msra.mxu0 %v5886_v22  ;;  %4258 = vmatpush1.bf16.msra.mxu1 %v5889_v23  ;;  %v5973_v22 = vld [vmem:[%s6426_s7 + $0xa48] ss:$16 sps:$4 sm:$0xff]   ;;  %v5978_v23 = vld [vmem:[%s6426_s7 + $0xa64] ss:$16 sps:$4 sm:$0xff]  }
 0x14a   : > { %3835 = vmatprep.subr.bf16.mxu0 %v5894_v24  ;;  %4259 = vmatprep.subr.bf16.mxu1 %v5897_v25  ;;  %v5981_v24 = vld [vmem:[%s6426_s7 + $0xa6c] ss:$16 sps:$4 sm:$0xff]   ;;  %v4783_v25 = vcombine.high %v6814_v18, %v6817_v19 }
 0x14d   : > { %3836 = vmatpush1.bf16.msra.mxu0 %v5892_v26  ;;  %4260 = vmatpush1.bf16.msra.mxu1 %v5895_v27  ;;  %v5976_v26 = vld [vmem:[%s6426_s7 + $0xa60] ss:$16 sps:$4 sm:$0xff]   ;;  %v5979_v27 = vld [vmem:[%s6426_s7 + $0xa68] ss:$16 sps:$4 sm:$0xff]  }
 0x14e   : > { %3837 = vmatprep.subr.bf16.mxu0 %v5900_v28  ;;  %4261 = vmatprep.subr.bf16.mxu1 %v5903_v29  ;;  %v5984_v28 = vld [vmem:[%s6426_s7 + $0xa84] ss:$16 sps:$4 sm:$0xff]   ;;  %v5987_v29 = vld [vmem:[%s6426_s7 + $0xa8c] ss:$16 sps:$4 sm:$0xff]  }
 0x151   : > { %3838 = vmatpush1.bf16.msra.mxu0 %v5898_v30  ;;  %4262 = vmatpush1.bf16.msra.mxu1 %v5901_v31  ;;  %v5982_v30 = vld [vmem:[%s6426_s7 + $0xa80] ss:$16 sps:$4 sm:$0xff]   ;;  %v5985_v31 = vld [vmem:[%s6426_s7 + $0xa88] ss:$16 sps:$4 sm:$0xff]  }
 0x152   : > { %3839 = vmatprep.subr.bf16.mxu0 %v5906_v32  ;;  %4263 = vmatprep.subr.bf16.mxu1 %v5909_v33  ;;  %v5990_v32 = vld [vmem:[%s6426_s7 + $0xaa4] ss:$16 sps:$4 sm:$0xff]   ;;  %v5993_v33 = vld [vmem:[%s6426_s7 + $0xaac] ss:$16 sps:$4 sm:$0xff]  }
 0x155   : > { %3840 = vmatpush1.bf16.msra.mxu0 %v5904_v34  ;;  %4264 = vmatpush1.bf16.msra.mxu1 %v5907_v35  ;;  %v5988_v34 = vld [vmem:[%s6426_s7 + $0xaa0] ss:$16 sps:$4 sm:$0xff]   ;;  %v5991_v35 = vld [vmem:[%s6426_s7 + $0xaa8] ss:$16 sps:$4 sm:$0xff]  }
 0x156   : > { %3841 = vmatprep.subr.bf16.mxu0 %v5912_v36  ;;  %4265 = vmatprep.subr.bf16.mxu1 %v5915_v37  ;;  %v5996_v36 = vld [vmem:[%s6426_s7 + $0xac4] ss:$16 sps:$4 sm:$0xff]   ;;  %v5999_v37 = vld [vmem:[%s6426_s7 + $0xacc] ss:$16 sps:$4 sm:$0xff]  }
 0x159   : > { %3842 = vmatpush1.bf16.msra.mxu0 %v5910_v38  ;;  %4266 = vmatpush1.bf16.msra.mxu1 %v5913_v39  ;;  %v5994_v38 = vld [vmem:[%s6426_s7 + $0xac0] ss:$16 sps:$4 sm:$0xff]   ;;  %v5997_v39 = vld [vmem:[%s6426_s7 + $0xac8] ss:$16 sps:$4 sm:$0xff]  }
 0x15a   : > { %3843 = vmatprep.subr.bf16.mxu0 %v5918_v40  ;;  %4267 = vmatprep.subr.bf16.mxu1 %v5921_v41  ;;  %v6002_v40 = vld [vmem:[%s6426_s7 + $0xae4] ss:$16 sps:$4 sm:$0xff]   ;;  %v6005_v41 = vld [vmem:[%s6426_s7 + $0xaec] ss:$16 sps:$4 sm:$0xff]  }
 0x15d   : > { %3844 = vmatpush1.bf16.msra.mxu0 %v5916_v42  ;;  %4268 = vmatpush1.bf16.msra.mxu1 %v5919_v43  ;;  %v6000_v42 = vld [vmem:[%s6426_s7 + $0xae0] ss:$16 sps:$4 sm:$0xff]   ;;  %v6003_v43 = vld [vmem:[%s6426_s7 + $0xae8] ss:$16 sps:$4 sm:$0xff]  }
 0x15e   : > { %3845 = vmatprep.subr.bf16.mxu0 %v5924_v44  ;;  %4269 = vmatprep.subr.bf16.mxu1 %v5927_v45  ;;  %v6008_v44 = vld [vmem:[%s6426_s7 + $0xb04] ss:$16 sps:$4 sm:$0xff]   ;;  %v6011_v45 = vld [vmem:[%s6426_s7 + $0xb0c] ss:$16 sps:$4 sm:$0xff]  }
 0x161   : > { %3846 = vmatpush1.bf16.msra.mxu0 %v5922_v46  ;;  %4270 = vmatpush1.bf16.msra.mxu1 %v5925_v47  ;;  %v6006_v46 = vld [vmem:[%s6426_s7 + $0xb00] ss:$16 sps:$4 sm:$0xff]   ;;  %v6009_v47 = vld [vmem:[%s6426_s7 + $0xb08] ss:$16 sps:$4 sm:$0xff]  }
 0x162   : > { %3847 = vmatprep.subr.bf16.mxu0 %v5930_v48  ;;  %4271 = vmatprep.subr.bf16.mxu1 %v5933_v49  ;;  %v6014_v48 = vld [vmem:[%s6426_s7 + $0xb24] ss:$16 sps:$4 sm:$0xff]   ;;  %v6017_v49 = vld [vmem:[%s6426_s7 + $0xb2c] ss:$16 sps:$4 sm:$0xff]  }
 0x165   : > { %3848 = vmatpush1.bf16.msra.mxu0 %v5928_v50  ;;  %4272 = vmatpush1.bf16.msra.mxu1 %v5931_v51  ;;  %v6012_v50 = vld [vmem:[%s6426_s7 + $0xb20] ss:$16 sps:$4 sm:$0xff]   ;;  %v6015_v51 = vld [vmem:[%s6426_s7 + $0xb28] ss:$16 sps:$4 sm:$0xff]  }
 0x166   : > { %3849 = vmatprep.subr.bf16.mxu0 %v5936_v52  ;;  %4273 = vmatprep.subr.bf16.mxu1 %v5939_v53  ;;  %v6020_v52 = vld [vmem:[%s6426_s7 + $0xb44] ss:$16 sps:$4 sm:$0xff]   ;;  %v6023_v53 = vld [vmem:[%s6426_s7 + $0xb4c] ss:$16 sps:$4 sm:$0xff]  }
 0x169   : > { %3850 = vmatpush1.bf16.msra.mxu0 %v5934_v54  ;;  %4274 = vmatpush1.bf16.msra.mxu1 %v5937_v55  ;;  %v6018_v54 = vld [vmem:[%s6426_s7 + $0xb40] ss:$16 sps:$4 sm:$0xff]   ;;  %v6021_v55 = vld [vmem:[%s6426_s7 + $0xb48] ss:$16 sps:$4 sm:$0xff]  }
 0x16a   : > { %3851 = vmatprep.subr.bf16.mxu0 %v5942_v56  ;;  %4275 = vmatprep.subr.bf16.mxu1 %v5945_v57  ;;  %v6026_v56 = vld [vmem:[%s6426_s7 + $0xb64] ss:$16 sps:$4 sm:$0xff]   ;;  %v6029_v57 = vld [vmem:[%s6426_s7 + $0xb6c] ss:$16 sps:$4 sm:$0xff]  }
 0x16d   : > { %3852 = vmatpush1.bf16.msra.mxu0 %v5940_v59  ;;  %4276 = vmatpush1.bf16.msra.mxu1 %v5943_v61  ;;  %v6024_v59 = vld [vmem:[%s6426_s7 + $0xb60] ss:$16 sps:$4 sm:$0xff]   ;;  %v6027_v61 = vld [vmem:[%s6426_s7 + $0xb68] ss:$16 sps:$4 sm:$0xff]  }
 0x16e   : > { %3853 = vmatprep.subr.bf16.mxu0 %v5948_v62  ;;  %4277 = vmatprep.subr.bf16.mxu1 %v5951_v63  ;;  %v6032_v62 = vld [vmem:[%s6426_s7 + $0xb84] ss:$16 sps:$4 sm:$0xff]   ;;  %v6035_v63 = vld [vmem:[%s6426_s7 + $0xb8c] ss:$16 sps:$4 sm:$0xff]  }
 0x171   : > { %3854 = vmatpush1.bf16.msra.mxu0 %v5946_v58  ;;  %4278 = vmatpush1.bf16.msra.mxu1 %v5949_v60  ;;  %v6030_v58 = vld [vmem:[%s6426_s7 + $0xb80] ss:$16 sps:$4 sm:$0xff]   ;;  %v6033_v60 = vld [vmem:[%s6426_s7 + $0xb88] ss:$16 sps:$4 sm:$0xff]  }
 0x172   : > { %3855 = vmatprep.subr.bf16.mxu0 %v5954_v0  ;;  %4279 = vmatprep.subr.bf16.mxu1 %v5957_v1  ;;  %v6038_v0 = vld [vmem:[%s6426_s7 + $0xba4] ss:$16 sps:$4 sm:$0xff]   ;;  %v6041_v1 = vld [vmem:[%s6426_s7 + $0xbac] ss:$16 sps:$4 sm:$0xff]  }
 0x175   : > { %3856 = vmatpush1.bf16.msra.mxu0 %v5952_v3  ;;  %4280 = vmatpush1.bf16.msra.mxu1 %v5955_v5  ;;  %v6036_v3 = vld [vmem:[%s6426_s7 + $0xba0] ss:$16 sps:$4 sm:$0xff]   ;;  %v6039_v5 = vld [vmem:[%s6426_s7 + $0xba8] ss:$16 sps:$4 sm:$0xff]  }
 0x176   : > { %3878 = vmatprep.subr.bf16.mxu0 %v5960_v6  ;;  %4302 = vmatprep.subr.bf16.mxu1 %v5963_v7  ;;  %v6044_v6 = vld [vmem:[%s6426_s7 + $0xbc4] ss:$16 sps:$4 sm:$0xff]   ;;  %v6047_v7 = vld [vmem:[%s6426_s7 + $0xbcc] ss:$16 sps:$4 sm:$0xff]  }
 0x178   : > { %3858 = vmatmul.mubr.bf16.vlgmr.msra.gmra.mrb[0].mxu0 %v4780_v4  ;;  %4282 = vmatmul.mubr.bf16.vlgmr.msra.gmra.mrb[0].mxu1 %v4780_v4  ;;  %v6050_v4 = vld [vmem:[%s6426_s7 + $0xbe4] ss:$16 sps:$4 sm:$0xff]  }
 0x179   : > { %3879 = vmatpush1.bf16.msra.mxu0 %v5958_v9  ;;  %4303 = vmatpush1.bf16.msra.mxu1 %v5961_v11  ;;  %v6053_v9 = vld [vmem:[%s6426_s7 + $0xbec] ss:$16 sps:$4 sm:$0xff]   ;;  %v6048_v11 = vld [vmem:[%s6426_s7 + $0xbe0] ss:$16 sps:$4 sm:$0xff]  }
 0x17a   : > { %3880 = vmatprep.subr.bf16.mxu0 %v5966_v13  ;;  %4304 = vmatprep.subr.bf16.mxu1 %v5969_v14  ;;  %v6051_v13 = vld [vmem:[%s6426_s7 + $0xbe8] ss:$16 sps:$4 sm:$0xff]   ;;  %v6056_v14 = vld [vmem:[%s6426_s7 + $0xc04] ss:$16 sps:$4 sm:$0xff]  }
 0x17b   : > { %3867 = vmatprep.mubr.bf16.mxu0 %v4797_v17  ;;  %4291 = vmatprep.mubr.bf16.mxu1 %v4797_v17  ;;  %v370_v17 = vld [vmem:[%s6428_s8 + $0xa8] sm:$0xff] }
 0x17d   : > { %3881 = vmatpush1.bf16.msra.mxu0 %v5964_v15  ;;  %4305 = vmatpush1.bf16.msra.mxu1 %v5967_v16  ;;  %v6059_v15 = vld [vmem:[%s6426_s7 + $0xc0c] ss:$16 sps:$4 sm:$0xff]   ;;  %v4782_v16 = vcombine.low %v6814_v18, %v6817_v19  ;;  %v6060_v18 = vld [vmem:[%s6426_s7 + $0xc20] ss:$16 sps:$4 sm:$0xff]   ;;  %v6063_v19 = vld [vmem:[%s6426_s7 + $0xc28] ss:$16 sps:$4 sm:$0xff]  }
 0x17e   : > { %3882 = vmatprep.subr.bf16.mxu0 %v5972_v10  ;;  %4306 = vmatprep.subr.bf16.mxu1 %v5975_v12  ;;  %v378_v10 = vld [vmem:[%s6428_s8 + $0xe8] sm:$0xff]  ;;  %v6054_v12 = vld [vmem:[%s6426_s7 + $0xc00] ss:$16 sps:$4 sm:$0xff]  }
 0x180   : > { %3868 = vmatmul.mubr.bf16.gmra.mrb[4].mxu0 %v4796_v20  ;;  %4292 = vmatmul.mubr.bf16.gmra.mrb[4].mxu1 %v4796_v20  ;;  %v6057_v20 = vld [vmem:[%s6426_s7 + $0xc08] ss:$16 sps:$4 sm:$0xff]  }
 0x181   : > { %3883 = vmatpush1.bf16.msra.mxu0 %v5970_v21  ;;  %4307 = vmatpush1.bf16.msra.mxu1 %v5973_v22  ;;  %v6062_v21 = vld [vmem:[%s6426_s7 + $0xc24] ss:$16 sps:$4 sm:$0xff]   ;;  %v6065_v22 = vld [vmem:[%s6426_s7 + $0xc2c] ss:$16 sps:$4 sm:$0xff]  }
 0x182   : > { %3884 = vmatprep.subr.bf16.mxu0 %v5978_v23  ;;  %4308 = vmatprep.subr.bf16.mxu1 %v5981_v24  ;;  %v4799_v23 = vcombine.high %v370_v17, %v378_v10  ;;  %v6068_v24 = vld [vmem:[%s6426_s7 + $0xc44] ss:$16 sps:$4 sm:$0xff]  }
 0x183   : > { %3910 = vmatprep.mubr.bf16.mxu0 %v4783_v25  ;;  %4334 = vmatprep.mubr.bf16.mxu1 %v4783_v25  ;;  %v6071_v25 = vld [vmem:[%s6426_s7 + $0xc4c] ss:$16 sps:$4 sm:$0xff]  }
 0x185   : > { %3885 = vmatpush1.bf16.msra.mxu0 %v5976_v26  ;;  %4309 = vmatpush1.bf16.msra.mxu1 %v5979_v27  ;;  %v4798_v26 = vcombine.low %v370_v17, %v378_v10  ;;  %v6890_v27 = vld [vmem:[%s6428_s8 + $0x30] sm:$0xff]  ;;  %v6141_v17 = vld [vmem:[%s6426_s7 + $0xdc8] ss:$16 sps:$4 sm:$0xff]  }
 0x186   : > { %3886 = vmatprep.subr.bf16.mxu0 %v5984_v28  ;;  %4310 = vmatprep.subr.bf16.mxu1 %v5987_v29  ;;  %v6893_v28 = vld [vmem:[%s6428_s8 + $0x70] sm:$0xff] }
 0x187   : > { %v6066_v29 = vld [vmem:[%s6426_s7 + $0xc40] ss:$16 sps:$4 sm:$0xff]   ;;  %v6146_v10 = vld [vmem:[%s6426_s7 + $0xde4] ss:$16 sps:$4 sm:$0xff]  }
 0x189   : > { %3887 = vmatpush1.bf16.msra.mxu0 %v5982_v30  ;;  %4311 = vmatpush1.bf16.msra.mxu1 %v5985_v31  ;;  %v6069_v30 = vld [vmem:[%s6426_s7 + $0xc48] ss:$16 sps:$4 sm:$0xff]   ;;  %v6074_v31 = vld [vmem:[%s6426_s7 + $0xc64] ss:$16 sps:$4 sm:$0xff]  }
 0x18a   : > { %3888 = vmatprep.subr.bf16.mxu0 %v5990_v32  ;;  %4312 = vmatprep.subr.bf16.mxu1 %v5993_v33  ;;  %v6077_v32 = vld [vmem:[%s6426_s7 + $0xc6c] ss:$16 sps:$4 sm:$0xff]   ;;  %v4785_v33 = vcombine.high %v6890_v27, %v6893_v28 }
 0x18d   : > { %3889 = vmatpush1.bf16.msra.mxu0 %v5988_v34  ;;  %4313 = vmatpush1.bf16.msra.mxu1 %v5991_v35  ;;  %v6072_v34 = vld [vmem:[%s6426_s7 + $0xc60] ss:$16 sps:$4 sm:$0xff]   ;;  %v6075_v35 = vld [vmem:[%s6426_s7 + $0xc68] ss:$16 sps:$4 sm:$0xff]  }
 0x18e   : > { %3890 = vmatprep.subr.bf16.mxu0 %v5996_v36  ;;  %4314 = vmatprep.subr.bf16.mxu1 %v5999_v37  ;;  %v6080_v36 = vld [vmem:[%s6426_s7 + $0xc84] ss:$16 sps:$4 sm:$0xff]   ;;  %v6083_v37 = vld [vmem:[%s6426_s7 + $0xc8c] ss:$16 sps:$4 sm:$0xff]  }
 0x191   : > { %3891 = vmatpush1.bf16.msra.mxu0 %v5994_v38  ;;  %4315 = vmatpush1.bf16.msra.mxu1 %v5997_v39  ;;  %v6078_v38 = vld [vmem:[%s6426_s7 + $0xc80] ss:$16 sps:$4 sm:$0xff]   ;;  %v6081_v39 = vld [vmem:[%s6426_s7 + $0xc88] ss:$16 sps:$4 sm:$0xff]  }
 0x192   : > { %3892 = vmatprep.subr.bf16.mxu0 %v6002_v40  ;;  %4316 = vmatprep.subr.bf16.mxu1 %v6005_v41  ;;  %v6086_v40 = vld [vmem:[%s6426_s7 + $0xca4] ss:$16 sps:$4 sm:$0xff]   ;;  %v6089_v41 = vld [vmem:[%s6426_s7 + $0xcac] ss:$16 sps:$4 sm:$0xff]  }
 0x195   : > { %3893 = vmatpush1.bf16.msra.mxu0 %v6000_v42  ;;  %4317 = vmatpush1.bf16.msra.mxu1 %v6003_v43  ;;  %v6084_v42 = vld [vmem:[%s6426_s7 + $0xca0] ss:$16 sps:$4 sm:$0xff]   ;;  %v6087_v43 = vld [vmem:[%s6426_s7 + $0xca8] ss:$16 sps:$4 sm:$0xff]  }
 0x196   : > { %3894 = vmatprep.subr.bf16.mxu0 %v6008_v44  ;;  %4318 = vmatprep.subr.bf16.mxu1 %v6011_v45  ;;  %v6092_v44 = vld [vmem:[%s6426_s7 + $0xcc4] ss:$16 sps:$4 sm:$0xff]   ;;  %v6095_v45 = vld [vmem:[%s6426_s7 + $0xccc] ss:$16 sps:$4 sm:$0xff]  }
 0x199   : > { %3895 = vmatpush1.bf16.msra.mxu0 %v6006_v46  ;;  %4319 = vmatpush1.bf16.msra.mxu1 %v6009_v47  ;;  %v6090_v46 = vld [vmem:[%s6426_s7 + $0xcc0] ss:$16 sps:$4 sm:$0xff]   ;;  %v6093_v47 = vld [vmem:[%s6426_s7 + $0xcc8] ss:$16 sps:$4 sm:$0xff]  }
 0x19a   : > { %3896 = vmatprep.subr.bf16.mxu0 %v6014_v48  ;;  %4320 = vmatprep.subr.bf16.mxu1 %v6017_v49  ;;  %v6098_v48 = vld [vmem:[%s6426_s7 + $0xce4] ss:$16 sps:$4 sm:$0xff]   ;;  %v6101_v49 = vld [vmem:[%s6426_s7 + $0xcec] ss:$16 sps:$4 sm:$0xff]  }
 0x19d   : > { %3897 = vmatpush1.bf16.msra.mxu0 %v6012_v50  ;;  %4321 = vmatpush1.bf16.msra.mxu1 %v6015_v51  ;;  %v6096_v50 = vld [vmem:[%s6426_s7 + $0xce0] ss:$16 sps:$4 sm:$0xff]   ;;  %v6099_v51 = vld [vmem:[%s6426_s7 + $0xce8] ss:$16 sps:$4 sm:$0xff]  }
 0x19e   : > { %3898 = vmatprep.subr.bf16.mxu0 %v6020_v52  ;;  %4322 = vmatprep.subr.bf16.mxu1 %v6023_v53  ;;  %v6104_v52 = vld [vmem:[%s6426_s7 + $0xd04] ss:$16 sps:$4 sm:$0xff]   ;;  %v6107_v53 = vld [vmem:[%s6426_s7 + $0xd0c] ss:$16 sps:$4 sm:$0xff]  }
 0x1a1   : > { %3899 = vmatpush1.bf16.msra.mxu0 %v6018_v54  ;;  %4323 = vmatpush1.bf16.msra.mxu1 %v6021_v55  ;;  %v6102_v54 = vld [vmem:[%s6426_s7 + $0xd00] ss:$16 sps:$4 sm:$0xff]   ;;  %v6105_v55 = vld [vmem:[%s6426_s7 + $0xd08] ss:$16 sps:$4 sm:$0xff]  }
 0x1a2   : > { %3900 = vmatprep.subr.bf16.mxu0 %v6026_v56  ;;  %4324 = vmatprep.subr.bf16.mxu1 %v6029_v57  ;;  %v6110_v56 = vld [vmem:[%s6426_s7 + $0xd24] ss:$16 sps:$4 sm:$0xff]   ;;  %v6113_v57 = vld [vmem:[%s6426_s7 + $0xd2c] ss:$16 sps:$4 sm:$0xff]  }
 0x1a5   : > { %3901 = vmatpush1.bf16.msra.mxu0 %v6024_v59  ;;  %4325 = vmatpush1.bf16.msra.mxu1 %v6027_v61  ;;  %v6108_v59 = vld [vmem:[%s6426_s7 + $0xd20] ss:$16 sps:$4 sm:$0xff]   ;;  %v6111_v61 = vld [vmem:[%s6426_s7 + $0xd28] ss:$16 sps:$4 sm:$0xff]  }
 0x1a6   : > { %3902 = vmatprep.subr.bf16.mxu0 %v6032_v62  ;;  %4326 = vmatprep.subr.bf16.mxu1 %v6035_v63  ;;  %v6116_v62 = vld [vmem:[%s6426_s7 + $0xd44] ss:$16 sps:$4 sm:$0xff]   ;;  %v6119_v63 = vld [vmem:[%s6426_s7 + $0xd4c] ss:$16 sps:$4 sm:$0xff]  }
 0x1a9   : > { %3903 = vmatpush1.bf16.msra.mxu0 %v6030_v58  ;;  %4327 = vmatpush1.bf16.msra.mxu1 %v6033_v60  ;;  %v6114_v58 = vld [vmem:[%s6426_s7 + $0xd40] ss:$16 sps:$4 sm:$0xff]   ;;  %v6117_v60 = vld [vmem:[%s6426_s7 + $0xd48] ss:$16 sps:$4 sm:$0xff]  }
 0x1aa   : > { %3904 = vmatprep.subr.bf16.mxu0 %v6038_v0  ;;  %4328 = vmatprep.subr.bf16.mxu1 %v6041_v1  ;;  %v6122_v0 = vld [vmem:[%s6426_s7 + $0xd64] ss:$16 sps:$4 sm:$0xff]   ;;  %v6125_v1 = vld [vmem:[%s6426_s7 + $0xd6c] ss:$16 sps:$4 sm:$0xff]  }
 0x1ad   : > { %3905 = vmatpush1.bf16.msra.mxu0 %v6036_v3  ;;  %4329 = vmatpush1.bf16.msra.mxu1 %v6039_v5  ;;  %v6120_v3 = vld [vmem:[%s6426_s7 + $0xd60] ss:$16 sps:$4 sm:$0xff]   ;;  %v6123_v5 = vld [vmem:[%s6426_s7 + $0xd68] ss:$16 sps:$4 sm:$0xff]  }
 0x1ae   : > { %3906 = vmatprep.subr.bf16.mxu0 %v6044_v6  ;;  %4330 = vmatprep.subr.bf16.mxu1 %v6047_v7  ;;  %v6128_v6 = vld [vmem:[%s6426_s7 + $0xd84] ss:$16 sps:$4 sm:$0xff]   ;;  %v6131_v7 = vld [vmem:[%s6426_s7 + $0xd8c] ss:$16 sps:$4 sm:$0xff]  }
 0x1b1   : > { %3907 = vmatpush1.bf16.msra.mxu0 %v6042_v8  ;;  %4331 = vmatpush1.bf16.msra.mxu1 %v6045_v2  ;;  %v6126_v8 = vld [vmem:[%s6426_s7 + $0xd80] ss:$16 sps:$4 sm:$0xff]   ;;  %v6129_v2 = vld [vmem:[%s6426_s7 + $0xd88] ss:$16 sps:$4 sm:$0xff]  }
 0x1b2   : > { %3908 = vmatprep.subr.bf16.mxu0 %v6050_v4  ;;  %4332 = vmatprep.subr.bf16.mxu1 %v6053_v9  ;;  %v6134_v4 = vld [vmem:[%s6426_s7 + $0xda4] ss:$16 sps:$4 sm:$0xff]   ;;  %v6137_v9 = vld [vmem:[%s6426_s7 + $0xdac] ss:$16 sps:$4 sm:$0xff]  }
 0x1b5   : > { %3909 = vmatpush1.bf16.msra.mxu0 %v6048_v11  ;;  %4333 = vmatpush1.bf16.msra.mxu1 %v6051_v13  ;;  %v6132_v11 = vld [vmem:[%s6426_s7 + $0xda0] ss:$16 sps:$4 sm:$0xff]   ;;  %v6135_v13 = vld [vmem:[%s6426_s7 + $0xda8] ss:$16 sps:$4 sm:$0xff]  }
 0x1b6   : > { %3931 = vmatprep.subr.bf16.mxu0 %v6056_v14  ;;  %4355 = vmatprep.subr.bf16.mxu1 %v6059_v15  ;;  %v6140_v14 = vld [vmem:[%s6426_s7 + $0xdc4] ss:$16 sps:$4 sm:$0xff]   ;;  %v6143_v15 = vld [vmem:[%s6426_s7 + $0xdcc] ss:$16 sps:$4 sm:$0xff]  }
 0x1b8   : > { %3911 = vmatmul.mubr.bf16.vlgmr.msra.gmra.mrb[0].mxu0 %v4782_v16  ;;  %4335 = vmatmul.mubr.bf16.vlgmr.msra.gmra.mrb[0].mxu1 %v4782_v16  ;;  %v6138_v16 = vld [vmem:[%s6426_s7 + $0xdc0] ss:$16 sps:$4 sm:$0xff]  }
 0x1b9   : > { %3932 = vmatpush1.bf16.msra.mxu0 %v6054_v12  ;;  %4356 = vmatpush1.bf16.msra.mxu1 %v6057_v20  ;;  %v6149_v12 = vld [vmem:[%s6426_s7 + $0xdec] ss:$16 sps:$4 sm:$0xff]   ;;  %v6144_v20 = vld [vmem:[%s6426_s7 + $0xde0] ss:$16 sps:$4 sm:$0xff]  }
 0x1ba   : > { %3933 = vmatprep.subr.bf16.mxu0 %v6062_v21  ;;  %4357 = vmatprep.subr.bf16.mxu1 %v6065_v22  ;;  %v6147_v21 = vld [vmem:[%s6426_s7 + $0xde8] ss:$16 sps:$4 sm:$0xff]   ;;  %v6152_v22 = vld [vmem:[%s6426_s7 + $0xe04] ss:$16 sps:$4 sm:$0xff]  }
 0x1bb   : > { %3920 = vmatprep.mubr.bf16.mxu0 %v4799_v23  ;;  %4344 = vmatprep.mubr.bf16.mxu1 %v4799_v23  ;;  %v6155_v23 = vld [vmem:[%s6426_s7 + $0xe0c] ss:$16 sps:$4 sm:$0xff]  }
 0x1bd   : > { %3934 = vmatpush1.bf16.msra.mxu0 %v6060_v18  ;;  %4358 = vmatpush1.bf16.msra.mxu1 %v6063_v19  ;;  %v4784_v18 = vcombine.low %v6890_v27, %v6893_v28  ;;  %v371_v19 = vld [vmem:[%s6428_s8 + $0xb0] sm:$0xff]  ;;  %v6159_v28 = vld [vmem:[%s6426_s7 + $0xe28] ss:$16 sps:$4 sm:$0xff]  }
 0x1be   : > { %3935 = vmatprep.subr.bf16.mxu0 %v6068_v24  ;;  %4359 = vmatprep.subr.bf16.mxu1 %v6071_v25  ;;  %v379_v24 = vld [vmem:[%s6428_s8 + $0xf0] sm:$0xff] }
 0x1bf   : > { %v6150_v25 = vld [vmem:[%s6426_s7 + $0xe00] ss:$16 sps:$4 sm:$0xff]  }
 0x1c0   : > { %3921 = vmatmul.mubr.bf16.gmra.mrb[4].mxu0 %v4798_v26  ;;  %4345 = vmatmul.mubr.bf16.gmra.mrb[4].mxu1 %v4798_v26  ;;  %v6153_v26 = vld [vmem:[%s6426_s7 + $0xe08] ss:$16 sps:$4 sm:$0xff]   ;;  %v6156_v27 = vld [vmem:[%s6426_s7 + $0xe20] ss:$16 sps:$4 sm:$0xff]  }
 0x1c1   : > { %3936 = vmatpush1.bf16.msra.mxu0 %v6066_v29  ;;  %4360 = vmatpush1.bf16.msra.mxu1 %v6069_v30  ;;  %v6158_v29 = vld [vmem:[%s6426_s7 + $0xe24] ss:$16 sps:$4 sm:$0xff]   ;;  %v6161_v30 = vld [vmem:[%s6426_s7 + $0xe2c] ss:$16 sps:$4 sm:$0xff]  }
 0x1c2   : > { %3937 = vmatprep.subr.bf16.mxu0 %v6074_v31  ;;  %4361 = vmatprep.subr.bf16.mxu1 %v6077_v32  ;;  %v4801_v31 = vcombine.high %v371_v19, %v379_v24  ;;  %v6164_v32 = vld [vmem:[%s6426_s7 + $0xe44] ss:$16 sps:$4 sm:$0xff]  }
 0x1c3   : > { %3963 = vmatprep.mubr.bf16.mxu0 %v4785_v33  ;;  %4387 = vmatprep.mubr.bf16.mxu1 %v4785_v33  ;;  %v6167_v33 = vld [vmem:[%s6426_s7 + $0xe4c] ss:$16 sps:$4 sm:$0xff]  }
 0x1c5   : > { %3938 = vmatpush1.bf16.msra.mxu0 %v6072_v34  ;;  %4362 = vmatpush1.bf16.msra.mxu1 %v6075_v35  ;;  %v4800_v34 = vcombine.low %v371_v19, %v379_v24  ;;  %v6966_v35 = vld [vmem:[%s6428_s8 + $0x38] sm:$0xff]  ;;  %v6242_v24 = vld [vmem:[%s6426_s7 + $0xfe4] ss:$16 sps:$4 sm:$0xff]  }
 0x1c6   : > { %3939 = vmatprep.subr.bf16.mxu0 %v6080_v36  ;;  %4363 = vmatprep.subr.bf16.mxu1 %v6083_v37  ;;  %v6969_v36 = vld [vmem:[%s6428_s8 + $0x78] sm:$0xff]  ;;  %v6162_v37 = vld [vmem:[%s6426_s7 + $0xe40] ss:$16 sps:$4 sm:$0xff]  }
 0x1c7   : > { %v6237_v19 = vld [vmem:[%s6426_s7 + $0xfc8] ss:$16 sps:$4 sm:$0xff]  }
 0x1c9   : > { %3940 = vmatpush1.bf16.msra.mxu0 %v6078_v38  ;;  %4364 = vmatpush1.bf16.msra.mxu1 %v6081_v39  ;;  %v6165_v38 = vld [vmem:[%s6426_s7 + $0xe48] ss:$16 sps:$4 sm:$0xff]   ;;  %v6170_v39 = vld [vmem:[%s6426_s7 + $0xe64] ss:$16 sps:$4 sm:$0xff]  }
 0x1ca   : > { %3941 = vmatprep.subr.bf16.mxu0 %v6086_v40  ;;  %4365 = vmatprep.subr.bf16.mxu1 %v6089_v41  ;;  %v6173_v40 = vld [vmem:[%s6426_s7 + $0xe6c] ss:$16 sps:$4 sm:$0xff]   ;;  %v4787_v41 = vcombine.high %v6966_v35, %v6969_v36 }
 0x1cd   : > { %3942 = vmatpush1.bf16.msra.mxu0 %v6084_v42  ;;  %4366 = vmatpush1.bf16.msra.mxu1 %v6087_v43  ;;  %v6168_v42 = vld [vmem:[%s6426_s7 + $0xe60] ss:$16 sps:$4 sm:$0xff]   ;;  %v6171_v43 = vld [vmem:[%s6426_s7 + $0xe68] ss:$16 sps:$4 sm:$0xff]  }
 0x1ce   : > { %3943 = vmatprep.subr.bf16.mxu0 %v6092_v44  ;;  %4367 = vmatprep.subr.bf16.mxu1 %v6095_v45  ;;  %v6176_v44 = vld [vmem:[%s6426_s7 + $0xe84] ss:$16 sps:$4 sm:$0xff]   ;;  %v6179_v45 = vld [vmem:[%s6426_s7 + $0xe8c] ss:$16 sps:$4 sm:$0xff]  }
 0x1d1   : > { %3944 = vmatpush1.bf16.msra.mxu0 %v6090_v46  ;;  %4368 = vmatpush1.bf16.msra.mxu1 %v6093_v47  ;;  %v6174_v46 = vld [vmem:[%s6426_s7 + $0xe80] ss:$16 sps:$4 sm:$0xff]   ;;  %v6177_v47 = vld [vmem:[%s6426_s7 + $0xe88] ss:$16 sps:$4 sm:$0xff]  }
 0x1d2   : > { %3945 = vmatprep.subr.bf16.mxu0 %v6098_v48  ;;  %4369 = vmatprep.subr.bf16.mxu1 %v6101_v49  ;;  %v6182_v48 = vld [vmem:[%s6426_s7 + $0xea4] ss:$16 sps:$4 sm:$0xff]   ;;  %v6185_v49 = vld [vmem:[%s6426_s7 + $0xeac] ss:$16 sps:$4 sm:$0xff]  }
 0x1d5   : > { %3946 = vmatpush1.bf16.msra.mxu0 %v6096_v50  ;;  %4370 = vmatpush1.bf16.msra.mxu1 %v6099_v51  ;;  %v6180_v50 = vld [vmem:[%s6426_s7 + $0xea0] ss:$16 sps:$4 sm:$0xff]   ;;  %v6183_v51 = vld [vmem:[%s6426_s7 + $0xea8] ss:$16 sps:$4 sm:$0xff]  }
 0x1d6   : > { %3947 = vmatprep.subr.bf16.mxu0 %v6104_v52  ;;  %4371 = vmatprep.subr.bf16.mxu1 %v6107_v53  ;;  %v6188_v52 = vld [vmem:[%s6426_s7 + $0xec4] ss:$16 sps:$4 sm:$0xff]   ;;  %v6191_v53 = vld [vmem:[%s6426_s7 + $0xecc] ss:$16 sps:$4 sm:$0xff]  }
 0x1d9   : > { %3948 = vmatpush1.bf16.msra.mxu0 %v6102_v54  ;;  %4372 = vmatpush1.bf16.msra.mxu1 %v6105_v55  ;;  %v6186_v54 = vld [vmem:[%s6426_s7 + $0xec0] ss:$16 sps:$4 sm:$0xff]   ;;  %v6189_v55 = vld [vmem:[%s6426_s7 + $0xec8] ss:$16 sps:$4 sm:$0xff]  }
 0x1da   : > { %3949 = vmatprep.subr.bf16.mxu0 %v6110_v56  ;;  %4373 = vmatprep.subr.bf16.mxu1 %v6113_v57  ;;  %v6194_v56 = vld [vmem:[%s6426_s7 + $0xee4] ss:$16 sps:$4 sm:$0xff]   ;;  %v6197_v57 = vld [vmem:[%s6426_s7 + $0xeec] ss:$16 sps:$4 sm:$0xff]  }
 0x1dd   : > { %3950 = vmatpush1.bf16.msra.mxu0 %v6108_v59  ;;  %4374 = vmatpush1.bf16.msra.mxu1 %v6111_v61  ;;  %v6192_v59 = vld [vmem:[%s6426_s7 + $0xee0] ss:$16 sps:$4 sm:$0xff]   ;;  %v6195_v61 = vld [vmem:[%s6426_s7 + $0xee8] ss:$16 sps:$4 sm:$0xff]  }
 0x1de   : > { %3951 = vmatprep.subr.bf16.mxu0 %v6116_v62  ;;  %4375 = vmatprep.subr.bf16.mxu1 %v6119_v63  ;;  %v6200_v62 = vld [vmem:[%s6426_s7 + $0xf04] ss:$16 sps:$4 sm:$0xff]   ;;  %v6203_v63 = vld [vmem:[%s6426_s7 + $0xf0c] ss:$16 sps:$4 sm:$0xff]  }
 0x1e1   : > { %3952 = vmatpush1.bf16.msra.mxu0 %v6114_v58  ;;  %4376 = vmatpush1.bf16.msra.mxu1 %v6117_v60  ;;  %v6198_v58 = vld [vmem:[%s6426_s7 + $0xf00] ss:$16 sps:$4 sm:$0xff]   ;;  %v6201_v60 = vld [vmem:[%s6426_s7 + $0xf08] ss:$16 sps:$4 sm:$0xff]  }
 0x1e2   : > { %3953 = vmatprep.subr.bf16.mxu0 %v6122_v0  ;;  %4377 = vmatprep.subr.bf16.mxu1 %v6125_v1  ;;  %v6206_v0 = vld [vmem:[%s6426_s7 + $0xf24] ss:$16 sps:$4 sm:$0xff]   ;;  %v6209_v1 = vld [vmem:[%s6426_s7 + $0xf2c] ss:$16 sps:$4 sm:$0xff]  }
 0x1e5   : > { %3954 = vmatpush1.bf16.msra.mxu0 %v6120_v3  ;;  %4378 = vmatpush1.bf16.msra.mxu1 %v6123_v5  ;;  %v6204_v3 = vld [vmem:[%s6426_s7 + $0xf20] ss:$16 sps:$4 sm:$0xff]   ;;  %v6207_v5 = vld [vmem:[%s6426_s7 + $0xf28] ss:$16 sps:$4 sm:$0xff]  }
 0x1e6   : > { %3955 = vmatprep.subr.bf16.mxu0 %v6128_v6  ;;  %4379 = vmatprep.subr.bf16.mxu1 %v6131_v7  ;;  %v6212_v6 = vld [vmem:[%s6426_s7 + $0xf44] ss:$16 sps:$4 sm:$0xff]   ;;  %v6215_v7 = vld [vmem:[%s6426_s7 + $0xf4c] ss:$16 sps:$4 sm:$0xff]  }
 0x1e9   : > { %3956 = vmatpush1.bf16.msra.mxu0 %v6126_v8  ;;  %4380 = vmatpush1.bf16.msra.mxu1 %v6129_v2  ;;  %v6210_v8 = vld [vmem:[%s6426_s7 + $0xf40] ss:$16 sps:$4 sm:$0xff]   ;;  %v6213_v2 = vld [vmem:[%s6426_s7 + $0xf48] ss:$16 sps:$4 sm:$0xff]  }
 0x1ea   : > { %3957 = vmatprep.subr.bf16.mxu0 %v6134_v4  ;;  %4381 = vmatprep.subr.bf16.mxu1 %v6137_v9  ;;  %v6218_v4 = vld [vmem:[%s6426_s7 + $0xf64] ss:$16 sps:$4 sm:$0xff]   ;;  %v6221_v9 = vld [vmem:[%s6426_s7 + $0xf6c] ss:$16 sps:$4 sm:$0xff]  }
 0x1ed   : > { %3958 = vmatpush1.bf16.msra.mxu0 %v6132_v11  ;;  %4382 = vmatpush1.bf16.msra.mxu1 %v6135_v13  ;;  %v6216_v11 = vld [vmem:[%s6426_s7 + $0xf60] ss:$16 sps:$4 sm:$0xff]   ;;  %v6219_v13 = vld [vmem:[%s6426_s7 + $0xf68] ss:$16 sps:$4 sm:$0xff]  }
 0x1ee   : > { %3959 = vmatprep.subr.bf16.mxu0 %v6140_v14  ;;  %4383 = vmatprep.subr.bf16.mxu1 %v6143_v15  ;;  %v6224_v14 = vld [vmem:[%s6426_s7 + $0xf84] ss:$16 sps:$4 sm:$0xff]   ;;  %v6227_v15 = vld [vmem:[%s6426_s7 + $0xf8c] ss:$16 sps:$4 sm:$0xff]  }
 0x1f1   : > { %3960 = vmatpush1.bf16.msra.mxu0 %v6138_v16  ;;  %4384 = vmatpush1.bf16.msra.mxu1 %v6141_v17  ;;  %v6222_v16 = vld [vmem:[%s6426_s7 + $0xf80] ss:$16 sps:$4 sm:$0xff]   ;;  %v6225_v17 = vld [vmem:[%s6426_s7 + $0xf88] ss:$16 sps:$4 sm:$0xff]  }
 0x1f2   : > { %3961 = vmatprep.subr.bf16.mxu0 %v6146_v10  ;;  %4385 = vmatprep.subr.bf16.mxu1 %v6149_v12  ;;  %v6230_v10 = vld [vmem:[%s6426_s7 + $0xfa4] ss:$16 sps:$4 sm:$0xff]   ;;  %v6233_v12 = vld [vmem:[%s6426_s7 + $0xfac] ss:$16 sps:$4 sm:$0xff]  }
 0x1f5   : > { %3962 = vmatpush1.bf16.msra.mxu0 %v6144_v20  ;;  %4386 = vmatpush1.bf16.msra.mxu1 %v6147_v21  ;;  %v6228_v20 = vld [vmem:[%s6426_s7 + $0xfa0] ss:$16 sps:$4 sm:$0xff]   ;;  %v6231_v21 = vld [vmem:[%s6426_s7 + $0xfa8] ss:$16 sps:$4 sm:$0xff]  }
 0x1f6   : > { %3984 = vmatprep.subr.bf16.mxu0 %v6152_v22  ;;  %4408 = vmatprep.subr.bf16.mxu1 %v6155_v23  ;;  %v6236_v22 = vld [vmem:[%s6426_s7 + $0xfc4] ss:$16 sps:$4 sm:$0xff]   ;;  %v6239_v23 = vld [vmem:[%s6426_s7 + $0xfcc] ss:$16 sps:$4 sm:$0xff]  }
 0x1f8   : > { %3964 = vmatmul.mubr.bf16.vlgmr.msra.gmra.mrb[0].mxu0 %v4784_v18  ;;  %4388 = vmatmul.mubr.bf16.vlgmr.msra.gmra.mrb[0].mxu1 %v4784_v18  ;;  %v6234_v18 = vld [vmem:[%s6426_s7 + $0xfc0] ss:$16 sps:$4 sm:$0xff]  }
 0x1f9   : > { %3985 = vmatpush1.bf16.msra.mxu0 %v6150_v25  ;;  %4409 = vmatpush1.bf16.msra.mxu1 %v6153_v26  ;;  %v6245_v25 = vld [vmem:[%s6426_s7 + $0xfec] ss:$16 sps:$4 sm:$0xff]   ;;  %v6240_v26 = vld [vmem:[%s6426_s7 + $0xfe0] ss:$16 sps:$4 sm:$0xff]  }
 0x1fa   : > { %3986 = vmatprep.subr.bf16.mxu0 %v6158_v29  ;;  %4410 = vmatprep.subr.bf16.mxu1 %v6161_v30  ;;  %v6243_v29 = vld [vmem:[%s6426_s7 + $0xfe8] ss:$16 sps:$4 sm:$0xff]  }
 0x1fb   : > { %3973 = vmatprep.mubr.bf16.mxu0 %v4801_v31  ;;  %4397 = vmatprep.mubr.bf16.mxu1 %v4801_v31  ;;  %v372_v30 = vld [vmem:[%s6428_s8 + $0xb8] sm:$0xff] }
 0x1fc   : > { %v380_v31 = vld [vmem:[%s6428_s8 + $0xf8] sm:$0xff] }
 0x1fd   : > { %3987 = vmatpush1.bf16.msra.mxu0 %v6156_v27  ;;  %4411 = vmatpush1.bf16.msra.mxu1 %v6159_v28  ;;  %v4786_v27 = vcombine.low %v6966_v35, %v6969_v36  ;;  %v4803_v28 = vcombine.high %v372_v30, %v380_v31 }
 0x1fe   : > { %3988 = vmatprep.subr.bf16.mxu0 %v6164_v32  ;;  %4412 = vmatprep.subr.bf16.mxu1 %v6167_v33  ;;  %v4802_v32 = vcombine.low %v372_v30, %v380_v31  ;;  %v333_v33 = vld [vmem:[#allocation2] sm:$0xff] }
 0x200   : > { %3974 = vmatmul.mubr.bf16.gmra.mrb[4].mxu0 %v4800_v34  ;;  %4398 = vmatmul.mubr.bf16.gmra.mrb[4].mxu1 %v4800_v34  ;;  %v335_v34 = vld [vmem:[#allocation2 + $0x10] sm:$0xff] }
 0x201   : > { %3989 = vmatpush1.bf16.msra.mxu0 %v6162_v37  ;;  %4413 = vmatpush1.bf16.msra.mxu1 %v6165_v38  ;;  %v334_v37 = vld [vmem:[#allocation2 + $0x8] sm:$0xff]  ;;  %v336_v38 = vld [vmem:[#allocation2 + $0x18] sm:$0xff] }
 0x202   : > { %3990 = vmatprep.subr.bf16.mxu0 %v6170_v39  ;;  %4414 = vmatprep.subr.bf16.mxu1 %v6173_v40 }
 0x203   : > { %4016 = vmatprep.mubr.bf16.mxu0 %v4787_v41  ;;  %4440 = vmatprep.mubr.bf16.mxu1 %v4787_v41  ;;  %v337_v41 = vld [vmem:[#allocation2 + $0x20] sm:$0xff] }
 0x205   : > { %3991 = vmatpush1.bf16.msra.mxu0 %v6168_v42  ;;  %4415 = vmatpush1.bf16.msra.mxu1 %v6171_v43  ;;  %v339_v42 = vld [vmem:[#allocation2 + $0x30] sm:$0xff] }
 0x206   : > { %3992 = vmatprep.subr.bf16.mxu0 %v6176_v44  ;;  %4416 = vmatprep.subr.bf16.mxu1 %v6179_v45  ;;  %v338_v45 = vld [vmem:[#allocation2 + $0x28] sm:$0xff] }
 0x209   : > { %3993 = vmatpush1.bf16.msra.mxu0 %v6174_v46  ;;  %4417 = vmatpush1.bf16.msra.mxu1 %v6177_v47  ;;  %v340_v46 = vld [vmem:[#allocation2 + $0x38] sm:$0xff] }
 0x20a   : > { %3994 = vmatprep.subr.bf16.mxu0 %v6182_v48  ;;  %4418 = vmatprep.subr.bf16.mxu1 %v6185_v49 }
 0x20d   : > { %3995 = vmatpush1.bf16.msra.mxu0 %v6180_v50  ;;  %4419 = vmatpush1.bf16.msra.mxu1 %v6183_v51 }
 0x20e   : > { %3996 = vmatprep.subr.bf16.mxu0 %v6188_v52  ;;  %4420 = vmatprep.subr.bf16.mxu1 %v6191_v53 }
 0x211   : > { %3997 = vmatpush1.bf16.msra.mxu0 %v6186_v54  ;;  %4421 = vmatpush1.bf16.msra.mxu1 %v6189_v55 }
 0x212   : > { %3998 = vmatprep.subr.bf16.mxu0 %v6194_v56  ;;  %4422 = vmatprep.subr.bf16.mxu1 %v6197_v57  ;;  %v341_v57 = vld [vmem:[#allocation2 + $0x40] sm:$0xff] }
 0x215   : > { %3999 = vmatpush1.bf16.msra.mxu0 %v6192_v59  ;;  %4423 = vmatpush1.bf16.msra.mxu1 %v6195_v61  ;;  %v343_v59 = vld [vmem:[#allocation2 + $0x50] sm:$0xff]  ;;  %v342_v61 = vld [vmem:[#allocation2 + $0x48] sm:$0xff] }
 0x216   : > { %4000 = vmatprep.subr.bf16.mxu0 %v6200_v62  ;;  %4424 = vmatprep.subr.bf16.mxu1 %v6203_v63  ;;  %v344_v62 = vld [vmem:[#allocation2 + $0x58] sm:$0xff] }
 0x219   : > { %4001 = vmatpush1.bf16.msra.mxu0 %v6198_v58  ;;  %4425 = vmatpush1.bf16.msra.mxu1 %v6201_v60  ;;  %v345_v60 = vld [vmem:[#allocation2 + $0x60] sm:$0xff] }
 0x21a   : > { %4002 = vmatprep.subr.bf16.mxu0 %v6206_v0  ;;  %4426 = vmatprep.subr.bf16.mxu1 %v6209_v1  ;;  %v347_v0 = vld [vmem:[#allocation2 + $0x70] sm:$0xff] }
 0x21d   : > { %4003 = vmatpush1.bf16.msra.mxu0 %v6204_v3  ;;  %4427 = vmatpush1.bf16.msra.mxu1 %v6207_v5 }
 0x21e   : > { %4004 = vmatprep.subr.bf16.mxu0 %v6212_v6  ;;  %4428 = vmatprep.subr.bf16.mxu1 %v6215_v7  ;;  %v346_v7 = vld [vmem:[#allocation2 + $0x68] sm:$0xff] }
 0x221   : > { %4005 = vmatpush1.bf16.msra.mxu0 %v6210_v8  ;;  %4429 = vmatpush1.bf16.msra.mxu1 %v6213_v2  ;;  %v348_v8 = vld [vmem:[#allocation2 + $0x78] sm:$0xff] }
 0x222   : > { %4006 = vmatprep.subr.bf16.mxu0 %v6218_v4  ;;  %4430 = vmatprep.subr.bf16.mxu1 %v6221_v9 }
 0x225   : > { %4007 = vmatpush1.bf16.msra.mxu0 %v6216_v11  ;;  %4431 = vmatpush1.bf16.msra.mxu1 %v6219_v13 }
 0x226   : > { %4008 = vmatprep.subr.bf16.mxu0 %v6224_v14  ;;  %4432 = vmatprep.subr.bf16.mxu1 %v6227_v15 }
 0x229   : > { %4009 = vmatpush1.bf16.msra.mxu0 %v6222_v16  ;;  %4433 = vmatpush1.bf16.msra.mxu1 %v6225_v17 }
 0x22a   : > { %4010 = vmatprep.subr.bf16.mxu0 %v6230_v10  ;;  %4434 = vmatprep.subr.bf16.mxu1 %v6233_v12 }
 0x22d   : > { %4011 = vmatpush1.bf16.msra.mxu0 %v6228_v20  ;;  %4435 = vmatpush1.bf16.msra.mxu1 %v6231_v21 }
 0x22e   : > { %4012 = vmatprep.subr.bf16.mxu0 %v6236_v22  ;;  %4436 = vmatprep.subr.bf16.mxu1 %v6239_v23 }
 0x231   : > { %4013 = vmatpush1.bf16.msra.mxu0 %v6234_v18  ;;  %4437 = vmatpush1.bf16.msra.mxu1 %v6237_v19 }
 0x232   : > { %4014 = vmatprep.subr.bf16.mxu0 %v6242_v24  ;;  %4438 = vmatprep.subr.bf16.mxu1 %v6245_v25 }
 0x235   : > { %4015 = vmatpush1.bf16.msra.mxu0 %v6240_v26  ;;  %4439 = vmatpush1.bf16.msra.mxu1 %v6243_v29 }
 0x238   : > { %4017 = vmatmul.mubr.bf16.vlgmr.msra.gmra.mrb[0].mxu0 %v4786_v27  ;;  %4441 = vmatmul.mubr.bf16.vlgmr.msra.gmra.mrb[0].mxu1 %v4786_v27 }
 0x239   : > { %4026 = vmatprep.mubr.bf16.mxu0 %v4803_v28  ;;  %4450 = vmatprep.mubr.bf16.mxu1 %v4803_v28 }
 0x240   : > { %4027 = vmatmul.mubr.bf16.gmra.mrb[4].mxu0 %v4802_v32  ;;  %4451 = vmatmul.mubr.bf16.gmra.mrb[4].mxu1 %v4802_v32 }
 0x30b   : > { %v4018_v39 = vpop.f32.mrb[0].mxu0  ;;  %v4442_v40 = vpop.f32.mrb[0].mxu1 }
 0x30c   : > { %v4461_v43 = vadd.f32 %v4018_v39, %v333_v33  ;;  %v4463_v35 = vadd.f32 %v4442_v40, %v335_v34  ;;  %v4020_v36 = vpop.f32.mrb[1].mxu0  ;;  %v4444_v44 = vpop.f32.mrb[1].mxu1 }
 0x30d   : > { %v4462_v47 = vadd.f32 %v4020_v36, %v334_v37  ;;  %v4464_v48 = vadd.f32 %v4444_v44, %v336_v38  ;;  %v4022_v49 = vpop.f32.mrb[2].mxu0  ;;  %v4446_v50 = vpop.f32.mrb[2].mxu1 }
 0x30e   : > { %4477 = vst [vmem:[#allocation2] sm:$0xff] %v4461_v43  ;;  %4479 = vst [vmem:[#allocation2 + $0x10] sm:$0xff] %v4463_v35  ;;  %v4465_v51 = vadd.f32 %v4022_v49, %v337_v41  ;;  %v4467_v52 = vadd.f32 %v4446_v50, %v339_v42  ;;  %v4024_v53 = vpop.f32.mrb[3].mxu0  ;;  %v4448_v54 = vpop.f32.mrb[3].mxu1 }
 0x30f   : > { %4478 = vst [vmem:[#allocation2 + $0x8] sm:$0xff] %v4462_v47  ;;  %4480 = vst [vmem:[#allocation2 + $0x18] sm:$0xff] %v4464_v48  ;;  %v4466_v55 = vadd.f32 %v4024_v53, %v338_v45  ;;  %v4468_v56 = vadd.f32 %v4448_v54, %v340_v46 }
 0x310   : > { %4481 = vst [vmem:[#allocation2 + $0x20] sm:$0xff] %v4465_v51  ;;  %4483 = vst [vmem:[#allocation2 + $0x30] sm:$0xff] %v4467_v52 }
 0x311   : > { %4482 = vst [vmem:[#allocation2 + $0x28] sm:$0xff] %v4466_v55  ;;  %4484 = vst [vmem:[#allocation2 + $0x38] sm:$0xff] %v4468_v56 }
 0x313   : > { %v4028_v63 = vpop.f32.mrb[4].mxu0  ;;  %v4452_v58 = vpop.f32.mrb[4].mxu1  ;;  %4496 = sbr.rel (%p5316_p11) target bundleno = 829 (0x33d), region = 59 }
 0x314   : > { %v4469_v1 = vadd.f32 %v4028_v63, %v341_v57  ;;  %v4471_v3 = vadd.f32 %v4452_v58, %v343_v59  ;;  %v4030_v5 = vpop.f32.mrb[5].mxu0  ;;  %v4454_v6 = vpop.f32.mrb[5].mxu1 }
 0x315   : > { %v4470_v2 = vadd.f32 %v4030_v5, %v342_v61  ;;  %v4472_v4 = vadd.f32 %v4454_v6, %v344_v62  ;;  %v4032_v9 = vpop.f32.mrb[6].mxu0  ;;  %v4456_v11 = vpop.f32.mrb[6].mxu1  ;;  %v4497_v12 = vld [vmem:[#allocation2] sm:$0xff] (!%p5316_p11)  ;;  %v4499_v21 = vld [vmem:[#allocation2 + $0x10] sm:$0xff] (!%p5316_p11) }
 0x316   : > { %4485 = vst [vmem:[#allocation2 + $0x40] sm:$0xff] %v4469_v1  ;;  %4487 = vst [vmem:[#allocation2 + $0x50] sm:$0xff] %v4471_v3  ;;  %v4473_v13 = vadd.f32 %v4032_v9, %v345_v60  ;;  %v4475_v14 = vadd.f32 %v4456_v11, %v347_v0  ;;  %v4034_v15 = vpop.f32.mrb[7].mxu0  ;;  %v4458_v16 = vpop.f32.mrb[7].mxu1  ;;  %v4498_v20 = vld [vmem:[#allocation2 + $0x8] sm:$0xff] (!%p5316_p11)  ;;  %v4500_v22 = vld [vmem:[#allocation2 + $0x18] sm:$0xff] (!%p5316_p11)  ;;  %v4549_v19 = vmul.f32 (!%p5316_p11), %v4497_v12, %v4497_v12 }
 0x317   : > { %4486 = vst [vmem:[#allocation2 + $0x48] sm:$0xff] %v4470_v2  ;;  %4488 = vst [vmem:[#allocation2 + $0x58] sm:$0xff] %v4472_v4  ;;  %v4474_v17 = vadd.f32 %v4034_v15, %v346_v7  ;;  %v4476_v10 = vadd.f32 %v4458_v16, %v348_v8  ;;  %v4501_v23 = vld [vmem:[#allocation2 + $0x20] sm:$0xff] (!%p5316_p11)  ;;  %v4550_v24 = vmul.f32 (!%p5316_p11), %v4498_v20, %v4498_v20  ;;  %v4503_v26 = vld [vmem:[#allocation2 + $0x30] sm:$0xff] (!%p5316_p11) }
 0x318   : > { %4489 = vst [vmem:[#allocation2 + $0x60] sm:$0xff] %v4473_v13  ;;  %4491 = vst [vmem:[#allocation2 + $0x70] sm:$0xff] %v4475_v14  ;;  %v4502_v18 = vld [vmem:[#allocation2 + $0x28] sm:$0xff] (!%p5316_p11)  ;;  %v4551_v25 = vmul.f32 (!%p5316_p11), %v4499_v21, %v4499_v21  ;;  %v4504_v29 = vld [vmem:[#allocation2 + $0x38] sm:$0xff] (!%p5316_p11)  ;;  %v4513_v31 = vadd.f32 (!%p5316_p11), %v4501_v23, %v4497_v12  ;;  %v4552_v28 = vmul.f32 (!%p5316_p11), %v4500_v22, %v4500_v22 }
 0x319   : > { %4490 = vst [vmem:[#allocation2 + $0x68] sm:$0xff] %v4474_v17  ;;  %4492 = vst [vmem:[#allocation2 + $0x78] sm:$0xff] %v4476_v10  ;;  %v4522_v27 = vadd.f32 (!%p5316_p11), %v4502_v18, %v4498_v20  ;;  %v4553_v32 = vmul.f32 (!%p5316_p11), %v4501_v23, %v4501_v23  ;;  %v4531_v38 = vadd.f32 (!%p5316_p11), %v4503_v26, %v4499_v21 }
 0x31a   : > { %4629 = vst [vmem:[%s7104_s2] sm:$0xff] %v4497_v12  ;;  %4630 = vst [vmem:[%s7104_s2 + $0x8] sm:$0xff] %v4498_v20  ;;  %v4540_v39 = vadd.f32 %v4504_v29, %v4500_v22  ;;  %v4554_v40 = vmul.f32 %v4502_v18, %v4502_v18  ;;  %v4555_v41 = vmul.f32 %v4503_v26, %v4503_v26 }
 0x31b   : > { %4631 = vst [vmem:[%s7104_s2 + $0x10] sm:$0xff] %v4499_v21  ;;  %4632 = vst [vmem:[%s7104_s2 + $0x18] sm:$0xff] %v4500_v22  ;;  %v4556_v45 = vmul.f32 %v4504_v29, %v4504_v29  ;;  %v4565_v60 = vadd.f32 %v4553_v32, %v4549_v19 }
 0x31c   : > { %4633 = vst [vmem:[%s7104_s2 + $0x20] sm:$0xff] %v4501_v23  ;;  %4634 = vst [vmem:[%s7104_s2 + $0x28] sm:$0xff] %v4502_v18  ;;  %v4574_v3 = vadd.f32 %v4554_v40, %v4550_v24  ;;  %v4583_v5 = vadd.f32 %v4555_v41, %v4551_v25 }
 0x31d   : > { %v4505_v30 = vld [vmem:[#allocation2 + $0x40] sm:$0xff]  ;;  %v4507_v34 = vld [vmem:[#allocation2 + $0x50] sm:$0xff]  ;;  %4635 = vst [vmem:[%s7104_s2 + $0x30] sm:$0xff] %v4503_v26  ;;  %4636 = vst [vmem:[%s7104_s2 + $0x38] sm:$0xff] %v4504_v29  ;;  %v4592_v2 = vadd.f32 %v4556_v45, %v4552_v28 }
 0x31e   : > { %v4506_v33 = vld [vmem:[#allocation2 + $0x48] sm:$0xff]  ;;  %v4508_v37 = vld [vmem:[#allocation2 + $0x58] sm:$0xff]  ;;  %4637 = vst [vmem:[%s7104_s2 + $0x40] sm:$0xff] %v4505_v30  ;;  %v4514_v36 = vadd.f32 %v4513_v31, %v4505_v30  ;;  %v4557_v46 = vmul.f32 %v4505_v30, %v4505_v30  ;;  %4639 = vst [vmem:[%s7104_s2 + $0x50] sm:$0xff] %v4507_v34  ;;  %v4532_v48 = vadd.f32 %v4531_v38, %v4507_v34 }
 0x31f   : > { %v4509_v42 = vld [vmem:[#allocation2 + $0x60] sm:$0xff]  ;;  %v4511_v35 = vld [vmem:[#allocation2 + $0x70] sm:$0xff]  ;;  %v4523_v44 = vadd.f32 %v4522_v27, %v4506_v33  ;;  %4638 = vst [vmem:[%s7104_s2 + $0x48] sm:$0xff] %v4506_v33  ;;  %4640 = vst [vmem:[%s7104_s2 + $0x58] sm:$0xff] %v4508_v37  ;;  %v4541_v49 = vadd.f32 %v4540_v39, %v4508_v37  ;;  %v4558_v50 = vmul.f32 %v4506_v33, %v4506_v33  ;;  %v4615_v39 = vlaneseq }
 0x320   : > { %v4510_v43 = vld [vmem:[#allocation2 + $0x68] sm:$0xff]  ;;  %v4512_v47 = vld [vmem:[#allocation2 + $0x78] sm:$0xff]  ;;  %v4559_v51 = vmul.f32 %v4507_v34, %v4507_v34  ;;  %4641 = vst [vmem:[%s7104_s2 + $0x60] sm:$0xff] %v4509_v42  ;;  %4643 = vst [vmem:[%s7104_s2 + $0x70] sm:$0xff] %v4511_v35  ;;  %v4515_v52 = vadd.f32 %v4514_v36, %v4509_v42  ;;  %v4560_v54 = vmul.f32 %v4508_v37, %v4508_v37  ;;  %v6287_v37 = vmov 1983009808  }
 0x321   : > { %4642 = vst [vmem:[%s7104_s2 + $0x68] sm:$0xff] %v4510_v43  ;;  %v4524_v53 = vadd.f32 %v4523_v44, %v4510_v43  ;;  %v4561_v55 = vmul.f32 %v4509_v42, %v4509_v42  ;;  %4644 = vst [vmem:[%s7104_s2 + $0x78] sm:$0xff] %v4512_v47  ;;  %v4533_v56 = vadd.f32 %v4532_v48, %v4511_v35  ;;  %v4613_v38 = vunpack.c.l.s4 %v6287_v37 }
 0x322   : > { %v4542_v57 = vadd.f32 %v4541_v49, %v4512_v47  ;;  %v4562_v59 = vmul.f32 %v4510_v43, %v4510_v43  ;;  %v4563_v61 = vmul.f32 %v4511_v35, %v4511_v35  ;;  %v4516_v62 = vrot.slane %v4515_v52, 4 }
 0x323   : > { %v4525_v63 = vrot.slane %v4524_v53, 4  ;;  %v4564_v58 = vmul.f32 %v4512_v47, %v4512_v47  ;;  %v4534_v0 = vrot.slane %v4533_v56, 4  ;;  %v4566_v8 = vadd.f32 %v4565_v60, %v4557_v46 }
 0x324   : > { %v4543_v1 = vrot.slane %v4542_v57, 4  ;;  %v4517_v6 = vadd.f32 %v4516_v62, %v4515_v52  ;;  %v4575_v11 = vadd.f32 %v4574_v3, %v4558_v50  ;;  %v4584_v13 = vadd.f32 %v4583_v5, %v4559_v51 }
 0x325   : > { %v4526_v7 = vadd.f32 %v4525_v63, %v4524_v53  ;;  %v4535_v4 = vadd.f32 %v4534_v0, %v4533_v56  ;;  %v4567_v16 = vadd.f32 %v4566_v8, %v4561_v55  ;;  %v4593_v17 = vadd.f32 %v4592_v2, %v4560_v54 }
 0x326   : > { %v4544_v9 = vadd.f32 %v4543_v1, %v4542_v57  ;;  %v4518_v14 = vrot.slane %v4517_v6, 2  ;;  %v4576_v20 = vadd.f32 %v4575_v11, %v4562_v59  ;;  %v4585_v21 = vadd.f32 %v4584_v13, %v4563_v61 }
 0x327   : > { %v4527_v15 = vrot.slane %v4526_v7, 2  ;;  %v4536_v10 = vrot.slane %v4535_v4, 2  ;;  %v4568_v23 = vrot.slane %v4567_v16, 4  ;;  %v4594_v18 = vadd.f32 %v4593_v17, %v4564_v58 }
 0x328   : > { %v4545_v12 = vrot.slane %v4544_v9, 2  ;;  %v4519_v22 = vadd.f32 %v4518_v14, %v4517_v6  ;;  %v4577_v25 = vrot.slane %v4576_v20, 4  ;;  %v4586_v26 = vrot.slane %v4585_v21, 4 }
 0x329   : > { %v4528_v19 = vadd.f32 %v4527_v15, %v4526_v7  ;;  %v4537_v24 = vadd.f32 %v4536_v10, %v4535_v4  ;;  %v4569_v30 = vadd.f32 %v4568_v23, %v4567_v16  ;;  %v4595_v31 = vrot.slane %v4594_v18, 4 }
 0x32a   : > { %v4546_v29 = vadd.f32 %v4545_v12, %v4544_v9  ;;  %v4520_v27 = vrot.slane %v4519_v22, 1  ;;  %v4578_v28 = vadd.f32 %v4577_v25, %v4576_v20  ;;  %v4587_v32 = vadd.f32 %v4586_v26, %v4585_v21 }
 0x32b   : > { %v4570_v33 = vrot.slane %v4569_v30, 2  ;;  %v4596_v34 = vadd.f32 %v4595_v31, %v4594_v18  ;;  %v4529_v40 = vrot.slane %v4528_v19, 1  ;;  %v4538_v41 = vrot.slane %v4537_v24, 1 }
 0x32c   : > { %v4579_v42 = vrot.slane %v4578_v28, 2  ;;  %v4588_v43 = vrot.slane %v4587_v32, 2  ;;  %v4547_v35 = vrot.slane %v4546_v29, 1  ;;  %v4521_v45 = vadd.f32 %v4520_v27, %v4519_v22 }
 0x32d   : > { %v4571_v36 = vadd.f32 %v4570_v33, %v4569_v30  ;;  %v4597_v44 = vrot.slane %v4596_v34, 2  ;;  %v4614_v50 = vunpack.c.0.s8 %v4613_v38  ;;  %v4616_v51 = vshrl.u32 %v4615_v39, 7 }
 0x32e   : > { %v4580_v46 = vadd.f32 %v4579_v42, %v4578_v28  ;;  %v4589_v47 = vadd.f32 %v4588_v43, %v4587_v32  ;;  %v4530_v52 = vadd.f32 %v4529_v40, %v4528_v19  ;;  %v4539_v53 = vadd.f32 %v4538_v41, %v4537_v24 }
 0x32f   : > { %v4572_v48 = vrot.slane %v4571_v36, 1  ;;  %v4598_v49 = vadd.f32 %v4597_v44, %v4596_v34  ;;  %v4548_v56 = vadd.f32 %v4547_v35, %v4546_v29  ;;  %v4617_v60 = vsub.s32 %v4614_v50, %v4616_v51 }
 0x330   : > { %v4581_v54 = vrot.slane %v4580_v46, 1  ;;  %v4590_v55 = vrot.slane %v4589_v47, 1 }
 0x331   : > { %v4573_v57 = vadd.f32 %v4572_v48, %v4571_v36  ;;  %v4599_v59 = vrot.slane %v4598_v49, 1 }
 0x332   : > { %v4582_v61 = vadd.f32 %v4581_v54, %v4580_v46  ;;  %v4591_v62 = vadd.f32 %v4590_v55, %v4589_v47 }
 0x333   : > { %v4600_v63 = vadd.f32 %v4599_v59, %v4598_v49  ;;  %v4602_v58 = vsel %vm4601_vm0, %v4521_v45, %v4573_v57 }
 0x334   : > { %v4603_v0 = vsel %vm4601_vm0, %v4530_v52, %v4582_v61  ;;  %v4604_v1 = vsel %vm4601_vm0, %v4539_v53, %v4591_v62 }
 0x335   : > { %v4605_v3 = vsel %vm4601_vm0, %v4548_v56, %v4600_v63  ;;  %v4610_v5 = vcombine.low %v4602_v58, %v4603_v0 }
 0x336   : > { %v4611_v6 = vcombine.low %v4604_v1, %v4605_v3 }
 0x337   : > { %v4618_v7 = vrot.slane %v4610_v5, %v4617_v60 }
 0x338   : > { %v4625_v8 = vrot.slane %v4611_v6, %v4617_v60 }
 0x33a   : > { %v4626_v2 = vcombine.low %v4618_v7, %v4625_v8 }
 0x33c   : > { %4628 = vst [vmem:[%s7105_s3] sm:$0xff] %v4626_v2 }
 0x33d PF: > { %s14_s16 = sadd.s32 1, %s6284_s16   ;;  %s7106_s12 = smov %s6272_s13 }
 0x33e   : > { %p11_p12 = scmp.ge.s32.totalorder %s14_s16, 4   ;;  %s7107_s13 = smov %s6343_s20 }
 0x33f   : > { %s7108_s14 = smov %s6280_s15  ;;  %s7109_s15 = smov %s7111_s17 }
 0x340   :  { %13 = sbr.rel (!%p11_p12) target bundleno = 3 (0x3), region = 109 }

// kernel: _lambda_.15
= control target key start
LH: loop header
LB: loop body
LE: loop exit
PB: predicated region body
PF: predicated region fallthrough
CT: control target
= control target key end

     0   :  { %s2372_s9 = smov 0   ;;  %s2374_s10 = smov 0   ;;  %s2611_s0 = inlined_call_operand.vmem [shape: bf16[16,8192], index: 0, kind: input, shape index: {}]   ;;  %s2612_s1 = inlined_call_operand.vmem [shape: bf16[8192,128], index: 1, kind: input, shape index: {}]   ;;  %s2613_s2 = inlined_call_operand.vmem [shape: f32[16,128], index: 2, kind: output, shape index: {}]  }
   0x1   :  { %s2376_s11 = smov 0   ;;  %s2378_s12 = smov 0  }
   0x2   :  { %s2380_s13 = smov 0  }
   0x3 LB: > { %s21_s14 = sadd.s32 1, %s2350_s12  ;;  %p40_p1 = scmp.ne.s32.totalorder %s2342_s10, %s2338_s9  ;;  %s2354_s13 = sphi %s2380_s13, %s12_s13   ;;  %s2350_s12 = sphi %s2378_s12, %s2617_s12   ;;  %s2346_s11 = sphi %s2376_s11, %s2616_s11   ;;  %s2342_s10 = sphi %s2374_s10, %s2615_s10   ;;  %s2338_s9 = sphi %s2372_s9, %s2614_s9  }
   0x4   : > { %p22_p0 = scmp.ge.s32.totalorder %s21_s14, 4  ;;  %p41_p2 = scmp.eq.s32.totalorder %s2354_s13, 0 }
   0x5   : > { %s33_s16 = sadd.s32 1, %s2342_s10  ;;  %p1802_p5 = scmp.ge.s32.totalorder %s2354_s13, 4 }
   0x6   : > { %s2619_s14 = smov (%p22_p0, %s21_s14), 0  ;;  %p42_p3 = por %p41_p2, %p40_p1 }
   0x7   : > { %s29_s15 = ssub.s32 %s2350_s12, %s2619_s14  ;;  %118 = sbr.rel (%p1802_p5) target bundleno = 26 (0x1a), region = 16 }
   0x8   : > { %p31_p4 = scmp.eq.s32.totalorder %s29_s15, 0 }
   0xa   : > { %s2407_s17 = scalar_select %p31_p4, %s2342_s10, %s33_s16  }
   0xe   : > { %121 = sbr.rel (!%p42_p3) target bundleno = 26 (0x1a), region = 20  ;;  %s123_s18 = sand.u32 (%p42_p3), 1, %s2342_s10  }
   0xf   : > { %s1962_s19 = sshll.u32 (%p42_p3), %s2350_s12, 6  ;;  %s1803_s20 = sshll.u32 (%p42_p3), %s123_s18, 7 }
  0x10   : > { %s2415_s23 = scalar_lea.vmem (%p42_p3), %s2611_s0, %s1962_s19  ;;  %s125_s24 = scalar_lea.vmem (%p42_p3), [#allocation3], %s1803_s20 }
  0x11   : > { %v144_v0 = vld [vmem:[%s2415_s23] sm:$0xff] (%p42_p3)  ;;  %v146_v1 = vld [vmem:[%s2415_s23 + $0x8] sm:$0xff] (%p42_p3)  ;;  %v148_v2 = vld [vmem:[%s2415_s23 + $0x10] sm:$0xff] (%p42_p3) }
  0x12   : > { %145 = vst [vmem:[%s125_s24] sm:$0xff] (%p42_p3), %v144_v0  ;;  %147 = vst [vmem:[%s125_s24 + $0x8] sm:$0xff] (%p42_p3), %v146_v1  ;;  %v150_v3 = vld [vmem:[%s2415_s23 + $0x18] sm:$0xff] (%p42_p3)  ;;  %v152_v4 = vld [vmem:[%s2415_s23 + $0x20] sm:$0xff] (%p42_p3) }
  0x13   : > { %149 = vst [vmem:[%s125_s24 + $0x10] sm:$0xff] (%p42_p3), %v148_v2  ;;  %v154_v5 = vld [vmem:[%s2415_s23 + $0x28] sm:$0xff] (%p42_p3)  ;;  %151 = vst [vmem:[%s125_s24 + $0x18] sm:$0xff] (%p42_p3), %v150_v3  ;;  %v156_v6 = vld [vmem:[%s2415_s23 + $0x30] sm:$0xff] (%p42_p3) }
  0x14   : > { %153 = vst [vmem:[%s125_s24 + $0x20] sm:$0xff] (%p42_p3), %v152_v4  ;;  %155 = vst [vmem:[%s125_s24 + $0x28] sm:$0xff] (%p42_p3), %v154_v5  ;;  %v158_v7 = vld [vmem:[%s2415_s23 + $0x38] sm:$0xff] (%p42_p3)  ;;  %v160_v8 = vld [vmem:[%s2415_s23 + $0x100] sm:$0xff] (%p42_p3) }
  0x15   : > { %157 = vst [vmem:[%s125_s24 + $0x30] sm:$0xff] %v156_v6  ;;  %159 = vst [vmem:[%s125_s24 + $0x38] sm:$0xff] %v158_v7  ;;  %v162_v9 = vld [vmem:[%s2415_s23 + $0x108] sm:$0xff]  ;;  %v164_v10 = vld [vmem:[%s2415_s23 + $0x110] sm:$0xff] }
  0x16   : > { %161 = vst [vmem:[%s125_s24 + $0x40] sm:$0xff] %v160_v8  ;;  %v166_v11 = vld [vmem:[%s2415_s23 + $0x118] sm:$0xff]  ;;  %163 = vst [vmem:[%s125_s24 + $0x48] sm:$0xff] %v162_v9  ;;  %v168_v12 = vld [vmem:[%s2415_s23 + $0x120] sm:$0xff] }
  0x17   : > { %165 = vst [vmem:[%s125_s24 + $0x50] sm:$0xff] %v164_v10  ;;  %167 = vst [vmem:[%s125_s24 + $0x58] sm:$0xff] %v166_v11  ;;  %v170_v13 = vld [vmem:[%s2415_s23 + $0x128] sm:$0xff]  ;;  %v172_v14 = vld [vmem:[%s2415_s23 + $0x130] sm:$0xff] }
  0x18   : > { %169 = vst [vmem:[%s125_s24 + $0x60] sm:$0xff] %v168_v12  ;;  %171 = vst [vmem:[%s125_s24 + $0x68] sm:$0xff] %v170_v13  ;;  %v174_v15 = vld [vmem:[%s2415_s23 + $0x138] sm:$0xff] }
  0x19   : > { %173 = vst [vmem:[%s125_s24 + $0x70] sm:$0xff] %v172_v14  ;;  %175 = vst [vmem:[%s125_s24 + $0x78] sm:$0xff] %v174_v15 }
  0x1a PF: > { %p1806_p6 = scmp.ge.s32.totalorder %s2354_s13, 1  ;;  %p189_p7 = scmp.lt.s32.totalorder %s2354_s13, 5 }
  0x1c   : > { %p190_p8 = pnand %p1806_p6, %p189_p7 }
  0x1d   : > { %s196_s25 = sand.u32 (!%p190_p8), 1, %s2338_s9   ;;  %s1808_s26 = sshll.u32 (!%p190_p8), %s2346_s11, 8 }
  0x1e   : > { %193 = sbr.rel (%p190_p8) target bundleno = 432 (0x1b0), region = 47  ;;  %s1807_s27 = sshll.u32 (!%p190_p8), %s196_s25, 7 }
  0x1f   : > { %p225_p9 = scmp.lt.s32.totalorder (!%p190_p8), %s1808_s26, 1023  ;;  %s2442_s4 = scalar_lea.vmem (!%p190_p8), [#allocation3], %s1807_s27 }
  0x20   : > { %p1810_p10 = scmp.ne.s32.totalorder (!%p190_p8), %s2346_s11, 0 }
  0x25   : > { %s2621_s26 = smov (!%p225_p9, %s1808_s26), 1023  ;;  %240 = sbr.rel (%p1810_p10) target bundleno = 44 (0x2c), region = 55 }
  0x26   : > { %s1809_s28 = sshll.u32 %s2621_s26, 2  ;;  %v2356_v16 = vmov (!%p1810_p10), 0.0  }
  0x27   : > { %s2440_s3 = scalar_lea.vmem %s2612_s1, %s1809_s28  ;;  %241 = vst [vmem:[#allocation2] sm:$0xff] (!%p1810_p10), %v2356_v16  ;;  %242 = vst [vmem:[#allocation2 + $0x8] sm:$0xff] (!%p1810_p10), %v2356_v16 }
  0x2c PF: > { %v2180_v17 = vld [vmem:[%s2440_s3 + $0x40] sm:$0xff]   ;;  %v2184_v21 = vld [vmem:[%s2440_s3 + $0x48] sm:$0xff]   ;;  %v2188_v25 = vld [vmem:[%s2440_s3 + $0x50] sm:$0xff]   ;;  %p1955_p11 = scmp.ne.s32.totalorder %s2346_s11, 3 }
  0x2d   : > { %v2181_v18 = vld [vmem:[%s2440_s3 + $0xc0] sm:$0xff]   ;;  %1963 = vmatprep.subr.bf16.mxu0 %v2180_v17  ;;  %v2185_v22 = vld [vmem:[%s2440_s3 + $0xc8] sm:$0xff]   ;;  %v2189_v26 = vld [vmem:[%s2440_s3 + $0xd0] sm:$0xff]  }
  0x2e   : > { %v2182_v19 = vld [vmem:[%s2440_s3] sm:$0xff]   ;;  %1985 = vmatprep.subr.bf16.mxu1 %v2181_v18  ;;  %v2186_v23 = vld [vmem:[%s2440_s3 + $0x8] sm:$0xff]   ;;  %v2190_v27 = vld [vmem:[%s2440_s3 + $0x10] sm:$0xff]  }
  0x2f   : > { %v2183_v20 = vld [vmem:[%s2440_s3 + $0x80] sm:$0xff]   ;;  %1964 = vmatpush3.bf16.msra.mxu0 %v2182_v19  ;;  %v2187_v24 = vld [vmem:[%s2440_s3 + $0x88] sm:$0xff]   ;;  %v2191_v28 = vld [vmem:[%s2440_s3 + $0x90] sm:$0xff]  }
  0x30   : > { %1986 = vmatpush3.bf16.msra.mxu1 %v2183_v20  ;;  %1965 = vmatprep.subr.bf16.mxu0 %v2184_v21  ;;  %v2192_v29 = vld [vmem:[%s2440_s3 + $0x58] sm:$0xff]   ;;  %v2196_v33 = vld [vmem:[%s2440_s3 + $0x60] sm:$0xff]   ;;  %v2200_v37 = vld [vmem:[%s2440_s3 + $0x68] sm:$0xff]  }
  0x31   : > { %1987 = vmatprep.subr.bf16.mxu1 %v2185_v22  ;;  %v2193_v30 = vld [vmem:[%s2440_s3 + $0xd8] sm:$0xff]   ;;  %v2197_v34 = vld [vmem:[%s2440_s3 + $0xe0] sm:$0xff]   ;;  %v2201_v38 = vld [vmem:[%s2440_s3 + $0xe8] sm:$0xff]  }
  0x32   : > { %v2194_v31 = vld [vmem:[%s2440_s3 + $0x18] sm:$0xff]   ;;  %v2198_v35 = vld [vmem:[%s2440_s3 + $0x20] sm:$0xff]   ;;  %v2202_v39 = vld [vmem:[%s2440_s3 + $0x28] sm:$0xff]  }
  0x33   : > { %1966 = vmatpush3.bf16.msra.mxu0 %v2186_v23  ;;  %v2195_v32 = vld [vmem:[%s2440_s3 + $0x98] sm:$0xff]   ;;  %v2199_v36 = vld [vmem:[%s2440_s3 + $0xa0] sm:$0xff]   ;;  %v2203_v40 = vld [vmem:[%s2440_s3 + $0xa8] sm:$0xff]  }
  0x34   : > { %1988 = vmatpush3.bf16.msra.mxu1 %v2187_v24  ;;  %1967 = vmatprep.subr.bf16.mxu0 %v2188_v25  ;;  %v2204_v41 = vld [vmem:[%s2440_s3 + $0x70] sm:$0xff]   ;;  %v2208_v45 = vld [vmem:[%s2440_s3 + $0x78] sm:$0xff]   ;;  %v2212_v57 = vld [vmem:[%s2440_s3 + $0x140] sm:$0xff]  }
  0x35   : > { %1989 = vmatprep.subr.bf16.mxu1 %v2189_v26  ;;  %v2205_v42 = vld [vmem:[%s2440_s3 + $0xf0] sm:$0xff]   ;;  %v2209_v46 = vld [vmem:[%s2440_s3 + $0xf8] sm:$0xff]   ;;  %v2213_v58 = vld [vmem:[%s2440_s3 + $0x1c0] sm:$0xff]  }
  0x36   : > { %v2206_v43 = vld [vmem:[%s2440_s3 + $0x30] sm:$0xff]   ;;  %v2210_v47 = vld [vmem:[%s2440_s3 + $0x38] sm:$0xff]   ;;  %v2214_v59 = vld [vmem:[%s2440_s3 + $0x100] sm:$0xff]  }
  0x37   : > { %1968 = vmatpush3.bf16.msra.mxu0 %v2190_v27  ;;  %v2207_v44 = vld [vmem:[%s2440_s3 + $0xb0] sm:$0xff]   ;;  %v2211_v48 = vld [vmem:[%s2440_s3 + $0xb8] sm:$0xff]   ;;  %v2215_v60 = vld [vmem:[%s2440_s3 + $0x180] sm:$0xff]  }
  0x38   : > { %1990 = vmatpush3.bf16.msra.mxu1 %v2191_v28  ;;  %1969 = vmatprep.subr.bf16.mxu0 %v2192_v29  ;;  %v245_v49 = vld [vmem:[%s2442_s4] sm:$0xff]  ;;  %v246_v51 = vld [vmem:[%s2442_s4 + $0x8] sm:$0xff]  ;;  %v2216_v61 = vld [vmem:[%s2440_s3 + $0x148] sm:$0xff]  }
  0x39   : > { %1991 = vmatprep.subr.bf16.mxu1 %v2193_v30  ;;  %v253_v50 = vld [vmem:[%s2442_s4 + $0x40] sm:$0xff]  ;;  %v254_v54 = vld [vmem:[%s2442_s4 + $0x48] sm:$0xff]  ;;  %v2217_v62 = vld [vmem:[%s2440_s3 + $0x1c8] sm:$0xff]  }
  0x3a   : > { %v1811_v52 = vcombine.low %v245_v49, %v253_v50  ;;  %v1812_v53 = vcombine.high %v245_v49, %v253_v50  ;;  %v1813_v55 = vcombine.low %v246_v51, %v254_v54  ;;  %v1814_v56 = vcombine.high %v246_v51, %v254_v54  ;;  %v2218_v63 = vld [vmem:[%s2440_s3 + $0x108] sm:$0xff]   ;;  %v2220_v1 = vld [vmem:[%s2440_s3 + $0x150] sm:$0xff]   ;;  %v2224_v5 = vld [vmem:[%s2440_s3 + $0x158] sm:$0xff]  }
  0x3b   : > { %1970 = vmatpush3.bf16.msra.mxu0 %v2194_v31  ;;  %v2219_v0 = vld [vmem:[%s2440_s3 + $0x188] sm:$0xff]   ;;  %v2221_v2 = vld [vmem:[%s2440_s3 + $0x1d0] sm:$0xff]   ;;  %v2225_v6 = vld [vmem:[%s2440_s3 + $0x1d8] sm:$0xff]  }
  0x3c   : > { %1992 = vmatpush3.bf16.msra.mxu1 %v2195_v32  ;;  %1971 = vmatprep.subr.bf16.mxu0 %v2196_v33  ;;  %v2222_v3 = vld [vmem:[%s2440_s3 + $0x110] sm:$0xff]   ;;  %v2226_v7 = vld [vmem:[%s2440_s3 + $0x118] sm:$0xff]   ;;  %v2228_v9 = vld [vmem:[%s2440_s3 + $0x160] sm:$0xff]  }
  0x3d   : > { %1993 = vmatprep.subr.bf16.mxu1 %v2197_v34  ;;  %1397 = vmatprep.mubr.bf16.mxu0 %v1812_v53  ;;  %v2223_v4 = vld [vmem:[%s2440_s3 + $0x190] sm:$0xff]   ;;  %v2227_v8 = vld [vmem:[%s2440_s3 + $0x198] sm:$0xff]   ;;  %v2229_v10 = vld [vmem:[%s2440_s3 + $0x1e0] sm:$0xff]  }
  0x3e   : > { %1438 = vmatprep.mubr.bf16.mxu1 %v1814_v56  ;;  %v2230_v11 = vld [vmem:[%s2440_s3 + $0x120] sm:$0xff]   ;;  %v2232_v13 = vld [vmem:[%s2440_s3 + $0x168] sm:$0xff]   ;;  %v2236_v17 = vld [vmem:[%s2440_s3 + $0x170] sm:$0xff]  }
  0x3f   : > { %1972 = vmatpush3.bf16.msra.mxu0 %v2198_v35  ;;  %v2231_v12 = vld [vmem:[%s2440_s3 + $0x1a0] sm:$0xff]   ;;  %v2233_v14 = vld [vmem:[%s2440_s3 + $0x1e8] sm:$0xff]   ;;  %v2237_v18 = vld [vmem:[%s2440_s3 + $0x1f0] sm:$0xff]  }
  0x40   : > { %1994 = vmatpush3.bf16.msra.mxu1 %v2199_v36  ;;  %1973 = vmatprep.subr.bf16.mxu0 %v2200_v37  ;;  %v2234_v15 = vld [vmem:[%s2440_s3 + $0x128] sm:$0xff]   ;;  %v2238_v19 = vld [vmem:[%s2440_s3 + $0x130] sm:$0xff]   ;;  %v2240_v21 = vld [vmem:[%s2440_s3 + $0x178] sm:$0xff]  }
  0x41   : > { %1995 = vmatprep.subr.bf16.mxu1 %v2201_v38  ;;  %v2235_v16 = vld [vmem:[%s2440_s3 + $0x1a8] sm:$0xff]   ;;  %v2239_v20 = vld [vmem:[%s2440_s3 + $0x1b0] sm:$0xff]   ;;  %v2241_v22 = vld [vmem:[%s2440_s3 + $0x1f8] sm:$0xff]  }
  0x42   : > { %v2242_v23 = vld [vmem:[%s2440_s3 + $0x138] sm:$0xff]   ;;  %v247_v25 = vld [vmem:[%s2442_s4 + $0x10] sm:$0xff]  ;;  %v248_v29 = vld [vmem:[%s2442_s4 + $0x18] sm:$0xff] }
  0x43   : > { %1974 = vmatpush3.bf16.msra.mxu0 %v2202_v39  ;;  %v2243_v24 = vld [vmem:[%s2440_s3 + $0x1b8] sm:$0xff]   ;;  %v255_v26 = vld [vmem:[%s2442_s4 + $0x50] sm:$0xff]  ;;  %v256_v30 = vld [vmem:[%s2442_s4 + $0x58] sm:$0xff] }
  0x44   : > { %1996 = vmatpush3.bf16.msra.mxu1 %v2203_v40  ;;  %1975 = vmatprep.subr.bf16.mxu0 %v2204_v41  ;;  %v1815_v27 = vcombine.low %v247_v25, %v255_v26  ;;  %v1816_v28 = vcombine.high %v247_v25, %v255_v26  ;;  %v1817_v31 = vcombine.low %v248_v29, %v256_v30  ;;  %v2244_v33 = vld [vmem:[%s2440_s3 + $0x240] sm:$0xff]   ;;  %v2248_v37 = vld [vmem:[%s2440_s3 + $0x248] sm:$0xff]   ;;  %v2252_v41 = vld [vmem:[%s2440_s3 + $0x250] sm:$0xff]  }
  0x45   : > { %1997 = vmatprep.subr.bf16.mxu1 %v2205_v42  ;;  %v1818_v32 = vcombine.high %v248_v29, %v256_v30  ;;  %v2245_v34 = vld [vmem:[%s2440_s3 + $0x2c0] sm:$0xff]   ;;  %v2249_v38 = vld [vmem:[%s2440_s3 + $0x2c8] sm:$0xff]   ;;  %v2253_v42 = vld [vmem:[%s2440_s3 + $0x2d0] sm:$0xff]  }
  0x46   : > { %v2246_v35 = vld [vmem:[%s2440_s3 + $0x200] sm:$0xff]   ;;  %v2250_v39 = vld [vmem:[%s2440_s3 + $0x208] sm:$0xff]  }
  0x47   : > { %1976 = vmatpush3.bf16.msra.mxu0 %v2206_v43  ;;  %v2247_v36 = vld [vmem:[%s2440_s3 + $0x280] sm:$0xff]   ;;  %v2251_v40 = vld [vmem:[%s2440_s3 + $0x288] sm:$0xff]   ;;  %v2254_v43 = vld [vmem:[%s2440_s3 + $0x210] sm:$0xff]  }
  0x48   : > { %1998 = vmatpush3.bf16.msra.mxu1 %v2207_v44  ;;  %1977 = vmatprep.subr.bf16.mxu0 %v2208_v45  ;;  %v2255_v44 = vld [vmem:[%s2440_s3 + $0x290] sm:$0xff]   ;;  %v2256_v45 = vld [vmem:[%s2440_s3 + $0x258] sm:$0xff]   ;;  %v2260_v49 = vld [vmem:[%s2440_s3 + $0x260] sm:$0xff]  }
  0x49   : > { %1999 = vmatprep.subr.bf16.mxu1 %v2209_v46  ;;  %v2257_v46 = vld [vmem:[%s2440_s3 + $0x2d8] sm:$0xff]   ;;  %v2261_v50 = vld [vmem:[%s2440_s3 + $0x2e0] sm:$0xff]   ;;  %v2264_v53 = vld [vmem:[%s2440_s3 + $0x268] sm:$0xff]  }
  0x4a   : > { %v2262_v51 = vld [vmem:[%s2440_s3 + $0x220] sm:$0xff]   ;;  %v2265_v54 = vld [vmem:[%s2440_s3 + $0x2e8] sm:$0xff]  }
  0x4b   : > { %1978 = vmatpush3.bf16.msra.mxu0 %v2210_v47  ;;  %v2258_v47 = vld [vmem:[%s2440_s3 + $0x218] sm:$0xff]   ;;  %v2267_v56 = vld [vmem:[%s2440_s3 + $0x2a8] sm:$0xff]   ;;  %v2292_v25 = vld [vmem:[%s2440_s3 + $0x360] sm:$0xff]  }
  0x4c   : > { %2000 = vmatpush3.bf16.msra.mxu1 %v2211_v48  ;;  %2007 = vmatprep.subr.bf16.mxu0 %v2212_v57  ;;  %v2259_v48 = vld [vmem:[%s2440_s3 + $0x298] sm:$0xff]   ;;  %v2268_v57 = vld [vmem:[%s2440_s3 + $0x270] sm:$0xff]   ;;  %v2293_v26 = vld [vmem:[%s2440_s3 + $0x3e0] sm:$0xff]  }
  0x4d   : > { %2029 = vmatprep.subr.bf16.mxu1 %v2213_v58  ;;  %v2269_v58 = vld [vmem:[%s2440_s3 + $0x2f0] sm:$0xff]   ;;  %v2296_v29 = vld [vmem:[%s2440_s3 + $0x368] sm:$0xff]  }
  0x4e   : > { %1398 = vmatmul.mubr.bf16.vlgmr.msra.gmra.mrb[0].mxu0 %v1811_v52  ;;  %v2263_v52 = vld [vmem:[%s2440_s3 + $0x2a0] sm:$0xff]   ;;  %v2297_v30 = vld [vmem:[%s2440_s3 + $0x3e8] sm:$0xff]  }
  0x4f   : > { %1439 = vmatmul.mubr.bf16.vlgmr.msra.gmra.mrb[0].mxu1 %v1813_v55  ;;  %2008 = vmatpush3.bf16.msra.mxu0 %v2214_v59  ;;  %v2266_v55 = vld [vmem:[%s2440_s3 + $0x228] sm:$0xff]   ;;  %v2270_v59 = vld [vmem:[%s2440_s3 + $0x230] sm:$0xff]  }
  0x50   : > { %2030 = vmatpush3.bf16.msra.mxu1 %v2215_v60  ;;  %2009 = vmatprep.subr.bf16.mxu0 %v2216_v61  ;;  %v2271_v60 = vld [vmem:[%s2440_s3 + $0x2b0] sm:$0xff]   ;;  %v2272_v61 = vld [vmem:[%s2440_s3 + $0x278] sm:$0xff]  }
  0x51   : > { %2031 = vmatprep.subr.bf16.mxu1 %v2217_v62  ;;  %1479 = vmatprep.mubr.bf16.mxu0 %v1816_v28  ;;  %v2273_v62 = vld [vmem:[%s2440_s3 + $0x2f8] sm:$0xff]   ;;  %v2295_v28 = vld [vmem:[%s2440_s3 + $0x3a0] sm:$0xff]  }
  0x52   : > { %1520 = vmatprep.mubr.bf16.mxu1 %v1818_v32  ;;  %v2299_v32 = vld [vmem:[%s2440_s3 + $0x3a8] sm:$0xff]  }
  0x53   : > { %2010 = vmatpush3.bf16.msra.mxu0 %v2218_v63  ;;  %v2274_v63 = vld [vmem:[%s2440_s3 + $0x238] sm:$0xff]  }
  0x54   : > { %2032 = vmatpush3.bf16.msra.mxu1 %v2219_v0  ;;  %2011 = vmatprep.subr.bf16.mxu0 %v2220_v1  ;;  %v2275_v0 = vld [vmem:[%s2440_s3 + $0x2b8] sm:$0xff]   ;;  %v249_v1 = vld [vmem:[%s2442_s4 + $0x20] sm:$0xff] }
  0x55   : > { %2033 = vmatprep.subr.bf16.mxu1 %v2221_v2  ;;  %v257_v2 = vld [vmem:[%s2442_s4 + $0x60] sm:$0xff] }
  0x57   : > { %2012 = vmatpush3.bf16.msra.mxu0 %v2222_v3  ;;  %v250_v3 = vld [vmem:[%s2442_s4 + $0x28] sm:$0xff] }
  0x58   : > { %2034 = vmatpush3.bf16.msra.mxu1 %v2223_v4  ;;  %2013 = vmatprep.subr.bf16.mxu0 %v2224_v5  ;;  %v258_v4 = vld [vmem:[%s2442_s4 + $0x68] sm:$0xff]  ;;  %v1819_v5 = vcombine.low %v249_v1, %v257_v2 }
  0x59   : > { %2035 = vmatprep.subr.bf16.mxu1 %v2225_v6  ;;  %v1820_v6 = vcombine.high %v249_v1, %v257_v2 }
  0x5b   : > { %2014 = vmatpush3.bf16.msra.mxu0 %v2226_v7  ;;  %v1821_v7 = vcombine.low %v250_v3, %v258_v4 }
  0x5c   : > { %2036 = vmatpush3.bf16.msra.mxu1 %v2227_v8  ;;  %2015 = vmatprep.subr.bf16.mxu0 %v2228_v9  ;;  %v1822_v8 = vcombine.high %v250_v3, %v258_v4  ;;  %v2276_v9 = vld [vmem:[%s2440_s3 + $0x340] sm:$0xff]  }
  0x5d   : > { %2037 = vmatprep.subr.bf16.mxu1 %v2229_v10  ;;  %v2277_v10 = vld [vmem:[%s2440_s3 + $0x3c0] sm:$0xff]  }
  0x5f   : > { %2016 = vmatpush3.bf16.msra.mxu0 %v2230_v11  ;;  %v2278_v11 = vld [vmem:[%s2440_s3 + $0x300] sm:$0xff]  }
  0x60   : > { %2038 = vmatpush3.bf16.msra.mxu1 %v2231_v12  ;;  %2017 = vmatprep.subr.bf16.mxu0 %v2232_v13  ;;  %v2279_v12 = vld [vmem:[%s2440_s3 + $0x380] sm:$0xff]   ;;  %v2280_v13 = vld [vmem:[%s2440_s3 + $0x348] sm:$0xff]  }
  0x61   : > { %2039 = vmatprep.subr.bf16.mxu1 %v2233_v14  ;;  %v2281_v14 = vld [vmem:[%s2440_s3 + $0x3c8] sm:$0xff]  }
  0x63   : > { %2018 = vmatpush3.bf16.msra.mxu0 %v2234_v15  ;;  %v2282_v15 = vld [vmem:[%s2440_s3 + $0x308] sm:$0xff]  }
  0x64   : > { %2040 = vmatpush3.bf16.msra.mxu1 %v2235_v16  ;;  %2019 = vmatprep.subr.bf16.mxu0 %v2236_v17  ;;  %v2283_v16 = vld [vmem:[%s2440_s3 + $0x388] sm:$0xff]   ;;  %v2284_v17 = vld [vmem:[%s2440_s3 + $0x350] sm:$0xff]  }
  0x65   : > { %2041 = vmatprep.subr.bf16.mxu1 %v2237_v18  ;;  %v2285_v18 = vld [vmem:[%s2440_s3 + $0x3d0] sm:$0xff]  }
  0x67   : > { %2020 = vmatpush3.bf16.msra.mxu0 %v2238_v19  ;;  %v2286_v19 = vld [vmem:[%s2440_s3 + $0x310] sm:$0xff]  }
  0x68   : > { %2042 = vmatpush3.bf16.msra.mxu1 %v2239_v20  ;;  %2021 = vmatprep.subr.bf16.mxu0 %v2240_v21  ;;  %v2287_v20 = vld [vmem:[%s2440_s3 + $0x390] sm:$0xff]   ;;  %v2288_v21 = vld [vmem:[%s2440_s3 + $0x358] sm:$0xff]  }
  0x69   : > { %2043 = vmatprep.subr.bf16.mxu1 %v2241_v22  ;;  %v2289_v22 = vld [vmem:[%s2440_s3 + $0x3d8] sm:$0xff]  }
  0x6b   : > { %2022 = vmatpush3.bf16.msra.mxu0 %v2242_v23  ;;  %v2290_v23 = vld [vmem:[%s2440_s3 + $0x318] sm:$0xff]  }
  0x6c   : > { %2044 = vmatpush3.bf16.msra.mxu1 %v2243_v24  ;;  %2051 = vmatprep.subr.bf16.mxu0 %v2244_v33  ;;  %v2291_v24 = vld [vmem:[%s2440_s3 + $0x398] sm:$0xff]   ;;  %v2300_v33 = vld [vmem:[%s2440_s3 + $0x370] sm:$0xff]  }
  0x6d   : > { %2073 = vmatprep.subr.bf16.mxu1 %v2245_v34  ;;  %v2301_v34 = vld [vmem:[%s2440_s3 + $0x3f0] sm:$0xff]  }
  0x6e   : > { %1480 = vmatmul.mubr.bf16.vlgmr.msra.gmra.mrb[4].mxu0 %v1815_v27  ;;  %v2294_v27 = vld [vmem:[%s2440_s3 + $0x320] sm:$0xff]  }
  0x6f   : > { %1521 = vmatmul.mubr.bf16.vlgmr.msra.gmra.mrb[4].mxu1 %v1817_v31  ;;  %2052 = vmatpush3.bf16.msra.mxu0 %v2246_v35  ;;  %v2298_v31 = vld [vmem:[%s2440_s3 + $0x328] sm:$0xff]   ;;  %v2302_v35 = vld [vmem:[%s2440_s3 + $0x330] sm:$0xff]  }
  0x70   : > { %2074 = vmatpush3.bf16.msra.mxu1 %v2247_v36  ;;  %2053 = vmatprep.subr.bf16.mxu0 %v2248_v37  ;;  %v2303_v36 = vld [vmem:[%s2440_s3 + $0x3b0] sm:$0xff]   ;;  %v2304_v37 = vld [vmem:[%s2440_s3 + $0x378] sm:$0xff]  }
  0x71   : > { %2075 = vmatprep.subr.bf16.mxu1 %v2249_v38  ;;  %1561 = vmatprep.mubr.bf16.mxu0 %v1820_v6  ;;  %v2305_v38 = vld [vmem:[%s2440_s3 + $0x3f8] sm:$0xff]  }
  0x72   : > { %1602 = vmatprep.mubr.bf16.mxu1 %v1822_v8 }
  0x73   : > { %2054 = vmatpush3.bf16.msra.mxu0 %v2250_v39  ;;  %v2306_v39 = vld [vmem:[%s2440_s3 + $0x338] sm:$0xff]  }
  0x74   : > { %2076 = vmatpush3.bf16.msra.mxu1 %v2251_v40  ;;  %2055 = vmatprep.subr.bf16.mxu0 %v2252_v41  ;;  %v2307_v40 = vld [vmem:[%s2440_s3 + $0x3b8] sm:$0xff]   ;;  %v251_v41 = vld [vmem:[%s2442_s4 + $0x30] sm:$0xff] }
  0x75   : > { %2077 = vmatprep.subr.bf16.mxu1 %v2253_v42  ;;  %v259_v42 = vld [vmem:[%s2442_s4 + $0x70] sm:$0xff] }
  0x77   : > { %2056 = vmatpush3.bf16.msra.mxu0 %v2254_v43  ;;  %v252_v43 = vld [vmem:[%s2442_s4 + $0x38] sm:$0xff] }
  0x78   : > { %2078 = vmatpush3.bf16.msra.mxu1 %v2255_v44  ;;  %2057 = vmatprep.subr.bf16.mxu0 %v2256_v45  ;;  %v1823_v44 = vcombine.low %v251_v41, %v259_v42  ;;  %v1824_v45 = vcombine.high %v251_v41, %v259_v42 }
  0x79   : > { %2079 = vmatprep.subr.bf16.mxu1 %v2257_v46  ;;  %v260_v46 = vld [vmem:[%s2442_s4 + $0x78] sm:$0xff] }
  0x7b   : > { %2058 = vmatpush3.bf16.msra.mxu0 %v2258_v47  ;;  %v1825_v47 = vcombine.low %v252_v43, %v260_v46 }
  0x7c   : > { %2080 = vmatpush3.bf16.msra.mxu1 %v2259_v48  ;;  %2059 = vmatprep.subr.bf16.mxu0 %v2260_v49  ;;  %v1826_v48 = vcombine.high %v252_v43, %v260_v46  ;;  %v243_v43 = vld [vmem:[#allocation2] sm:$0xff] }
  0x7d   : > { %2081 = vmatprep.subr.bf16.mxu1 %v2261_v50 }
  0x7f   : > { %2060 = vmatpush3.bf16.msra.mxu0 %v2262_v51 }
  0x80   : > { %2082 = vmatpush3.bf16.msra.mxu1 %v2263_v52  ;;  %2061 = vmatprep.subr.bf16.mxu0 %v2264_v53 }
  0x81   : > { %2083 = vmatprep.subr.bf16.mxu1 %v2265_v54 }
  0x83   : > { %2062 = vmatpush3.bf16.msra.mxu0 %v2266_v55 }
  0x84   : > { %2084 = vmatpush3.bf16.msra.mxu1 %v2267_v56  ;;  %2063 = vmatprep.subr.bf16.mxu0 %v2268_v57 }
  0x85   : > { %2085 = vmatprep.subr.bf16.mxu1 %v2269_v58 }
  0x87   : > { %2064 = vmatpush3.bf16.msra.mxu0 %v2270_v59 }
  0x88   : > { %2086 = vmatpush3.bf16.msra.mxu1 %v2271_v60  ;;  %2065 = vmatprep.subr.bf16.mxu0 %v2272_v61 }
  0x89   : > { %2087 = vmatprep.subr.bf16.mxu1 %v2273_v62 }
  0x8b   : > { %2066 = vmatpush3.bf16.msra.mxu0 %v2274_v63 }
  0x8c   : > { %2088 = vmatpush3.bf16.msra.mxu1 %v2275_v0  ;;  %2095 = vmatprep.subr.bf16.mxu0 %v2276_v9 }
  0x8d   : > { %2117 = vmatprep.subr.bf16.mxu1 %v2277_v10 }
  0x8e   : > { %1562 = vmatmul.mubr.bf16.vlgmr.msra.gmra.mrb[8].mxu0 %v1819_v5 }
  0x8f   : > { %1603 = vmatmul.mubr.bf16.vlgmr.msra.gmra.mrb[8].mxu1 %v1821_v7  ;;  %2096 = vmatpush3.bf16.msra.mxu0 %v2278_v11 }
  0x90   : > { %2118 = vmatpush3.bf16.msra.mxu1 %v2279_v12  ;;  %2097 = vmatprep.subr.bf16.mxu0 %v2280_v13 }
  0x91   : > { %2119 = vmatprep.subr.bf16.mxu1 %v2281_v14  ;;  %1643 = vmatprep.mubr.bf16.mxu0 %v1824_v45 }
  0x92   : > { %1684 = vmatprep.mubr.bf16.mxu1 %v1826_v48 }
  0x93   : > { %2098 = vmatpush3.bf16.msra.mxu0 %v2282_v15 }
  0x94   : > { %2120 = vmatpush3.bf16.msra.mxu1 %v2283_v16  ;;  %2099 = vmatprep.subr.bf16.mxu0 %v2284_v17 }
  0x95   : > { %2121 = vmatprep.subr.bf16.mxu1 %v2285_v18 }
  0x97   : > { %2100 = vmatpush3.bf16.msra.mxu0 %v2286_v19 }
  0x98   : > { %2122 = vmatpush3.bf16.msra.mxu1 %v2287_v20  ;;  %2101 = vmatprep.subr.bf16.mxu0 %v2288_v21 }
  0x99   : > { %2123 = vmatprep.subr.bf16.mxu1 %v2289_v22 }
  0x9b   : > { %2102 = vmatpush3.bf16.msra.mxu0 %v2290_v23 }
  0x9c   : > { %2124 = vmatpush3.bf16.msra.mxu1 %v2291_v24  ;;  %2103 = vmatprep.subr.bf16.mxu0 %v2292_v25 }
  0x9d   : > { %2125 = vmatprep.subr.bf16.mxu1 %v2293_v26 }
  0x9f   : > { %2104 = vmatpush3.bf16.msra.mxu0 %v2294_v27 }
  0xa0   : > { %2126 = vmatpush3.bf16.msra.mxu1 %v2295_v28  ;;  %2105 = vmatprep.subr.bf16.mxu0 %v2296_v29 }
  0xa1   : > { %2127 = vmatprep.subr.bf16.mxu1 %v2297_v30 }
  0xa3   : > { %2106 = vmatpush3.bf16.msra.mxu0 %v2298_v31 }
  0xa4   : > { %2128 = vmatpush3.bf16.msra.mxu1 %v2299_v32  ;;  %2107 = vmatprep.subr.bf16.mxu0 %v2300_v33 }
  0xa5   : > { %2129 = vmatprep.subr.bf16.mxu1 %v2301_v34 }
  0xa7   : > { %2108 = vmatpush3.bf16.msra.mxu0 %v2302_v35 }
  0xa8   : > { %2130 = vmatpush3.bf16.msra.mxu1 %v2303_v36  ;;  %2109 = vmatprep.subr.bf16.mxu0 %v2304_v37 }
  0xa9   : > { %2131 = vmatprep.subr.bf16.mxu1 %v2305_v38 }
  0xab   : > { %2110 = vmatpush3.bf16.msra.mxu0 %v2306_v39 }
  0xac   : > { %2132 = vmatpush3.bf16.msra.mxu1 %v2307_v40 }
  0xae   : > { %1644 = vmatmul.mubr.bf16.vlgmr.msra.gmra.mrb[12].mxu0 %v1823_v44 }
  0xaf   : > { %1685 = vmatmul.mubr.bf16.vlgmr.msra.gmra.mrb[12].mxu1 %v1825_v47  ;;  %v244_v47 = vld [vmem:[#allocation2 + $0x8] sm:$0xff] }
 0x121   : > { %v1979_v49 = vpop.f32.mrb[0].mxu0 }
 0x122   : > { %v2001_v50 = vpop.f32.mrb[0].mxu1  ;;  %v1980_v51 = vpop.f32.mrb[1].mxu0 }
 0x123   : > { %v1981_v52 = vadd.f32 %v1980_v51, %v1979_v49  ;;  %v2002_v53 = vpop.f32.mrb[1].mxu1  ;;  %v1982_v54 = vpop.f32.mrb[2].mxu0 }
 0x124   : > { %v2003_v55 = vadd.f32 %v2002_v53, %v2001_v50  ;;  %v2004_v56 = vpop.f32.mrb[2].mxu1  ;;  %v1983_v57 = vpop.f32.mrb[3].mxu0 }
 0x125   : > { %v1984_v58 = vadd.f32 %v1983_v57, %v1982_v54  ;;  %v2005_v59 = vpop.f32.mrb[3].mxu1 }
 0x126   : > { %v1441_v60 = vadd.f32 %v2003_v55, %v1981_v52  ;;  %v2006_v61 = vadd.f32 %v2005_v59, %v2004_v56 }
 0x128   : > { %v1444_v62 = vadd.f32 %v2006_v61, %v1984_v58 }
 0x141   : > { %v2023_v63 = vpop.f32.mrb[4].mxu0 }
 0x142   : > { %v2045_v0 = vpop.f32.mrb[4].mxu1  ;;  %v2024_v1 = vpop.f32.mrb[5].mxu0 }
 0x143   : > { %v2025_v2 = vadd.f32 %v2024_v1, %v2023_v63  ;;  %v2046_v3 = vpop.f32.mrb[5].mxu1  ;;  %v2026_v4 = vpop.f32.mrb[6].mxu0 }
 0x144   : > { %v2047_v5 = vadd.f32 %v2046_v3, %v2045_v0  ;;  %v2048_v6 = vpop.f32.mrb[6].mxu1  ;;  %v2027_v7 = vpop.f32.mrb[7].mxu0 }
 0x145   : > { %v1482_v8 = vadd.f32 %v2025_v2, %v1441_v60  ;;  %v2028_v9 = vadd.f32 %v2027_v7, %v2026_v4  ;;  %v2049_v10 = vpop.f32.mrb[7].mxu1 }
 0x146   : > { %v2050_v11 = vadd.f32 %v2049_v10, %v2048_v6 }
 0x147   : > { %v1523_v12 = vadd.f32 %v2047_v5, %v1482_v8  ;;  %v1485_v13 = vadd.f32 %v2028_v9, %v1444_v62 }
 0x149   : > { %v1526_v14 = vadd.f32 %v2050_v11, %v1485_v13 }
 0x161   : > { %v2067_v15 = vpop.f32.mrb[8].mxu0 }
 0x162   : > { %v2089_v16 = vpop.f32.mrb[8].mxu1  ;;  %v2068_v17 = vpop.f32.mrb[9].mxu0 }
 0x163   : > { %v2090_v18 = vpop.f32.mrb[9].mxu1  ;;  %v2069_v19 = vadd.f32 %v2068_v17, %v2067_v15  ;;  %v2070_v21 = vpop.f32.mrb[10].mxu0 }
 0x164   : > { %v2091_v20 = vadd.f32 %v2090_v18, %v2089_v16  ;;  %v2092_v22 = vpop.f32.mrb[10].mxu1  ;;  %v2071_v23 = vpop.f32.mrb[11].mxu0 }
 0x165   : > { %v2093_v24 = vpop.f32.mrb[11].mxu1  ;;  %v1564_v25 = vadd.f32 %v2069_v19, %v1523_v12  ;;  %v2072_v26 = vadd.f32 %v2071_v23, %v2070_v21 }
 0x166   : > { %v2094_v27 = vadd.f32 %v2093_v24, %v2092_v22 }
 0x167   : > { %v1605_v28 = vadd.f32 %v2091_v20, %v1564_v25  ;;  %v1567_v29 = vadd.f32 %v2072_v26, %v1526_v14 }
 0x169   : > { %v1608_v30 = vadd.f32 %v2094_v27, %v1567_v29 }
 0x181   : > { %v2111_v31 = vpop.f32.mrb[12].mxu0 }
 0x182   : > { %v2133_v32 = vpop.f32.mrb[12].mxu1  ;;  %v2112_v33 = vpop.f32.mrb[13].mxu0 }
 0x183   : > { %v2113_v34 = vadd.f32 %v2112_v33, %v2111_v31  ;;  %v2134_v35 = vpop.f32.mrb[13].mxu1  ;;  %v2114_v36 = vpop.f32.mrb[14].mxu0 }
 0x184   : > { %v2135_v37 = vadd.f32 %v2134_v35, %v2133_v32  ;;  %v2136_v38 = vpop.f32.mrb[14].mxu1  ;;  %v2115_v39 = vpop.f32.mrb[15].mxu0 }
 0x185   : > { %v1646_v40 = vadd.f32 %v2113_v34, %v1605_v28  ;;  %v2116_v41 = vadd.f32 %v2115_v39, %v2114_v36  ;;  %v2137_v42 = vpop.f32.mrb[15].mxu1 }
 0x186   : > { %v2138_v44 = vadd.f32 %v2137_v42, %v2136_v38 }
 0x187   : > { %v1687_v45 = vadd.f32 %v2135_v37, %v1646_v40  ;;  %v1649_v46 = vadd.f32 %v2116_v41, %v1608_v30  ;;  %1700 = sbr.rel (%p1955_p11) target bundleno = 432 (0x1b0), region = 59 }
 0x189   : > { %v1693_v48 = vadd.f32 %v1687_v45, %v243_v43  ;;  %v1690_v49 = vadd.f32 %v2138_v44, %v1649_v46 }
 0x18b   : > { %1695 = vst [vmem:[#allocation2] sm:$0xff] %v1693_v48  ;;  %v1694_v50 = vadd.f32 %v1690_v49, %v244_v47 }
 0x18d   : > { %1696 = vst [vmem:[#allocation2 + $0x8] sm:$0xff] %v1694_v50 }
 0x192   : > { %v1701_v51 = vld [vmem:[#allocation2] sm:$0xff] }
 0x193   : > { %v1956_v53 = vmul.f32 -1.442695, %v1701_v51 }
 0x194   : > { %v1702_v52 = vld [vmem:[#allocation2 + $0x8] sm:$0xff] }
 0x195   : > { %v1957_v54 = vmul.f32 -1.442695, %v1702_v52  ;;  %2308 = vpow2.f32 %v1956_v53 }
 0x197   : > { %2310 = vpow2.f32 %v1957_v54 }
 0x19f   : > { %v2309_v55 = vpop.eup %2308 }
 0x1a0   : > { %v1709_v57 = vadd.f32 1.0, %v2309_v55 }
 0x1a1   : > { %v2311_v56 = vpop.eup %2310 }
 0x1a2   : > { %v1710_v58 = vadd.f32 1.0, %v2311_v56  ;;  %2312 = vrcp.f32 %v1709_v57 }
 0x1a4   : > { %2314 = vrcp.f32 %v1710_v58 }
 0x1ac   : > { %v2313_v59 = vpop.eup %2312 }
 0x1ad   : > { %1715 = vst [vmem:[%s2613_s2] sm:$0xff] %v2313_v59 }
 0x1ae   : > { %v2315_v60 = vpop.eup %2314 }
 0x1af   : > { %1716 = vst [vmem:[%s2613_s2 + $0x8] sm:$0xff] %v2315_v60 }
 0x1b0 PF: > { %s12_s13 = sadd.s32 1, %s2354_s13   ;;  %s2614_s9 = smov %s2342_s10 }
 0x1b1   : > { %p9_p12 = scmp.ge.s32.totalorder %s12_s13, 6   ;;  %s2615_s10 = smov %s2407_s17 }
 0x1b2   : > { %s2616_s11 = smov %s2350_s12  ;;  %s2617_s12 = smov %s2619_s14 }
 0x1b3   :  { %11 = sbr.rel (!%p9_p12) target bundleno = 3 (0x3), region = 97 }

</bundles_post_ra>
